<compile_context>
chip_gen: v7x
topology: tpu7x:2x2x1
jax: 0.10.0
libtpu: 0.0.40
codegen_flags: <defaults>
</compile_context>

<pallas_src>
import jax
import jax.numpy as jnp
from jax.experimental import pallas as pl
from jax.experimental.pallas import tpu as pltpu  # noqa: F401  (TPU backend)

# ----------------------------- configuration --------------------------------
OBS = 8            # observed sequence length (input_data.size(0))
NUM_PRED = 12      # `num` prediction steps
N_PEDS = 4         # number of pedestrians (batch of the sequence)
N_PAD = 8          # pedestrian axis padded to one full vreg sublane group
EMB_IN = 32        # args['embedded_input']
EMB_OMAP = 32      # args['embedding_occupancy_map']
EMB_TOT = EMB_IN + EMB_OMAP          # 64
GRID_SIZE = 4      # args['grid_size']
G2 = GRID_SIZE * GRID_SIZE
HIDDEN = 32        # args['hidden_size']
MAX_DIST = 2.0     # args['max_dist']
N_NEIGH = 3        # synthetic neighbor count
USE_SPEEDS = True  # args['use_speeds']
OUT_PAD = 8        # output layer (5) padded to 8 lanes


# --------------------------- in-kernel helpers --------------------------------
def _spatial_embed(xy, ws, bs):
    """relu(Linear(2 -> EMB_IN)); in_features == 2 so expand on the VPU."""
    return jnp.maximum(xy[:, 0:1] * ws[0:1, :] + xy[:, 1:2] * ws[1:2, :] + bs, 0.0)


def _gate_nonlin(gates):
    """Full-vreg gate nonlinearity. Gate columns are pre-permuted (i,f,o,g):
    sigmoid on lanes [0,3H), tanh on lanes [3H,4H) via one where-select."""
    H = HIDDEN
    lane = jax.lax.broadcasted_iota(jnp.int32, gates.shape, 1)
    act = jnp.where(lane < 3 * H, jax.nn.sigmoid(gates), jnp.tanh(gates))
    i_g = act[:, 0:H]
    f_g = act[:, H:2 * H]
    o_g = act[:, 2 * H:3 * H]
    g_g = act[:, 3 * H:4 * H]
    return i_g, f_g, o_g, g_g


# ------------------------------ fused kernel ----------------------------------
def olstm_kernel(xy_ref, g_ref, nbr_ref, h0_ref, c0_ref, fp_ref,
                 ws_ref, bs_ref, wo_ref, bo_ref,
                 wstk_ref, b_ref, wout_ref, bout_ref,
                 results_ref, points_ref):
    H = HIDDEN
    N = N_PAD

    ws, bs = ws_ref[...], bs_ref[...]
    wo, bo = wo_ref[...], bo_ref[...]
    wstk = wstk_ref[...]                     # (EMB_TOT + H, 4H) stacked [w_ih ; w_hh]
    wih = wstk[0:EMB_TOT, :]
    whh = wstk[EMB_TOT:EMB_TOT + H, :]
    b = b_ref[...]                           # (1, 4H) folded b_ih + b_hh (permuted)
    wout, bout = wout_ref[...], bout_ref[...]

    # -------- encoder: all OBS embeddings + gate projections in one matmul ----
    e_s_all = _spatial_embed(xy_ref[...], ws, bs)                         # (OBS*N, E)
    e_o_all = jnp.maximum(
        jnp.dot(g_ref[...], wo, preferred_element_type=jnp.float32) + bo, 0.0)
    emb_all = jnp.concatenate([e_s_all, e_o_all], axis=1)                 # (OBS*N, 64)
    gx_all = jnp.dot(emb_all, wih, preferred_element_type=jnp.float32) + b  # (OBS*N, 4H)

    h = h0_ref[...]
    c = c0_ref[...]
    for t in range(OBS - 1):                 # 7 serial encoder steps (unrolled)
        gates = gx_all[t * N:(t + 1) * N, :] + jnp.dot(
            h, whh, preferred_element_type=jnp.float32)
        i_g, f_g, o_g, g_g = _gate_nonlin(gates)
        c = f_g * c + i_g * g_g
        h = o_g * jnp.tanh(c)

    emb = emb_all[(OBS - 1) * N:OBS * N, :]  # 'last' input embedding (N, 64)
    pos = fp_ref[...]                        # position tracker (N, 2)

    lane_g2 = jax.lax.broadcasted_iota(jnp.int32, (N, G2), 1)
    col_out = jax.lax.broadcasted_iota(jnp.int32, (N, OUT_PAD), 1)

    res_steps = []
    pts_steps = []

    # -------- decode: NUM_PRED fully unrolled steps, state stays in vregs -----
    for step in range(NUM_PRED):
        # one fused (N, 96) @ (96, 4H) matmul: gates = [emb, h] @ [w_ih ; w_hh] + b
        act_in = jnp.concatenate([emb, h], axis=1)                        # (N, 96)
        gates = jnp.dot(act_in, wstk, preferred_element_type=jnp.float32) + b
        i_g, f_g, o_g, g_g = _gate_nonlin(gates)
        c = f_g * c + i_g * g_g
        h = o_g * jnp.tanh(c)

        # output Linear(H -> 5, lane-padded to 8) + get_coef:
        # [mux, muy, exp(sx), exp(sy), tanh(rho)]
        o = jnp.dot(h, wout, preferred_element_type=jnp.float32) + bout   # (N, 8)
        res = jnp.where(col_out < 2, o,
                        jnp.where(col_out < 4, jnp.exp(o), jnp.tanh(o)))
        res_steps.append(res)

        # TODO(synk): sample_gaussian_2d is a host-side numpy RNG sampler in the
        # reference; the deterministic mean (mux, muy) is used as the speed.
        speed = res[:, 0:2]
        if USE_SPEEDS:
            pts = speed + pos
            pos = pts
        else:
            pts = speed
        pts_steps.append(pts)

        # occupancy map of this step's neighbors around the predicted points.
        # TODO(synk): `get_grid` is an external helper not defined in the module;
        # deterministic binary occupancy construction matching its interface.
        nbr = nbr_ref[step * N:(step + 1) * N, :]        # (N, 2*NB): [x0..x2, y0..y2]
        relx = nbr[:, 0:N_NEIGH] - pts[:, 0:1]           # (N, NB)
        rely = nbr[:, N_NEIGH:2 * N_NEIGH] - pts[:, 1:2]
        within = jnp.logical_and(jnp.abs(relx) < MAX_DIST,
                                 jnp.abs(rely) < MAX_DIST)
        cx = jnp.clip(jnp.floor((relx + MAX_DIST) / (2.0 * MAX_DIST) * GRID_SIZE)
                      .astype(jnp.int32), 0, GRID_SIZE - 1)
        cy = jnp.clip(jnp.floor((rely + MAX_DIST) / (2.0 * MAX_DIST) * GRID_SIZE)
                      .astype(jnp.int32), 0, GRID_SIZE - 1)
        flat = cx * GRID_SIZE + cy                       # (N, NB)
        occ = jnp.zeros((N, G2), jnp.float32)
        for m in range(N_NEIGH):   # tiny one-hot scatter; rel/cell math vectorized above
            hit = jnp.logical_and(lane_g2 == flat[:, m:m + 1], within[:, m:m + 1])
            occ = occ + hit.astype(jnp.float32)
        occ = jnp.minimum(occ, 1.0)

        # next step's input embeddings (gate projection is fused above)
        e_s = _spatial_embed(speed, ws, bs)
        e_o = jnp.maximum(
            jnp.dot(occ, wo, preferred_element_type=jnp.float32) + bo, 0.0)
        emb = jnp.concatenate([e_s, e_o], axis=1)

    # single write-back of all steps (no per-step narrow masked stores)
    results_ref[...] = jnp.concatenate(res_steps, axis=0)   # (NUM_PRED*N, OUT_PAD)
    points_ref[...] = jnp.concatenate(pts_steps, axis=0)    # (NUM_PRED*N, 2)


# ------------------------------ wrapper ---------------------------------------
def olstm_forward(kparams, input_data, grids, neighbors, first_positions, h0, c0):
    T, N, _ = input_data.shape
    pad_n = N_PAD - N

    # observed xy (selector = [2, 3]) and occupancy grids, ped axis padded to 8
    xy = jnp.pad(input_data[:, :, 2:4], ((0, 0), (0, pad_n), (0, 0)))
    xy = xy.reshape(OBS * N_PAD, 2)
    g = jnp.pad(grids, ((0, 0), (0, pad_n), (0, 0))).reshape(OBS * N_PAD, G2)

    # decode-phase neighbors: (NUM_PRED, N, NB, 2) -> de-interleaved (x..., y...)
    nbr = jnp.transpose(neighbors[:, OBS:OBS + NUM_PRED], (1, 0, 2, 3))
    nbr = jnp.concatenate([nbr[..., 0], nbr[..., 1]], axis=-1)       # (P, N, 2*NB)
    nbr = jnp.pad(nbr, ((0, 0), (0, pad_n), (0, 0)))
    nbr = nbr.reshape(NUM_PRED * N_PAD, 2 * N_NEIGH)

    h0p = jnp.pad(h0, ((0, pad_n), (0, 0)))
    c0p = jnp.pad(c0, ((0, pad_n), (0, 0)))
    fpp = jnp.pad(first_positions, ((0, pad_n), (0, 0)))

    # single kernel invocation: no grid, full arrays resident in VMEM.
    res2d, pts2d = pl.pallas_call(
        olstm_kernel,
        out_shape=[
            jax.ShapeDtypeStruct((NUM_PRED * N_PAD, OUT_PAD), jnp.float32),
            jax.ShapeDtypeStruct((NUM_PRED * N_PAD, 2), jnp.float32),
        ],
    )(xy, g, nbr, h0p, c0p, fpp,
      kparams["ws_t"], kparams["bs"], kparams["wo_t"], kparams["bo"],
      kparams["w_stack"], kparams["b_lstm"], kparams["wout_t"], kparams["bout"])

    results = res2d.reshape(NUM_PRED, N_PAD, OUT_PAD)[:, :N, :5]
    points = pts2d.reshape(NUM_PRED, N_PAD, 2)[:, :N, :]
    return results, points


# ------------------------- parameter construction -----------------------------
def init_params(key):
    """Synthetic parameters in PyTorch layout (nn.Linear / nn.LSTM defaults)."""
    ks = jax.random.split(key, 10)

    def unif(k, shape, fan_in):
        bound = 1.0 / jnp.sqrt(jnp.float32(fan_in))
        return jax.random.uniform(k, shape, jnp.float32, -bound, bound)

    H = HIDDEN
    return {
        "emb_s_w": unif(ks[0], (EMB_IN, 2), 2),          # embedding_spatial.weight
        "emb_s_b": unif(ks[1], (EMB_IN,), 2),
        "emb_o_w": unif(ks[2], (EMB_OMAP, G2), G2),      # embedding_o_map.weight
        "emb_o_b": unif(ks[3], (EMB_OMAP,), G2),
        "w_ih": unif(ks[4], (4 * H, EMB_TOT), H),        # lstm.weight_ih_l0 (i,f,g,o)
        "w_hh": unif(ks[5], (4 * H, H), H),              # lstm.weight_hh_l0
        "b_ih": unif(ks[6], (4 * H,), H),
        "b_hh": unif(ks[7], (4 * H,), H),
        "out_w": unif(ks[8], (5, H), H),                 # output.weight
        "out_b": unif(ks[9], (5,), H),
    }


def prepare_params(p):
    """Transpose, permute gates (i,f,g,o)->(i,f,o,g), fold biases, stack weights."""
    H = HIDDEN
    perm = jnp.concatenate([jnp.arange(0, 2 * H),        # i, f
                            jnp.arange(3 * H, 4 * H),    # o
                            jnp.arange(2 * H, 3 * H)])   # g
    wih_t = p["w_ih"].T[:, perm]                          # (EMB_TOT, 4H)
    whh_t = p["w_hh"].T[:, perm]                          # (H, 4H)
    b = (p["b_ih"] + p["b_hh"])[perm]                     # (4H,)
    wout_t = jnp.pad(p["out_w"].T, ((0, 0), (0, OUT_PAD - 5)))   # (H, 8)
    bout = jnp.pad(p["out_b"], ((0, OUT_PAD - 5),))
    return {
        "ws_t": p["emb_s_w"].T,                           # (2, E)
        "bs": p["emb_s_b"].reshape(1, -1),
        "wo_t": p["emb_o_w"].T,                           # (G2, EO)
        "bo": p["emb_o_b"].reshape(1, -1),
        "w_stack": jnp.concatenate([wih_t, whh_t], 0),    # (EMB_TOT + H, 4H)
        "b_lstm": b.reshape(1, -1),                       # (1, 4H)
        "wout_t": wout_t,                                 # (H, 8)
        "bout": bout.reshape(1, -1),                      # (1, 8)
    }


# --------------------------------- main ---------------------------------------
if __name__ == "__main__":
    key = jax.random.PRNGKey(0)
    kp, kx, kg, kn, kf, kh, kc = jax.random.split(key, 7)

    kparams = prepare_params(init_params(kp))
    input_data = jax.random.normal(kx, (OBS, N_PEDS, 4), jnp.float32)
    grids = (jax.random.uniform(kg, (OBS, N_PEDS, G2)) > 0.5).astype(jnp.float32)
    neighbors = jax.random.normal(kn, (N_PEDS, OBS + NUM_PRED, N_NEIGH, 2),
                                  jnp.float32) * 1.5
    first_positions = jax.random.normal(kf, (N_PEDS, 2), jnp.float32)
    # module draws torch.randn initial hidden; made deterministic with fixed keys
    h0 = jax.random.normal(kh, (N_PEDS, HIDDEN), jnp.float32)
    c0 = jax.random.normal(kc, (N_PEDS, HIDDEN), jnp.float32)

    fwd = jax.jit(olstm_forward)
    results, points = fwd(kparams, input_data, grids, neighbors,
                          first_positions, h0, c0)
    jax.block_until_ready((results, points))

    assert results.shape == (NUM_PRED, N_PEDS, 5), results.shape
    assert points.shape == (NUM_PRED, N_PEDS, 2), points.shape
    assert bool(jnp.all(jnp.isfinite(results))) and bool(jnp.all(jnp.isfinite(points)))
    print("KERNEL_OK")
</pallas_src>

<mosaic_0001>
module attributes {stable_mosaic.version = 11 : i64} {
  func.func @olstm_kernel(%arg0: memref<64x2xf32, #tpu.memory_space<vmem>>, %arg1: memref<64x16xf32, #tpu.memory_space<vmem>>, %arg2: memref<96x6xf32, #tpu.memory_space<vmem>>, %arg3: memref<8x32xf32, #tpu.memory_space<vmem>>, %arg4: memref<8x32xf32, #tpu.memory_space<vmem>>, %arg5: memref<8x2xf32, #tpu.memory_space<vmem>>, %arg6: memref<2x32xf32, #tpu.memory_space<vmem>>, %arg7: memref<1x32xf32, #tpu.memory_space<vmem>>, %arg8: memref<16x32xf32, #tpu.memory_space<vmem>>, %arg9: memref<1x32xf32, #tpu.memory_space<vmem>>, %arg10: memref<96x128xf32, #tpu.memory_space<vmem>>, %arg11: memref<1x128xf32, #tpu.memory_space<vmem>>, %arg12: memref<32x8xf32, #tpu.memory_space<vmem>>, %arg13: memref<1x8xf32, #tpu.memory_space<vmem>>, %arg14: memref<96x8xf32, #tpu.memory_space<vmem>>, %arg15: memref<96x2xf32, #tpu.memory_space<vmem>>) attributes {dimension_semantics = [], scalar_prefetch = 0 : i64, scratch_operands = 0 : i64, tpu.core_type = #tpu.core_type<tc>} {
    %c0 = arith.constant 0 : index
    %c0_0 = arith.constant 0 : index
    %0 = vector.load %arg6[%c0, %c0_0] : memref<2x32xf32, #tpu.memory_space<vmem>>, vector<2x32xf32>
    %c0_1 = arith.constant 0 : index
    %c0_2 = arith.constant 0 : index
    %1 = vector.load %arg7[%c0_1, %c0_2] : memref<1x32xf32, #tpu.memory_space<vmem>>, vector<1x32xf32>
    %c0_3 = arith.constant 0 : index
    %c0_4 = arith.constant 0 : index
    %2 = vector.load %arg8[%c0_3, %c0_4] : memref<16x32xf32, #tpu.memory_space<vmem>>, vector<16x32xf32>
    %c0_5 = arith.constant 0 : index
    %c0_6 = arith.constant 0 : index
    %3 = vector.load %arg9[%c0_5, %c0_6] : memref<1x32xf32, #tpu.memory_space<vmem>>, vector<1x32xf32>
    %c0_7 = arith.constant 0 : index
    %c0_8 = arith.constant 0 : index
    %4 = vector.load %arg10[%c0_7, %c0_8] : memref<96x128xf32, #tpu.memory_space<vmem>>, vector<96x128xf32>
    %5 = vector.extract_strided_slice %4 {offsets = [0, 0], sizes = [64, 128], strides = [1, 1]} : vector<96x128xf32> to vector<64x128xf32>
    %6 = vector.extract_strided_slice %4 {offsets = [64, 0], sizes = [32, 128], strides = [1, 1]} : vector<96x128xf32> to vector<32x128xf32>
    %c0_9 = arith.constant 0 : index
    %c0_10 = arith.constant 0 : index
    %7 = vector.load %arg11[%c0_9, %c0_10] : memref<1x128xf32, #tpu.memory_space<vmem>>, vector<1x128xf32>
    %c0_11 = arith.constant 0 : index
    %c0_12 = arith.constant 0 : index
    %8 = vector.load %arg12[%c0_11, %c0_12] : memref<32x8xf32, #tpu.memory_space<vmem>>, vector<32x8xf32>
    %c0_13 = arith.constant 0 : index
    %c0_14 = arith.constant 0 : index
    %9 = vector.load %arg13[%c0_13, %c0_14] : memref<1x8xf32, #tpu.memory_space<vmem>>, vector<1x8xf32>
    %c0_15 = arith.constant 0 : index
    %c0_16 = arith.constant 0 : index
    %10 = vector.load %arg0[%c0_15, %c0_16] : memref<64x2xf32, #tpu.memory_space<vmem>>, vector<64x2xf32>
    %11 = vector.extract_strided_slice %10 {offsets = [0, 0], sizes = [64, 1], strides = [1, 1]} : vector<64x2xf32> to vector<64x1xf32>
    %12 = vector.extract_strided_slice %0 {offsets = [0, 0], sizes = [1, 32], strides = [1, 1]} : vector<2x32xf32> to vector<1x32xf32>
    %13 = vector.broadcast %11 : vector<64x1xf32> to vector<64x32xf32>
    %14 = vector.broadcast %12 : vector<1x32xf32> to vector<64x32xf32>
    %15 = arith.mulf %13, %14 : vector<64x32xf32>
    %16 = vector.extract_strided_slice %10 {offsets = [0, 1], sizes = [64, 1], strides = [1, 1]} : vector<64x2xf32> to vector<64x1xf32>
    %17 = vector.extract_strided_slice %0 {offsets = [1, 0], sizes = [1, 32], strides = [1, 1]} : vector<2x32xf32> to vector<1x32xf32>
    %18 = vector.broadcast %16 : vector<64x1xf32> to vector<64x32xf32>
    %19 = vector.broadcast %17 : vector<1x32xf32> to vector<64x32xf32>
    %20 = arith.mulf %18, %19 : vector<64x32xf32>
    %21 = arith.addf %15, %20 : vector<64x32xf32>
    %22 = vector.broadcast %1 : vector<1x32xf32> to vector<64x32xf32>
    %23 = arith.addf %21, %22 : vector<64x32xf32>
    %cst = arith.constant 0.000000e+00 : f32
    %24 = vector.broadcast %cst : f32 to vector<64x32xf32>
    %25 = arith.maximumf %23, %24 : vector<64x32xf32>
    %c0_17 = arith.constant 0 : index
    %c0_18 = arith.constant 0 : index
    %26 = vector.load %arg1[%c0_17, %c0_18] : memref<64x16xf32, #tpu.memory_space<vmem>>, vector<64x16xf32>
    %cst_19 = arith.constant dense<0.000000e+00> : vector<64x32xf32>
    %27 = tpu.matmul %26, %2, %cst_19 {dimension_numbers = #tpu.dot_dimension_numbers<[1], [0], [0], [1], [0, 0, 1, 1], [], []>} : vector<64x16xf32>, vector<16x32xf32>, vector<64x32xf32> -> vector<64x32xf32>
    %28 = vector.broadcast %3 : vector<1x32xf32> to vector<64x32xf32>
    %29 = arith.addf %27, %28 : vector<64x32xf32>
    %cst_20 = arith.constant 0.000000e+00 : f32
    %30 = vector.broadcast %cst_20 : f32 to vector<64x32xf32>
    %31 = arith.maximumf %29, %30 : vector<64x32xf32>
    %32 = tpu.concatenate %25, %31 in 1 : vector<64x32xf32>, vector<64x32xf32> -> vector<64x64xf32>
    %cst_21 = arith.constant dense<0.000000e+00> : vector<64x128xf32>
    %33 = tpu.matmul %32, %5, %cst_21 {dimension_numbers = #tpu.dot_dimension_numbers<[1], [0], [0], [1], [0, 0, 1, 1], [], []>} : vector<64x64xf32>, vector<64x128xf32>, vector<64x128xf32> -> vector<64x128xf32>
    %34 = vector.broadcast %7 : vector<1x128xf32> to vector<64x128xf32>
    %35 = arith.addf %33, %34 : vector<64x128xf32>
    %c0_22 = arith.constant 0 : index
    %c0_23 = arith.constant 0 : index
    %36 = vector.load %arg3[%c0_22, %c0_23] : memref<8x32xf32, #tpu.memory_space<vmem>>, vector<8x32xf32>
    %c0_24 = arith.constant 0 : index
    %c0_25 = arith.constant 0 : index
    %37 = vector.load %arg4[%c0_24, %c0_25] : memref<8x32xf32, #tpu.memory_space<vmem>>, vector<8x32xf32>
    %38 = vector.extract_strided_slice %35 {offsets = [0, 0], sizes = [8, 128], strides = [1, 1]} : vector<64x128xf32> to vector<8x128xf32>
    %cst_26 = arith.constant dense<0.000000e+00> : vector<8x128xf32>
    %39 = tpu.matmul %36, %6, %cst_26 {dimension_numbers = #tpu.dot_dimension_numbers<[1], [0], [0], [1], [0, 0, 1, 1], [], []>} : vector<8x32xf32>, vector<32x128xf32>, vector<8x128xf32> -> vector<8x128xf32>
    %40 = arith.addf %38, %39 : vector<8x128xf32>
    %41 = tpu.iota {dimensions = array<i32: 1>} : vector<8x128xi32>
    %c96_i32 = arith.constant 96 : i32
    %42 = vector.broadcast %c96_i32 : i32 to vector<8x128xi32>
    %43 = arith.cmpi slt, %41, %42 : vector<8x128xi32>
    %44 = arith.negf %40 : vector<8x128xf32>
    %45 = math.exp %44 : vector<8x128xf32>
    %cst_27 = arith.constant 1.000000e+00 : f32
    %46 = vector.broadcast %cst_27 : f32 to vector<8x128xf32>
    %47 = arith.addf %46, %45 : vector<8x128xf32>
    %48 = arith.divf %46, %47 : vector<8x128xf32>
    %49 = math.tanh %40 : vector<8x128xf32>
    %50 = arith.select %43, %48, %49 : vector<8x128xi1>, vector<8x128xf32>
    %51 = vector.extract_strided_slice %50 {offsets = [0, 0], sizes = [8, 32], strides = [1, 1]} : vector<8x128xf32> to vector<8x32xf32>
    %52 = vector.extract_strided_slice %50 {offsets = [0, 32], sizes = [8, 32], strides = [1, 1]} : vector<8x128xf32> to vector<8x32xf32>
    %53 = vector.extract_strided_slice %50 {offsets = [0, 64], sizes = [8, 32], strides = [1, 1]} : vector<8x128xf32> to vector<8x32xf32>
    %54 = vector.extract_strided_slice %50 {offsets = [0, 96], sizes = [8, 32], strides = [1, 1]} : vector<8x128xf32> to vector<8x32xf32>
    %55 = arith.mulf %52, %37 : vector<8x32xf32>
    %56 = arith.mulf %51, %54 : vector<8x32xf32>
    %57 = arith.addf %55, %56 : vector<8x32xf32>
    %58 = math.tanh %57 : vector<8x32xf32>
    %59 = arith.mulf %53, %58 : vector<8x32xf32>
    %60 = vector.extract_strided_slice %35 {offsets = [8, 0], sizes = [8, 128], strides = [1, 1]} : vector<64x128xf32> to vector<8x128xf32>
    %cst_28 = arith.constant dense<0.000000e+00> : vector<8x128xf32>
    %61 = tpu.matmul %59, %6, %cst_28 {dimension_numbers = #tpu.dot_dimension_numbers<[1], [0], [0], [1], [0, 0, 1, 1], [], []>} : vector<8x32xf32>, vector<32x128xf32>, vector<8x128xf32> -> vector<8x128xf32>
    %62 = arith.addf %60, %61 : vector<8x128xf32>
    %63 = tpu.iota {dimensions = array<i32: 1>} : vector<8x128xi32>
    %c96_i32_29 = arith.constant 96 : i32
    %64 = vector.broadcast %c96_i32_29 : i32 to vector<8x128xi32>
    %65 = arith.cmpi slt, %63, %64 : vector<8x128xi32>
    %66 = arith.negf %62 : vector<8x128xf32>
    %67 = math.exp %66 : vector<8x128xf32>
    %cst_30 = arith.constant 1.000000e+00 : f32
    %68 = vector.broadcast %cst_30 : f32 to vector<8x128xf32>
    %69 = arith.addf %68, %67 : vector<8x128xf32>
    %70 = arith.divf %68, %69 : vector<8x128xf32>
    %71 = math.tanh %62 : vector<8x128xf32>
    %72 = arith.select %65, %70, %71 : vector<8x128xi1>, vector<8x128xf32>
    %73 = vector.extract_strided_slice %72 {offsets = [0, 0], sizes = [8, 32], strides = [1, 1]} : vector<8x128xf32> to vector<8x32xf32>
    %74 = vector.extract_strided_slice %72 {offsets = [0, 32], sizes = [8, 32], strides = [1, 1]} : vector<8x128xf32> to vector<8x32xf32>
    %75 = vector.extract_strided_slice %72 {offsets = [0, 64], sizes = [8, 32], strides = [1, 1]} : vector<8x128xf32> to vector<8x32xf32>
    %76 = vector.extract_strided_slice %72 {offsets = [0, 96], sizes = [8, 32], strides = [1, 1]} : vector<8x128xf32> to vector<8x32xf32>
    %77 = arith.mulf %74, %57 : vector<8x32xf32>
    %78 = arith.mulf %73, %76 : vector<8x32xf32>
    %79 = arith.addf %77, %78 : vector<8x32xf32>
    %80 = math.tanh %79 : vector<8x32xf32>
    %81 = arith.mulf %75, %80 : vector<8x32xf32>
    %82 = vector.extract_strided_slice %35 {offsets = [16, 0], sizes = [8, 128], strides = [1, 1]} : vector<64x128xf32> to vector<8x128xf32>
    %cst_31 = arith.constant dense<0.000000e+00> : vector<8x128xf32>
    %83 = tpu.matmul %81, %6, %cst_31 {dimension_numbers = #tpu.dot_dimension_numbers<[1], [0], [0], [1], [0, 0, 1, 1], [], []>} : vector<8x32xf32>, vector<32x128xf32>, vector<8x128xf32> -> vector<8x128xf32>
    %84 = arith.addf %82, %83 : vector<8x128xf32>
    %85 = tpu.iota {dimensions = array<i32: 1>} : vector<8x128xi32>
    %c96_i32_32 = arith.constant 96 : i32
    %86 = vector.broadcast %c96_i32_32 : i32 to vector<8x128xi32>
    %87 = arith.cmpi slt, %85, %86 : vector<8x128xi32>
    %88 = arith.negf %84 : vector<8x128xf32>
    %89 = math.exp %88 : vector<8x128xf32>
    %cst_33 = arith.constant 1.000000e+00 : f32
    %90 = vector.broadcast %cst_33 : f32 to vector<8x128xf32>
    %91 = arith.addf %90, %89 : vector<8x128xf32>
    %92 = arith.divf %90, %91 : vector<8x128xf32>
    %93 = math.tanh %84 : vector<8x128xf32>
    %94 = arith.select %87, %92, %93 : vector<8x128xi1>, vector<8x128xf32>
    %95 = vector.extract_strided_slice %94 {offsets = [0, 0], sizes = [8, 32], strides = [1, 1]} : vector<8x128xf32> to vector<8x32xf32>
    %96 = vector.extract_strided_slice %94 {offsets = [0, 32], sizes = [8, 32], strides = [1, 1]} : vector<8x128xf32> to vector<8x32xf32>
    %97 = vector.extract_strided_slice %94 {offsets = [0, 64], sizes = [8, 32], strides = [1, 1]} : vector<8x128xf32> to vector<8x32xf32>
    %98 = vector.extract_strided_slice %94 {offsets = [0, 96], sizes = [8, 32], strides = [1, 1]} : vector<8x128xf32> to vector<8x32xf32>
    %99 = arith.mulf %96, %79 : vector<8x32xf32>
    %100 = arith.mulf %95, %98 : vector<8x32xf32>
    %101 = arith.addf %99, %100 : vector<8x32xf32>
    %102 = math.tanh %101 : vector<8x32xf32>
    %103 = arith.mulf %97, %102 : vector<8x32xf32>
    %104 = vector.extract_strided_slice %35 {offsets = [24, 0], sizes = [8, 128], strides = [1, 1]} : vector<64x128xf32> to vector<8x128xf32>
    %cst_34 = arith.constant dense<0.000000e+00> : vector<8x128xf32>
    %105 = tpu.matmul %103, %6, %cst_34 {dimension_numbers = #tpu.dot_dimension_numbers<[1], [0], [0], [1], [0, 0, 1, 1], [], []>} : vector<8x32xf32>, vector<32x128xf32>, vector<8x128xf32> -> vector<8x128xf32>
    %106 = arith.addf %104, %105 : vector<8x128xf32>
    %107 = tpu.iota {dimensions = array<i32: 1>} : vector<8x128xi32>
    %c96_i32_35 = arith.constant 96 : i32
    %108 = vector.broadcast %c96_i32_35 : i32 to vector<8x128xi32>
    %109 = arith.cmpi slt, %107, %108 : vector<8x128xi32>
    %110 = arith.negf %106 : vector<8x128xf32>
    %111 = math.exp %110 : vector<8x128xf32>
    %cst_36 = arith.constant 1.000000e+00 : f32
    %112 = vector.broadcast %cst_36 : f32 to vector<8x128xf32>
    %113 = arith.addf %112, %111 : vector<8x128xf32>
    %114 = arith.divf %112, %113 : vector<8x128xf32>
    %115 = math.tanh %106 : vector<8x128xf32>
    %116 = arith.select %109, %114, %115 : vector<8x128xi1>, vector<8x128xf32>
    %117 = vector.extract_strided_slice %116 {offsets = [0, 0], sizes = [8, 32], strides = [1, 1]} : vector<8x128xf32> to vector<8x32xf32>
    %118 = vector.extract_strided_slice %116 {offsets = [0, 32], sizes = [8, 32], strides = [1, 1]} : vector<8x128xf32> to vector<8x32xf32>
    %119 = vector.extract_strided_slice %116 {offsets = [0, 64], sizes = [8, 32], strides = [1, 1]} : vector<8x128xf32> to vector<8x32xf32>
    %120 = vector.extract_strided_slice %116 {offsets = [0, 96], sizes = [8, 32], strides = [1, 1]} : vector<8x128xf32> to vector<8x32xf32>
    %121 = arith.mulf %118, %101 : vector<8x32xf32>
    %122 = arith.mulf %117, %120 : vector<8x32xf32>
    %123 = arith.addf %121, %122 : vector<8x32xf32>
    %124 = math.tanh %123 : vector<8x32xf32>
    %125 = arith.mulf %119, %124 : vector<8x32xf32>
    %126 = vector.extract_strided_slice %35 {offsets = [32, 0], sizes = [8, 128], strides = [1, 1]} : vector<64x128xf32> to vector<8x128xf32>
    %cst_37 = arith.constant dense<0.000000e+00> : vector<8x128xf32>
    %127 = tpu.matmul %125, %6, %cst_37 {dimension_numbers = #tpu.dot_dimension_numbers<[1], [0], [0], [1], [0, 0, 1, 1], [], []>} : vector<8x32xf32>, vector<32x128xf32>, vector<8x128xf32> -> vector<8x128xf32>
    %128 = arith.addf %126, %127 : vector<8x128xf32>
    %129 = tpu.iota {dimensions = array<i32: 1>} : vector<8x128xi32>
    %c96_i32_38 = arith.constant 96 : i32
    %130 = vector.broadcast %c96_i32_38 : i32 to vector<8x128xi32>
    %131 = arith.cmpi slt, %129, %130 : vector<8x128xi32>
    %132 = arith.negf %128 : vector<8x128xf32>
    %133 = math.exp %132 : vector<8x128xf32>
    %cst_39 = arith.constant 1.000000e+00 : f32
    %134 = vector.broadcast %cst_39 : f32 to vector<8x128xf32>
    %135 = arith.addf %134, %133 : vector<8x128xf32>
    %136 = arith.divf %134, %135 : vector<8x128xf32>
    %137 = math.tanh %128 : vector<8x128xf32>
    %138 = arith.select %131, %136, %137 : vector<8x128xi1>, vector<8x128xf32>
    %139 = vector.extract_strided_slice %138 {offsets = [0, 0], sizes = [8, 32], strides = [1, 1]} : vector<8x128xf32> to vector<8x32xf32>
    %140 = vector.extract_strided_slice %138 {offsets = [0, 32], sizes = [8, 32], strides = [1, 1]} : vector<8x128xf32> to vector<8x32xf32>
    %141 = vector.extract_strided_slice %138 {offsets = [0, 64], sizes = [8, 32], strides = [1, 1]} : vector<8x128xf32> to vector<8x32xf32>
    %142 = vector.extract_strided_slice %138 {offsets = [0, 96], sizes = [8, 32], strides = [1, 1]} : vector<8x128xf32> to vector<8x32xf32>
    %143 = arith.mulf %140, %123 : vector<8x32xf32>
    %144 = arith.mulf %139, %142 : vector<8x32xf32>
    %145 = arith.addf %143, %144 : vector<8x32xf32>
    %146 = math.tanh %145 : vector<8x32xf32>
    %147 = arith.mulf %141, %146 : vector<8x32xf32>
    %148 = vector.extract_strided_slice %35 {offsets = [40, 0], sizes = [8, 128], strides = [1, 1]} : vector<64x128xf32> to vector<8x128xf32>
    %cst_40 = arith.constant dense<0.000000e+00> : vector<8x128xf32>
    %149 = tpu.matmul %147, %6, %cst_40 {dimension_numbers = #tpu.dot_dimension_numbers<[1], [0], [0], [1], [0, 0, 1, 1], [], []>} : vector<8x32xf32>, vector<32x128xf32>, vector<8x128xf32> -> vector<8x128xf32>
    %150 = arith.addf %148, %149 : vector<8x128xf32>
    %151 = tpu.iota {dimensions = array<i32: 1>} : vector<8x128xi32>
    %c96_i32_41 = arith.constant 96 : i32
    %152 = vector.broadcast %c96_i32_41 : i32 to vector<8x128xi32>
    %153 = arith.cmpi slt, %151, %152 : vector<8x128xi32>
    %154 = arith.negf %150 : vector<8x128xf32>
    %155 = math.exp %154 : vector<8x128xf32>
    %cst_42 = arith.constant 1.000000e+00 : f32
    %156 = vector.broadcast %cst_42 : f32 to vector<8x128xf32>
    %157 = arith.addf %156, %155 : vector<8x128xf32>
    %158 = arith.divf %156, %157 : vector<8x128xf32>
    %159 = math.tanh %150 : vector<8x128xf32>
    %160 = arith.select %153, %158, %159 : vector<8x128xi1>, vector<8x128xf32>
    %161 = vector.extract_strided_slice %160 {offsets = [0, 0], sizes = [8, 32], strides = [1, 1]} : vector<8x128xf32> to vector<8x32xf32>
    %162 = vector.extract_strided_slice %160 {offsets = [0, 32], sizes = [8, 32], strides = [1, 1]} : vector<8x128xf32> to vector<8x32xf32>
    %163 = vector.extract_strided_slice %160 {offsets = [0, 64], sizes = [8, 32], strides = [1, 1]} : vector<8x128xf32> to vector<8x32xf32>
    %164 = vector.extract_strided_slice %160 {offsets = [0, 96], sizes = [8, 32], strides = [1, 1]} : vector<8x128xf32> to vector<8x32xf32>
    %165 = arith.mulf %162, %145 : vector<8x32xf32>
    %166 = arith.mulf %161, %164 : vector<8x32xf32>
    %167 = arith.addf %165, %166 : vector<8x32xf32>
    %168 = math.tanh %167 : vector<8x32xf32>
    %169 = arith.mulf %163, %168 : vector<8x32xf32>
    %170 = vector.extract_strided_slice %35 {offsets = [48, 0], sizes = [8, 128], strides = [1, 1]} : vector<64x128xf32> to vector<8x128xf32>
    %cst_43 = arith.constant dense<0.000000e+00> : vector<8x128xf32>
    %171 = tpu.matmul %169, %6, %cst_43 {dimension_numbers = #tpu.dot_dimension_numbers<[1], [0], [0], [1], [0, 0, 1, 1], [], []>} : vector<8x32xf32>, vector<32x128xf32>, vector<8x128xf32> -> vector<8x128xf32>
    %172 = arith.addf %170, %171 : vector<8x128xf32>
    %173 = tpu.iota {dimensions = array<i32: 1>} : vector<8x128xi32>
    %c96_i32_44 = arith.constant 96 : i32
    %174 = vector.broadcast %c96_i32_44 : i32 to vector<8x128xi32>
    %175 = arith.cmpi slt, %173, %174 : vector<8x128xi32>
    %176 = arith.negf %172 : vector<8x128xf32>
    %177 = math.exp %176 : vector<8x128xf32>
    %cst_45 = arith.constant 1.000000e+00 : f32
    %178 = vector.broadcast %cst_45 : f32 to vector<8x128xf32>
    %179 = arith.addf %178, %177 : vector<8x128xf32>
    %180 = arith.divf %178, %179 : vector<8x128xf32>
    %181 = math.tanh %172 : vector<8x128xf32>
    %182 = arith.select %175, %180, %181 : vector<8x128xi1>, vector<8x128xf32>
    %183 = vector.extract_strided_slice %182 {offsets = [0, 0], sizes = [8, 32], strides = [1, 1]} : vector<8x128xf32> to vector<8x32xf32>
    %184 = vector.extract_strided_slice %182 {offsets = [0, 32], sizes = [8, 32], strides = [1, 1]} : vector<8x128xf32> to vector<8x32xf32>
    %185 = vector.extract_strided_slice %182 {offsets = [0, 64], sizes = [8, 32], strides = [1, 1]} : vector<8x128xf32> to vector<8x32xf32>
    %186 = vector.extract_strided_slice %182 {offsets = [0, 96], sizes = [8, 32], strides = [1, 1]} : vector<8x128xf32> to vector<8x32xf32>
    %187 = arith.mulf %184, %167 : vector<8x32xf32>
    %188 = arith.mulf %183, %186 : vector<8x32xf32>
    %189 = arith.addf %187, %188 : vector<8x32xf32>
    %190 = math.tanh %189 : vector<8x32xf32>
    %191 = arith.mulf %185, %190 : vector<8x32xf32>
    %192 = vector.extract_strided_slice %32 {offsets = [56, 0], sizes = [8, 64], strides = [1, 1]} : vector<64x64xf32> to vector<8x64xf32>
    %c0_46 = arith.constant 0 : index
    %c0_47 = arith.constant 0 : index
    %193 = vector.load %arg5[%c0_46, %c0_47] : memref<8x2xf32, #tpu.memory_space<vmem>>, vector<8x2xf32>
    %194 = tpu.iota {dimensions = array<i32: 1>} : vector<8x16xi32>
    %195 = tpu.iota {dimensions = array<i32: 1>} : vector<8x8xi32>
    %196 = tpu.concatenate %192, %191 in 1 : vector<8x64xf32>, vector<8x32xf32> -> vector<8x96xf32>
    %cst_48 = arith.constant dense<0.000000e+00> : vector<8x128xf32>
    %197 = tpu.matmul %196, %4, %cst_48 {dimension_numbers = #tpu.dot_dimension_numbers<[1], [0], [0], [1], [0, 0, 1, 1], [], []>} : vector<8x96xf32>, vector<96x128xf32>, vector<8x128xf32> -> vector<8x128xf32>
    %198 = vector.broadcast %7 : vector<1x128xf32> to vector<8x128xf32>
    %199 = arith.addf %197, %198 : vector<8x128xf32>
    %200 = tpu.iota {dimensions = array<i32: 1>} : vector<8x128xi32>
    %c96_i32_49 = arith.constant 96 : i32
    %201 = vector.broadcast %c96_i32_49 : i32 to vector<8x128xi32>
    %202 = arith.cmpi slt, %200, %201 : vector<8x128xi32>
    %203 = arith.negf %199 : vector<8x128xf32>
    %204 = math.exp %203 : vector<8x128xf32>
    %cst_50 = arith.constant 1.000000e+00 : f32
    %205 = vector.broadcast %cst_50 : f32 to vector<8x128xf32>
    %206 = arith.addf %205, %204 : vector<8x128xf32>
    %207 = arith.divf %205, %206 : vector<8x128xf32>
    %208 = math.tanh %199 : vector<8x128xf32>
    %209 = arith.select %202, %207, %208 : vector<8x128xi1>, vector<8x128xf32>
    %210 = vector.extract_strided_slice %209 {offsets = [0, 0], sizes = [8, 32], strides = [1, 1]} : vector<8x128xf32> to vector<8x32xf32>
    %211 = vector.extract_strided_slice %209 {offsets = [0, 32], sizes = [8, 32], strides = [1, 1]} : vector<8x128xf32> to vector<8x32xf32>
    %212 = vector.extract_strided_slice %209 {offsets = [0, 64], sizes = [8, 32], strides = [1, 1]} : vector<8x128xf32> to vector<8x32xf32>
    %213 = vector.extract_strided_slice %209 {offsets = [0, 96], sizes = [8, 32], strides = [1, 1]} : vector<8x128xf32> to vector<8x32xf32>
    %214 = arith.mulf %211, %189 : vector<8x32xf32>
    %215 = arith.mulf %210, %213 : vector<8x32xf32>
    %216 = arith.addf %214, %215 : vector<8x32xf32>
    %217 = math.tanh %216 : vector<8x32xf32>
    %218 = arith.mulf %212, %217 : vector<8x32xf32>
    %cst_51 = arith.constant dense<0.000000e+00> : vector<8x8xf32>
    %219 = tpu.matmul %218, %8, %cst_51 {dimension_numbers = #tpu.dot_dimension_numbers<[1], [0], [0], [1], [0, 0, 1, 1], [], []>} : vector<8x32xf32>, vector<32x8xf32>, vector<8x8xf32> -> vector<8x8xf32>
    %220 = vector.broadcast %9 : vector<1x8xf32> to vector<8x8xf32>
    %221 = arith.addf %219, %220 : vector<8x8xf32>
    %c2_i32 = arith.constant 2 : i32
    %222 = vector.broadcast %c2_i32 : i32 to vector<8x8xi32>
    %223 = arith.cmpi slt, %195, %222 : vector<8x8xi32>
    %c4_i32 = arith.constant 4 : i32
    %224 = vector.broadcast %c4_i32 : i32 to vector<8x8xi32>
    %225 = arith.cmpi slt, %195, %224 : vector<8x8xi32>
    %226 = math.exp %221 : vector<8x8xf32>
    %227 = math.tanh %221 : vector<8x8xf32>
    %228 = arith.select %225, %226, %227 : vector<8x8xi1>, vector<8x8xf32>
    %229 = arith.select %223, %221, %228 : vector<8x8xi1>, vector<8x8xf32>
    %230 = vector.extract_strided_slice %229 {offsets = [0, 0], sizes = [8, 2], strides = [1, 1]} : vector<8x8xf32> to vector<8x2xf32>
    %231 = arith.addf %230, %193 : vector<8x2xf32>
    %c0_52 = arith.constant 0 : index
    %c0_53 = arith.constant 0 : index
    %232 = vector.load %arg2[%c0_52, %c0_53] : memref<96x6xf32, #tpu.memory_space<vmem>>, vector<8x6xf32>
    %233 = vector.extract_strided_slice %232 {offsets = [0, 0], sizes = [8, 3], strides = [1, 1]} : vector<8x6xf32> to vector<8x3xf32>
    %234 = vector.extract_strided_slice %231 {offsets = [0, 0], sizes = [8, 1], strides = [1, 1]} : vector<8x2xf32> to vector<8x1xf32>
    %235 = vector.broadcast %234 : vector<8x1xf32> to vector<8x3xf32>
    %236 = arith.subf %233, %235 : vector<8x3xf32>
    %237 = vector.extract_strided_slice %232 {offsets = [0, 3], sizes = [8, 3], strides = [1, 1]} : vector<8x6xf32> to vector<8x3xf32>
    %238 = vector.extract_strided_slice %231 {offsets = [0, 1], sizes = [8, 1], strides = [1, 1]} : vector<8x2xf32> to vector<8x1xf32>
    %239 = vector.broadcast %238 : vector<8x1xf32> to vector<8x3xf32>
    %240 = arith.subf %237, %239 : vector<8x3xf32>
    %241 = math.absf %236 : vector<8x3xf32>
    %cst_54 = arith.constant 2.000000e+00 : f32
    %242 = vector.broadcast %cst_54 : f32 to vector<8x3xf32>
    %243 = arith.cmpf olt, %241, %242 : vector<8x3xf32>
    %244 = math.absf %240 : vector<8x3xf32>
    %cst_55 = arith.constant 2.000000e+00 : f32
    %245 = vector.broadcast %cst_55 : f32 to vector<8x3xf32>
    %246 = arith.cmpf olt, %244, %245 : vector<8x3xf32>
    %247 = arith.andi %243, %246 : vector<8x3xi1>
    %cst_56 = arith.constant 2.000000e+00 : f32
    %248 = vector.broadcast %cst_56 : f32 to vector<8x3xf32>
    %249 = arith.addf %236, %248 : vector<8x3xf32>
    %cst_57 = arith.constant 4.000000e+00 : f32
    %250 = vector.broadcast %cst_57 : f32 to vector<8x3xf32>
    %251 = arith.divf %249, %250 : vector<8x3xf32>
    %cst_58 = arith.constant 4.000000e+00 : f32
    %252 = vector.broadcast %cst_58 : f32 to vector<8x3xf32>
    %253 = arith.mulf %251, %252 : vector<8x3xf32>
    %254 = math.floor %253 : vector<8x3xf32>
    %255 = arith.fptosi %254 : vector<8x3xf32> to vector<8x3xi32>
    %c0_i32 = arith.constant 0 : i32
    %c3_i32 = arith.constant 3 : i32
    %256 = vector.broadcast %c0_i32 : i32 to vector<8x3xi32>
    %257 = arith.maxsi %256, %255 : vector<8x3xi32>
    %258 = vector.broadcast %c3_i32 : i32 to vector<8x3xi32>
    %259 = arith.minsi %258, %257 : vector<8x3xi32>
    %cst_59 = arith.constant 2.000000e+00 : f32
    %260 = vector.broadcast %cst_59 : f32 to vector<8x3xf32>
    %261 = arith.addf %240, %260 : vector<8x3xf32>
    %cst_60 = arith.constant 4.000000e+00 : f32
    %262 = vector.broadcast %cst_60 : f32 to vector<8x3xf32>
    %263 = arith.divf %261, %262 : vector<8x3xf32>
    %cst_61 = arith.constant 4.000000e+00 : f32
    %264 = vector.broadcast %cst_61 : f32 to vector<8x3xf32>
    %265 = arith.mulf %263, %264 : vector<8x3xf32>
    %266 = math.floor %265 : vector<8x3xf32>
    %267 = arith.fptosi %266 : vector<8x3xf32> to vector<8x3xi32>
    %c0_i32_62 = arith.constant 0 : i32
    %c3_i32_63 = arith.constant 3 : i32
    %268 = vector.broadcast %c0_i32_62 : i32 to vector<8x3xi32>
    %269 = arith.maxsi %268, %267 : vector<8x3xi32>
    %270 = vector.broadcast %c3_i32_63 : i32 to vector<8x3xi32>
    %271 = arith.minsi %270, %269 : vector<8x3xi32>
    %c4_i32_64 = arith.constant 4 : i32
    %272 = vector.broadcast %c4_i32_64 : i32 to vector<8x3xi32>
    %273 = arith.muli %259, %272 : vector<8x3xi32>
    %274 = arith.addi %273, %271 : vector<8x3xi32>
    %cst_65 = arith.constant 0.000000e+00 : f32
    %275 = vector.broadcast %cst_65 : f32 to vector<8x16xf32>
    %276 = vector.extract_strided_slice %274 {offsets = [0, 0], sizes = [8, 1], strides = [1, 1]} : vector<8x3xi32> to vector<8x1xi32>
    %277 = vector.broadcast %276 : vector<8x1xi32> to vector<8x16xi32>
    %278 = arith.cmpi eq, %194, %277 : vector<8x16xi32>
    %279 = vector.extract_strided_slice %247 {offsets = [0, 0], sizes = [8, 1], strides = [1, 1]} : vector<8x3xi1> to vector<8x1xi1>
    %280 = vector.broadcast %279 : vector<8x1xi1> to vector<8x16xi1>
    %281 = arith.andi %278, %280 : vector<8x16xi1>
    %282 = arith.extui %281 : vector<8x16xi1> to vector<8x16xi32>
    %283 = arith.sitofp %282 : vector<8x16xi32> to vector<8x16xf32>
    %284 = arith.addf %275, %283 : vector<8x16xf32>
    %285 = vector.extract_strided_slice %274 {offsets = [0, 1], sizes = [8, 1], strides = [1, 1]} : vector<8x3xi32> to vector<8x1xi32>
    %286 = vector.broadcast %285 : vector<8x1xi32> to vector<8x16xi32>
    %287 = arith.cmpi eq, %194, %286 : vector<8x16xi32>
    %288 = vector.extract_strided_slice %247 {offsets = [0, 1], sizes = [8, 1], strides = [1, 1]} : vector<8x3xi1> to vector<8x1xi1>
    %289 = vector.broadcast %288 : vector<8x1xi1> to vector<8x16xi1>
    %290 = arith.andi %287, %289 : vector<8x16xi1>
    %291 = arith.extui %290 : vector<8x16xi1> to vector<8x16xi32>
    %292 = arith.sitofp %291 : vector<8x16xi32> to vector<8x16xf32>
    %293 = arith.addf %284, %292 : vector<8x16xf32>
    %294 = vector.extract_strided_slice %274 {offsets = [0, 2], sizes = [8, 1], strides = [1, 1]} : vector<8x3xi32> to vector<8x1xi32>
    %295 = vector.broadcast %294 : vector<8x1xi32> to vector<8x16xi32>
    %296 = arith.cmpi eq, %194, %295 : vector<8x16xi32>
    %297 = vector.extract_strided_slice %247 {offsets = [0, 2], sizes = [8, 1], strides = [1, 1]} : vector<8x3xi1> to vector<8x1xi1>
    %298 = vector.broadcast %297 : vector<8x1xi1> to vector<8x16xi1>
    %299 = arith.andi %296, %298 : vector<8x16xi1>
    %300 = arith.extui %299 : vector<8x16xi1> to vector<8x16xi32>
    %301 = arith.sitofp %300 : vector<8x16xi32> to vector<8x16xf32>
    %302 = arith.addf %293, %301 : vector<8x16xf32>
    %cst_66 = arith.constant 1.000000e+00 : f32
    %303 = vector.broadcast %cst_66 : f32 to vector<8x16xf32>
    %304 = arith.minimumf %302, %303 : vector<8x16xf32>
    %305 = vector.extract_strided_slice %230 {offsets = [0, 0], sizes = [8, 1], strides = [1, 1]} : vector<8x2xf32> to vector<8x1xf32>
    %306 = vector.extract_strided_slice %0 {offsets = [0, 0], sizes = [1, 32], strides = [1, 1]} : vector<2x32xf32> to vector<1x32xf32>
    %307 = vector.broadcast %305 : vector<8x1xf32> to vector<8x32xf32>
    %308 = vector.broadcast %306 : vector<1x32xf32> to vector<8x32xf32>
    %309 = arith.mulf %307, %308 : vector<8x32xf32>
    %310 = vector.extract_strided_slice %230 {offsets = [0, 1], sizes = [8, 1], strides = [1, 1]} : vector<8x2xf32> to vector<8x1xf32>
    %311 = vector.extract_strided_slice %0 {offsets = [1, 0], sizes = [1, 32], strides = [1, 1]} : vector<2x32xf32> to vector<1x32xf32>
    %312 = vector.broadcast %310 : vector<8x1xf32> to vector<8x32xf32>
    %313 = vector.broadcast %311 : vector<1x32xf32> to vector<8x32xf32>
    %314 = arith.mulf %312, %313 : vector<8x32xf32>
    %315 = arith.addf %309, %314 : vector<8x32xf32>
    %316 = vector.broadcast %1 : vector<1x32xf32> to vector<8x32xf32>
    %317 = arith.addf %315, %316 : vector<8x32xf32>
    %cst_67 = arith.constant 0.000000e+00 : f32
    %318 = vector.broadcast %cst_67 : f32 to vector<8x32xf32>
    %319 = arith.maximumf %317, %318 : vector<8x32xf32>
    %cst_68 = arith.constant dense<0.000000e+00> : vector<8x32xf32>
    %320 = tpu.matmul %304, %2, %cst_68 {dimension_numbers = #tpu.dot_dimension_numbers<[1], [0], [0], [1], [0, 0, 1, 1], [], []>} : vector<8x16xf32>, vector<16x32xf32>, vector<8x32xf32> -> vector<8x32xf32>
    %321 = vector.broadcast %3 : vector<1x32xf32> to vector<8x32xf32>
    %322 = arith.addf %320, %321 : vector<8x32xf32>
    %cst_69 = arith.constant 0.000000e+00 : f32
    %323 = vector.broadcast %cst_69 : f32 to vector<8x32xf32>
    %324 = arith.maximumf %322, %323 : vector<8x32xf32>
    %325 = tpu.concatenate %319, %324 in 1 : vector<8x32xf32>, vector<8x32xf32> -> vector<8x64xf32>
    %326 = tpu.concatenate %325, %218 in 1 : vector<8x64xf32>, vector<8x32xf32> -> vector<8x96xf32>
    %cst_70 = arith.constant dense<0.000000e+00> : vector<8x128xf32>
    %327 = tpu.matmul %326, %4, %cst_70 {dimension_numbers = #tpu.dot_dimension_numbers<[1], [0], [0], [1], [0, 0, 1, 1], [], []>} : vector<8x96xf32>, vector<96x128xf32>, vector<8x128xf32> -> vector<8x128xf32>
    %328 = vector.broadcast %7 : vector<1x128xf32> to vector<8x128xf32>
    %329 = arith.addf %327, %328 : vector<8x128xf32>
    %330 = tpu.iota {dimensions = array<i32: 1>} : vector<8x128xi32>
    %c96_i32_71 = arith.constant 96 : i32
    %331 = vector.broadcast %c96_i32_71 : i32 to vector<8x128xi32>
    %332 = arith.cmpi slt, %330, %331 : vector<8x128xi32>
    %333 = arith.negf %329 : vector<8x128xf32>
    %334 = math.exp %333 : vector<8x128xf32>
    %cst_72 = arith.constant 1.000000e+00 : f32
    %335 = vector.broadcast %cst_72 : f32 to vector<8x128xf32>
    %336 = arith.addf %335, %334 : vector<8x128xf32>
    %337 = arith.divf %335, %336 : vector<8x128xf32>
    %338 = math.tanh %329 : vector<8x128xf32>
    %339 = arith.select %332, %337, %338 : vector<8x128xi1>, vector<8x128xf32>
    %340 = vector.extract_strided_slice %339 {offsets = [0, 0], sizes = [8, 32], strides = [1, 1]} : vector<8x128xf32> to vector<8x32xf32>
    %341 = vector.extract_strided_slice %339 {offsets = [0, 32], sizes = [8, 32], strides = [1, 1]} : vector<8x128xf32> to vector<8x32xf32>
    %342 = vector.extract_strided_slice %339 {offsets = [0, 64], sizes = [8, 32], strides = [1, 1]} : vector<8x128xf32> to vector<8x32xf32>
    %343 = vector.extract_strided_slice %339 {offsets = [0, 96], sizes = [8, 32], strides = [1, 1]} : vector<8x128xf32> to vector<8x32xf32>
    %344 = arith.mulf %341, %216 : vector<8x32xf32>
    %345 = arith.mulf %340, %343 : vector<8x32xf32>
    %346 = arith.addf %344, %345 : vector<8x32xf32>
    %347 = math.tanh %346 : vector<8x32xf32>
    %348 = arith.mulf %342, %347 : vector<8x32xf32>
    %cst_73 = arith.constant dense<0.000000e+00> : vector<8x8xf32>
    %349 = tpu.matmul %348, %8, %cst_73 {dimension_numbers = #tpu.dot_dimension_numbers<[1], [0], [0], [1], [0, 0, 1, 1], [], []>} : vector<8x32xf32>, vector<32x8xf32>, vector<8x8xf32> -> vector<8x8xf32>
    %350 = vector.broadcast %9 : vector<1x8xf32> to vector<8x8xf32>
    %351 = arith.addf %349, %350 : vector<8x8xf32>
    %c2_i32_74 = arith.constant 2 : i32
    %352 = vector.broadcast %c2_i32_74 : i32 to vector<8x8xi32>
    %353 = arith.cmpi slt, %195, %352 : vector<8x8xi32>
    %c4_i32_75 = arith.constant 4 : i32
    %354 = vector.broadcast %c4_i32_75 : i32 to vector<8x8xi32>
    %355 = arith.cmpi slt, %195, %354 : vector<8x8xi32>
    %356 = math.exp %351 : vector<8x8xf32>
    %357 = math.tanh %351 : vector<8x8xf32>
    %358 = arith.select %355, %356, %357 : vector<8x8xi1>, vector<8x8xf32>
    %359 = arith.select %353, %351, %358 : vector<8x8xi1>, vector<8x8xf32>
    %360 = vector.extract_strided_slice %359 {offsets = [0, 0], sizes = [8, 2], strides = [1, 1]} : vector<8x8xf32> to vector<8x2xf32>
    %361 = arith.addf %360, %231 : vector<8x2xf32>
    %c8 = arith.constant 8 : index
    %c0_76 = arith.constant 0 : index
    %362 = vector.load %arg2[%c8, %c0_76] : memref<96x6xf32, #tpu.memory_space<vmem>>, vector<8x6xf32>
    %363 = vector.extract_strided_slice %362 {offsets = [0, 0], sizes = [8, 3], strides = [1, 1]} : vector<8x6xf32> to vector<8x3xf32>
    %364 = vector.extract_strided_slice %361 {offsets = [0, 0], sizes = [8, 1], strides = [1, 1]} : vector<8x2xf32> to vector<8x1xf32>
    %365 = vector.broadcast %364 : vector<8x1xf32> to vector<8x3xf32>
    %366 = arith.subf %363, %365 : vector<8x3xf32>
    %367 = vector.extract_strided_slice %362 {offsets = [0, 3], sizes = [8, 3], strides = [1, 1]} : vector<8x6xf32> to vector<8x3xf32>
    %368 = vector.extract_strided_slice %361 {offsets = [0, 1], sizes = [8, 1], strides = [1, 1]} : vector<8x2xf32> to vector<8x1xf32>
    %369 = vector.broadcast %368 : vector<8x1xf32> to vector<8x3xf32>
    %370 = arith.subf %367, %369 : vector<8x3xf32>
    %371 = math.absf %366 : vector<8x3xf32>
    %cst_77 = arith.constant 2.000000e+00 : f32
    %372 = vector.broadcast %cst_77 : f32 to vector<8x3xf32>
    %373 = arith.cmpf olt, %371, %372 : vector<8x3xf32>
    %374 = math.absf %370 : vector<8x3xf32>
    %cst_78 = arith.constant 2.000000e+00 : f32
    %375 = vector.broadcast %cst_78 : f32 to vector<8x3xf32>
    %376 = arith.cmpf olt, %374, %375 : vector<8x3xf32>
    %377 = arith.andi %373, %376 : vector<8x3xi1>
    %cst_79 = arith.constant 2.000000e+00 : f32
    %378 = vector.broadcast %cst_79 : f32 to vector<8x3xf32>
    %379 = arith.addf %366, %378 : vector<8x3xf32>
    %cst_80 = arith.constant 4.000000e+00 : f32
    %380 = vector.broadcast %cst_80 : f32 to vector<8x3xf32>
    %381 = arith.divf %379, %380 : vector<8x3xf32>
    %cst_81 = arith.constant 4.000000e+00 : f32
    %382 = vector.broadcast %cst_81 : f32 to vector<8x3xf32>
    %383 = arith.mulf %381, %382 : vector<8x3xf32>
    %384 = math.floor %383 : vector<8x3xf32>
    %385 = arith.fptosi %384 : vector<8x3xf32> to vector<8x3xi32>
    %c0_i32_82 = arith.constant 0 : i32
    %c3_i32_83 = arith.constant 3 : i32
    %386 = vector.broadcast %c0_i32_82 : i32 to vector<8x3xi32>
    %387 = arith.maxsi %386, %385 : vector<8x3xi32>
    %388 = vector.broadcast %c3_i32_83 : i32 to vector<8x3xi32>
    %389 = arith.minsi %388, %387 : vector<8x3xi32>
    %cst_84 = arith.constant 2.000000e+00 : f32
    %390 = vector.broadcast %cst_84 : f32 to vector<8x3xf32>
    %391 = arith.addf %370, %390 : vector<8x3xf32>
    %cst_85 = arith.constant 4.000000e+00 : f32
    %392 = vector.broadcast %cst_85 : f32 to vector<8x3xf32>
    %393 = arith.divf %391, %392 : vector<8x3xf32>
    %cst_86 = arith.constant 4.000000e+00 : f32
    %394 = vector.broadcast %cst_86 : f32 to vector<8x3xf32>
    %395 = arith.mulf %393, %394 : vector<8x3xf32>
    %396 = math.floor %395 : vector<8x3xf32>
    %397 = arith.fptosi %396 : vector<8x3xf32> to vector<8x3xi32>
    %c0_i32_87 = arith.constant 0 : i32
    %c3_i32_88 = arith.constant 3 : i32
    %398 = vector.broadcast %c0_i32_87 : i32 to vector<8x3xi32>
    %399 = arith.maxsi %398, %397 : vector<8x3xi32>
    %400 = vector.broadcast %c3_i32_88 : i32 to vector<8x3xi32>
    %401 = arith.minsi %400, %399 : vector<8x3xi32>
    %c4_i32_89 = arith.constant 4 : i32
    %402 = vector.broadcast %c4_i32_89 : i32 to vector<8x3xi32>
    %403 = arith.muli %389, %402 : vector<8x3xi32>
    %404 = arith.addi %403, %401 : vector<8x3xi32>
    %cst_90 = arith.constant 0.000000e+00 : f32
    %405 = vector.broadcast %cst_90 : f32 to vector<8x16xf32>
    %406 = vector.extract_strided_slice %404 {offsets = [0, 0], sizes = [8, 1], strides = [1, 1]} : vector<8x3xi32> to vector<8x1xi32>
    %407 = vector.broadcast %406 : vector<8x1xi32> to vector<8x16xi32>
    %408 = arith.cmpi eq, %194, %407 : vector<8x16xi32>
    %409 = vector.extract_strided_slice %377 {offsets = [0, 0], sizes = [8, 1], strides = [1, 1]} : vector<8x3xi1> to vector<8x1xi1>
    %410 = vector.broadcast %409 : vector<8x1xi1> to vector<8x16xi1>
    %411 = arith.andi %408, %410 : vector<8x16xi1>
    %412 = arith.extui %411 : vector<8x16xi1> to vector<8x16xi32>
    %413 = arith.sitofp %412 : vector<8x16xi32> to vector<8x16xf32>
    %414 = arith.addf %405, %413 : vector<8x16xf32>
    %415 = vector.extract_strided_slice %404 {offsets = [0, 1], sizes = [8, 1], strides = [1, 1]} : vector<8x3xi32> to vector<8x1xi32>
    %416 = vector.broadcast %415 : vector<8x1xi32> to vector<8x16xi32>
    %417 = arith.cmpi eq, %194, %416 : vector<8x16xi32>
    %418 = vector.extract_strided_slice %377 {offsets = [0, 1], sizes = [8, 1], strides = [1, 1]} : vector<8x3xi1> to vector<8x1xi1>
    %419 = vector.broadcast %418 : vector<8x1xi1> to vector<8x16xi1>
    %420 = arith.andi %417, %419 : vector<8x16xi1>
    %421 = arith.extui %420 : vector<8x16xi1> to vector<8x16xi32>
    %422 = arith.sitofp %421 : vector<8x16xi32> to vector<8x16xf32>
    %423 = arith.addf %414, %422 : vector<8x16xf32>
    %424 = vector.extract_strided_slice %404 {offsets = [0, 2], sizes = [8, 1], strides = [1, 1]} : vector<8x3xi32> to vector<8x1xi32>
    %425 = vector.broadcast %424 : vector<8x1xi32> to vector<8x16xi32>
    %426 = arith.cmpi eq, %194, %425 : vector<8x16xi32>
    %427 = vector.extract_strided_slice %377 {offsets = [0, 2], sizes = [8, 1], strides = [1, 1]} : vector<8x3xi1> to vector<8x1xi1>
    %428 = vector.broadcast %427 : vector<8x1xi1> to vector<8x16xi1>
    %429 = arith.andi %426, %428 : vector<8x16xi1>
    %430 = arith.extui %429 : vector<8x16xi1> to vector<8x16xi32>
    %431 = arith.sitofp %430 : vector<8x16xi32> to vector<8x16xf32>
    %432 = arith.addf %423, %431 : vector<8x16xf32>
    %cst_91 = arith.constant 1.000000e+00 : f32
    %433 = vector.broadcast %cst_91 : f32 to vector<8x16xf32>
    %434 = arith.minimumf %432, %433 : vector<8x16xf32>
    %435 = vector.extract_strided_slice %360 {offsets = [0, 0], sizes = [8, 1], strides = [1, 1]} : vector<8x2xf32> to vector<8x1xf32>
    %436 = vector.extract_strided_slice %0 {offsets = [0, 0], sizes = [1, 32], strides = [1, 1]} : vector<2x32xf32> to vector<1x32xf32>
    %437 = vector.broadcast %435 : vector<8x1xf32> to vector<8x32xf32>
    %438 = vector.broadcast %436 : vector<1x32xf32> to vector<8x32xf32>
    %439 = arith.mulf %437, %438 : vector<8x32xf32>
    %440 = vector.extract_strided_slice %360 {offsets = [0, 1], sizes = [8, 1], strides = [1, 1]} : vector<8x2xf32> to vector<8x1xf32>
    %441 = vector.extract_strided_slice %0 {offsets = [1, 0], sizes = [1, 32], strides = [1, 1]} : vector<2x32xf32> to vector<1x32xf32>
    %442 = vector.broadcast %440 : vector<8x1xf32> to vector<8x32xf32>
    %443 = vector.broadcast %441 : vector<1x32xf32> to vector<8x32xf32>
    %444 = arith.mulf %442, %443 : vector<8x32xf32>
    %445 = arith.addf %439, %444 : vector<8x32xf32>
    %446 = vector.broadcast %1 : vector<1x32xf32> to vector<8x32xf32>
    %447 = arith.addf %445, %446 : vector<8x32xf32>
    %cst_92 = arith.constant 0.000000e+00 : f32
    %448 = vector.broadcast %cst_92 : f32 to vector<8x32xf32>
    %449 = arith.maximumf %447, %448 : vector<8x32xf32>
    %cst_93 = arith.constant dense<0.000000e+00> : vector<8x32xf32>
    %450 = tpu.matmul %434, %2, %cst_93 {dimension_numbers = #tpu.dot_dimension_numbers<[1], [0], [0], [1], [0, 0, 1, 1], [], []>} : vector<8x16xf32>, vector<16x32xf32>, vector<8x32xf32> -> vector<8x32xf32>
    %451 = vector.broadcast %3 : vector<1x32xf32> to vector<8x32xf32>
    %452 = arith.addf %450, %451 : vector<8x32xf32>
    %cst_94 = arith.constant 0.000000e+00 : f32
    %453 = vector.broadcast %cst_94 : f32 to vector<8x32xf32>
    %454 = arith.maximumf %452, %453 : vector<8x32xf32>
    %455 = tpu.concatenate %449, %454 in 1 : vector<8x32xf32>, vector<8x32xf32> -> vector<8x64xf32>
    %456 = tpu.concatenate %455, %348 in 1 : vector<8x64xf32>, vector<8x32xf32> -> vector<8x96xf32>
    %cst_95 = arith.constant dense<0.000000e+00> : vector<8x128xf32>
    %457 = tpu.matmul %456, %4, %cst_95 {dimension_numbers = #tpu.dot_dimension_numbers<[1], [0], [0], [1], [0, 0, 1, 1], [], []>} : vector<8x96xf32>, vector<96x128xf32>, vector<8x128xf32> -> vector<8x128xf32>
    %458 = vector.broadcast %7 : vector<1x128xf32> to vector<8x128xf32>
    %459 = arith.addf %457, %458 : vector<8x128xf32>
    %460 = tpu.iota {dimensions = array<i32: 1>} : vector<8x128xi32>
    %c96_i32_96 = arith.constant 96 : i32
    %461 = vector.broadcast %c96_i32_96 : i32 to vector<8x128xi32>
    %462 = arith.cmpi slt, %460, %461 : vector<8x128xi32>
    %463 = arith.negf %459 : vector<8x128xf32>
    %464 = math.exp %463 : vector<8x128xf32>
    %cst_97 = arith.constant 1.000000e+00 : f32
    %465 = vector.broadcast %cst_97 : f32 to vector<8x128xf32>
    %466 = arith.addf %465, %464 : vector<8x128xf32>
    %467 = arith.divf %465, %466 : vector<8x128xf32>
    %468 = math.tanh %459 : vector<8x128xf32>
    %469 = arith.select %462, %467, %468 : vector<8x128xi1>, vector<8x128xf32>
    %470 = vector.extract_strided_slice %469 {offsets = [0, 0], sizes = [8, 32], strides = [1, 1]} : vector<8x128xf32> to vector<8x32xf32>
    %471 = vector.extract_strided_slice %469 {offsets = [0, 32], sizes = [8, 32], strides = [1, 1]} : vector<8x128xf32> to vector<8x32xf32>
    %472 = vector.extract_strided_slice %469 {offsets = [0, 64], sizes = [8, 32], strides = [1, 1]} : vector<8x128xf32> to vector<8x32xf32>
    %473 = vector.extract_strided_slice %469 {offsets = [0, 96], sizes = [8, 32], strides = [1, 1]} : vector<8x128xf32> to vector<8x32xf32>
    %474 = arith.mulf %471, %346 : vector<8x32xf32>
    %475 = arith.mulf %470, %473 : vector<8x32xf32>
    %476 = arith.addf %474, %475 : vector<8x32xf32>
    %477 = math.tanh %476 : vector<8x32xf32>
    %478 = arith.mulf %472, %477 : vector<8x32xf32>
    %cst_98 = arith.constant dense<0.000000e+00> : vector<8x8xf32>
    %479 = tpu.matmul %478, %8, %cst_98 {dimension_numbers = #tpu.dot_dimension_numbers<[1], [0], [0], [1], [0, 0, 1, 1], [], []>} : vector<8x32xf32>, vector<32x8xf32>, vector<8x8xf32> -> vector<8x8xf32>
    %480 = vector.broadcast %9 : vector<1x8xf32> to vector<8x8xf32>
    %481 = arith.addf %479, %480 : vector<8x8xf32>
    %c2_i32_99 = arith.constant 2 : i32
    %482 = vector.broadcast %c2_i32_99 : i32 to vector<8x8xi32>
    %483 = arith.cmpi slt, %195, %482 : vector<8x8xi32>
    %c4_i32_100 = arith.constant 4 : i32
    %484 = vector.broadcast %c4_i32_100 : i32 to vector<8x8xi32>
    %485 = arith.cmpi slt, %195, %484 : vector<8x8xi32>
    %486 = math.exp %481 : vector<8x8xf32>
    %487 = math.tanh %481 : vector<8x8xf32>
    %488 = arith.select %485, %486, %487 : vector<8x8xi1>, vector<8x8xf32>
    %489 = arith.select %483, %481, %488 : vector<8x8xi1>, vector<8x8xf32>
    %490 = vector.extract_strided_slice %489 {offsets = [0, 0], sizes = [8, 2], strides = [1, 1]} : vector<8x8xf32> to vector<8x2xf32>
    %491 = arith.addf %490, %361 : vector<8x2xf32>
    %c16 = arith.constant 16 : index
    %c0_101 = arith.constant 0 : index
    %492 = vector.load %arg2[%c16, %c0_101] : memref<96x6xf32, #tpu.memory_space<vmem>>, vector<8x6xf32>
    %493 = vector.extract_strided_slice %492 {offsets = [0, 0], sizes = [8, 3], strides = [1, 1]} : vector<8x6xf32> to vector<8x3xf32>
    %494 = vector.extract_strided_slice %491 {offsets = [0, 0], sizes = [8, 1], strides = [1, 1]} : vector<8x2xf32> to vector<8x1xf32>
    %495 = vector.broadcast %494 : vector<8x1xf32> to vector<8x3xf32>
    %496 = arith.subf %493, %495 : vector<8x3xf32>
    %497 = vector.extract_strided_slice %492 {offsets = [0, 3], sizes = [8, 3], strides = [1, 1]} : vector<8x6xf32> to vector<8x3xf32>
    %498 = vector.extract_strided_slice %491 {offsets = [0, 1], sizes = [8, 1], strides = [1, 1]} : vector<8x2xf32> to vector<8x1xf32>
    %499 = vector.broadcast %498 : vector<8x1xf32> to vector<8x3xf32>
    %500 = arith.subf %497, %499 : vector<8x3xf32>
    %501 = math.absf %496 : vector<8x3xf32>
    %cst_102 = arith.constant 2.000000e+00 : f32
    %502 = vector.broadcast %cst_102 : f32 to vector<8x3xf32>
    %503 = arith.cmpf olt, %501, %502 : vector<8x3xf32>
    %504 = math.absf %500 : vector<8x3xf32>
    %cst_103 = arith.constant 2.000000e+00 : f32
    %505 = vector.broadcast %cst_103 : f32 to vector<8x3xf32>
    %506 = arith.cmpf olt, %504, %505 : vector<8x3xf32>
    %507 = arith.andi %503, %506 : vector<8x3xi1>
    %cst_104 = arith.constant 2.000000e+00 : f32
    %508 = vector.broadcast %cst_104 : f32 to vector<8x3xf32>
    %509 = arith.addf %496, %508 : vector<8x3xf32>
    %cst_105 = arith.constant 4.000000e+00 : f32
    %510 = vector.broadcast %cst_105 : f32 to vector<8x3xf32>
    %511 = arith.divf %509, %510 : vector<8x3xf32>
    %cst_106 = arith.constant 4.000000e+00 : f32
    %512 = vector.broadcast %cst_106 : f32 to vector<8x3xf32>
    %513 = arith.mulf %511, %512 : vector<8x3xf32>
    %514 = math.floor %513 : vector<8x3xf32>
    %515 = arith.fptosi %514 : vector<8x3xf32> to vector<8x3xi32>
    %c0_i32_107 = arith.constant 0 : i32
    %c3_i32_108 = arith.constant 3 : i32
    %516 = vector.broadcast %c0_i32_107 : i32 to vector<8x3xi32>
    %517 = arith.maxsi %516, %515 : vector<8x3xi32>
    %518 = vector.broadcast %c3_i32_108 : i32 to vector<8x3xi32>
    %519 = arith.minsi %518, %517 : vector<8x3xi32>
    %cst_109 = arith.constant 2.000000e+00 : f32
    %520 = vector.broadcast %cst_109 : f32 to vector<8x3xf32>
    %521 = arith.addf %500, %520 : vector<8x3xf32>
    %cst_110 = arith.constant 4.000000e+00 : f32
    %522 = vector.broadcast %cst_110 : f32 to vector<8x3xf32>
    %523 = arith.divf %521, %522 : vector<8x3xf32>
    %cst_111 = arith.constant 4.000000e+00 : f32
    %524 = vector.broadcast %cst_111 : f32 to vector<8x3xf32>
    %525 = arith.mulf %523, %524 : vector<8x3xf32>
    %526 = math.floor %525 : vector<8x3xf32>
    %527 = arith.fptosi %526 : vector<8x3xf32> to vector<8x3xi32>
    %c0_i32_112 = arith.constant 0 : i32
    %c3_i32_113 = arith.constant 3 : i32
    %528 = vector.broadcast %c0_i32_112 : i32 to vector<8x3xi32>
    %529 = arith.maxsi %528, %527 : vector<8x3xi32>
    %530 = vector.broadcast %c3_i32_113 : i32 to vector<8x3xi32>
    %531 = arith.minsi %530, %529 : vector<8x3xi32>
    %c4_i32_114 = arith.constant 4 : i32
    %532 = vector.broadcast %c4_i32_114 : i32 to vector<8x3xi32>
    %533 = arith.muli %519, %532 : vector<8x3xi32>
    %534 = arith.addi %533, %531 : vector<8x3xi32>
    %cst_115 = arith.constant 0.000000e+00 : f32
    %535 = vector.broadcast %cst_115 : f32 to vector<8x16xf32>
    %536 = vector.extract_strided_slice %534 {offsets = [0, 0], sizes = [8, 1], strides = [1, 1]} : vector<8x3xi32> to vector<8x1xi32>
    %537 = vector.broadcast %536 : vector<8x1xi32> to vector<8x16xi32>
    %538 = arith.cmpi eq, %194, %537 : vector<8x16xi32>
    %539 = vector.extract_strided_slice %507 {offsets = [0, 0], sizes = [8, 1], strides = [1, 1]} : vector<8x3xi1> to vector<8x1xi1>
    %540 = vector.broadcast %539 : vector<8x1xi1> to vector<8x16xi1>
    %541 = arith.andi %538, %540 : vector<8x16xi1>
    %542 = arith.extui %541 : vector<8x16xi1> to vector<8x16xi32>
    %543 = arith.sitofp %542 : vector<8x16xi32> to vector<8x16xf32>
    %544 = arith.addf %535, %543 : vector<8x16xf32>
    %545 = vector.extract_strided_slice %534 {offsets = [0, 1], sizes = [8, 1], strides = [1, 1]} : vector<8x3xi32> to vector<8x1xi32>
    %546 = vector.broadcast %545 : vector<8x1xi32> to vector<8x16xi32>
    %547 = arith.cmpi eq, %194, %546 : vector<8x16xi32>
    %548 = vector.extract_strided_slice %507 {offsets = [0, 1], sizes = [8, 1], strides = [1, 1]} : vector<8x3xi1> to vector<8x1xi1>
    %549 = vector.broadcast %548 : vector<8x1xi1> to vector<8x16xi1>
    %550 = arith.andi %547, %549 : vector<8x16xi1>
    %551 = arith.extui %550 : vector<8x16xi1> to vector<8x16xi32>
    %552 = arith.sitofp %551 : vector<8x16xi32> to vector<8x16xf32>
    %553 = arith.addf %544, %552 : vector<8x16xf32>
    %554 = vector.extract_strided_slice %534 {offsets = [0, 2], sizes = [8, 1], strides = [1, 1]} : vector<8x3xi32> to vector<8x1xi32>
    %555 = vector.broadcast %554 : vector<8x1xi32> to vector<8x16xi32>
    %556 = arith.cmpi eq, %194, %555 : vector<8x16xi32>
    %557 = vector.extract_strided_slice %507 {offsets = [0, 2], sizes = [8, 1], strides = [1, 1]} : vector<8x3xi1> to vector<8x1xi1>
    %558 = vector.broadcast %557 : vector<8x1xi1> to vector<8x16xi1>
    %559 = arith.andi %556, %558 : vector<8x16xi1>
    %560 = arith.extui %559 : vector<8x16xi1> to vector<8x16xi32>
    %561 = arith.sitofp %560 : vector<8x16xi32> to vector<8x16xf32>
    %562 = arith.addf %553, %561 : vector<8x16xf32>
    %cst_116 = arith.constant 1.000000e+00 : f32
    %563 = vector.broadcast %cst_116 : f32 to vector<8x16xf32>
    %564 = arith.minimumf %562, %563 : vector<8x16xf32>
    %565 = vector.extract_strided_slice %490 {offsets = [0, 0], sizes = [8, 1], strides = [1, 1]} : vector<8x2xf32> to vector<8x1xf32>
    %566 = vector.extract_strided_slice %0 {offsets = [0, 0], sizes = [1, 32], strides = [1, 1]} : vector<2x32xf32> to vector<1x32xf32>
    %567 = vector.broadcast %565 : vector<8x1xf32> to vector<8x32xf32>
    %568 = vector.broadcast %566 : vector<1x32xf32> to vector<8x32xf32>
    %569 = arith.mulf %567, %568 : vector<8x32xf32>
    %570 = vector.extract_strided_slice %490 {offsets = [0, 1], sizes = [8, 1], strides = [1, 1]} : vector<8x2xf32> to vector<8x1xf32>
    %571 = vector.extract_strided_slice %0 {offsets = [1, 0], sizes = [1, 32], strides = [1, 1]} : vector<2x32xf32> to vector<1x32xf32>
    %572 = vector.broadcast %570 : vector<8x1xf32> to vector<8x32xf32>
    %573 = vector.broadcast %571 : vector<1x32xf32> to vector<8x32xf32>
    %574 = arith.mulf %572, %573 : vector<8x32xf32>
    %575 = arith.addf %569, %574 : vector<8x32xf32>
    %576 = vector.broadcast %1 : vector<1x32xf32> to vector<8x32xf32>
    %577 = arith.addf %575, %576 : vector<8x32xf32>
    %cst_117 = arith.constant 0.000000e+00 : f32
    %578 = vector.broadcast %cst_117 : f32 to vector<8x32xf32>
    %579 = arith.maximumf %577, %578 : vector<8x32xf32>
    %cst_118 = arith.constant dense<0.000000e+00> : vector<8x32xf32>
    %580 = tpu.matmul %564, %2, %cst_118 {dimension_numbers = #tpu.dot_dimension_numbers<[1], [0], [0], [1], [0, 0, 1, 1], [], []>} : vector<8x16xf32>, vector<16x32xf32>, vector<8x32xf32> -> vector<8x32xf32>
    %581 = vector.broadcast %3 : vector<1x32xf32> to vector<8x32xf32>
    %582 = arith.addf %580, %581 : vector<8x32xf32>
    %cst_119 = arith.constant 0.000000e+00 : f32
    %583 = vector.broadcast %cst_119 : f32 to vector<8x32xf32>
    %584 = arith.maximumf %582, %583 : vector<8x32xf32>
    %585 = tpu.concatenate %579, %584 in 1 : vector<8x32xf32>, vector<8x32xf32> -> vector<8x64xf32>
    %586 = tpu.concatenate %585, %478 in 1 : vector<8x64xf32>, vector<8x32xf32> -> vector<8x96xf32>
    %cst_120 = arith.constant dense<0.000000e+00> : vector<8x128xf32>
    %587 = tpu.matmul %586, %4, %cst_120 {dimension_numbers = #tpu.dot_dimension_numbers<[1], [0], [0], [1], [0, 0, 1, 1], [], []>} : vector<8x96xf32>, vector<96x128xf32>, vector<8x128xf32> -> vector<8x128xf32>
    %588 = vector.broadcast %7 : vector<1x128xf32> to vector<8x128xf32>
    %589 = arith.addf %587, %588 : vector<8x128xf32>
    %590 = tpu.iota {dimensions = array<i32: 1>} : vector<8x128xi32>
    %c96_i32_121 = arith.constant 96 : i32
    %591 = vector.broadcast %c96_i32_121 : i32 to vector<8x128xi32>
    %592 = arith.cmpi slt, %590, %591 : vector<8x128xi32>
    %593 = arith.negf %589 : vector<8x128xf32>
    %594 = math.exp %593 : vector<8x128xf32>
    %cst_122 = arith.constant 1.000000e+00 : f32
    %595 = vector.broadcast %cst_122 : f32 to vector<8x128xf32>
    %596 = arith.addf %595, %594 : vector<8x128xf32>
    %597 = arith.divf %595, %596 : vector<8x128xf32>
    %598 = math.tanh %589 : vector<8x128xf32>
    %599 = arith.select %592, %597, %598 : vector<8x128xi1>, vector<8x128xf32>
    %600 = vector.extract_strided_slice %599 {offsets = [0, 0], sizes = [8, 32], strides = [1, 1]} : vector<8x128xf32> to vector<8x32xf32>
    %601 = vector.extract_strided_slice %599 {offsets = [0, 32], sizes = [8, 32], strides = [1, 1]} : vector<8x128xf32> to vector<8x32xf32>
    %602 = vector.extract_strided_slice %599 {offsets = [0, 64], sizes = [8, 32], strides = [1, 1]} : vector<8x128xf32> to vector<8x32xf32>
    %603 = vector.extract_strided_slice %599 {offsets = [0, 96], sizes = [8, 32], strides = [1, 1]} : vector<8x128xf32> to vector<8x32xf32>
    %604 = arith.mulf %601, %476 : vector<8x32xf32>
    %605 = arith.mulf %600, %603 : vector<8x32xf32>
    %606 = arith.addf %604, %605 : vector<8x32xf32>
    %607 = math.tanh %606 : vector<8x32xf32>
    %608 = arith.mulf %602, %607 : vector<8x32xf32>
    %cst_123 = arith.constant dense<0.000000e+00> : vector<8x8xf32>
    %609 = tpu.matmul %608, %8, %cst_123 {dimension_numbers = #tpu.dot_dimension_numbers<[1], [0], [0], [1], [0, 0, 1, 1], [], []>} : vector<8x32xf32>, vector<32x8xf32>, vector<8x8xf32> -> vector<8x8xf32>
    %610 = vector.broadcast %9 : vector<1x8xf32> to vector<8x8xf32>
    %611 = arith.addf %609, %610 : vector<8x8xf32>
    %c2_i32_124 = arith.constant 2 : i32
    %612 = vector.broadcast %c2_i32_124 : i32 to vector<8x8xi32>
    %613 = arith.cmpi slt, %195, %612 : vector<8x8xi32>
    %c4_i32_125 = arith.constant 4 : i32
    %614 = vector.broadcast %c4_i32_125 : i32 to vector<8x8xi32>
    %615 = arith.cmpi slt, %195, %614 : vector<8x8xi32>
    %616 = math.exp %611 : vector<8x8xf32>
    %617 = math.tanh %611 : vector<8x8xf32>
    %618 = arith.select %615, %616, %617 : vector<8x8xi1>, vector<8x8xf32>
    %619 = arith.select %613, %611, %618 : vector<8x8xi1>, vector<8x8xf32>
    %620 = vector.extract_strided_slice %619 {offsets = [0, 0], sizes = [8, 2], strides = [1, 1]} : vector<8x8xf32> to vector<8x2xf32>
    %621 = arith.addf %620, %491 : vector<8x2xf32>
    %c24 = arith.constant 24 : index
    %c0_126 = arith.constant 0 : index
    %622 = vector.load %arg2[%c24, %c0_126] : memref<96x6xf32, #tpu.memory_space<vmem>>, vector<8x6xf32>
    %623 = vector.extract_strided_slice %622 {offsets = [0, 0], sizes = [8, 3], strides = [1, 1]} : vector<8x6xf32> to vector<8x3xf32>
    %624 = vector.extract_strided_slice %621 {offsets = [0, 0], sizes = [8, 1], strides = [1, 1]} : vector<8x2xf32> to vector<8x1xf32>
    %625 = vector.broadcast %624 : vector<8x1xf32> to vector<8x3xf32>
    %626 = arith.subf %623, %625 : vector<8x3xf32>
    %627 = vector.extract_strided_slice %622 {offsets = [0, 3], sizes = [8, 3], strides = [1, 1]} : vector<8x6xf32> to vector<8x3xf32>
    %628 = vector.extract_strided_slice %621 {offsets = [0, 1], sizes = [8, 1], strides = [1, 1]} : vector<8x2xf32> to vector<8x1xf32>
    %629 = vector.broadcast %628 : vector<8x1xf32> to vector<8x3xf32>
    %630 = arith.subf %627, %629 : vector<8x3xf32>
    %631 = math.absf %626 : vector<8x3xf32>
    %cst_127 = arith.constant 2.000000e+00 : f32
    %632 = vector.broadcast %cst_127 : f32 to vector<8x3xf32>
    %633 = arith.cmpf olt, %631, %632 : vector<8x3xf32>
    %634 = math.absf %630 : vector<8x3xf32>
    %cst_128 = arith.constant 2.000000e+00 : f32
    %635 = vector.broadcast %cst_128 : f32 to vector<8x3xf32>
    %636 = arith.cmpf olt, %634, %635 : vector<8x3xf32>
    %637 = arith.andi %633, %636 : vector<8x3xi1>
    %cst_129 = arith.constant 2.000000e+00 : f32
    %638 = vector.broadcast %cst_129 : f32 to vector<8x3xf32>
    %639 = arith.addf %626, %638 : vector<8x3xf32>
    %cst_130 = arith.constant 4.000000e+00 : f32
    %640 = vector.broadcast %cst_130 : f32 to vector<8x3xf32>
    %641 = arith.divf %639, %640 : vector<8x3xf32>
    %cst_131 = arith.constant 4.000000e+00 : f32
    %642 = vector.broadcast %cst_131 : f32 to vector<8x3xf32>
    %643 = arith.mulf %641, %642 : vector<8x3xf32>
    %644 = math.floor %643 : vector<8x3xf32>
    %645 = arith.fptosi %644 : vector<8x3xf32> to vector<8x3xi32>
    %c0_i32_132 = arith.constant 0 : i32
    %c3_i32_133 = arith.constant 3 : i32
    %646 = vector.broadcast %c0_i32_132 : i32 to vector<8x3xi32>
    %647 = arith.maxsi %646, %645 : vector<8x3xi32>
    %648 = vector.broadcast %c3_i32_133 : i32 to vector<8x3xi32>
    %649 = arith.minsi %648, %647 : vector<8x3xi32>
    %cst_134 = arith.constant 2.000000e+00 : f32
    %650 = vector.broadcast %cst_134 : f32 to vector<8x3xf32>
    %651 = arith.addf %630, %650 : vector<8x3xf32>
    %cst_135 = arith.constant 4.000000e+00 : f32
    %652 = vector.broadcast %cst_135 : f32 to vector<8x3xf32>
    %653 = arith.divf %651, %652 : vector<8x3xf32>
    %cst_136 = arith.constant 4.000000e+00 : f32
    %654 = vector.broadcast %cst_136 : f32 to vector<8x3xf32>
    %655 = arith.mulf %653, %654 : vector<8x3xf32>
    %656 = math.floor %655 : vector<8x3xf32>
    %657 = arith.fptosi %656 : vector<8x3xf32> to vector<8x3xi32>
    %c0_i32_137 = arith.constant 0 : i32
    %c3_i32_138 = arith.constant 3 : i32
    %658 = vector.broadcast %c0_i32_137 : i32 to vector<8x3xi32>
    %659 = arith.maxsi %658, %657 : vector<8x3xi32>
    %660 = vector.broadcast %c3_i32_138 : i32 to vector<8x3xi32>
    %661 = arith.minsi %660, %659 : vector<8x3xi32>
    %c4_i32_139 = arith.constant 4 : i32
    %662 = vector.broadcast %c4_i32_139 : i32 to vector<8x3xi32>
    %663 = arith.muli %649, %662 : vector<8x3xi32>
    %664 = arith.addi %663, %661 : vector<8x3xi32>
    %cst_140 = arith.constant 0.000000e+00 : f32
    %665 = vector.broadcast %cst_140 : f32 to vector<8x16xf32>
    %666 = vector.extract_strided_slice %664 {offsets = [0, 0], sizes = [8, 1], strides = [1, 1]} : vector<8x3xi32> to vector<8x1xi32>
    %667 = vector.broadcast %666 : vector<8x1xi32> to vector<8x16xi32>
    %668 = arith.cmpi eq, %194, %667 : vector<8x16xi32>
    %669 = vector.extract_strided_slice %637 {offsets = [0, 0], sizes = [8, 1], strides = [1, 1]} : vector<8x3xi1> to vector<8x1xi1>
    %670 = vector.broadcast %669 : vector<8x1xi1> to vector<8x16xi1>
    %671 = arith.andi %668, %670 : vector<8x16xi1>
    %672 = arith.extui %671 : vector<8x16xi1> to vector<8x16xi32>
    %673 = arith.sitofp %672 : vector<8x16xi32> to vector<8x16xf32>
    %674 = arith.addf %665, %673 : vector<8x16xf32>
    %675 = vector.extract_strided_slice %664 {offsets = [0, 1], sizes = [8, 1], strides = [1, 1]} : vector<8x3xi32> to vector<8x1xi32>
    %676 = vector.broadcast %675 : vector<8x1xi32> to vector<8x16xi32>
    %677 = arith.cmpi eq, %194, %676 : vector<8x16xi32>
    %678 = vector.extract_strided_slice %637 {offsets = [0, 1], sizes = [8, 1], strides = [1, 1]} : vector<8x3xi1> to vector<8x1xi1>
    %679 = vector.broadcast %678 : vector<8x1xi1> to vector<8x16xi1>
    %680 = arith.andi %677, %679 : vector<8x16xi1>
    %681 = arith.extui %680 : vector<8x16xi1> to vector<8x16xi32>
    %682 = arith.sitofp %681 : vector<8x16xi32> to vector<8x16xf32>
    %683 = arith.addf %674, %682 : vector<8x16xf32>
    %684 = vector.extract_strided_slice %664 {offsets = [0, 2], sizes = [8, 1], strides = [1, 1]} : vector<8x3xi32> to vector<8x1xi32>
    %685 = vector.broadcast %684 : vector<8x1xi32> to vector<8x16xi32>
    %686 = arith.cmpi eq, %194, %685 : vector<8x16xi32>
    %687 = vector.extract_strided_slice %637 {offsets = [0, 2], sizes = [8, 1], strides = [1, 1]} : vector<8x3xi1> to vector<8x1xi1>
    %688 = vector.broadcast %687 : vector<8x1xi1> to vector<8x16xi1>
    %689 = arith.andi %686, %688 : vector<8x16xi1>
    %690 = arith.extui %689 : vector<8x16xi1> to vector<8x16xi32>
    %691 = arith.sitofp %690 : vector<8x16xi32> to vector<8x16xf32>
    %692 = arith.addf %683, %691 : vector<8x16xf32>
    %cst_141 = arith.constant 1.000000e+00 : f32
    %693 = vector.broadcast %cst_141 : f32 to vector<8x16xf32>
    %694 = arith.minimumf %692, %693 : vector<8x16xf32>
    %695 = vector.extract_strided_slice %620 {offsets = [0, 0], sizes = [8, 1], strides = [1, 1]} : vector<8x2xf32> to vector<8x1xf32>
    %696 = vector.extract_strided_slice %0 {offsets = [0, 0], sizes = [1, 32], strides = [1, 1]} : vector<2x32xf32> to vector<1x32xf32>
    %697 = vector.broadcast %695 : vector<8x1xf32> to vector<8x32xf32>
    %698 = vector.broadcast %696 : vector<1x32xf32> to vector<8x32xf32>
    %699 = arith.mulf %697, %698 : vector<8x32xf32>
    %700 = vector.extract_strided_slice %620 {offsets = [0, 1], sizes = [8, 1], strides = [1, 1]} : vector<8x2xf32> to vector<8x1xf32>
    %701 = vector.extract_strided_slice %0 {offsets = [1, 0], sizes = [1, 32], strides = [1, 1]} : vector<2x32xf32> to vector<1x32xf32>
    %702 = vector.broadcast %700 : vector<8x1xf32> to vector<8x32xf32>
    %703 = vector.broadcast %701 : vector<1x32xf32> to vector<8x32xf32>
    %704 = arith.mulf %702, %703 : vector<8x32xf32>
    %705 = arith.addf %699, %704 : vector<8x32xf32>
    %706 = vector.broadcast %1 : vector<1x32xf32> to vector<8x32xf32>
    %707 = arith.addf %705, %706 : vector<8x32xf32>
    %cst_142 = arith.constant 0.000000e+00 : f32
    %708 = vector.broadcast %cst_142 : f32 to vector<8x32xf32>
    %709 = arith.maximumf %707, %708 : vector<8x32xf32>
    %cst_143 = arith.constant dense<0.000000e+00> : vector<8x32xf32>
    %710 = tpu.matmul %694, %2, %cst_143 {dimension_numbers = #tpu.dot_dimension_numbers<[1], [0], [0], [1], [0, 0, 1, 1], [], []>} : vector<8x16xf32>, vector<16x32xf32>, vector<8x32xf32> -> vector<8x32xf32>
    %711 = vector.broadcast %3 : vector<1x32xf32> to vector<8x32xf32>
    %712 = arith.addf %710, %711 : vector<8x32xf32>
    %cst_144 = arith.constant 0.000000e+00 : f32
    %713 = vector.broadcast %cst_144 : f32 to vector<8x32xf32>
    %714 = arith.maximumf %712, %713 : vector<8x32xf32>
    %715 = tpu.concatenate %709, %714 in 1 : vector<8x32xf32>, vector<8x32xf32> -> vector<8x64xf32>
    %716 = tpu.concatenate %715, %608 in 1 : vector<8x64xf32>, vector<8x32xf32> -> vector<8x96xf32>
    %cst_145 = arith.constant dense<0.000000e+00> : vector<8x128xf32>
    %717 = tpu.matmul %716, %4, %cst_145 {dimension_numbers = #tpu.dot_dimension_numbers<[1], [0], [0], [1], [0, 0, 1, 1], [], []>} : vector<8x96xf32>, vector<96x128xf32>, vector<8x128xf32> -> vector<8x128xf32>
    %718 = vector.broadcast %7 : vector<1x128xf32> to vector<8x128xf32>
    %719 = arith.addf %717, %718 : vector<8x128xf32>
    %720 = tpu.iota {dimensions = array<i32: 1>} : vector<8x128xi32>
    %c96_i32_146 = arith.constant 96 : i32
    %721 = vector.broadcast %c96_i32_146 : i32 to vector<8x128xi32>
    %722 = arith.cmpi slt, %720, %721 : vector<8x128xi32>
    %723 = arith.negf %719 : vector<8x128xf32>
    %724 = math.exp %723 : vector<8x128xf32>
    %cst_147 = arith.constant 1.000000e+00 : f32
    %725 = vector.broadcast %cst_147 : f32 to vector<8x128xf32>
    %726 = arith.addf %725, %724 : vector<8x128xf32>
    %727 = arith.divf %725, %726 : vector<8x128xf32>
    %728 = math.tanh %719 : vector<8x128xf32>
    %729 = arith.select %722, %727, %728 : vector<8x128xi1>, vector<8x128xf32>
    %730 = vector.extract_strided_slice %729 {offsets = [0, 0], sizes = [8, 32], strides = [1, 1]} : vector<8x128xf32> to vector<8x32xf32>
    %731 = vector.extract_strided_slice %729 {offsets = [0, 32], sizes = [8, 32], strides = [1, 1]} : vector<8x128xf32> to vector<8x32xf32>
    %732 = vector.extract_strided_slice %729 {offsets = [0, 64], sizes = [8, 32], strides = [1, 1]} : vector<8x128xf32> to vector<8x32xf32>
    %733 = vector.extract_strided_slice %729 {offsets = [0, 96], sizes = [8, 32], strides = [1, 1]} : vector<8x128xf32> to vector<8x32xf32>
    %734 = arith.mulf %731, %606 : vector<8x32xf32>
    %735 = arith.mulf %730, %733 : vector<8x32xf32>
    %736 = arith.addf %734, %735 : vector<8x32xf32>
    %737 = math.tanh %736 : vector<8x32xf32>
    %738 = arith.mulf %732, %737 : vector<8x32xf32>
    %cst_148 = arith.constant dense<0.000000e+00> : vector<8x8xf32>
    %739 = tpu.matmul %738, %8, %cst_148 {dimension_numbers = #tpu.dot_dimension_numbers<[1], [0], [0], [1], [0, 0, 1, 1], [], []>} : vector<8x32xf32>, vector<32x8xf32>, vector<8x8xf32> -> vector<8x8xf32>
    %740 = vector.broadcast %9 : vector<1x8xf32> to vector<8x8xf32>
    %741 = arith.addf %739, %740 : vector<8x8xf32>
    %c2_i32_149 = arith.constant 2 : i32
    %742 = vector.broadcast %c2_i32_149 : i32 to vector<8x8xi32>
    %743 = arith.cmpi slt, %195, %742 : vector<8x8xi32>
    %c4_i32_150 = arith.constant 4 : i32
    %744 = vector.broadcast %c4_i32_150 : i32 to vector<8x8xi32>
    %745 = arith.cmpi slt, %195, %744 : vector<8x8xi32>
    %746 = math.exp %741 : vector<8x8xf32>
    %747 = math.tanh %741 : vector<8x8xf32>
    %748 = arith.select %745, %746, %747 : vector<8x8xi1>, vector<8x8xf32>
    %749 = arith.select %743, %741, %748 : vector<8x8xi1>, vector<8x8xf32>
    %750 = vector.extract_strided_slice %749 {offsets = [0, 0], sizes = [8, 2], strides = [1, 1]} : vector<8x8xf32> to vector<8x2xf32>
    %751 = arith.addf %750, %621 : vector<8x2xf32>
    %c32 = arith.constant 32 : index
    %c0_151 = arith.constant 0 : index
    %752 = vector.load %arg2[%c32, %c0_151] : memref<96x6xf32, #tpu.memory_space<vmem>>, vector<8x6xf32>
    %753 = vector.extract_strided_slice %752 {offsets = [0, 0], sizes = [8, 3], strides = [1, 1]} : vector<8x6xf32> to vector<8x3xf32>
    %754 = vector.extract_strided_slice %751 {offsets = [0, 0], sizes = [8, 1], strides = [1, 1]} : vector<8x2xf32> to vector<8x1xf32>
    %755 = vector.broadcast %754 : vector<8x1xf32> to vector<8x3xf32>
    %756 = arith.subf %753, %755 : vector<8x3xf32>
    %757 = vector.extract_strided_slice %752 {offsets = [0, 3], sizes = [8, 3], strides = [1, 1]} : vector<8x6xf32> to vector<8x3xf32>
    %758 = vector.extract_strided_slice %751 {offsets = [0, 1], sizes = [8, 1], strides = [1, 1]} : vector<8x2xf32> to vector<8x1xf32>
    %759 = vector.broadcast %758 : vector<8x1xf32> to vector<8x3xf32>
    %760 = arith.subf %757, %759 : vector<8x3xf32>
    %761 = math.absf %756 : vector<8x3xf32>
    %cst_152 = arith.constant 2.000000e+00 : f32
    %762 = vector.broadcast %cst_152 : f32 to vector<8x3xf32>
    %763 = arith.cmpf olt, %761, %762 : vector<8x3xf32>
    %764 = math.absf %760 : vector<8x3xf32>
    %cst_153 = arith.constant 2.000000e+00 : f32
    %765 = vector.broadcast %cst_153 : f32 to vector<8x3xf32>
    %766 = arith.cmpf olt, %764, %765 : vector<8x3xf32>
    %767 = arith.andi %763, %766 : vector<8x3xi1>
    %cst_154 = arith.constant 2.000000e+00 : f32
    %768 = vector.broadcast %cst_154 : f32 to vector<8x3xf32>
    %769 = arith.addf %756, %768 : vector<8x3xf32>
    %cst_155 = arith.constant 4.000000e+00 : f32
    %770 = vector.broadcast %cst_155 : f32 to vector<8x3xf32>
    %771 = arith.divf %769, %770 : vector<8x3xf32>
    %cst_156 = arith.constant 4.000000e+00 : f32
    %772 = vector.broadcast %cst_156 : f32 to vector<8x3xf32>
    %773 = arith.mulf %771, %772 : vector<8x3xf32>
    %774 = math.floor %773 : vector<8x3xf32>
    %775 = arith.fptosi %774 : vector<8x3xf32> to vector<8x3xi32>
    %c0_i32_157 = arith.constant 0 : i32
    %c3_i32_158 = arith.constant 3 : i32
    %776 = vector.broadcast %c0_i32_157 : i32 to vector<8x3xi32>
    %777 = arith.maxsi %776, %775 : vector<8x3xi32>
    %778 = vector.broadcast %c3_i32_158 : i32 to vector<8x3xi32>
    %779 = arith.minsi %778, %777 : vector<8x3xi32>
    %cst_159 = arith.constant 2.000000e+00 : f32
    %780 = vector.broadcast %cst_159 : f32 to vector<8x3xf32>
    %781 = arith.addf %760, %780 : vector<8x3xf32>
    %cst_160 = arith.constant 4.000000e+00 : f32
    %782 = vector.broadcast %cst_160 : f32 to vector<8x3xf32>
    %783 = arith.divf %781, %782 : vector<8x3xf32>
    %cst_161 = arith.constant 4.000000e+00 : f32
    %784 = vector.broadcast %cst_161 : f32 to vector<8x3xf32>
    %785 = arith.mulf %783, %784 : vector<8x3xf32>
    %786 = math.floor %785 : vector<8x3xf32>
    %787 = arith.fptosi %786 : vector<8x3xf32> to vector<8x3xi32>
    %c0_i32_162 = arith.constant 0 : i32
    %c3_i32_163 = arith.constant 3 : i32
    %788 = vector.broadcast %c0_i32_162 : i32 to vector<8x3xi32>
    %789 = arith.maxsi %788, %787 : vector<8x3xi32>
    %790 = vector.broadcast %c3_i32_163 : i32 to vector<8x3xi32>
    %791 = arith.minsi %790, %789 : vector<8x3xi32>
    %c4_i32_164 = arith.constant 4 : i32
    %792 = vector.broadcast %c4_i32_164 : i32 to vector<8x3xi32>
    %793 = arith.muli %779, %792 : vector<8x3xi32>
    %794 = arith.addi %793, %791 : vector<8x3xi32>
    %cst_165 = arith.constant 0.000000e+00 : f32
    %795 = vector.broadcast %cst_165 : f32 to vector<8x16xf32>
    %796 = vector.extract_strided_slice %794 {offsets = [0, 0], sizes = [8, 1], strides = [1, 1]} : vector<8x3xi32> to vector<8x1xi32>
    %797 = vector.broadcast %796 : vector<8x1xi32> to vector<8x16xi32>
    %798 = arith.cmpi eq, %194, %797 : vector<8x16xi32>
    %799 = vector.extract_strided_slice %767 {offsets = [0, 0], sizes = [8, 1], strides = [1, 1]} : vector<8x3xi1> to vector<8x1xi1>
    %800 = vector.broadcast %799 : vector<8x1xi1> to vector<8x16xi1>
    %801 = arith.andi %798, %800 : vector<8x16xi1>
    %802 = arith.extui %801 : vector<8x16xi1> to vector<8x16xi32>
    %803 = arith.sitofp %802 : vector<8x16xi32> to vector<8x16xf32>
    %804 = arith.addf %795, %803 : vector<8x16xf32>
    %805 = vector.extract_strided_slice %794 {offsets = [0, 1], sizes = [8, 1], strides = [1, 1]} : vector<8x3xi32> to vector<8x1xi32>
    %806 = vector.broadcast %805 : vector<8x1xi32> to vector<8x16xi32>
    %807 = arith.cmpi eq, %194, %806 : vector<8x16xi32>
    %808 = vector.extract_strided_slice %767 {offsets = [0, 1], sizes = [8, 1], strides = [1, 1]} : vector<8x3xi1> to vector<8x1xi1>
    %809 = vector.broadcast %808 : vector<8x1xi1> to vector<8x16xi1>
    %810 = arith.andi %807, %809 : vector<8x16xi1>
    %811 = arith.extui %810 : vector<8x16xi1> to vector<8x16xi32>
    %812 = arith.sitofp %811 : vector<8x16xi32> to vector<8x16xf32>
    %813 = arith.addf %804, %812 : vector<8x16xf32>
    %814 = vector.extract_strided_slice %794 {offsets = [0, 2], sizes = [8, 1], strides = [1, 1]} : vector<8x3xi32> to vector<8x1xi32>
    %815 = vector.broadcast %814 : vector<8x1xi32> to vector<8x16xi32>
    %816 = arith.cmpi eq, %194, %815 : vector<8x16xi32>
    %817 = vector.extract_strided_slice %767 {offsets = [0, 2], sizes = [8, 1], strides = [1, 1]} : vector<8x3xi1> to vector<8x1xi1>
    %818 = vector.broadcast %817 : vector<8x1xi1> to vector<8x16xi1>
    %819 = arith.andi %816, %818 : vector<8x16xi1>
    %820 = arith.extui %819 : vector<8x16xi1> to vector<8x16xi32>
    %821 = arith.sitofp %820 : vector<8x16xi32> to vector<8x16xf32>
    %822 = arith.addf %813, %821 : vector<8x16xf32>
    %cst_166 = arith.constant 1.000000e+00 : f32
    %823 = vector.broadcast %cst_166 : f32 to vector<8x16xf32>
    %824 = arith.minimumf %822, %823 : vector<8x16xf32>
    %825 = vector.extract_strided_slice %750 {offsets = [0, 0], sizes = [8, 1], strides = [1, 1]} : vector<8x2xf32> to vector<8x1xf32>
    %826 = vector.extract_strided_slice %0 {offsets = [0, 0], sizes = [1, 32], strides = [1, 1]} : vector<2x32xf32> to vector<1x32xf32>
    %827 = vector.broadcast %825 : vector<8x1xf32> to vector<8x32xf32>
    %828 = vector.broadcast %826 : vector<1x32xf32> to vector<8x32xf32>
    %829 = arith.mulf %827, %828 : vector<8x32xf32>
    %830 = vector.extract_strided_slice %750 {offsets = [0, 1], sizes = [8, 1], strides = [1, 1]} : vector<8x2xf32> to vector<8x1xf32>
    %831 = vector.extract_strided_slice %0 {offsets = [1, 0], sizes = [1, 32], strides = [1, 1]} : vector<2x32xf32> to vector<1x32xf32>
    %832 = vector.broadcast %830 : vector<8x1xf32> to vector<8x32xf32>
    %833 = vector.broadcast %831 : vector<1x32xf32> to vector<8x32xf32>
    %834 = arith.mulf %832, %833 : vector<8x32xf32>
    %835 = arith.addf %829, %834 : vector<8x32xf32>
    %836 = vector.broadcast %1 : vector<1x32xf32> to vector<8x32xf32>
    %837 = arith.addf %835, %836 : vector<8x32xf32>
    %cst_167 = arith.constant 0.000000e+00 : f32
    %838 = vector.broadcast %cst_167 : f32 to vector<8x32xf32>
    %839 = arith.maximumf %837, %838 : vector<8x32xf32>
    %cst_168 = arith.constant dense<0.000000e+00> : vector<8x32xf32>
    %840 = tpu.matmul %824, %2, %cst_168 {dimension_numbers = #tpu.dot_dimension_numbers<[1], [0], [0], [1], [0, 0, 1, 1], [], []>} : vector<8x16xf32>, vector<16x32xf32>, vector<8x32xf32> -> vector<8x32xf32>
    %841 = vector.broadcast %3 : vector<1x32xf32> to vector<8x32xf32>
    %842 = arith.addf %840, %841 : vector<8x32xf32>
    %cst_169 = arith.constant 0.000000e+00 : f32
    %843 = vector.broadcast %cst_169 : f32 to vector<8x32xf32>
    %844 = arith.maximumf %842, %843 : vector<8x32xf32>
    %845 = tpu.concatenate %839, %844 in 1 : vector<8x32xf32>, vector<8x32xf32> -> vector<8x64xf32>
    %846 = tpu.concatenate %845, %738 in 1 : vector<8x64xf32>, vector<8x32xf32> -> vector<8x96xf32>
    %cst_170 = arith.constant dense<0.000000e+00> : vector<8x128xf32>
    %847 = tpu.matmul %846, %4, %cst_170 {dimension_numbers = #tpu.dot_dimension_numbers<[1], [0], [0], [1], [0, 0, 1, 1], [], []>} : vector<8x96xf32>, vector<96x128xf32>, vector<8x128xf32> -> vector<8x128xf32>
    %848 = vector.broadcast %7 : vector<1x128xf32> to vector<8x128xf32>
    %849 = arith.addf %847, %848 : vector<8x128xf32>
    %850 = tpu.iota {dimensions = array<i32: 1>} : vector<8x128xi32>
    %c96_i32_171 = arith.constant 96 : i32
    %851 = vector.broadcast %c96_i32_171 : i32 to vector<8x128xi32>
    %852 = arith.cmpi slt, %850, %851 : vector<8x128xi32>
    %853 = arith.negf %849 : vector<8x128xf32>
    %854 = math.exp %853 : vector<8x128xf32>
    %cst_172 = arith.constant 1.000000e+00 : f32
    %855 = vector.broadcast %cst_172 : f32 to vector<8x128xf32>
    %856 = arith.addf %855, %854 : vector<8x128xf32>
    %857 = arith.divf %855, %856 : vector<8x128xf32>
    %858 = math.tanh %849 : vector<8x128xf32>
    %859 = arith.select %852, %857, %858 : vector<8x128xi1>, vector<8x128xf32>
    %860 = vector.extract_strided_slice %859 {offsets = [0, 0], sizes = [8, 32], strides = [1, 1]} : vector<8x128xf32> to vector<8x32xf32>
    %861 = vector.extract_strided_slice %859 {offsets = [0, 32], sizes = [8, 32], strides = [1, 1]} : vector<8x128xf32> to vector<8x32xf32>
    %862 = vector.extract_strided_slice %859 {offsets = [0, 64], sizes = [8, 32], strides = [1, 1]} : vector<8x128xf32> to vector<8x32xf32>
    %863 = vector.extract_strided_slice %859 {offsets = [0, 96], sizes = [8, 32], strides = [1, 1]} : vector<8x128xf32> to vector<8x32xf32>
    %864 = arith.mulf %861, %736 : vector<8x32xf32>
    %865 = arith.mulf %860, %863 : vector<8x32xf32>
    %866 = arith.addf %864, %865 : vector<8x32xf32>
    %867 = math.tanh %866 : vector<8x32xf32>
    %868 = arith.mulf %862, %867 : vector<8x32xf32>
    %cst_173 = arith.constant dense<0.000000e+00> : vector<8x8xf32>
    %869 = tpu.matmul %868, %8, %cst_173 {dimension_numbers = #tpu.dot_dimension_numbers<[1], [0], [0], [1], [0, 0, 1, 1], [], []>} : vector<8x32xf32>, vector<32x8xf32>, vector<8x8xf32> -> vector<8x8xf32>
    %870 = vector.broadcast %9 : vector<1x8xf32> to vector<8x8xf32>
    %871 = arith.addf %869, %870 : vector<8x8xf32>
    %c2_i32_174 = arith.constant 2 : i32
    %872 = vector.broadcast %c2_i32_174 : i32 to vector<8x8xi32>
    %873 = arith.cmpi slt, %195, %872 : vector<8x8xi32>
    %c4_i32_175 = arith.constant 4 : i32
    %874 = vector.broadcast %c4_i32_175 : i32 to vector<8x8xi32>
    %875 = arith.cmpi slt, %195, %874 : vector<8x8xi32>
    %876 = math.exp %871 : vector<8x8xf32>
    %877 = math.tanh %871 : vector<8x8xf32>
    %878 = arith.select %875, %876, %877 : vector<8x8xi1>, vector<8x8xf32>
    %879 = arith.select %873, %871, %878 : vector<8x8xi1>, vector<8x8xf32>
    %880 = vector.extract_strided_slice %879 {offsets = [0, 0], sizes = [8, 2], strides = [1, 1]} : vector<8x8xf32> to vector<8x2xf32>
    %881 = arith.addf %880, %751 : vector<8x2xf32>
    %c40 = arith.constant 40 : index
    %c0_176 = arith.constant 0 : index
    %882 = vector.load %arg2[%c40, %c0_176] : memref<96x6xf32, #tpu.memory_space<vmem>>, vector<8x6xf32>
    %883 = vector.extract_strided_slice %882 {offsets = [0, 0], sizes = [8, 3], strides = [1, 1]} : vector<8x6xf32> to vector<8x3xf32>
    %884 = vector.extract_strided_slice %881 {offsets = [0, 0], sizes = [8, 1], strides = [1, 1]} : vector<8x2xf32> to vector<8x1xf32>
    %885 = vector.broadcast %884 : vector<8x1xf32> to vector<8x3xf32>
    %886 = arith.subf %883, %885 : vector<8x3xf32>
    %887 = vector.extract_strided_slice %882 {offsets = [0, 3], sizes = [8, 3], strides = [1, 1]} : vector<8x6xf32> to vector<8x3xf32>
    %888 = vector.extract_strided_slice %881 {offsets = [0, 1], sizes = [8, 1], strides = [1, 1]} : vector<8x2xf32> to vector<8x1xf32>
    %889 = vector.broadcast %888 : vector<8x1xf32> to vector<8x3xf32>
    %890 = arith.subf %887, %889 : vector<8x3xf32>
    %891 = math.absf %886 : vector<8x3xf32>
    %cst_177 = arith.constant 2.000000e+00 : f32
    %892 = vector.broadcast %cst_177 : f32 to vector<8x3xf32>
    %893 = arith.cmpf olt, %891, %892 : vector<8x3xf32>
    %894 = math.absf %890 : vector<8x3xf32>
    %cst_178 = arith.constant 2.000000e+00 : f32
    %895 = vector.broadcast %cst_178 : f32 to vector<8x3xf32>
    %896 = arith.cmpf olt, %894, %895 : vector<8x3xf32>
    %897 = arith.andi %893, %896 : vector<8x3xi1>
    %cst_179 = arith.constant 2.000000e+00 : f32
    %898 = vector.broadcast %cst_179 : f32 to vector<8x3xf32>
    %899 = arith.addf %886, %898 : vector<8x3xf32>
    %cst_180 = arith.constant 4.000000e+00 : f32
    %900 = vector.broadcast %cst_180 : f32 to vector<8x3xf32>
    %901 = arith.divf %899, %900 : vector<8x3xf32>
    %cst_181 = arith.constant 4.000000e+00 : f32
    %902 = vector.broadcast %cst_181 : f32 to vector<8x3xf32>
    %903 = arith.mulf %901, %902 : vector<8x3xf32>
    %904 = math.floor %903 : vector<8x3xf32>
    %905 = arith.fptosi %904 : vector<8x3xf32> to vector<8x3xi32>
    %c0_i32_182 = arith.constant 0 : i32
    %c3_i32_183 = arith.constant 3 : i32
    %906 = vector.broadcast %c0_i32_182 : i32 to vector<8x3xi32>
    %907 = arith.maxsi %906, %905 : vector<8x3xi32>
    %908 = vector.broadcast %c3_i32_183 : i32 to vector<8x3xi32>
    %909 = arith.minsi %908, %907 : vector<8x3xi32>
    %cst_184 = arith.constant 2.000000e+00 : f32
    %910 = vector.broadcast %cst_184 : f32 to vector<8x3xf32>
    %911 = arith.addf %890, %910 : vector<8x3xf32>
    %cst_185 = arith.constant 4.000000e+00 : f32
    %912 = vector.broadcast %cst_185 : f32 to vector<8x3xf32>
    %913 = arith.divf %911, %912 : vector<8x3xf32>
    %cst_186 = arith.constant 4.000000e+00 : f32
    %914 = vector.broadcast %cst_186 : f32 to vector<8x3xf32>
    %915 = arith.mulf %913, %914 : vector<8x3xf32>
    %916 = math.floor %915 : vector<8x3xf32>
    %917 = arith.fptosi %916 : vector<8x3xf32> to vector<8x3xi32>
    %c0_i32_187 = arith.constant 0 : i32
    %c3_i32_188 = arith.constant 3 : i32
    %918 = vector.broadcast %c0_i32_187 : i32 to vector<8x3xi32>
    %919 = arith.maxsi %918, %917 : vector<8x3xi32>
    %920 = vector.broadcast %c3_i32_188 : i32 to vector<8x3xi32>
    %921 = arith.minsi %920, %919 : vector<8x3xi32>
    %c4_i32_189 = arith.constant 4 : i32
    %922 = vector.broadcast %c4_i32_189 : i32 to vector<8x3xi32>
    %923 = arith.muli %909, %922 : vector<8x3xi32>
    %924 = arith.addi %923, %921 : vector<8x3xi32>
    %cst_190 = arith.constant 0.000000e+00 : f32
    %925 = vector.broadcast %cst_190 : f32 to vector<8x16xf32>
    %926 = vector.extract_strided_slice %924 {offsets = [0, 0], sizes = [8, 1], strides = [1, 1]} : vector<8x3xi32> to vector<8x1xi32>
    %927 = vector.broadcast %926 : vector<8x1xi32> to vector<8x16xi32>
    %928 = arith.cmpi eq, %194, %927 : vector<8x16xi32>
    %929 = vector.extract_strided_slice %897 {offsets = [0, 0], sizes = [8, 1], strides = [1, 1]} : vector<8x3xi1> to vector<8x1xi1>
    %930 = vector.broadcast %929 : vector<8x1xi1> to vector<8x16xi1>
    %931 = arith.andi %928, %930 : vector<8x16xi1>
    %932 = arith.extui %931 : vector<8x16xi1> to vector<8x16xi32>
    %933 = arith.sitofp %932 : vector<8x16xi32> to vector<8x16xf32>
    %934 = arith.addf %925, %933 : vector<8x16xf32>
    %935 = vector.extract_strided_slice %924 {offsets = [0, 1], sizes = [8, 1], strides = [1, 1]} : vector<8x3xi32> to vector<8x1xi32>
    %936 = vector.broadcast %935 : vector<8x1xi32> to vector<8x16xi32>
    %937 = arith.cmpi eq, %194, %936 : vector<8x16xi32>
    %938 = vector.extract_strided_slice %897 {offsets = [0, 1], sizes = [8, 1], strides = [1, 1]} : vector<8x3xi1> to vector<8x1xi1>
    %939 = vector.broadcast %938 : vector<8x1xi1> to vector<8x16xi1>
    %940 = arith.andi %937, %939 : vector<8x16xi1>
    %941 = arith.extui %940 : vector<8x16xi1> to vector<8x16xi32>
    %942 = arith.sitofp %941 : vector<8x16xi32> to vector<8x16xf32>
    %943 = arith.addf %934, %942 : vector<8x16xf32>
    %944 = vector.extract_strided_slice %924 {offsets = [0, 2], sizes = [8, 1], strides = [1, 1]} : vector<8x3xi32> to vector<8x1xi32>
    %945 = vector.broadcast %944 : vector<8x1xi32> to vector<8x16xi32>
    %946 = arith.cmpi eq, %194, %945 : vector<8x16xi32>
    %947 = vector.extract_strided_slice %897 {offsets = [0, 2], sizes = [8, 1], strides = [1, 1]} : vector<8x3xi1> to vector<8x1xi1>
    %948 = vector.broadcast %947 : vector<8x1xi1> to vector<8x16xi1>
    %949 = arith.andi %946, %948 : vector<8x16xi1>
    %950 = arith.extui %949 : vector<8x16xi1> to vector<8x16xi32>
    %951 = arith.sitofp %950 : vector<8x16xi32> to vector<8x16xf32>
    %952 = arith.addf %943, %951 : vector<8x16xf32>
    %cst_191 = arith.constant 1.000000e+00 : f32
    %953 = vector.broadcast %cst_191 : f32 to vector<8x16xf32>
    %954 = arith.minimumf %952, %953 : vector<8x16xf32>
    %955 = vector.extract_strided_slice %880 {offsets = [0, 0], sizes = [8, 1], strides = [1, 1]} : vector<8x2xf32> to vector<8x1xf32>
    %956 = vector.extract_strided_slice %0 {offsets = [0, 0], sizes = [1, 32], strides = [1, 1]} : vector<2x32xf32> to vector<1x32xf32>
    %957 = vector.broadcast %955 : vector<8x1xf32> to vector<8x32xf32>
    %958 = vector.broadcast %956 : vector<1x32xf32> to vector<8x32xf32>
    %959 = arith.mulf %957, %958 : vector<8x32xf32>
    %960 = vector.extract_strided_slice %880 {offsets = [0, 1], sizes = [8, 1], strides = [1, 1]} : vector<8x2xf32> to vector<8x1xf32>
    %961 = vector.extract_strided_slice %0 {offsets = [1, 0], sizes = [1, 32], strides = [1, 1]} : vector<2x32xf32> to vector<1x32xf32>
    %962 = vector.broadcast %960 : vector<8x1xf32> to vector<8x32xf32>
    %963 = vector.broadcast %961 : vector<1x32xf32> to vector<8x32xf32>
    %964 = arith.mulf %962, %963 : vector<8x32xf32>
    %965 = arith.addf %959, %964 : vector<8x32xf32>
    %966 = vector.broadcast %1 : vector<1x32xf32> to vector<8x32xf32>
    %967 = arith.addf %965, %966 : vector<8x32xf32>
    %cst_192 = arith.constant 0.000000e+00 : f32
    %968 = vector.broadcast %cst_192 : f32 to vector<8x32xf32>
    %969 = arith.maximumf %967, %968 : vector<8x32xf32>
    %cst_193 = arith.constant dense<0.000000e+00> : vector<8x32xf32>
    %970 = tpu.matmul %954, %2, %cst_193 {dimension_numbers = #tpu.dot_dimension_numbers<[1], [0], [0], [1], [0, 0, 1, 1], [], []>} : vector<8x16xf32>, vector<16x32xf32>, vector<8x32xf32> -> vector<8x32xf32>
    %971 = vector.broadcast %3 : vector<1x32xf32> to vector<8x32xf32>
    %972 = arith.addf %970, %971 : vector<8x32xf32>
    %cst_194 = arith.constant 0.000000e+00 : f32
    %973 = vector.broadcast %cst_194 : f32 to vector<8x32xf32>
    %974 = arith.maximumf %972, %973 : vector<8x32xf32>
    %975 = tpu.concatenate %969, %974 in 1 : vector<8x32xf32>, vector<8x32xf32> -> vector<8x64xf32>
    %976 = tpu.concatenate %975, %868 in 1 : vector<8x64xf32>, vector<8x32xf32> -> vector<8x96xf32>
    %cst_195 = arith.constant dense<0.000000e+00> : vector<8x128xf32>
    %977 = tpu.matmul %976, %4, %cst_195 {dimension_numbers = #tpu.dot_dimension_numbers<[1], [0], [0], [1], [0, 0, 1, 1], [], []>} : vector<8x96xf32>, vector<96x128xf32>, vector<8x128xf32> -> vector<8x128xf32>
    %978 = vector.broadcast %7 : vector<1x128xf32> to vector<8x128xf32>
    %979 = arith.addf %977, %978 : vector<8x128xf32>
    %980 = tpu.iota {dimensions = array<i32: 1>} : vector<8x128xi32>
    %c96_i32_196 = arith.constant 96 : i32
    %981 = vector.broadcast %c96_i32_196 : i32 to vector<8x128xi32>
    %982 = arith.cmpi slt, %980, %981 : vector<8x128xi32>
    %983 = arith.negf %979 : vector<8x128xf32>
    %984 = math.exp %983 : vector<8x128xf32>
    %cst_197 = arith.constant 1.000000e+00 : f32
    %985 = vector.broadcast %cst_197 : f32 to vector<8x128xf32>
    %986 = arith.addf %985, %984 : vector<8x128xf32>
    %987 = arith.divf %985, %986 : vector<8x128xf32>
    %988 = math.tanh %979 : vector<8x128xf32>
    %989 = arith.select %982, %987, %988 : vector<8x128xi1>, vector<8x128xf32>
    %990 = vector.extract_strided_slice %989 {offsets = [0, 0], sizes = [8, 32], strides = [1, 1]} : vector<8x128xf32> to vector<8x32xf32>
    %991 = vector.extract_strided_slice %989 {offsets = [0, 32], sizes = [8, 32], strides = [1, 1]} : vector<8x128xf32> to vector<8x32xf32>
    %992 = vector.extract_strided_slice %989 {offsets = [0, 64], sizes = [8, 32], strides = [1, 1]} : vector<8x128xf32> to vector<8x32xf32>
    %993 = vector.extract_strided_slice %989 {offsets = [0, 96], sizes = [8, 32], strides = [1, 1]} : vector<8x128xf32> to vector<8x32xf32>
    %994 = arith.mulf %991, %866 : vector<8x32xf32>
    %995 = arith.mulf %990, %993 : vector<8x32xf32>
    %996 = arith.addf %994, %995 : vector<8x32xf32>
    %997 = math.tanh %996 : vector<8x32xf32>
    %998 = arith.mulf %992, %997 : vector<8x32xf32>
    %cst_198 = arith.constant dense<0.000000e+00> : vector<8x8xf32>
    %999 = tpu.matmul %998, %8, %cst_198 {dimension_numbers = #tpu.dot_dimension_numbers<[1], [0], [0], [1], [0, 0, 1, 1], [], []>} : vector<8x32xf32>, vector<32x8xf32>, vector<8x8xf32> -> vector<8x8xf32>
    %1000 = vector.broadcast %9 : vector<1x8xf32> to vector<8x8xf32>
    %1001 = arith.addf %999, %1000 : vector<8x8xf32>
    %c2_i32_199 = arith.constant 2 : i32
    %1002 = vector.broadcast %c2_i32_199 : i32 to vector<8x8xi32>
    %1003 = arith.cmpi slt, %195, %1002 : vector<8x8xi32>
    %c4_i32_200 = arith.constant 4 : i32
    %1004 = vector.broadcast %c4_i32_200 : i32 to vector<8x8xi32>
    %1005 = arith.cmpi slt, %195, %1004 : vector<8x8xi32>
    %1006 = math.exp %1001 : vector<8x8xf32>
    %1007 = math.tanh %1001 : vector<8x8xf32>
    %1008 = arith.select %1005, %1006, %1007 : vector<8x8xi1>, vector<8x8xf32>
    %1009 = arith.select %1003, %1001, %1008 : vector<8x8xi1>, vector<8x8xf32>
    %1010 = vector.extract_strided_slice %1009 {offsets = [0, 0], sizes = [8, 2], strides = [1, 1]} : vector<8x8xf32> to vector<8x2xf32>
    %1011 = arith.addf %1010, %881 : vector<8x2xf32>
    %c48 = arith.constant 48 : index
    %c0_201 = arith.constant 0 : index
    %1012 = vector.load %arg2[%c48, %c0_201] : memref<96x6xf32, #tpu.memory_space<vmem>>, vector<8x6xf32>
    %1013 = vector.extract_strided_slice %1012 {offsets = [0, 0], sizes = [8, 3], strides = [1, 1]} : vector<8x6xf32> to vector<8x3xf32>
    %1014 = vector.extract_strided_slice %1011 {offsets = [0, 0], sizes = [8, 1], strides = [1, 1]} : vector<8x2xf32> to vector<8x1xf32>
    %1015 = vector.broadcast %1014 : vector<8x1xf32> to vector<8x3xf32>
    %1016 = arith.subf %1013, %1015 : vector<8x3xf32>
    %1017 = vector.extract_strided_slice %1012 {offsets = [0, 3], sizes = [8, 3], strides = [1, 1]} : vector<8x6xf32> to vector<8x3xf32>
    %1018 = vector.extract_strided_slice %1011 {offsets = [0, 1], sizes = [8, 1], strides = [1, 1]} : vector<8x2xf32> to vector<8x1xf32>
    %1019 = vector.broadcast %1018 : vector<8x1xf32> to vector<8x3xf32>
    %1020 = arith.subf %1017, %1019 : vector<8x3xf32>
    %1021 = math.absf %1016 : vector<8x3xf32>
    %cst_202 = arith.constant 2.000000e+00 : f32
    %1022 = vector.broadcast %cst_202 : f32 to vector<8x3xf32>
    %1023 = arith.cmpf olt, %1021, %1022 : vector<8x3xf32>
    %1024 = math.absf %1020 : vector<8x3xf32>
    %cst_203 = arith.constant 2.000000e+00 : f32
    %1025 = vector.broadcast %cst_203 : f32 to vector<8x3xf32>
    %1026 = arith.cmpf olt, %1024, %1025 : vector<8x3xf32>
    %1027 = arith.andi %1023, %1026 : vector<8x3xi1>
    %cst_204 = arith.constant 2.000000e+00 : f32
    %1028 = vector.broadcast %cst_204 : f32 to vector<8x3xf32>
    %1029 = arith.addf %1016, %1028 : vector<8x3xf32>
    %cst_205 = arith.constant 4.000000e+00 : f32
    %1030 = vector.broadcast %cst_205 : f32 to vector<8x3xf32>
    %1031 = arith.divf %1029, %1030 : vector<8x3xf32>
    %cst_206 = arith.constant 4.000000e+00 : f32
    %1032 = vector.broadcast %cst_206 : f32 to vector<8x3xf32>
    %1033 = arith.mulf %1031, %1032 : vector<8x3xf32>
    %1034 = math.floor %1033 : vector<8x3xf32>
    %1035 = arith.fptosi %1034 : vector<8x3xf32> to vector<8x3xi32>
    %c0_i32_207 = arith.constant 0 : i32
    %c3_i32_208 = arith.constant 3 : i32
    %1036 = vector.broadcast %c0_i32_207 : i32 to vector<8x3xi32>
    %1037 = arith.maxsi %1036, %1035 : vector<8x3xi32>
    %1038 = vector.broadcast %c3_i32_208 : i32 to vector<8x3xi32>
    %1039 = arith.minsi %1038, %1037 : vector<8x3xi32>
    %cst_209 = arith.constant 2.000000e+00 : f32
    %1040 = vector.broadcast %cst_209 : f32 to vector<8x3xf32>
    %1041 = arith.addf %1020, %1040 : vector<8x3xf32>
    %cst_210 = arith.constant 4.000000e+00 : f32
    %1042 = vector.broadcast %cst_210 : f32 to vector<8x3xf32>
    %1043 = arith.divf %1041, %1042 : vector<8x3xf32>
    %cst_211 = arith.constant 4.000000e+00 : f32
    %1044 = vector.broadcast %cst_211 : f32 to vector<8x3xf32>
    %1045 = arith.mulf %1043, %1044 : vector<8x3xf32>
    %1046 = math.floor %1045 : vector<8x3xf32>
    %1047 = arith.fptosi %1046 : vector<8x3xf32> to vector<8x3xi32>
    %c0_i32_212 = arith.constant 0 : i32
    %c3_i32_213 = arith.constant 3 : i32
    %1048 = vector.broadcast %c0_i32_212 : i32 to vector<8x3xi32>
    %1049 = arith.maxsi %1048, %1047 : vector<8x3xi32>
    %1050 = vector.broadcast %c3_i32_213 : i32 to vector<8x3xi32>
    %1051 = arith.minsi %1050, %1049 : vector<8x3xi32>
    %c4_i32_214 = arith.constant 4 : i32
    %1052 = vector.broadcast %c4_i32_214 : i32 to vector<8x3xi32>
    %1053 = arith.muli %1039, %1052 : vector<8x3xi32>
    %1054 = arith.addi %1053, %1051 : vector<8x3xi32>
    %cst_215 = arith.constant 0.000000e+00 : f32
    %1055 = vector.broadcast %cst_215 : f32 to vector<8x16xf32>
    %1056 = vector.extract_strided_slice %1054 {offsets = [0, 0], sizes = [8, 1], strides = [1, 1]} : vector<8x3xi32> to vector<8x1xi32>
    %1057 = vector.broadcast %1056 : vector<8x1xi32> to vector<8x16xi32>
    %1058 = arith.cmpi eq, %194, %1057 : vector<8x16xi32>
    %1059 = vector.extract_strided_slice %1027 {offsets = [0, 0], sizes = [8, 1], strides = [1, 1]} : vector<8x3xi1> to vector<8x1xi1>
    %1060 = vector.broadcast %1059 : vector<8x1xi1> to vector<8x16xi1>
    %1061 = arith.andi %1058, %1060 : vector<8x16xi1>
    %1062 = arith.extui %1061 : vector<8x16xi1> to vector<8x16xi32>
    %1063 = arith.sitofp %1062 : vector<8x16xi32> to vector<8x16xf32>
    %1064 = arith.addf %1055, %1063 : vector<8x16xf32>
    %1065 = vector.extract_strided_slice %1054 {offsets = [0, 1], sizes = [8, 1], strides = [1, 1]} : vector<8x3xi32> to vector<8x1xi32>
    %1066 = vector.broadcast %1065 : vector<8x1xi32> to vector<8x16xi32>
    %1067 = arith.cmpi eq, %194, %1066 : vector<8x16xi32>
    %1068 = vector.extract_strided_slice %1027 {offsets = [0, 1], sizes = [8, 1], strides = [1, 1]} : vector<8x3xi1> to vector<8x1xi1>
    %1069 = vector.broadcast %1068 : vector<8x1xi1> to vector<8x16xi1>
    %1070 = arith.andi %1067, %1069 : vector<8x16xi1>
    %1071 = arith.extui %1070 : vector<8x16xi1> to vector<8x16xi32>
    %1072 = arith.sitofp %1071 : vector<8x16xi32> to vector<8x16xf32>
    %1073 = arith.addf %1064, %1072 : vector<8x16xf32>
    %1074 = vector.extract_strided_slice %1054 {offsets = [0, 2], sizes = [8, 1], strides = [1, 1]} : vector<8x3xi32> to vector<8x1xi32>
    %1075 = vector.broadcast %1074 : vector<8x1xi32> to vector<8x16xi32>
    %1076 = arith.cmpi eq, %194, %1075 : vector<8x16xi32>
    %1077 = vector.extract_strided_slice %1027 {offsets = [0, 2], sizes = [8, 1], strides = [1, 1]} : vector<8x3xi1> to vector<8x1xi1>
    %1078 = vector.broadcast %1077 : vector<8x1xi1> to vector<8x16xi1>
    %1079 = arith.andi %1076, %1078 : vector<8x16xi1>
    %1080 = arith.extui %1079 : vector<8x16xi1> to vector<8x16xi32>
    %1081 = arith.sitofp %1080 : vector<8x16xi32> to vector<8x16xf32>
    %1082 = arith.addf %1073, %1081 : vector<8x16xf32>
    %cst_216 = arith.constant 1.000000e+00 : f32
    %1083 = vector.broadcast %cst_216 : f32 to vector<8x16xf32>
    %1084 = arith.minimumf %1082, %1083 : vector<8x16xf32>
    %1085 = vector.extract_strided_slice %1010 {offsets = [0, 0], sizes = [8, 1], strides = [1, 1]} : vector<8x2xf32> to vector<8x1xf32>
    %1086 = vector.extract_strided_slice %0 {offsets = [0, 0], sizes = [1, 32], strides = [1, 1]} : vector<2x32xf32> to vector<1x32xf32>
    %1087 = vector.broadcast %1085 : vector<8x1xf32> to vector<8x32xf32>
    %1088 = vector.broadcast %1086 : vector<1x32xf32> to vector<8x32xf32>
    %1089 = arith.mulf %1087, %1088 : vector<8x32xf32>
    %1090 = vector.extract_strided_slice %1010 {offsets = [0, 1], sizes = [8, 1], strides = [1, 1]} : vector<8x2xf32> to vector<8x1xf32>
    %1091 = vector.extract_strided_slice %0 {offsets = [1, 0], sizes = [1, 32], strides = [1, 1]} : vector<2x32xf32> to vector<1x32xf32>
    %1092 = vector.broadcast %1090 : vector<8x1xf32> to vector<8x32xf32>
    %1093 = vector.broadcast %1091 : vector<1x32xf32> to vector<8x32xf32>
    %1094 = arith.mulf %1092, %1093 : vector<8x32xf32>
    %1095 = arith.addf %1089, %1094 : vector<8x32xf32>
    %1096 = vector.broadcast %1 : vector<1x32xf32> to vector<8x32xf32>
    %1097 = arith.addf %1095, %1096 : vector<8x32xf32>
    %cst_217 = arith.constant 0.000000e+00 : f32
    %1098 = vector.broadcast %cst_217 : f32 to vector<8x32xf32>
    %1099 = arith.maximumf %1097, %1098 : vector<8x32xf32>
    %cst_218 = arith.constant dense<0.000000e+00> : vector<8x32xf32>
    %1100 = tpu.matmul %1084, %2, %cst_218 {dimension_numbers = #tpu.dot_dimension_numbers<[1], [0], [0], [1], [0, 0, 1, 1], [], []>} : vector<8x16xf32>, vector<16x32xf32>, vector<8x32xf32> -> vector<8x32xf32>
    %1101 = vector.broadcast %3 : vector<1x32xf32> to vector<8x32xf32>
    %1102 = arith.addf %1100, %1101 : vector<8x32xf32>
    %cst_219 = arith.constant 0.000000e+00 : f32
    %1103 = vector.broadcast %cst_219 : f32 to vector<8x32xf32>
    %1104 = arith.maximumf %1102, %1103 : vector<8x32xf32>
    %1105 = tpu.concatenate %1099, %1104 in 1 : vector<8x32xf32>, vector<8x32xf32> -> vector<8x64xf32>
    %1106 = tpu.concatenate %1105, %998 in 1 : vector<8x64xf32>, vector<8x32xf32> -> vector<8x96xf32>
    %cst_220 = arith.constant dense<0.000000e+00> : vector<8x128xf32>
    %1107 = tpu.matmul %1106, %4, %cst_220 {dimension_numbers = #tpu.dot_dimension_numbers<[1], [0], [0], [1], [0, 0, 1, 1], [], []>} : vector<8x96xf32>, vector<96x128xf32>, vector<8x128xf32> -> vector<8x128xf32>
    %1108 = vector.broadcast %7 : vector<1x128xf32> to vector<8x128xf32>
    %1109 = arith.addf %1107, %1108 : vector<8x128xf32>
    %1110 = tpu.iota {dimensions = array<i32: 1>} : vector<8x128xi32>
    %c96_i32_221 = arith.constant 96 : i32
    %1111 = vector.broadcast %c96_i32_221 : i32 to vector<8x128xi32>
    %1112 = arith.cmpi slt, %1110, %1111 : vector<8x128xi32>
    %1113 = arith.negf %1109 : vector<8x128xf32>
    %1114 = math.exp %1113 : vector<8x128xf32>
    %cst_222 = arith.constant 1.000000e+00 : f32
    %1115 = vector.broadcast %cst_222 : f32 to vector<8x128xf32>
    %1116 = arith.addf %1115, %1114 : vector<8x128xf32>
    %1117 = arith.divf %1115, %1116 : vector<8x128xf32>
    %1118 = math.tanh %1109 : vector<8x128xf32>
    %1119 = arith.select %1112, %1117, %1118 : vector<8x128xi1>, vector<8x128xf32>
    %1120 = vector.extract_strided_slice %1119 {offsets = [0, 0], sizes = [8, 32], strides = [1, 1]} : vector<8x128xf32> to vector<8x32xf32>
    %1121 = vector.extract_strided_slice %1119 {offsets = [0, 32], sizes = [8, 32], strides = [1, 1]} : vector<8x128xf32> to vector<8x32xf32>
    %1122 = vector.extract_strided_slice %1119 {offsets = [0, 64], sizes = [8, 32], strides = [1, 1]} : vector<8x128xf32> to vector<8x32xf32>
    %1123 = vector.extract_strided_slice %1119 {offsets = [0, 96], sizes = [8, 32], strides = [1, 1]} : vector<8x128xf32> to vector<8x32xf32>
    %1124 = arith.mulf %1121, %996 : vector<8x32xf32>
    %1125 = arith.mulf %1120, %1123 : vector<8x32xf32>
    %1126 = arith.addf %1124, %1125 : vector<8x32xf32>
    %1127 = math.tanh %1126 : vector<8x32xf32>
    %1128 = arith.mulf %1122, %1127 : vector<8x32xf32>
    %cst_223 = arith.constant dense<0.000000e+00> : vector<8x8xf32>
    %1129 = tpu.matmul %1128, %8, %cst_223 {dimension_numbers = #tpu.dot_dimension_numbers<[1], [0], [0], [1], [0, 0, 1, 1], [], []>} : vector<8x32xf32>, vector<32x8xf32>, vector<8x8xf32> -> vector<8x8xf32>
    %1130 = vector.broadcast %9 : vector<1x8xf32> to vector<8x8xf32>
    %1131 = arith.addf %1129, %1130 : vector<8x8xf32>
    %c2_i32_224 = arith.constant 2 : i32
    %1132 = vector.broadcast %c2_i32_224 : i32 to vector<8x8xi32>
    %1133 = arith.cmpi slt, %195, %1132 : vector<8x8xi32>
    %c4_i32_225 = arith.constant 4 : i32
    %1134 = vector.broadcast %c4_i32_225 : i32 to vector<8x8xi32>
    %1135 = arith.cmpi slt, %195, %1134 : vector<8x8xi32>
    %1136 = math.exp %1131 : vector<8x8xf32>
    %1137 = math.tanh %1131 : vector<8x8xf32>
    %1138 = arith.select %1135, %1136, %1137 : vector<8x8xi1>, vector<8x8xf32>
    %1139 = arith.select %1133, %1131, %1138 : vector<8x8xi1>, vector<8x8xf32>
    %1140 = vector.extract_strided_slice %1139 {offsets = [0, 0], sizes = [8, 2], strides = [1, 1]} : vector<8x8xf32> to vector<8x2xf32>
    %1141 = arith.addf %1140, %1011 : vector<8x2xf32>
    %c56 = arith.constant 56 : index
    %c0_226 = arith.constant 0 : index
    %1142 = vector.load %arg2[%c56, %c0_226] : memref<96x6xf32, #tpu.memory_space<vmem>>, vector<8x6xf32>
    %1143 = vector.extract_strided_slice %1142 {offsets = [0, 0], sizes = [8, 3], strides = [1, 1]} : vector<8x6xf32> to vector<8x3xf32>
    %1144 = vector.extract_strided_slice %1141 {offsets = [0, 0], sizes = [8, 1], strides = [1, 1]} : vector<8x2xf32> to vector<8x1xf32>
    %1145 = vector.broadcast %1144 : vector<8x1xf32> to vector<8x3xf32>
    %1146 = arith.subf %1143, %1145 : vector<8x3xf32>
    %1147 = vector.extract_strided_slice %1142 {offsets = [0, 3], sizes = [8, 3], strides = [1, 1]} : vector<8x6xf32> to vector<8x3xf32>
    %1148 = vector.extract_strided_slice %1141 {offsets = [0, 1], sizes = [8, 1], strides = [1, 1]} : vector<8x2xf32> to vector<8x1xf32>
    %1149 = vector.broadcast %1148 : vector<8x1xf32> to vector<8x3xf32>
    %1150 = arith.subf %1147, %1149 : vector<8x3xf32>
    %1151 = math.absf %1146 : vector<8x3xf32>
    %cst_227 = arith.constant 2.000000e+00 : f32
    %1152 = vector.broadcast %cst_227 : f32 to vector<8x3xf32>
    %1153 = arith.cmpf olt, %1151, %1152 : vector<8x3xf32>
    %1154 = math.absf %1150 : vector<8x3xf32>
    %cst_228 = arith.constant 2.000000e+00 : f32
    %1155 = vector.broadcast %cst_228 : f32 to vector<8x3xf32>
    %1156 = arith.cmpf olt, %1154, %1155 : vector<8x3xf32>
    %1157 = arith.andi %1153, %1156 : vector<8x3xi1>
    %cst_229 = arith.constant 2.000000e+00 : f32
    %1158 = vector.broadcast %cst_229 : f32 to vector<8x3xf32>
    %1159 = arith.addf %1146, %1158 : vector<8x3xf32>
    %cst_230 = arith.constant 4.000000e+00 : f32
    %1160 = vector.broadcast %cst_230 : f32 to vector<8x3xf32>
    %1161 = arith.divf %1159, %1160 : vector<8x3xf32>
    %cst_231 = arith.constant 4.000000e+00 : f32
    %1162 = vector.broadcast %cst_231 : f32 to vector<8x3xf32>
    %1163 = arith.mulf %1161, %1162 : vector<8x3xf32>
    %1164 = math.floor %1163 : vector<8x3xf32>
    %1165 = arith.fptosi %1164 : vector<8x3xf32> to vector<8x3xi32>
    %c0_i32_232 = arith.constant 0 : i32
    %c3_i32_233 = arith.constant 3 : i32
    %1166 = vector.broadcast %c0_i32_232 : i32 to vector<8x3xi32>
    %1167 = arith.maxsi %1166, %1165 : vector<8x3xi32>
    %1168 = vector.broadcast %c3_i32_233 : i32 to vector<8x3xi32>
    %1169 = arith.minsi %1168, %1167 : vector<8x3xi32>
    %cst_234 = arith.constant 2.000000e+00 : f32
    %1170 = vector.broadcast %cst_234 : f32 to vector<8x3xf32>
    %1171 = arith.addf %1150, %1170 : vector<8x3xf32>
    %cst_235 = arith.constant 4.000000e+00 : f32
    %1172 = vector.broadcast %cst_235 : f32 to vector<8x3xf32>
    %1173 = arith.divf %1171, %1172 : vector<8x3xf32>
    %cst_236 = arith.constant 4.000000e+00 : f32
    %1174 = vector.broadcast %cst_236 : f32 to vector<8x3xf32>
    %1175 = arith.mulf %1173, %1174 : vector<8x3xf32>
    %1176 = math.floor %1175 : vector<8x3xf32>
    %1177 = arith.fptosi %1176 : vector<8x3xf32> to vector<8x3xi32>
    %c0_i32_237 = arith.constant 0 : i32
    %c3_i32_238 = arith.constant 3 : i32
    %1178 = vector.broadcast %c0_i32_237 : i32 to vector<8x3xi32>
    %1179 = arith.maxsi %1178, %1177 : vector<8x3xi32>
    %1180 = vector.broadcast %c3_i32_238 : i32 to vector<8x3xi32>
    %1181 = arith.minsi %1180, %1179 : vector<8x3xi32>
    %c4_i32_239 = arith.constant 4 : i32
    %1182 = vector.broadcast %c4_i32_239 : i32 to vector<8x3xi32>
    %1183 = arith.muli %1169, %1182 : vector<8x3xi32>
    %1184 = arith.addi %1183, %1181 : vector<8x3xi32>
    %cst_240 = arith.constant 0.000000e+00 : f32
    %1185 = vector.broadcast %cst_240 : f32 to vector<8x16xf32>
    %1186 = vector.extract_strided_slice %1184 {offsets = [0, 0], sizes = [8, 1], strides = [1, 1]} : vector<8x3xi32> to vector<8x1xi32>
    %1187 = vector.broadcast %1186 : vector<8x1xi32> to vector<8x16xi32>
    %1188 = arith.cmpi eq, %194, %1187 : vector<8x16xi32>
    %1189 = vector.extract_strided_slice %1157 {offsets = [0, 0], sizes = [8, 1], strides = [1, 1]} : vector<8x3xi1> to vector<8x1xi1>
    %1190 = vector.broadcast %1189 : vector<8x1xi1> to vector<8x16xi1>
    %1191 = arith.andi %1188, %1190 : vector<8x16xi1>
    %1192 = arith.extui %1191 : vector<8x16xi1> to vector<8x16xi32>
    %1193 = arith.sitofp %1192 : vector<8x16xi32> to vector<8x16xf32>
    %1194 = arith.addf %1185, %1193 : vector<8x16xf32>
    %1195 = vector.extract_strided_slice %1184 {offsets = [0, 1], sizes = [8, 1], strides = [1, 1]} : vector<8x3xi32> to vector<8x1xi32>
    %1196 = vector.broadcast %1195 : vector<8x1xi32> to vector<8x16xi32>
    %1197 = arith.cmpi eq, %194, %1196 : vector<8x16xi32>
    %1198 = vector.extract_strided_slice %1157 {offsets = [0, 1], sizes = [8, 1], strides = [1, 1]} : vector<8x3xi1> to vector<8x1xi1>
    %1199 = vector.broadcast %1198 : vector<8x1xi1> to vector<8x16xi1>
    %1200 = arith.andi %1197, %1199 : vector<8x16xi1>
    %1201 = arith.extui %1200 : vector<8x16xi1> to vector<8x16xi32>
    %1202 = arith.sitofp %1201 : vector<8x16xi32> to vector<8x16xf32>
    %1203 = arith.addf %1194, %1202 : vector<8x16xf32>
    %1204 = vector.extract_strided_slice %1184 {offsets = [0, 2], sizes = [8, 1], strides = [1, 1]} : vector<8x3xi32> to vector<8x1xi32>
    %1205 = vector.broadcast %1204 : vector<8x1xi32> to vector<8x16xi32>
    %1206 = arith.cmpi eq, %194, %1205 : vector<8x16xi32>
    %1207 = vector.extract_strided_slice %1157 {offsets = [0, 2], sizes = [8, 1], strides = [1, 1]} : vector<8x3xi1> to vector<8x1xi1>
    %1208 = vector.broadcast %1207 : vector<8x1xi1> to vector<8x16xi1>
    %1209 = arith.andi %1206, %1208 : vector<8x16xi1>
    %1210 = arith.extui %1209 : vector<8x16xi1> to vector<8x16xi32>
    %1211 = arith.sitofp %1210 : vector<8x16xi32> to vector<8x16xf32>
    %1212 = arith.addf %1203, %1211 : vector<8x16xf32>
    %cst_241 = arith.constant 1.000000e+00 : f32
    %1213 = vector.broadcast %cst_241 : f32 to vector<8x16xf32>
    %1214 = arith.minimumf %1212, %1213 : vector<8x16xf32>
    %1215 = vector.extract_strided_slice %1140 {offsets = [0, 0], sizes = [8, 1], strides = [1, 1]} : vector<8x2xf32> to vector<8x1xf32>
    %1216 = vector.extract_strided_slice %0 {offsets = [0, 0], sizes = [1, 32], strides = [1, 1]} : vector<2x32xf32> to vector<1x32xf32>
    %1217 = vector.broadcast %1215 : vector<8x1xf32> to vector<8x32xf32>
    %1218 = vector.broadcast %1216 : vector<1x32xf32> to vector<8x32xf32>
    %1219 = arith.mulf %1217, %1218 : vector<8x32xf32>
    %1220 = vector.extract_strided_slice %1140 {offsets = [0, 1], sizes = [8, 1], strides = [1, 1]} : vector<8x2xf32> to vector<8x1xf32>
    %1221 = vector.extract_strided_slice %0 {offsets = [1, 0], sizes = [1, 32], strides = [1, 1]} : vector<2x32xf32> to vector<1x32xf32>
    %1222 = vector.broadcast %1220 : vector<8x1xf32> to vector<8x32xf32>
    %1223 = vector.broadcast %1221 : vector<1x32xf32> to vector<8x32xf32>
    %1224 = arith.mulf %1222, %1223 : vector<8x32xf32>
    %1225 = arith.addf %1219, %1224 : vector<8x32xf32>
    %1226 = vector.broadcast %1 : vector<1x32xf32> to vector<8x32xf32>
    %1227 = arith.addf %1225, %1226 : vector<8x32xf32>
    %cst_242 = arith.constant 0.000000e+00 : f32
    %1228 = vector.broadcast %cst_242 : f32 to vector<8x32xf32>
    %1229 = arith.maximumf %1227, %1228 : vector<8x32xf32>
    %cst_243 = arith.constant dense<0.000000e+00> : vector<8x32xf32>
    %1230 = tpu.matmul %1214, %2, %cst_243 {dimension_numbers = #tpu.dot_dimension_numbers<[1], [0], [0], [1], [0, 0, 1, 1], [], []>} : vector<8x16xf32>, vector<16x32xf32>, vector<8x32xf32> -> vector<8x32xf32>
    %1231 = vector.broadcast %3 : vector<1x32xf32> to vector<8x32xf32>
    %1232 = arith.addf %1230, %1231 : vector<8x32xf32>
    %cst_244 = arith.constant 0.000000e+00 : f32
    %1233 = vector.broadcast %cst_244 : f32 to vector<8x32xf32>
    %1234 = arith.maximumf %1232, %1233 : vector<8x32xf32>
    %1235 = tpu.concatenate %1229, %1234 in 1 : vector<8x32xf32>, vector<8x32xf32> -> vector<8x64xf32>
    %1236 = tpu.concatenate %1235, %1128 in 1 : vector<8x64xf32>, vector<8x32xf32> -> vector<8x96xf32>
    %cst_245 = arith.constant dense<0.000000e+00> : vector<8x128xf32>
    %1237 = tpu.matmul %1236, %4, %cst_245 {dimension_numbers = #tpu.dot_dimension_numbers<[1], [0], [0], [1], [0, 0, 1, 1], [], []>} : vector<8x96xf32>, vector<96x128xf32>, vector<8x128xf32> -> vector<8x128xf32>
    %1238 = vector.broadcast %7 : vector<1x128xf32> to vector<8x128xf32>
    %1239 = arith.addf %1237, %1238 : vector<8x128xf32>
    %1240 = tpu.iota {dimensions = array<i32: 1>} : vector<8x128xi32>
    %c96_i32_246 = arith.constant 96 : i32
    %1241 = vector.broadcast %c96_i32_246 : i32 to vector<8x128xi32>
    %1242 = arith.cmpi slt, %1240, %1241 : vector<8x128xi32>
    %1243 = arith.negf %1239 : vector<8x128xf32>
    %1244 = math.exp %1243 : vector<8x128xf32>
    %cst_247 = arith.constant 1.000000e+00 : f32
    %1245 = vector.broadcast %cst_247 : f32 to vector<8x128xf32>
    %1246 = arith.addf %1245, %1244 : vector<8x128xf32>
    %1247 = arith.divf %1245, %1246 : vector<8x128xf32>
    %1248 = math.tanh %1239 : vector<8x128xf32>
    %1249 = arith.select %1242, %1247, %1248 : vector<8x128xi1>, vector<8x128xf32>
    %1250 = vector.extract_strided_slice %1249 {offsets = [0, 0], sizes = [8, 32], strides = [1, 1]} : vector<8x128xf32> to vector<8x32xf32>
    %1251 = vector.extract_strided_slice %1249 {offsets = [0, 32], sizes = [8, 32], strides = [1, 1]} : vector<8x128xf32> to vector<8x32xf32>
    %1252 = vector.extract_strided_slice %1249 {offsets = [0, 64], sizes = [8, 32], strides = [1, 1]} : vector<8x128xf32> to vector<8x32xf32>
    %1253 = vector.extract_strided_slice %1249 {offsets = [0, 96], sizes = [8, 32], strides = [1, 1]} : vector<8x128xf32> to vector<8x32xf32>
    %1254 = arith.mulf %1251, %1126 : vector<8x32xf32>
    %1255 = arith.mulf %1250, %1253 : vector<8x32xf32>
    %1256 = arith.addf %1254, %1255 : vector<8x32xf32>
    %1257 = math.tanh %1256 : vector<8x32xf32>
    %1258 = arith.mulf %1252, %1257 : vector<8x32xf32>
    %cst_248 = arith.constant dense<0.000000e+00> : vector<8x8xf32>
    %1259 = tpu.matmul %1258, %8, %cst_248 {dimension_numbers = #tpu.dot_dimension_numbers<[1], [0], [0], [1], [0, 0, 1, 1], [], []>} : vector<8x32xf32>, vector<32x8xf32>, vector<8x8xf32> -> vector<8x8xf32>
    %1260 = vector.broadcast %9 : vector<1x8xf32> to vector<8x8xf32>
    %1261 = arith.addf %1259, %1260 : vector<8x8xf32>
    %c2_i32_249 = arith.constant 2 : i32
    %1262 = vector.broadcast %c2_i32_249 : i32 to vector<8x8xi32>
    %1263 = arith.cmpi slt, %195, %1262 : vector<8x8xi32>
    %c4_i32_250 = arith.constant 4 : i32
    %1264 = vector.broadcast %c4_i32_250 : i32 to vector<8x8xi32>
    %1265 = arith.cmpi slt, %195, %1264 : vector<8x8xi32>
    %1266 = math.exp %1261 : vector<8x8xf32>
    %1267 = math.tanh %1261 : vector<8x8xf32>
    %1268 = arith.select %1265, %1266, %1267 : vector<8x8xi1>, vector<8x8xf32>
    %1269 = arith.select %1263, %1261, %1268 : vector<8x8xi1>, vector<8x8xf32>
    %1270 = vector.extract_strided_slice %1269 {offsets = [0, 0], sizes = [8, 2], strides = [1, 1]} : vector<8x8xf32> to vector<8x2xf32>
    %1271 = arith.addf %1270, %1141 : vector<8x2xf32>
    %c64 = arith.constant 64 : index
    %c0_251 = arith.constant 0 : index
    %1272 = vector.load %arg2[%c64, %c0_251] : memref<96x6xf32, #tpu.memory_space<vmem>>, vector<8x6xf32>
    %1273 = vector.extract_strided_slice %1272 {offsets = [0, 0], sizes = [8, 3], strides = [1, 1]} : vector<8x6xf32> to vector<8x3xf32>
    %1274 = vector.extract_strided_slice %1271 {offsets = [0, 0], sizes = [8, 1], strides = [1, 1]} : vector<8x2xf32> to vector<8x1xf32>
    %1275 = vector.broadcast %1274 : vector<8x1xf32> to vector<8x3xf32>
    %1276 = arith.subf %1273, %1275 : vector<8x3xf32>
    %1277 = vector.extract_strided_slice %1272 {offsets = [0, 3], sizes = [8, 3], strides = [1, 1]} : vector<8x6xf32> to vector<8x3xf32>
    %1278 = vector.extract_strided_slice %1271 {offsets = [0, 1], sizes = [8, 1], strides = [1, 1]} : vector<8x2xf32> to vector<8x1xf32>
    %1279 = vector.broadcast %1278 : vector<8x1xf32> to vector<8x3xf32>
    %1280 = arith.subf %1277, %1279 : vector<8x3xf32>
    %1281 = math.absf %1276 : vector<8x3xf32>
    %cst_252 = arith.constant 2.000000e+00 : f32
    %1282 = vector.broadcast %cst_252 : f32 to vector<8x3xf32>
    %1283 = arith.cmpf olt, %1281, %1282 : vector<8x3xf32>
    %1284 = math.absf %1280 : vector<8x3xf32>
    %cst_253 = arith.constant 2.000000e+00 : f32
    %1285 = vector.broadcast %cst_253 : f32 to vector<8x3xf32>
    %1286 = arith.cmpf olt, %1284, %1285 : vector<8x3xf32>
    %1287 = arith.andi %1283, %1286 : vector<8x3xi1>
    %cst_254 = arith.constant 2.000000e+00 : f32
    %1288 = vector.broadcast %cst_254 : f32 to vector<8x3xf32>
    %1289 = arith.addf %1276, %1288 : vector<8x3xf32>
    %cst_255 = arith.constant 4.000000e+00 : f32
    %1290 = vector.broadcast %cst_255 : f32 to vector<8x3xf32>
    %1291 = arith.divf %1289, %1290 : vector<8x3xf32>
    %cst_256 = arith.constant 4.000000e+00 : f32
    %1292 = vector.broadcast %cst_256 : f32 to vector<8x3xf32>
    %1293 = arith.mulf %1291, %1292 : vector<8x3xf32>
    %1294 = math.floor %1293 : vector<8x3xf32>
    %1295 = arith.fptosi %1294 : vector<8x3xf32> to vector<8x3xi32>
    %c0_i32_257 = arith.constant 0 : i32
    %c3_i32_258 = arith.constant 3 : i32
    %1296 = vector.broadcast %c0_i32_257 : i32 to vector<8x3xi32>
    %1297 = arith.maxsi %1296, %1295 : vector<8x3xi32>
    %1298 = vector.broadcast %c3_i32_258 : i32 to vector<8x3xi32>
    %1299 = arith.minsi %1298, %1297 : vector<8x3xi32>
    %cst_259 = arith.constant 2.000000e+00 : f32
    %1300 = vector.broadcast %cst_259 : f32 to vector<8x3xf32>
    %1301 = arith.addf %1280, %1300 : vector<8x3xf32>
    %cst_260 = arith.constant 4.000000e+00 : f32
    %1302 = vector.broadcast %cst_260 : f32 to vector<8x3xf32>
    %1303 = arith.divf %1301, %1302 : vector<8x3xf32>
    %cst_261 = arith.constant 4.000000e+00 : f32
    %1304 = vector.broadcast %cst_261 : f32 to vector<8x3xf32>
    %1305 = arith.mulf %1303, %1304 : vector<8x3xf32>
    %1306 = math.floor %1305 : vector<8x3xf32>
    %1307 = arith.fptosi %1306 : vector<8x3xf32> to vector<8x3xi32>
    %c0_i32_262 = arith.constant 0 : i32
    %c3_i32_263 = arith.constant 3 : i32
    %1308 = vector.broadcast %c0_i32_262 : i32 to vector<8x3xi32>
    %1309 = arith.maxsi %1308, %1307 : vector<8x3xi32>
    %1310 = vector.broadcast %c3_i32_263 : i32 to vector<8x3xi32>
    %1311 = arith.minsi %1310, %1309 : vector<8x3xi32>
    %c4_i32_264 = arith.constant 4 : i32
    %1312 = vector.broadcast %c4_i32_264 : i32 to vector<8x3xi32>
    %1313 = arith.muli %1299, %1312 : vector<8x3xi32>
    %1314 = arith.addi %1313, %1311 : vector<8x3xi32>
    %cst_265 = arith.constant 0.000000e+00 : f32
    %1315 = vector.broadcast %cst_265 : f32 to vector<8x16xf32>
    %1316 = vector.extract_strided_slice %1314 {offsets = [0, 0], sizes = [8, 1], strides = [1, 1]} : vector<8x3xi32> to vector<8x1xi32>
    %1317 = vector.broadcast %1316 : vector<8x1xi32> to vector<8x16xi32>
    %1318 = arith.cmpi eq, %194, %1317 : vector<8x16xi32>
    %1319 = vector.extract_strided_slice %1287 {offsets = [0, 0], sizes = [8, 1], strides = [1, 1]} : vector<8x3xi1> to vector<8x1xi1>
    %1320 = vector.broadcast %1319 : vector<8x1xi1> to vector<8x16xi1>
    %1321 = arith.andi %1318, %1320 : vector<8x16xi1>
    %1322 = arith.extui %1321 : vector<8x16xi1> to vector<8x16xi32>
    %1323 = arith.sitofp %1322 : vector<8x16xi32> to vector<8x16xf32>
    %1324 = arith.addf %1315, %1323 : vector<8x16xf32>
    %1325 = vector.extract_strided_slice %1314 {offsets = [0, 1], sizes = [8, 1], strides = [1, 1]} : vector<8x3xi32> to vector<8x1xi32>
    %1326 = vector.broadcast %1325 : vector<8x1xi32> to vector<8x16xi32>
    %1327 = arith.cmpi eq, %194, %1326 : vector<8x16xi32>
    %1328 = vector.extract_strided_slice %1287 {offsets = [0, 1], sizes = [8, 1], strides = [1, 1]} : vector<8x3xi1> to vector<8x1xi1>
    %1329 = vector.broadcast %1328 : vector<8x1xi1> to vector<8x16xi1>
    %1330 = arith.andi %1327, %1329 : vector<8x16xi1>
    %1331 = arith.extui %1330 : vector<8x16xi1> to vector<8x16xi32>
    %1332 = arith.sitofp %1331 : vector<8x16xi32> to vector<8x16xf32>
    %1333 = arith.addf %1324, %1332 : vector<8x16xf32>
    %1334 = vector.extract_strided_slice %1314 {offsets = [0, 2], sizes = [8, 1], strides = [1, 1]} : vector<8x3xi32> to vector<8x1xi32>
    %1335 = vector.broadcast %1334 : vector<8x1xi32> to vector<8x16xi32>
    %1336 = arith.cmpi eq, %194, %1335 : vector<8x16xi32>
    %1337 = vector.extract_strided_slice %1287 {offsets = [0, 2], sizes = [8, 1], strides = [1, 1]} : vector<8x3xi1> to vector<8x1xi1>
    %1338 = vector.broadcast %1337 : vector<8x1xi1> to vector<8x16xi1>
    %1339 = arith.andi %1336, %1338 : vector<8x16xi1>
    %1340 = arith.extui %1339 : vector<8x16xi1> to vector<8x16xi32>
    %1341 = arith.sitofp %1340 : vector<8x16xi32> to vector<8x16xf32>
    %1342 = arith.addf %1333, %1341 : vector<8x16xf32>
    %cst_266 = arith.constant 1.000000e+00 : f32
    %1343 = vector.broadcast %cst_266 : f32 to vector<8x16xf32>
    %1344 = arith.minimumf %1342, %1343 : vector<8x16xf32>
    %1345 = vector.extract_strided_slice %1270 {offsets = [0, 0], sizes = [8, 1], strides = [1, 1]} : vector<8x2xf32> to vector<8x1xf32>
    %1346 = vector.extract_strided_slice %0 {offsets = [0, 0], sizes = [1, 32], strides = [1, 1]} : vector<2x32xf32> to vector<1x32xf32>
    %1347 = vector.broadcast %1345 : vector<8x1xf32> to vector<8x32xf32>
    %1348 = vector.broadcast %1346 : vector<1x32xf32> to vector<8x32xf32>
    %1349 = arith.mulf %1347, %1348 : vector<8x32xf32>
    %1350 = vector.extract_strided_slice %1270 {offsets = [0, 1], sizes = [8, 1], strides = [1, 1]} : vector<8x2xf32> to vector<8x1xf32>
    %1351 = vector.extract_strided_slice %0 {offsets = [1, 0], sizes = [1, 32], strides = [1, 1]} : vector<2x32xf32> to vector<1x32xf32>
    %1352 = vector.broadcast %1350 : vector<8x1xf32> to vector<8x32xf32>
    %1353 = vector.broadcast %1351 : vector<1x32xf32> to vector<8x32xf32>
    %1354 = arith.mulf %1352, %1353 : vector<8x32xf32>
    %1355 = arith.addf %1349, %1354 : vector<8x32xf32>
    %1356 = vector.broadcast %1 : vector<1x32xf32> to vector<8x32xf32>
    %1357 = arith.addf %1355, %1356 : vector<8x32xf32>
    %cst_267 = arith.constant 0.000000e+00 : f32
    %1358 = vector.broadcast %cst_267 : f32 to vector<8x32xf32>
    %1359 = arith.maximumf %1357, %1358 : vector<8x32xf32>
    %cst_268 = arith.constant dense<0.000000e+00> : vector<8x32xf32>
    %1360 = tpu.matmul %1344, %2, %cst_268 {dimension_numbers = #tpu.dot_dimension_numbers<[1], [0], [0], [1], [0, 0, 1, 1], [], []>} : vector<8x16xf32>, vector<16x32xf32>, vector<8x32xf32> -> vector<8x32xf32>
    %1361 = vector.broadcast %3 : vector<1x32xf32> to vector<8x32xf32>
    %1362 = arith.addf %1360, %1361 : vector<8x32xf32>
    %cst_269 = arith.constant 0.000000e+00 : f32
    %1363 = vector.broadcast %cst_269 : f32 to vector<8x32xf32>
    %1364 = arith.maximumf %1362, %1363 : vector<8x32xf32>
    %1365 = tpu.concatenate %1359, %1364 in 1 : vector<8x32xf32>, vector<8x32xf32> -> vector<8x64xf32>
    %1366 = tpu.concatenate %1365, %1258 in 1 : vector<8x64xf32>, vector<8x32xf32> -> vector<8x96xf32>
    %cst_270 = arith.constant dense<0.000000e+00> : vector<8x128xf32>
    %1367 = tpu.matmul %1366, %4, %cst_270 {dimension_numbers = #tpu.dot_dimension_numbers<[1], [0], [0], [1], [0, 0, 1, 1], [], []>} : vector<8x96xf32>, vector<96x128xf32>, vector<8x128xf32> -> vector<8x128xf32>
    %1368 = vector.broadcast %7 : vector<1x128xf32> to vector<8x128xf32>
    %1369 = arith.addf %1367, %1368 : vector<8x128xf32>
    %1370 = tpu.iota {dimensions = array<i32: 1>} : vector<8x128xi32>
    %c96_i32_271 = arith.constant 96 : i32
    %1371 = vector.broadcast %c96_i32_271 : i32 to vector<8x128xi32>
    %1372 = arith.cmpi slt, %1370, %1371 : vector<8x128xi32>
    %1373 = arith.negf %1369 : vector<8x128xf32>
    %1374 = math.exp %1373 : vector<8x128xf32>
    %cst_272 = arith.constant 1.000000e+00 : f32
    %1375 = vector.broadcast %cst_272 : f32 to vector<8x128xf32>
    %1376 = arith.addf %1375, %1374 : vector<8x128xf32>
    %1377 = arith.divf %1375, %1376 : vector<8x128xf32>
    %1378 = math.tanh %1369 : vector<8x128xf32>
    %1379 = arith.select %1372, %1377, %1378 : vector<8x128xi1>, vector<8x128xf32>
    %1380 = vector.extract_strided_slice %1379 {offsets = [0, 0], sizes = [8, 32], strides = [1, 1]} : vector<8x128xf32> to vector<8x32xf32>
    %1381 = vector.extract_strided_slice %1379 {offsets = [0, 32], sizes = [8, 32], strides = [1, 1]} : vector<8x128xf32> to vector<8x32xf32>
    %1382 = vector.extract_strided_slice %1379 {offsets = [0, 64], sizes = [8, 32], strides = [1, 1]} : vector<8x128xf32> to vector<8x32xf32>
    %1383 = vector.extract_strided_slice %1379 {offsets = [0, 96], sizes = [8, 32], strides = [1, 1]} : vector<8x128xf32> to vector<8x32xf32>
    %1384 = arith.mulf %1381, %1256 : vector<8x32xf32>
    %1385 = arith.mulf %1380, %1383 : vector<8x32xf32>
    %1386 = arith.addf %1384, %1385 : vector<8x32xf32>
    %1387 = math.tanh %1386 : vector<8x32xf32>
    %1388 = arith.mulf %1382, %1387 : vector<8x32xf32>
    %cst_273 = arith.constant dense<0.000000e+00> : vector<8x8xf32>
    %1389 = tpu.matmul %1388, %8, %cst_273 {dimension_numbers = #tpu.dot_dimension_numbers<[1], [0], [0], [1], [0, 0, 1, 1], [], []>} : vector<8x32xf32>, vector<32x8xf32>, vector<8x8xf32> -> vector<8x8xf32>
    %1390 = vector.broadcast %9 : vector<1x8xf32> to vector<8x8xf32>
    %1391 = arith.addf %1389, %1390 : vector<8x8xf32>
    %c2_i32_274 = arith.constant 2 : i32
    %1392 = vector.broadcast %c2_i32_274 : i32 to vector<8x8xi32>
    %1393 = arith.cmpi slt, %195, %1392 : vector<8x8xi32>
    %c4_i32_275 = arith.constant 4 : i32
    %1394 = vector.broadcast %c4_i32_275 : i32 to vector<8x8xi32>
    %1395 = arith.cmpi slt, %195, %1394 : vector<8x8xi32>
    %1396 = math.exp %1391 : vector<8x8xf32>
    %1397 = math.tanh %1391 : vector<8x8xf32>
    %1398 = arith.select %1395, %1396, %1397 : vector<8x8xi1>, vector<8x8xf32>
    %1399 = arith.select %1393, %1391, %1398 : vector<8x8xi1>, vector<8x8xf32>
    %1400 = vector.extract_strided_slice %1399 {offsets = [0, 0], sizes = [8, 2], strides = [1, 1]} : vector<8x8xf32> to vector<8x2xf32>
    %1401 = arith.addf %1400, %1271 : vector<8x2xf32>
    %c72 = arith.constant 72 : index
    %c0_276 = arith.constant 0 : index
    %1402 = vector.load %arg2[%c72, %c0_276] : memref<96x6xf32, #tpu.memory_space<vmem>>, vector<8x6xf32>
    %1403 = vector.extract_strided_slice %1402 {offsets = [0, 0], sizes = [8, 3], strides = [1, 1]} : vector<8x6xf32> to vector<8x3xf32>
    %1404 = vector.extract_strided_slice %1401 {offsets = [0, 0], sizes = [8, 1], strides = [1, 1]} : vector<8x2xf32> to vector<8x1xf32>
    %1405 = vector.broadcast %1404 : vector<8x1xf32> to vector<8x3xf32>
    %1406 = arith.subf %1403, %1405 : vector<8x3xf32>
    %1407 = vector.extract_strided_slice %1402 {offsets = [0, 3], sizes = [8, 3], strides = [1, 1]} : vector<8x6xf32> to vector<8x3xf32>
    %1408 = vector.extract_strided_slice %1401 {offsets = [0, 1], sizes = [8, 1], strides = [1, 1]} : vector<8x2xf32> to vector<8x1xf32>
    %1409 = vector.broadcast %1408 : vector<8x1xf32> to vector<8x3xf32>
    %1410 = arith.subf %1407, %1409 : vector<8x3xf32>
    %1411 = math.absf %1406 : vector<8x3xf32>
    %cst_277 = arith.constant 2.000000e+00 : f32
    %1412 = vector.broadcast %cst_277 : f32 to vector<8x3xf32>
    %1413 = arith.cmpf olt, %1411, %1412 : vector<8x3xf32>
    %1414 = math.absf %1410 : vector<8x3xf32>
    %cst_278 = arith.constant 2.000000e+00 : f32
    %1415 = vector.broadcast %cst_278 : f32 to vector<8x3xf32>
    %1416 = arith.cmpf olt, %1414, %1415 : vector<8x3xf32>
    %1417 = arith.andi %1413, %1416 : vector<8x3xi1>
    %cst_279 = arith.constant 2.000000e+00 : f32
    %1418 = vector.broadcast %cst_279 : f32 to vector<8x3xf32>
    %1419 = arith.addf %1406, %1418 : vector<8x3xf32>
    %cst_280 = arith.constant 4.000000e+00 : f32
    %1420 = vector.broadcast %cst_280 : f32 to vector<8x3xf32>
    %1421 = arith.divf %1419, %1420 : vector<8x3xf32>
    %cst_281 = arith.constant 4.000000e+00 : f32
    %1422 = vector.broadcast %cst_281 : f32 to vector<8x3xf32>
    %1423 = arith.mulf %1421, %1422 : vector<8x3xf32>
    %1424 = math.floor %1423 : vector<8x3xf32>
    %1425 = arith.fptosi %1424 : vector<8x3xf32> to vector<8x3xi32>
    %c0_i32_282 = arith.constant 0 : i32
    %c3_i32_283 = arith.constant 3 : i32
    %1426 = vector.broadcast %c0_i32_282 : i32 to vector<8x3xi32>
    %1427 = arith.maxsi %1426, %1425 : vector<8x3xi32>
    %1428 = vector.broadcast %c3_i32_283 : i32 to vector<8x3xi32>
    %1429 = arith.minsi %1428, %1427 : vector<8x3xi32>
    %cst_284 = arith.constant 2.000000e+00 : f32
    %1430 = vector.broadcast %cst_284 : f32 to vector<8x3xf32>
    %1431 = arith.addf %1410, %1430 : vector<8x3xf32>
    %cst_285 = arith.constant 4.000000e+00 : f32
    %1432 = vector.broadcast %cst_285 : f32 to vector<8x3xf32>
    %1433 = arith.divf %1431, %1432 : vector<8x3xf32>
    %cst_286 = arith.constant 4.000000e+00 : f32
    %1434 = vector.broadcast %cst_286 : f32 to vector<8x3xf32>
    %1435 = arith.mulf %1433, %1434 : vector<8x3xf32>
    %1436 = math.floor %1435 : vector<8x3xf32>
    %1437 = arith.fptosi %1436 : vector<8x3xf32> to vector<8x3xi32>
    %c0_i32_287 = arith.constant 0 : i32
    %c3_i32_288 = arith.constant 3 : i32
    %1438 = vector.broadcast %c0_i32_287 : i32 to vector<8x3xi32>
    %1439 = arith.maxsi %1438, %1437 : vector<8x3xi32>
    %1440 = vector.broadcast %c3_i32_288 : i32 to vector<8x3xi32>
    %1441 = arith.minsi %1440, %1439 : vector<8x3xi32>
    %c4_i32_289 = arith.constant 4 : i32
    %1442 = vector.broadcast %c4_i32_289 : i32 to vector<8x3xi32>
    %1443 = arith.muli %1429, %1442 : vector<8x3xi32>
    %1444 = arith.addi %1443, %1441 : vector<8x3xi32>
    %cst_290 = arith.constant 0.000000e+00 : f32
    %1445 = vector.broadcast %cst_290 : f32 to vector<8x16xf32>
    %1446 = vector.extract_strided_slice %1444 {offsets = [0, 0], sizes = [8, 1], strides = [1, 1]} : vector<8x3xi32> to vector<8x1xi32>
    %1447 = vector.broadcast %1446 : vector<8x1xi32> to vector<8x16xi32>
    %1448 = arith.cmpi eq, %194, %1447 : vector<8x16xi32>
    %1449 = vector.extract_strided_slice %1417 {offsets = [0, 0], sizes = [8, 1], strides = [1, 1]} : vector<8x3xi1> to vector<8x1xi1>
    %1450 = vector.broadcast %1449 : vector<8x1xi1> to vector<8x16xi1>
    %1451 = arith.andi %1448, %1450 : vector<8x16xi1>
    %1452 = arith.extui %1451 : vector<8x16xi1> to vector<8x16xi32>
    %1453 = arith.sitofp %1452 : vector<8x16xi32> to vector<8x16xf32>
    %1454 = arith.addf %1445, %1453 : vector<8x16xf32>
    %1455 = vector.extract_strided_slice %1444 {offsets = [0, 1], sizes = [8, 1], strides = [1, 1]} : vector<8x3xi32> to vector<8x1xi32>
    %1456 = vector.broadcast %1455 : vector<8x1xi32> to vector<8x16xi32>
    %1457 = arith.cmpi eq, %194, %1456 : vector<8x16xi32>
    %1458 = vector.extract_strided_slice %1417 {offsets = [0, 1], sizes = [8, 1], strides = [1, 1]} : vector<8x3xi1> to vector<8x1xi1>
    %1459 = vector.broadcast %1458 : vector<8x1xi1> to vector<8x16xi1>
    %1460 = arith.andi %1457, %1459 : vector<8x16xi1>
    %1461 = arith.extui %1460 : vector<8x16xi1> to vector<8x16xi32>
    %1462 = arith.sitofp %1461 : vector<8x16xi32> to vector<8x16xf32>
    %1463 = arith.addf %1454, %1462 : vector<8x16xf32>
    %1464 = vector.extract_strided_slice %1444 {offsets = [0, 2], sizes = [8, 1], strides = [1, 1]} : vector<8x3xi32> to vector<8x1xi32>
    %1465 = vector.broadcast %1464 : vector<8x1xi32> to vector<8x16xi32>
    %1466 = arith.cmpi eq, %194, %1465 : vector<8x16xi32>
    %1467 = vector.extract_strided_slice %1417 {offsets = [0, 2], sizes = [8, 1], strides = [1, 1]} : vector<8x3xi1> to vector<8x1xi1>
    %1468 = vector.broadcast %1467 : vector<8x1xi1> to vector<8x16xi1>
    %1469 = arith.andi %1466, %1468 : vector<8x16xi1>
    %1470 = arith.extui %1469 : vector<8x16xi1> to vector<8x16xi32>
    %1471 = arith.sitofp %1470 : vector<8x16xi32> to vector<8x16xf32>
    %1472 = arith.addf %1463, %1471 : vector<8x16xf32>
    %cst_291 = arith.constant 1.000000e+00 : f32
    %1473 = vector.broadcast %cst_291 : f32 to vector<8x16xf32>
    %1474 = arith.minimumf %1472, %1473 : vector<8x16xf32>
    %1475 = vector.extract_strided_slice %1400 {offsets = [0, 0], sizes = [8, 1], strides = [1, 1]} : vector<8x2xf32> to vector<8x1xf32>
    %1476 = vector.extract_strided_slice %0 {offsets = [0, 0], sizes = [1, 32], strides = [1, 1]} : vector<2x32xf32> to vector<1x32xf32>
    %1477 = vector.broadcast %1475 : vector<8x1xf32> to vector<8x32xf32>
    %1478 = vector.broadcast %1476 : vector<1x32xf32> to vector<8x32xf32>
    %1479 = arith.mulf %1477, %1478 : vector<8x32xf32>
    %1480 = vector.extract_strided_slice %1400 {offsets = [0, 1], sizes = [8, 1], strides = [1, 1]} : vector<8x2xf32> to vector<8x1xf32>
    %1481 = vector.extract_strided_slice %0 {offsets = [1, 0], sizes = [1, 32], strides = [1, 1]} : vector<2x32xf32> to vector<1x32xf32>
    %1482 = vector.broadcast %1480 : vector<8x1xf32> to vector<8x32xf32>
    %1483 = vector.broadcast %1481 : vector<1x32xf32> to vector<8x32xf32>
    %1484 = arith.mulf %1482, %1483 : vector<8x32xf32>
    %1485 = arith.addf %1479, %1484 : vector<8x32xf32>
    %1486 = vector.broadcast %1 : vector<1x32xf32> to vector<8x32xf32>
    %1487 = arith.addf %1485, %1486 : vector<8x32xf32>
    %cst_292 = arith.constant 0.000000e+00 : f32
    %1488 = vector.broadcast %cst_292 : f32 to vector<8x32xf32>
    %1489 = arith.maximumf %1487, %1488 : vector<8x32xf32>
    %cst_293 = arith.constant dense<0.000000e+00> : vector<8x32xf32>
    %1490 = tpu.matmul %1474, %2, %cst_293 {dimension_numbers = #tpu.dot_dimension_numbers<[1], [0], [0], [1], [0, 0, 1, 1], [], []>} : vector<8x16xf32>, vector<16x32xf32>, vector<8x32xf32> -> vector<8x32xf32>
    %1491 = vector.broadcast %3 : vector<1x32xf32> to vector<8x32xf32>
    %1492 = arith.addf %1490, %1491 : vector<8x32xf32>
    %cst_294 = arith.constant 0.000000e+00 : f32
    %1493 = vector.broadcast %cst_294 : f32 to vector<8x32xf32>
    %1494 = arith.maximumf %1492, %1493 : vector<8x32xf32>
    %1495 = tpu.concatenate %1489, %1494 in 1 : vector<8x32xf32>, vector<8x32xf32> -> vector<8x64xf32>
    %1496 = tpu.concatenate %1495, %1388 in 1 : vector<8x64xf32>, vector<8x32xf32> -> vector<8x96xf32>
    %cst_295 = arith.constant dense<0.000000e+00> : vector<8x128xf32>
    %1497 = tpu.matmul %1496, %4, %cst_295 {dimension_numbers = #tpu.dot_dimension_numbers<[1], [0], [0], [1], [0, 0, 1, 1], [], []>} : vector<8x96xf32>, vector<96x128xf32>, vector<8x128xf32> -> vector<8x128xf32>
    %1498 = vector.broadcast %7 : vector<1x128xf32> to vector<8x128xf32>
    %1499 = arith.addf %1497, %1498 : vector<8x128xf32>
    %1500 = tpu.iota {dimensions = array<i32: 1>} : vector<8x128xi32>
    %c96_i32_296 = arith.constant 96 : i32
    %1501 = vector.broadcast %c96_i32_296 : i32 to vector<8x128xi32>
    %1502 = arith.cmpi slt, %1500, %1501 : vector<8x128xi32>
    %1503 = arith.negf %1499 : vector<8x128xf32>
    %1504 = math.exp %1503 : vector<8x128xf32>
    %cst_297 = arith.constant 1.000000e+00 : f32
    %1505 = vector.broadcast %cst_297 : f32 to vector<8x128xf32>
    %1506 = arith.addf %1505, %1504 : vector<8x128xf32>
    %1507 = arith.divf %1505, %1506 : vector<8x128xf32>
    %1508 = math.tanh %1499 : vector<8x128xf32>
    %1509 = arith.select %1502, %1507, %1508 : vector<8x128xi1>, vector<8x128xf32>
    %1510 = vector.extract_strided_slice %1509 {offsets = [0, 0], sizes = [8, 32], strides = [1, 1]} : vector<8x128xf32> to vector<8x32xf32>
    %1511 = vector.extract_strided_slice %1509 {offsets = [0, 32], sizes = [8, 32], strides = [1, 1]} : vector<8x128xf32> to vector<8x32xf32>
    %1512 = vector.extract_strided_slice %1509 {offsets = [0, 64], sizes = [8, 32], strides = [1, 1]} : vector<8x128xf32> to vector<8x32xf32>
    %1513 = vector.extract_strided_slice %1509 {offsets = [0, 96], sizes = [8, 32], strides = [1, 1]} : vector<8x128xf32> to vector<8x32xf32>
    %1514 = arith.mulf %1511, %1386 : vector<8x32xf32>
    %1515 = arith.mulf %1510, %1513 : vector<8x32xf32>
    %1516 = arith.addf %1514, %1515 : vector<8x32xf32>
    %1517 = math.tanh %1516 : vector<8x32xf32>
    %1518 = arith.mulf %1512, %1517 : vector<8x32xf32>
    %cst_298 = arith.constant dense<0.000000e+00> : vector<8x8xf32>
    %1519 = tpu.matmul %1518, %8, %cst_298 {dimension_numbers = #tpu.dot_dimension_numbers<[1], [0], [0], [1], [0, 0, 1, 1], [], []>} : vector<8x32xf32>, vector<32x8xf32>, vector<8x8xf32> -> vector<8x8xf32>
    %1520 = vector.broadcast %9 : vector<1x8xf32> to vector<8x8xf32>
    %1521 = arith.addf %1519, %1520 : vector<8x8xf32>
    %c2_i32_299 = arith.constant 2 : i32
    %1522 = vector.broadcast %c2_i32_299 : i32 to vector<8x8xi32>
    %1523 = arith.cmpi slt, %195, %1522 : vector<8x8xi32>
    %c4_i32_300 = arith.constant 4 : i32
    %1524 = vector.broadcast %c4_i32_300 : i32 to vector<8x8xi32>
    %1525 = arith.cmpi slt, %195, %1524 : vector<8x8xi32>
    %1526 = math.exp %1521 : vector<8x8xf32>
    %1527 = math.tanh %1521 : vector<8x8xf32>
    %1528 = arith.select %1525, %1526, %1527 : vector<8x8xi1>, vector<8x8xf32>
    %1529 = arith.select %1523, %1521, %1528 : vector<8x8xi1>, vector<8x8xf32>
    %1530 = vector.extract_strided_slice %1529 {offsets = [0, 0], sizes = [8, 2], strides = [1, 1]} : vector<8x8xf32> to vector<8x2xf32>
    %1531 = arith.addf %1530, %1401 : vector<8x2xf32>
    %c80 = arith.constant 80 : index
    %c0_301 = arith.constant 0 : index
    %1532 = vector.load %arg2[%c80, %c0_301] : memref<96x6xf32, #tpu.memory_space<vmem>>, vector<8x6xf32>
    %1533 = vector.extract_strided_slice %1532 {offsets = [0, 0], sizes = [8, 3], strides = [1, 1]} : vector<8x6xf32> to vector<8x3xf32>
    %1534 = vector.extract_strided_slice %1531 {offsets = [0, 0], sizes = [8, 1], strides = [1, 1]} : vector<8x2xf32> to vector<8x1xf32>
    %1535 = vector.broadcast %1534 : vector<8x1xf32> to vector<8x3xf32>
    %1536 = arith.subf %1533, %1535 : vector<8x3xf32>
    %1537 = vector.extract_strided_slice %1532 {offsets = [0, 3], sizes = [8, 3], strides = [1, 1]} : vector<8x6xf32> to vector<8x3xf32>
    %1538 = vector.extract_strided_slice %1531 {offsets = [0, 1], sizes = [8, 1], strides = [1, 1]} : vector<8x2xf32> to vector<8x1xf32>
    %1539 = vector.broadcast %1538 : vector<8x1xf32> to vector<8x3xf32>
    %1540 = arith.subf %1537, %1539 : vector<8x3xf32>
    %1541 = math.absf %1536 : vector<8x3xf32>
    %cst_302 = arith.constant 2.000000e+00 : f32
    %1542 = vector.broadcast %cst_302 : f32 to vector<8x3xf32>
    %1543 = arith.cmpf olt, %1541, %1542 : vector<8x3xf32>
    %1544 = math.absf %1540 : vector<8x3xf32>
    %cst_303 = arith.constant 2.000000e+00 : f32
    %1545 = vector.broadcast %cst_303 : f32 to vector<8x3xf32>
    %1546 = arith.cmpf olt, %1544, %1545 : vector<8x3xf32>
    %1547 = arith.andi %1543, %1546 : vector<8x3xi1>
    %cst_304 = arith.constant 2.000000e+00 : f32
    %1548 = vector.broadcast %cst_304 : f32 to vector<8x3xf32>
    %1549 = arith.addf %1536, %1548 : vector<8x3xf32>
    %cst_305 = arith.constant 4.000000e+00 : f32
    %1550 = vector.broadcast %cst_305 : f32 to vector<8x3xf32>
    %1551 = arith.divf %1549, %1550 : vector<8x3xf32>
    %cst_306 = arith.constant 4.000000e+00 : f32
    %1552 = vector.broadcast %cst_306 : f32 to vector<8x3xf32>
    %1553 = arith.mulf %1551, %1552 : vector<8x3xf32>
    %1554 = math.floor %1553 : vector<8x3xf32>
    %1555 = arith.fptosi %1554 : vector<8x3xf32> to vector<8x3xi32>
    %c0_i32_307 = arith.constant 0 : i32
    %c3_i32_308 = arith.constant 3 : i32
    %1556 = vector.broadcast %c0_i32_307 : i32 to vector<8x3xi32>
    %1557 = arith.maxsi %1556, %1555 : vector<8x3xi32>
    %1558 = vector.broadcast %c3_i32_308 : i32 to vector<8x3xi32>
    %1559 = arith.minsi %1558, %1557 : vector<8x3xi32>
    %cst_309 = arith.constant 2.000000e+00 : f32
    %1560 = vector.broadcast %cst_309 : f32 to vector<8x3xf32>
    %1561 = arith.addf %1540, %1560 : vector<8x3xf32>
    %cst_310 = arith.constant 4.000000e+00 : f32
    %1562 = vector.broadcast %cst_310 : f32 to vector<8x3xf32>
    %1563 = arith.divf %1561, %1562 : vector<8x3xf32>
    %cst_311 = arith.constant 4.000000e+00 : f32
    %1564 = vector.broadcast %cst_311 : f32 to vector<8x3xf32>
    %1565 = arith.mulf %1563, %1564 : vector<8x3xf32>
    %1566 = math.floor %1565 : vector<8x3xf32>
    %1567 = arith.fptosi %1566 : vector<8x3xf32> to vector<8x3xi32>
    %c0_i32_312 = arith.constant 0 : i32
    %c3_i32_313 = arith.constant 3 : i32
    %1568 = vector.broadcast %c0_i32_312 : i32 to vector<8x3xi32>
    %1569 = arith.maxsi %1568, %1567 : vector<8x3xi32>
    %1570 = vector.broadcast %c3_i32_313 : i32 to vector<8x3xi32>
    %1571 = arith.minsi %1570, %1569 : vector<8x3xi32>
    %c4_i32_314 = arith.constant 4 : i32
    %1572 = vector.broadcast %c4_i32_314 : i32 to vector<8x3xi32>
    %1573 = arith.muli %1559, %1572 : vector<8x3xi32>
    %1574 = arith.addi %1573, %1571 : vector<8x3xi32>
    %cst_315 = arith.constant 0.000000e+00 : f32
    %1575 = vector.broadcast %cst_315 : f32 to vector<8x16xf32>
    %1576 = vector.extract_strided_slice %1574 {offsets = [0, 0], sizes = [8, 1], strides = [1, 1]} : vector<8x3xi32> to vector<8x1xi32>
    %1577 = vector.broadcast %1576 : vector<8x1xi32> to vector<8x16xi32>
    %1578 = arith.cmpi eq, %194, %1577 : vector<8x16xi32>
    %1579 = vector.extract_strided_slice %1547 {offsets = [0, 0], sizes = [8, 1], strides = [1, 1]} : vector<8x3xi1> to vector<8x1xi1>
    %1580 = vector.broadcast %1579 : vector<8x1xi1> to vector<8x16xi1>
    %1581 = arith.andi %1578, %1580 : vector<8x16xi1>
    %1582 = arith.extui %1581 : vector<8x16xi1> to vector<8x16xi32>
    %1583 = arith.sitofp %1582 : vector<8x16xi32> to vector<8x16xf32>
    %1584 = arith.addf %1575, %1583 : vector<8x16xf32>
    %1585 = vector.extract_strided_slice %1574 {offsets = [0, 1], sizes = [8, 1], strides = [1, 1]} : vector<8x3xi32> to vector<8x1xi32>
    %1586 = vector.broadcast %1585 : vector<8x1xi32> to vector<8x16xi32>
    %1587 = arith.cmpi eq, %194, %1586 : vector<8x16xi32>
    %1588 = vector.extract_strided_slice %1547 {offsets = [0, 1], sizes = [8, 1], strides = [1, 1]} : vector<8x3xi1> to vector<8x1xi1>
    %1589 = vector.broadcast %1588 : vector<8x1xi1> to vector<8x16xi1>
    %1590 = arith.andi %1587, %1589 : vector<8x16xi1>
    %1591 = arith.extui %1590 : vector<8x16xi1> to vector<8x16xi32>
    %1592 = arith.sitofp %1591 : vector<8x16xi32> to vector<8x16xf32>
    %1593 = arith.addf %1584, %1592 : vector<8x16xf32>
    %1594 = vector.extract_strided_slice %1574 {offsets = [0, 2], sizes = [8, 1], strides = [1, 1]} : vector<8x3xi32> to vector<8x1xi32>
    %1595 = vector.broadcast %1594 : vector<8x1xi32> to vector<8x16xi32>
    %1596 = arith.cmpi eq, %194, %1595 : vector<8x16xi32>
    %1597 = vector.extract_strided_slice %1547 {offsets = [0, 2], sizes = [8, 1], strides = [1, 1]} : vector<8x3xi1> to vector<8x1xi1>
    %1598 = vector.broadcast %1597 : vector<8x1xi1> to vector<8x16xi1>
    %1599 = arith.andi %1596, %1598 : vector<8x16xi1>
    %1600 = arith.extui %1599 : vector<8x16xi1> to vector<8x16xi32>
    %1601 = arith.sitofp %1600 : vector<8x16xi32> to vector<8x16xf32>
    %1602 = arith.addf %1593, %1601 : vector<8x16xf32>
    %cst_316 = arith.constant 1.000000e+00 : f32
    %1603 = vector.broadcast %cst_316 : f32 to vector<8x16xf32>
    %1604 = arith.minimumf %1602, %1603 : vector<8x16xf32>
    %1605 = vector.extract_strided_slice %1530 {offsets = [0, 0], sizes = [8, 1], strides = [1, 1]} : vector<8x2xf32> to vector<8x1xf32>
    %1606 = vector.extract_strided_slice %0 {offsets = [0, 0], sizes = [1, 32], strides = [1, 1]} : vector<2x32xf32> to vector<1x32xf32>
    %1607 = vector.broadcast %1605 : vector<8x1xf32> to vector<8x32xf32>
    %1608 = vector.broadcast %1606 : vector<1x32xf32> to vector<8x32xf32>
    %1609 = arith.mulf %1607, %1608 : vector<8x32xf32>
    %1610 = vector.extract_strided_slice %1530 {offsets = [0, 1], sizes = [8, 1], strides = [1, 1]} : vector<8x2xf32> to vector<8x1xf32>
    %1611 = vector.extract_strided_slice %0 {offsets = [1, 0], sizes = [1, 32], strides = [1, 1]} : vector<2x32xf32> to vector<1x32xf32>
    %1612 = vector.broadcast %1610 : vector<8x1xf32> to vector<8x32xf32>
    %1613 = vector.broadcast %1611 : vector<1x32xf32> to vector<8x32xf32>
    %1614 = arith.mulf %1612, %1613 : vector<8x32xf32>
    %1615 = arith.addf %1609, %1614 : vector<8x32xf32>
    %1616 = vector.broadcast %1 : vector<1x32xf32> to vector<8x32xf32>
    %1617 = arith.addf %1615, %1616 : vector<8x32xf32>
    %cst_317 = arith.constant 0.000000e+00 : f32
    %1618 = vector.broadcast %cst_317 : f32 to vector<8x32xf32>
    %1619 = arith.maximumf %1617, %1618 : vector<8x32xf32>
    %cst_318 = arith.constant dense<0.000000e+00> : vector<8x32xf32>
    %1620 = tpu.matmul %1604, %2, %cst_318 {dimension_numbers = #tpu.dot_dimension_numbers<[1], [0], [0], [1], [0, 0, 1, 1], [], []>} : vector<8x16xf32>, vector<16x32xf32>, vector<8x32xf32> -> vector<8x32xf32>
    %1621 = vector.broadcast %3 : vector<1x32xf32> to vector<8x32xf32>
    %1622 = arith.addf %1620, %1621 : vector<8x32xf32>
    %cst_319 = arith.constant 0.000000e+00 : f32
    %1623 = vector.broadcast %cst_319 : f32 to vector<8x32xf32>
    %1624 = arith.maximumf %1622, %1623 : vector<8x32xf32>
    %1625 = tpu.concatenate %1619, %1624 in 1 : vector<8x32xf32>, vector<8x32xf32> -> vector<8x64xf32>
    %1626 = tpu.concatenate %1625, %1518 in 1 : vector<8x64xf32>, vector<8x32xf32> -> vector<8x96xf32>
    %cst_320 = arith.constant dense<0.000000e+00> : vector<8x128xf32>
    %1627 = tpu.matmul %1626, %4, %cst_320 {dimension_numbers = #tpu.dot_dimension_numbers<[1], [0], [0], [1], [0, 0, 1, 1], [], []>} : vector<8x96xf32>, vector<96x128xf32>, vector<8x128xf32> -> vector<8x128xf32>
    %1628 = vector.broadcast %7 : vector<1x128xf32> to vector<8x128xf32>
    %1629 = arith.addf %1627, %1628 : vector<8x128xf32>
    %1630 = tpu.iota {dimensions = array<i32: 1>} : vector<8x128xi32>
    %c96_i32_321 = arith.constant 96 : i32
    %1631 = vector.broadcast %c96_i32_321 : i32 to vector<8x128xi32>
    %1632 = arith.cmpi slt, %1630, %1631 : vector<8x128xi32>
    %1633 = arith.negf %1629 : vector<8x128xf32>
    %1634 = math.exp %1633 : vector<8x128xf32>
    %cst_322 = arith.constant 1.000000e+00 : f32
    %1635 = vector.broadcast %cst_322 : f32 to vector<8x128xf32>
    %1636 = arith.addf %1635, %1634 : vector<8x128xf32>
    %1637 = arith.divf %1635, %1636 : vector<8x128xf32>
    %1638 = math.tanh %1629 : vector<8x128xf32>
    %1639 = arith.select %1632, %1637, %1638 : vector<8x128xi1>, vector<8x128xf32>
    %1640 = vector.extract_strided_slice %1639 {offsets = [0, 0], sizes = [8, 32], strides = [1, 1]} : vector<8x128xf32> to vector<8x32xf32>
    %1641 = vector.extract_strided_slice %1639 {offsets = [0, 32], sizes = [8, 32], strides = [1, 1]} : vector<8x128xf32> to vector<8x32xf32>
    %1642 = vector.extract_strided_slice %1639 {offsets = [0, 64], sizes = [8, 32], strides = [1, 1]} : vector<8x128xf32> to vector<8x32xf32>
    %1643 = vector.extract_strided_slice %1639 {offsets = [0, 96], sizes = [8, 32], strides = [1, 1]} : vector<8x128xf32> to vector<8x32xf32>
    %1644 = arith.mulf %1641, %1516 : vector<8x32xf32>
    %1645 = arith.mulf %1640, %1643 : vector<8x32xf32>
    %1646 = arith.addf %1644, %1645 : vector<8x32xf32>
    %1647 = math.tanh %1646 : vector<8x32xf32>
    %1648 = arith.mulf %1642, %1647 : vector<8x32xf32>
    %cst_323 = arith.constant dense<0.000000e+00> : vector<8x8xf32>
    %1649 = tpu.matmul %1648, %8, %cst_323 {dimension_numbers = #tpu.dot_dimension_numbers<[1], [0], [0], [1], [0, 0, 1, 1], [], []>} : vector<8x32xf32>, vector<32x8xf32>, vector<8x8xf32> -> vector<8x8xf32>
    %1650 = vector.broadcast %9 : vector<1x8xf32> to vector<8x8xf32>
    %1651 = arith.addf %1649, %1650 : vector<8x8xf32>
    %c2_i32_324 = arith.constant 2 : i32
    %1652 = vector.broadcast %c2_i32_324 : i32 to vector<8x8xi32>
    %1653 = arith.cmpi slt, %195, %1652 : vector<8x8xi32>
    %c4_i32_325 = arith.constant 4 : i32
    %1654 = vector.broadcast %c4_i32_325 : i32 to vector<8x8xi32>
    %1655 = arith.cmpi slt, %195, %1654 : vector<8x8xi32>
    %1656 = math.exp %1651 : vector<8x8xf32>
    %1657 = math.tanh %1651 : vector<8x8xf32>
    %1658 = arith.select %1655, %1656, %1657 : vector<8x8xi1>, vector<8x8xf32>
    %1659 = arith.select %1653, %1651, %1658 : vector<8x8xi1>, vector<8x8xf32>
    %1660 = vector.extract_strided_slice %1659 {offsets = [0, 0], sizes = [8, 2], strides = [1, 1]} : vector<8x8xf32> to vector<8x2xf32>
    %1661 = arith.addf %1660, %1531 : vector<8x2xf32>
    %1662 = tpu.concatenate %229, %359, %489, %619, %749, %879, %1009, %1139, %1269, %1399, %1529, %1659 in 0 : vector<8x8xf32>, vector<8x8xf32>, vector<8x8xf32>, vector<8x8xf32>, vector<8x8xf32>, vector<8x8xf32>, vector<8x8xf32>, vector<8x8xf32>, vector<8x8xf32>, vector<8x8xf32>, vector<8x8xf32>, vector<8x8xf32> -> vector<96x8xf32>
    %c0_326 = arith.constant 0 : index
    %c0_327 = arith.constant 0 : index
    %1663 = vector.load %arg14[%c0_326, %c0_327] : memref<96x8xf32, #tpu.memory_space<vmem>>, vector<96x8xf32>
    tpu.vector_store %arg14[%c0_326, %c0_327], %1662 {strides = array<i32>} : memref<96x8xf32, #tpu.memory_space<vmem>>, vector<96x8xf32>,
    %1664 = tpu.concatenate %231, %361, %491, %621, %751, %881, %1011, %1141, %1271, %1401, %1531, %1661 in 0 : vector<8x2xf32>, vector<8x2xf32>, vector<8x2xf32>, vector<8x2xf32>, vector<8x2xf32>, vector<8x2xf32>, vector<8x2xf32>, vector<8x2xf32>, vector<8x2xf32>, vector<8x2xf32>, vector<8x2xf32>, vector<8x2xf32> -> vector<96x2xf32>
    %c0_328 = arith.constant 0 : index
    %c0_329 = arith.constant 0 : index
    %1665 = vector.load %arg15[%c0_328, %c0_329] : memref<96x2xf32, #tpu.memory_space<vmem>>, vector<96x2xf32>
    tpu.vector_store %arg15[%c0_328, %c0_329], %1664 {strides = array<i32>} : memref<96x2xf32, #tpu.memory_space<vmem>>, vector<96x2xf32>,
    return
  }
}

</mosaic_0001>

<bundles_post_ra>
// kernel: olstm_forward.1
= control target key start
LH: loop header
LB: loop body
LE: loop exit
PB: predicated region body
PF: predicated region fallthrough
CT: control target
= control target key end

     0   :  { %vm220_vm0 = vcmask 130048   ;;  %v7187_v3 = vmov 0   ;;  %v7188_v8 = vmov 1   ;;  %v7189_v14 = vmov 0.0|0.0   ;;  %s7193_s26 = smov 64   ;;  %s7194_s18 = smov 125   ;;  %s8728_s8 = inlined_call_operand.vmem [shape: f32[16,32], index: 8, kind: input, shape index: {}]   ;;  %s8729_s1 = inlined_call_operand.vmem [shape: f32[64,16], index: 1, kind: input, shape index: {}]   ;;  %s8730_s0 = inlined_call_operand.vmem [shape: f32[64,2], index: 0, kind: input, shape index: {}]   ;;  %s8731_s10 = inlined_call_operand.vmem [shape: f32[96,128], index: 10, kind: input, shape index: {}]   ;;  %s8732_s9 = inlined_call_operand.vmem [shape: f32[1,32], index: 9, kind: input, shape index: {}]   ;;  %s8733_s3 = inlined_call_operand.vmem [shape: f32[8,32], index: 3, kind: input, shape index: {}]   ;;  %s8734_s4 = inlined_call_operand.vmem [shape: f32[8,32], index: 4, kind: input, shape index: {}]   ;;  %s8735_s6 = inlined_call_operand.vmem [shape: f32[2,32], index: 6, kind: input, shape index: {}]   ;;  %s8736_s7 = inlined_call_operand.vmem [shape: f32[1,32], index: 7, kind: input, shape index: {}]   ;;  %s8737_s11 = inlined_call_operand.vmem [shape: f32[1,128], index: 11, kind: input, shape index: {}]   ;;  %s8738_s12 = inlined_call_operand.vmem [shape: f32[32,8], index: 12, kind: input, shape index: {}]   ;;  %s8739_s13 = inlined_call_operand.vmem [shape: f32[1,8], index: 13, kind: input, shape index: {}]   ;;  %s8740_s5 = inlined_call_operand.vmem [shape: f32[8,2], index: 5, kind: input, shape index: {}]   ;;  %s8741_s14 = inlined_call_operand.vmem [shape: f32[96,8], index: 14, kind: output, shape index: {0}]   ;;  %s8742_s15 = inlined_call_operand.vmem [shape: f32[96,2], index: 15, kind: output, shape index: {1}]   ;;  %s8743_s2 = inlined_call_operand.vmem [shape: f32[96,6], index: 2, kind: input, shape index: {}]  }
   0x1   :  { %v51_v0 = vld [vmem:[%s8728_s8] sm:$0xff]  ;;  %v52_v1 = vld [vmem:[%s8728_s8 + $0x8] sm:$0xff]  ;;  %6881 = vset.pattern.permute.xlu0 %v7187_v3  ;;  %6883 = vset.pattern.permute.xlu1 %v7187_v3  ;;  %v208_v9 = vld [vmem:[%s8729_s1 + $0x10] sm:$0xff]  ;;  %vm390_vm1 = vcmask 261120   ;;  %vm7190_vm2 = vmmov 0   ;;  %v7191_v34 = vmov 0.0   ;;  %v120_v44 = vlaneseq }
   0x2   :  { %v206_v2 = vld [vmem:[%s8729_s1] sm:$0xff]  ;;  %v7287_v4 = vpack.c.bf16 %v52_v1, %v51_v0  ;;  %v73_v6 = vld [vmem:[%s8730_s0 + $0x8] sm:$0xff]  ;;  %v209_v10 = vld [vmem:[%s8729_s1 + $0x18] sm:$0xff]  ;;  %vm405_vm3 = vcmask 523264   ;;  %vm1250_vm5 = vcmask 785408   ;;  %vm8745_vm8 = vcmask 64512  }
   0x3   :  { %5795 = vmatprep.mubr.msk.f32.mxu0 %vm220_vm0, %v206_v2  ;;  %v72_v5 = vld [vmem:[%s8730_s0] sm:$0xff]  ;;  %87 = vperm.xlu1 %6883, %v73_v6   ;;  %v207_v7 = vld [vmem:[%s8729_s1 + $0x8] sm:$0xff]  ;;  %v64_v17 = vld [vmem:[%s8731_s10 + $0x50] sm:$0xff]  ;;  %v121_v47 = vshrl.u32 %v120_v44, 7  ;;  %vm8744_vm9 = vcmask 15360  }
   0x4   :  { %82 = vperm.xlu0 %6881, %v72_v5   ;;  %6446 = vmatprep.subr.bf16.mxu0 %v7287_v4  ;;  %v210_v11 = vld [vmem:[%s8729_s1 + $0x20] sm:$0xff]  ;;  %v55_v13 = vld [vmem:[%s8731_s10 + $0x8] sm:$0xff]  ;;  %v65_v19 = vld [vmem:[%s8731_s10 + $0x58] sm:$0xff] }
   0x5   :  { %6448 = vmatpush3.bf16.msra.mxu0 %v7287_v4  ;;  %v54_v12 = vld [vmem:[%s8731_s10] sm:$0xff]  ;;  %v63_v16 = vld [vmem:[%s8731_s10 + $0x48] sm:$0xff]  ;;  %v56_v21 = vld [vmem:[%s8731_s10 + $0x10] sm:$0xff]  ;;  %v7353_v25 = vpack.c.bf16 %v65_v19, %v64_v17  ;;  %v122_v51 = vsub.s32 0, %v121_v47  ;;  %v166_v53 = vsub.s32 1, %v121_v47 }
   0x6   :  { %6465 = vmatprep.subr.bf16.mxu0 %v7189_v14  ;;  %v62_v15 = vld [vmem:[%s8731_s10 + $0x40] sm:$0xff]  ;;  %v7331_v18 = vpack.c.bf16 %v55_v13, %v54_v12  ;;  %v57_v22 = vld [vmem:[%s8731_s10 + $0x18] sm:$0xff]  ;;  %v59_v24 = vld [vmem:[%s8731_s10 + $0x28] sm:$0xff] }
   0x7   :  { %6884 = vset.pattern.permute.xlu1 %v7188_v8  ;;  %v7337_v20 = vpack.c.bf16 %v63_v16, %v62_v15  ;;  %v58_v23 = vld [vmem:[%s8731_s10 + $0x20] sm:$0xff]  ;;  %v7357_v26 = vpack.c.bf16 %v57_v22, %v56_v21  ;;  %v211_v27 = vld [vmem:[%s8729_s1 + $0x28] sm:$0xff]  ;;  %v60_v29 = vld [vmem:[%s8731_s10 + $0x30] sm:$0xff] }
   0x8   :  { %6882 = vset.pattern.permute.xlu0 %v7188_v8  ;;  %5796 = vmatmul.mubr.msk.f32.vlgmr.msra.gmra.mrb[0].mxu0 %vm220_vm0, %v207_v7  ;;  %v7362_v28 = vpack.c.bf16 %v59_v24, %v58_v23  ;;  %v61_v30 = vld [vmem:[%s8731_s10 + $0x38] sm:$0xff]  ;;  %v212_v32 = vld [vmem:[%s8729_s1 + $0x30] sm:$0xff]  ;;  %v534_v35 = vld [vmem:[%s8733_s3] sm:$0xff] }
   0x9   :  { %133 = vperm.xlu0 %6882, %v72_v5   ;;  %137 = vperm.xlu1 %6884, %v73_v6   ;;  %v7376_v31 = vpack.c.bf16 %v61_v30, %v60_v29  ;;  %v213_v33 = vld [vmem:[%s8729_s1 + $0x38] sm:$0xff]  ;;  %v7400_v36 = vld [vmem:[%s8732_s9] ss:$0 sm:$0xff]  ;;  %s7192_s1 = smov 32  }
   0xa   :  { %5798 = vmatprep.mubr.msk.f32.mxu0 %vm220_vm0, %v208_v9  ;;  %6450 = vmatprep.subr.bf16.mxu1 %v7331_v18  ;;  %v535_v43 = vld [vmem:[%s8734_s4] sm:$0xff] }
   0xb   :  { %6452 = vmatpush3.bf16.msra.mxu1 %v7331_v18  ;;  %6467 = vmatpush3.bf16.msra.mxu0 %v7337_v20  ;;  %v49_v54 = vld [vmem:[%s8735_s6] sm:$0x3] }
   0xc   :  { %5799 = vmatmul.mubr.msk.f32.gmra.mrb[2].mxu0 %vm220_vm0, %v209_v10  ;;  %6468 = vmatprep.subr.bf16.mxu0 %v7189_v14  ;;  %v7427_v55 = vrot.slane %v49_v54, %v122_v51  ;;  %v7429_v56 = vrot.slane %v49_v54, %v166_v53  ;;  %v7438_v0 = vld [vmem:[%s8736_s7] ss:$0 sm:$0xff] }
   0xd   :  { %6885 = vset.pattern.permute.xlu1 %v7187_v3  ;;  %5801 = vmatprep.mubr.msk.f32.mxu0 %vm220_vm0, %v210_v11  ;;  %v7457_v19 = vld [vmem:[%s8737_s11] ss:$0 sm:$0xff] }
   0xe   :  { %6454 = vmatprep.subr.bf16.mxu1 %v7357_v26 }
   0xf   :  { %6456 = vmatpush3.bf16.msra.mxu1 %v7357_v26  ;;  %6470 = vmatpush3.bf16.msra.mxu0 %v7353_v25 }
  0x10   :  { %5802 = vmatmul.mubr.msk.f32.gmra.mrb[4].mxu0 %vm220_vm0, %v211_v27  ;;  %6458 = vmatprep.subr.bf16.mxu1 %v7362_v28 }
  0x11   :  { %6471 = vmatprep.subr.bf16.mxu0 %v7189_v14  ;;  %5804 = vmatprep.mubr.msk.f32.mxu0 %vm220_vm0, %v212_v32  ;;  %v7460_v32 = vand.u32 127, %v120_v44 }
  0x13   :  { %6460 = vmatpush3.bf16.msra.mxu1 %v7362_v28  ;;  %vm612_vm4 = vcmp.lt.s32.totalorder %v7460_v32, 96  ;;  %vm1431_vm6 = vcmp.lt.s32.totalorder %v7460_v32, 4  ;;  %vm8746_vm7 = vcmp.lt.s32.totalorder %v7460_v32, 2 }
  0x14   :  { %6462 = vmatprep.subr.bf16.mxu1 %v7376_v31  ;;  %5805 = vmatmul.mubr.msk.f32.gmra.mrb[6].mxu0 %vm220_vm0, %v213_v33 }
  0x15   :  { %5843 = vmatprep.mubr.msk.f32.mxu0 %vm7190_vm2, %v7191_v34 }
  0x17   :  { %6464 = vmatpush3.bf16.msra.mxu1 %v7376_v31 }
  0x18   :  { %6477 = vmatprep.subr.bf16.mxu1 %v7189_v14  ;;  %5844 = vmatmul.mubr.msk.f32.vlgmr.msra.gmra.mrb[8].mxu0 %vm390_vm1, %v534_v35 }
  0x19   :  { %6473 = vmatpush3.bf16.msra.mxu0 %v7337_v20  ;;  %5854 = vmatprep.mubr.msk.f32.mxu0 %vm7190_vm2, %v7191_v34 }
  0x1a   :  { %6474 = vmatprep.subr.bf16.mxu0 %v7189_v14 }
  0x1d   :  { %6476 = vmatpush3.bf16.msra.mxu0 %v7353_v25 }
  0x1e   :  { %6483 = vmatprep.subr.bf16.mxu0 %v7189_v14 }
  0x82   :  { %v88_v52 = vpop.permute.xlu1 %87 }
  0x83   :  { %v83_v50 = vpop.permute.xlu0 %82  ;;  %v125_v61 = vmul.f32 %v7427_v55, %v88_v52 }
  0x84   :  { %v124_v59 = vmul.f32 %v7427_v55, %v83_v50 }
  0x88   :  { %v134_v57 = vpop.permute.xlu0 %133  ;;  %v138_v58 = vpop.permute.xlu1 %137 }
  0x89   :  { %v168_v60 = vmul.f32 %v7429_v56, %v134_v57  ;;  %v169_v62 = vmul.f32 %v7429_v56, %v138_v58 }
  0x8b   :  { %v176_v63 = vadd.f32 %v168_v60, %v124_v59  ;;  %v177_v1 = vadd.f32 %v169_v62, %v125_v61 }
  0x8d   :  { %v190_v2 = vadd.f32 %v7438_v0, %v176_v63  ;;  %v191_v5 = vadd.f32 %v7438_v0, %v177_v1 }
  0x8f   :  { %v198_v7 = vmax.f32 %v190_v2, 0.0  ;;  %v199_v9 = vmax.f32 %v191_v5, 0.0  ;;  %v74_v5 = vld [vmem:[%s8730_s0 + $0x10] sm:$0xff] }
  0xdb   :  { %v5797_v37 = vpop.f32.mrb[0].mxu0 }
  0xdc   :  { %v317_v38 = vadd.f32 %v5797_v37, %v7400_v36  ;;  %v311_v39 = vpop.f32.mrb[1].mxu0 }
  0xdd   :  { %v312_v40 = vadd.f32 %v7400_v36, %v311_v39 }
  0xde   :  { %v351_v41 = vmax.f32 %v317_v38, 0.0 }
  0xdf   :  { %v350_v42 = vmax.f32 %v312_v40, 0.0  ;;  %v7416_v45 = vpop.f32.mrb[2].mxu0 }
  0xe0   :  { %368 = vrot.lane.b32.xlu0 %v351_v41, %s7192_s1  ;;  %v7418_v46 = vpop.f32.mrb[3].mxu0 }
  0xe1   :  { %366 = vrot.lane.b32.xlu1 %v350_v42, %s7192_s1 }
  0xe3   :  { %v7420_v48 = vpop.f32.mrb[4].mxu0 }
  0xe4   :  { %622 = vrot.lane.b32.xlu0 %v535_v43, %s7192_s1  ;;  %v7422_v49 = vpop.f32.mrb[5].mxu0 }
  0xe7   :  { %v7450_v13 = vpop.f32.mrb[6].mxu0 }
  0xe8   :  { %v7452_v15 = vpop.f32.mrb[7].mxu0 }
  0xeb   :  { %v605_v16 = vpop.f32.mrb[8].mxu0 }
  0xec   :  { %v5845_v17 = vpop.f32.mrb[9].mxu0 }
  0xed   :  { %v332_v17 = vadd.f32 %v7400_v36, %v7422_v49 }
 0x152   :  { %v369_v6 = vpop.permute.xlu0 %368 }
 0x153   :  { %v367_v10 = vpop.permute.xlu1 %366  ;;  %v392_v12 = vsel %vm390_vm1, %v199_v9, %v369_v6  ;;  %v75_v6 = vld [vmem:[%s8730_s0 + $0x18] sm:$0xff]  ;;  %v77_v9 = vld [vmem:[%s8730_s0 + $0x28] sm:$0xff] }
 0x154   :  { %v391_v11 = vsel %vm390_vm1, %v198_v7, %v367_v10  ;;  %v76_v7 = vld [vmem:[%s8730_s0 + $0x20] sm:$0xff]  ;;  %v78_v10 = vld [vmem:[%s8730_s0 + $0x30] sm:$0xff] }
 0x155   :  { %5823 = vmatprep.mubr.msk.f32.mxu1 %vm405_vm3, %v391_v11  ;;  %v79_v11 = vld [vmem:[%s8730_s0 + $0x38] sm:$0xff] }
 0x156   :  { %5824 = vmatmul.mubr.msk.f32.vlgmr.msra.gmra.mrb[0].mxu1 %vm405_vm3, %v392_v12  ;;  %v623_v40 = vpop.permute.xlu0 %622  ;;  %v322_v12 = vadd.f32 %v7400_v36, %v7418_v46 }
 0x157   :  { %6479 = vmatpush3.bf16.msra.mxu1 %v7337_v20 }
 0x158   :  { %6480 = vmatprep.subr.bf16.mxu1 %v7189_v14 }
 0x15b   :  { %6482 = vmatpush3.bf16.msra.mxu1 %v7353_v25 }
 0x15c   :  { %6489 = vmatprep.subr.bf16.mxu1 %v7189_v14 }
 0x229   :  { %v5825_v21 = vpop.f32.mrb[0].mxu1 }
 0x22a   :  { %v496_v22 = vpop.f32.mrb[1].mxu1  ;;  %v502_v52 = vadd.f32 %v5825_v21, %v7457_v19  ;;  %v354_v21 = vmax.f32 %v332_v17, 0.0 }
 0x22b   :  { %v497_v23 = vadd.f32 %v7457_v19, %v496_v22  ;;  %v342_v22 = vadd.f32 %v7400_v36, %v7452_v15  ;;  %v327_v15 = vadd.f32 %v7416_v45, %v7400_v36 }
 0x22d   :  { %v609_v24 = vadd.f32 %v605_v16, %v497_v23  ;;  %v352_v16 = vmax.f32 %v322_v12, 0.0  ;;  %v356_v23 = vmax.f32 %v342_v22, 0.0 }
 0x22f   :  { %v5387_v27 = vmul.f32 -1.442695, %v609_v24 }
 0x231   :  { %6976 = vpow2.f32 %v5387_v27 }
 0x232   :  { %6978 = vtanh.f32 %v609_v24 }
 0x23b   :  { %v6977_v29 = vpop.eup %6976 }
 0x23c   :  { %v616_v30 = vadd.f32 1.0, %v6977_v29  ;;  %v6979_v33 = vpop.eup %6978  ;;  %v353_v29 = vmax.f32 %v327_v15, 0.0 }
 0x23e   :  { %6980 = vrcp.f32 %v616_v30  ;;  %v337_v30 = vadd.f32 %v7420_v48, %v7400_v36 }
 0x248   :  { %v6981_v35 = vpop.eup %6980 }
 0x249   :  { %v620_v37 = vsel %vm612_vm4, %v6981_v35, %v6979_v33  ;;  %v355_v33 = vmax.f32 %v337_v30, 0.0  ;;  %v347_v35 = vadd.f32 %v7450_v13, %v7400_v36 }
 0x24a   :  { %627 = vrot.lane.b32.xlu1 %v620_v37, %s7192_s1  ;;  %v625_v41 = vmul.f32 %v623_v40, %v620_v37 }
 0x2bc   :  { %v628_v38 = vpop.permute.xlu1 %627 }
 0x2bd   :  { %v630_v39 = vmul.f32 %v628_v38, %v620_v37 }
 0x2bf   :  { %632 = vrot.lane.b32.xlu1 %v630_v39, %s7192_s1 }
 0x331   :  { %v633_v42 = vpop.permute.xlu1 %632 }
 0x332   :  { %v635_v43 = vadd.f32 %v633_v42, %v625_v41 }
 0x334   :  { %6982 = vtanh.f32 %v635_v43 }
 0x33e   :  { %v6983_v44 = vpop.eup %6982 }
 0x33f   :  { %638 = vrot.lane.b32.xlu0 %v6983_v44, %s7192_s1 }
 0x3b1   :  { %v639_v47 = vpop.permute.xlu0 %638 }
 0x3b2   :  { %v641_v50 = vmul.f32 %v639_v47, %v620_v37  ;;  %v357_v37 = vmax.f32 %v347_v35, 0.0 }
 0x3b4   :  { %643 = vrot.lane.b32.xlu1 %v641_v50, %s7193_s26 }
 0x426   :  { %v644_v51 = vpop.permute.xlu1 %643 }
 0x427   :  { %5855 = vmatmul.mubr.msk.f32.vlgmr.msra.gmra.mrb[10].mxu0 %vm390_vm1, %v644_v51 }
 0x428   :  { %6485 = vmatpush3.bf16.msra.mxu0 %v7337_v20  ;;  %5876 = vmatprep.mubr.msk.f32.mxu0 %vm7190_vm2, %v7191_v34 }
 0x429   :  { %6486 = vmatprep.subr.bf16.mxu0 %v7189_v14 }
 0x42c   :  { %6488 = vmatpush3.bf16.msra.mxu0 %v7353_v25 }
 0x42d   :  { %6495 = vmatprep.subr.bf16.mxu0 %v7189_v14 }
 0x4fa   :  { %v713_v53 = vpop.f32.mrb[10].mxu0 }
 0x4fb   :  { %v717_v54 = vadd.f32 %v713_v53, %v502_v52  ;;  %v5856_v57 = vpop.f32.mrb[11].mxu0 }
 0x4fd   :  { %v5389_v58 = vmul.f32 -1.442695, %v717_v54 }
 0x4ff   :  { %6984 = vpow2.f32 %v5389_v58 }
 0x500   :  { %6986 = vtanh.f32 %v717_v54 }
 0x509   :  { %v6985_v59 = vpop.eup %6984 }
 0x50a   :  { %v721_v60 = vadd.f32 1.0, %v6985_v59  ;;  %v6987_v61 = vpop.eup %6986 }
 0x50c   :  { %6988 = vrcp.f32 %v721_v60 }
 0x516   :  { %v6989_v62 = vpop.eup %6988 }
 0x517   :  { %v725_v63 = vsel %vm612_vm4, %v6989_v62, %v6987_v61 }
 0x518   :  { %728 = vrot.lane.b32.xlu0 %v725_v63, %s7192_s1  ;;  %v726_v24 = vmul.f32 %v725_v63, %v635_v43 }
 0x58a   :  { %v729_v1 = vpop.permute.xlu0 %728 }
 0x58b   :  { %v731_v2 = vmul.f32 %v729_v1, %v725_v63 }
 0x58d   :  { %733 = vrot.lane.b32.xlu1 %v731_v2, %s7192_s1 }
 0x591   :  { %92 = vperm.xlu1 %6885, %v74_v5  }
 0x595   :  { %97 = vperm.xlu1 %6885, %v75_v6  }
 0x599   :  { %102 = vperm.xlu1 %6885, %v76_v7  }
 0x59d   :  { %107 = vperm.xlu1 %6885, %v77_v9  }
 0x5a1   :  { %112 = vperm.xlu1 %6885, %v78_v10  }
 0x5a5   :  { %117 = vperm.xlu1 %6885, %v79_v11  }
 0x5a9   :  { %370 = vrot.lane.b32.xlu1 %v352_v16, %s7192_s1 }
 0x5aa   :  { %6886 = vset.pattern.permute.xlu1 %v7188_v8 }
 0x5ad   :  { %374 = vrot.lane.b32.xlu1 %v354_v21, %s7192_s1 }
 0x5b1   :  { %378 = vrot.lane.b32.xlu1 %v356_v23, %s7192_s1 }
 0x5ff   :  { %v734_v46 = vpop.permute.xlu1 %733 }
 0x600   :  { %v7509_v27 = vadd.f32 %v734_v46, %v726_v24 }
 0x602   :  { %6990 = vtanh.f32 %v7509_v27 }
 0x60c   :  { %v6991_v49 = vpop.eup %6990 }
 0x60d   :  { %739 = vrot.lane.b32.xlu0 %v6991_v49, %s7192_s1 }
 0x610   :  { %v93_v38 = vpop.permute.xlu1 %92 }
 0x611   :  { %141 = vperm.xlu0 %6882, %v74_v5   ;;  %v126_v43 = vmul.f32 %v7427_v55, %v93_v38 }
 0x614   :  { %v98_v45 = vpop.permute.xlu1 %97 }
 0x615   :  { %145 = vperm.xlu0 %6882, %v75_v6   ;;  %v127_v60 = vmul.f32 %v7427_v55, %v98_v45 }
 0x618   :  { %v103_v40 = vpop.permute.xlu1 %102 }
 0x619   :  { %149 = vperm.xlu0 %6882, %v76_v7   ;;  %v128_v58 = vmul.f32 %v7427_v55, %v103_v40 }
 0x61c   :  { %v108_v48 = vpop.permute.xlu1 %107 }
 0x61d   :  { %153 = vperm.xlu0 %6882, %v77_v9   ;;  %v129_v1 = vmul.f32 %v7427_v55, %v108_v48 }
 0x620   :  { %v113_v42 = vpop.permute.xlu1 %112 }
 0x621   :  { %157 = vperm.xlu0 %6882, %v78_v10   ;;  %v130_v2 = vmul.f32 %v7427_v55, %v113_v42 }
 0x624   :  { %v118_v36 = vpop.permute.xlu1 %117 }
 0x625   :  { %161 = vperm.xlu0 %6882, %v79_v11   ;;  %v131_v11 = vmul.f32 %v7427_v55, %v118_v36 }
 0x628   :  { %v371_v53 = vpop.permute.xlu1 %370 }
 0x629   :  { %372 = vrot.lane.b32.xlu0 %v353_v29, %s7192_s1 }
 0x62a   :  { %6887 = vset.pattern.permute.xlu0 %v7187_v3 }
 0x62c   :  { %v375_v46 = vpop.permute.xlu1 %374 }
 0x62d   :  { %376 = vrot.lane.b32.xlu0 %v355_v33, %s7192_s1 }
 0x630   :  { %v379_v40 = vpop.permute.xlu1 %378 }
 0x631   :  { %380 = vrot.lane.b32.xlu0 %v357_v37, %s7192_s1 }
 0x67f   :  { %v740_v39 = vpop.permute.xlu0 %739 }
 0x680   :  { %v742_v41 = vmul.f32 %v740_v39, %v725_v63 }
 0x682   :  { %744 = vrot.lane.b32.xlu1 %v742_v41, %s7193_s26 }
 0x690   :  { %v142_v44 = vpop.permute.xlu0 %141 }
 0x691   :  { %v170_v47 = vmul.f32 %v7429_v56, %v142_v44 }
 0x693   :  { %v178_v13 = vadd.f32 %v170_v47, %v126_v43 }
 0x694   :  { %v146_v50 = vpop.permute.xlu0 %145 }
 0x695   :  { %v192_v51 = vadd.f32 %v7438_v0, %v178_v13  ;;  %v171_v61 = vmul.f32 %v7429_v56, %v146_v50 }
 0x697   :  { %v200_v52 = vmax.f32 %v192_v51, 0.0  ;;  %v179_v5 = vadd.f32 %v171_v61, %v127_v60 }
 0x698   :  { %v150_v54 = vpop.permute.xlu0 %149 }
 0x699   :  { %v393_v57 = vsel %vm390_vm1, %v200_v52, %v371_v53  ;;  %v172_v59 = vmul.f32 %v7429_v56, %v150_v54  ;;  %v193_v12 = vadd.f32 %v7438_v0, %v179_v5 }
 0x69a   :  { %5826 = vmatprep.mubr.msk.f32.mxu1 %vm405_vm3, %v393_v57 }
 0x69b   :  { %v180_v63 = vadd.f32 %v172_v59, %v128_v58  ;;  %v201_v29 = vmax.f32 %v193_v12, 0.0 }
 0x69c   :  { %v154_v62 = vpop.permute.xlu0 %153 }
 0x69d   :  { %v173_v6 = vmul.f32 %v7429_v56, %v154_v62  ;;  %v194_v10 = vadd.f32 %v7438_v0, %v180_v63 }
 0x69f   :  { %v181_v16 = vadd.f32 %v173_v6, %v129_v1  ;;  %v202_v23 = vmax.f32 %v194_v10, 0.0 }
 0x6a0   :  { %v158_v7 = vpop.permute.xlu0 %157 }
 0x6a1   :  { %v174_v9 = vmul.f32 %v7429_v56, %v158_v7  ;;  %v195_v49 = vadd.f32 %v7438_v0, %v181_v16  ;;  %v395_v37 = vsel %vm390_vm1, %v202_v23, %v375_v46 }
 0x6a3   :  { %v182_v17 = vadd.f32 %v174_v9, %v130_v2  ;;  %v203_v45 = vmax.f32 %v195_v49, 0.0 }
 0x6a4   :  { %v162_v21 = vpop.permute.xlu0 %161 }
 0x6a5   :  { %v175_v22 = vmul.f32 %v7429_v56, %v162_v21  ;;  %v196_v24 = vadd.f32 %v7438_v0, %v182_v17 }
 0x6a7   :  { %v183_v15 = vadd.f32 %v175_v22, %v131_v11  ;;  %v204_v35 = vmax.f32 %v196_v24, 0.0 }
 0x6a8   :  { %v373_v30 = vpop.permute.xlu0 %372 }
 0x6a9   :  { %v394_v33 = vsel %vm390_vm1, %v201_v29, %v373_v30  ;;  %v197_v38 = vadd.f32 %v7438_v0, %v183_v15  ;;  %v397_v48 = vsel %vm390_vm1, %v204_v35, %v379_v40 }
 0x6aa   :  { %5827 = vmatmul.mubr.msk.f32.gmra.mrb[2].mxu1 %vm405_vm3, %v394_v33 }
 0x6ab   :  { %5829 = vmatprep.mubr.msk.f32.mxu1 %vm405_vm3, %v395_v37  ;;  %v205_v42 = vmax.f32 %v197_v38, 0.0 }
 0x6ac   :  { %v377_v39 = vpop.permute.xlu0 %376 }
 0x6ad   :  { %v396_v41 = vsel %vm390_vm1, %v203_v45, %v377_v39 }
 0x6ae   :  { %5830 = vmatmul.mubr.msk.f32.gmra.mrb[4].mxu1 %vm405_vm3, %v396_v41 }
 0x6af   :  { %5832 = vmatprep.mubr.msk.f32.mxu1 %vm405_vm3, %v397_v48 }
 0x6b0   :  { %v381_v43 = vpop.permute.xlu0 %380 }
 0x6b1   :  { %v7553_v44 = vsel %vm390_vm1, %v205_v42, %v381_v43 }
 0x6b2   :  { %5833 = vmatmul.mubr.msk.f32.gmra.mrb[6].mxu1 %vm405_vm3, %v7553_v44 }
 0x6b3   :  { %5865 = vmatprep.mubr.msk.f32.mxu1 %vm7190_vm2, %v7191_v34 }
 0x6f4   :  { %v745_v0 = vpop.permute.xlu1 %744 }
 0x6f5   :  { %5866 = vmatmul.mubr.msk.f32.vlgmr.msra.gmra.mrb[8].mxu1 %vm390_vm1, %v745_v0 }
 0x6f6   :  { %6491 = vmatpush3.bf16.msra.mxu1 %v7337_v20  ;;  %5887 = vmatprep.mubr.msk.f32.mxu1 %vm7190_vm2, %v7191_v34 }
 0x6f7   :  { %6492 = vmatprep.subr.bf16.mxu1 %v7189_v14 }
 0x6fa   :  { %6494 = vmatpush3.bf16.msra.mxu1 %v7353_v25 }
 0x6fb   :  { %6501 = vmatprep.subr.bf16.mxu1 %v7189_v14 }
 0x77d   :  { %v5828_v47 = vpop.f32.mrb[2].mxu1 }
 0x77e   :  { %v506_v36 = vpop.f32.mrb[3].mxu1 }
 0x77f   :  { %v507_v53 = vadd.f32 %v7457_v19, %v506_v36 }
 0x781   :  { %v7566_v13 = vpop.f32.mrb[4].mxu1 }
 0x782   :  { %v7568_v50 = vpop.f32.mrb[5].mxu1 }
 0x783   :  { %v517_v48 = vadd.f32 %v7457_v19, %v7568_v50 }
 0x785   :  { %v5834_v51 = vpop.f32.mrb[6].mxu1 }
 0x786   :  { %v7570_v52 = vpop.f32.mrb[7].mxu1 }
 0x7c8   :  { %v814_v54 = vpop.f32.mrb[8].mxu1 }
 0x7c9   :  { %v818_v57 = vadd.f32 %v814_v54, %v507_v53  ;;  %v5867_v58 = vpop.f32.mrb[9].mxu1 }
 0x7cb   :  { %v5391_v59 = vmul.f32 -1.442695, %v818_v57 }
 0x7cd   :  { %6992 = vpow2.f32 %v5391_v59 }
 0x7ce   :  { %6994 = vtanh.f32 %v818_v57 }
 0x7d7   :  { %v6993_v60 = vpop.eup %6992 }
 0x7d8   :  { %v822_v61 = vadd.f32 1.0, %v6993_v60  ;;  %v6995_v62 = vpop.eup %6994 }
 0x7da   :  { %6996 = vrcp.f32 %v822_v61 }
 0x7e4   :  { %v6997_v63 = vpop.eup %6996 }
 0x7e5   :  { %v826_v1 = vsel %vm612_vm4, %v6997_v63, %v6995_v62 }
 0x7e6   :  { %829 = vrot.lane.b32.xlu0 %v826_v1, %s7192_s1  ;;  %v827_v6 = vmul.f32 %v826_v1, %v7509_v27  ;;  %v512_v27 = vadd.f32 %v5828_v47, %v7457_v19 }
 0x858   :  { %v830_v2 = vpop.permute.xlu0 %829 }
 0x859   :  { %v832_v5 = vmul.f32 %v830_v2, %v826_v1 }
 0x85b   :  { %834 = vrot.lane.b32.xlu1 %v832_v5, %s7192_s1  ;;  %v522_v5 = vadd.f32 %v7566_v13, %v7457_v19 }
 0x8cd   :  { %v835_v7 = vpop.permute.xlu1 %834 }
 0x8ce   :  { %v837_v9 = vadd.f32 %v835_v7, %v827_v6 }
 0x8d0   :  { %6998 = vtanh.f32 %v837_v9 }
 0x8da   :  { %v6999_v10 = vpop.eup %6998 }
 0x8db   :  { %840 = vrot.lane.b32.xlu0 %v6999_v10, %s7192_s1 }
 0x94d   :  { %v841_v11 = vpop.permute.xlu0 %840 }
 0x94e   :  { %v843_v12 = vmul.f32 %v841_v11, %v826_v1 }
 0x950   :  { %845 = vrot.lane.b32.xlu1 %v843_v12, %s7193_s26 }
 0x9c2   :  { %v846_v16 = vpop.permute.xlu1 %845 }
 0x9c3   :  { %5877 = vmatmul.mubr.msk.f32.vlgmr.msra.gmra.mrb[12].mxu0 %vm390_vm1, %v846_v16 }
 0x9c4   :  { %6497 = vmatpush3.bf16.msra.mxu0 %v7337_v20  ;;  %5898 = vmatprep.mubr.msk.f32.mxu0 %vm7190_vm2, %v7191_v34 }
 0x9c5   :  { %6498 = vmatprep.subr.bf16.mxu0 %v7189_v14 }
 0x9c8   :  { %6500 = vmatpush3.bf16.msra.mxu0 %v7353_v25 }
 0x9c9   :  { %6507 = vmatprep.subr.bf16.mxu0 %v7189_v14 }
 0xa96   :  { %v915_v17 = vpop.f32.mrb[12].mxu0 }
 0xa97   :  { %v919_v21 = vadd.f32 %v915_v17, %v512_v27  ;;  %v5878_v22 = vpop.f32.mrb[13].mxu0 }
 0xa99   :  { %v5393_v23 = vmul.f32 -1.442695, %v919_v21 }
 0xa9b   :  { %7000 = vpow2.f32 %v5393_v23 }
 0xa9c   :  { %7002 = vtanh.f32 %v919_v21 }
 0xaa5   :  { %v7001_v24 = vpop.eup %7000 }
 0xaa6   :  { %v923_v46 = vadd.f32 1.0, %v7001_v24  ;;  %v7003_v49 = vpop.eup %7002 }
 0xaa8   :  { %7004 = vrcp.f32 %v923_v46 }
 0xab2   :  { %v7005_v15 = vpop.eup %7004 }
 0xab3   :  { %v927_v29 = vsel %vm612_vm4, %v7005_v15, %v7003_v49 }
 0xab4   :  { %930 = vrot.lane.b32.xlu0 %v927_v29, %s7192_s1  ;;  %v928_v35 = vmul.f32 %v927_v29, %v837_v9 }
 0xb26   :  { %v931_v30 = vpop.permute.xlu0 %930 }
 0xb27   :  { %v933_v33 = vmul.f32 %v931_v30, %v927_v29  ;;  %v527_v30 = vadd.f32 %v7457_v19, %v7570_v52 }
 0xb29   :  { %935 = vrot.lane.b32.xlu1 %v933_v33, %s7192_s1 }
 0xb9b   :  { %v936_v37 = vpop.permute.xlu1 %935 }
 0xb9c   :  { %v938_v38 = vadd.f32 %v936_v37, %v928_v35 }
 0xb9e   :  { %7006 = vtanh.f32 %v938_v38 }
 0xba8   :  { %v7007_v45 = vpop.eup %7006 }
 0xba9   :  { %941 = vrot.lane.b32.xlu0 %v7007_v45, %s7192_s1 }
 0xc1b   :  { %v942_v39 = vpop.permute.xlu0 %941 }
 0xc1c   :  { %v944_v40 = vmul.f32 %v942_v39, %v927_v29 }
 0xc1e   :  { %946 = vrot.lane.b32.xlu1 %v944_v40, %s7193_s26 }
 0xc90   :  { %v947_v41 = vpop.permute.xlu1 %946 }
 0xc91   :  { %5888 = vmatmul.mubr.msk.f32.vlgmr.msra.gmra.mrb[10].mxu1 %vm390_vm1, %v947_v41 }
 0xc92   :  { %6503 = vmatpush3.bf16.msra.mxu1 %v7337_v20  ;;  %5909 = vmatprep.mubr.msk.f32.mxu1 %vm7190_vm2, %v7191_v34 }
 0xc93   :  { %6504 = vmatprep.subr.bf16.mxu1 %v7189_v14 }
 0xc96   :  { %6506 = vmatpush3.bf16.msra.mxu1 %v7353_v25 }
 0xc97   :  { %6525 = vmatprep.subr.bf16.mxu1 %v7189_v14 }
 0xd64   :  { %v1016_v42 = vpop.f32.mrb[10].mxu1 }
 0xd65   :  { %v1020_v43 = vadd.f32 %v1016_v42, %v517_v48  ;;  %v5889_v0 = vpop.f32.mrb[11].mxu1 }
 0xd67   :  { %v5395_v47 = vmul.f32 -1.442695, %v1020_v43 }
 0xd69   :  { %7008 = vpow2.f32 %v5395_v47 }
 0xd6a   :  { %7010 = vtanh.f32 %v1020_v43 }
 0xd73   :  { %v7009_v36 = vpop.eup %7008 }
 0xd74   :  { %v1024_v51 = vadd.f32 1.0, %v7009_v36  ;;  %v7011_v53 = vpop.eup %7010 }
 0xd76   :  { %7012 = vrcp.f32 %v1024_v51 }
 0xd80   :  { %v7013_v54 = vpop.eup %7012 }
 0xd81   :  { %v1028_v57 = vsel %vm612_vm4, %v7013_v54, %v7011_v53 }
 0xd82   :  { %1031 = vrot.lane.b32.xlu0 %v1028_v57, %s7192_s1  ;;  %v1029_v50 = vmul.f32 %v1028_v57, %v938_v38 }
 0xdf4   :  { %v1032_v58 = vpop.permute.xlu0 %1031 }
 0xdf5   :  { %v1034_v59 = vmul.f32 %v1032_v58, %v1028_v57 }
 0xdf7   :  { %1036 = vrot.lane.b32.xlu1 %v1034_v59, %s7192_s1 }
 0xe69   :  { %v1037_v60 = vpop.permute.xlu1 %1036 }
 0xe6a   :  { %v1039_v61 = vadd.f32 %v1037_v60, %v1029_v50 }
 0xe6c   :  { %7014 = vtanh.f32 %v1039_v61 }
 0xe76   :  { %v7015_v62 = vpop.eup %7014 }
 0xe77   :  { %1042 = vrot.lane.b32.xlu0 %v7015_v62, %s7192_s1 }
 0xee9   :  { %v1043_v63 = vpop.permute.xlu0 %1042 }
 0xeea   :  { %v1045_v1 = vmul.f32 %v1043_v63, %v1028_v57 }
 0xeec   :  { %1047 = vrot.lane.b32.xlu1 %v1045_v1, %s7193_s26 }
 0xf5e   :  { %v1048_v2 = vpop.permute.xlu1 %1047 }
 0xf5f   :  { %5899 = vmatmul.mubr.msk.f32.vlgmr.msra.gmra.mrb[14].mxu0 %vm390_vm1, %v1048_v2 }
 0xf60   :  { %6509 = vmatpush3.bf16.msra.mxu0 %v7331_v18  ;;  %5936 = vmatprep.mubr.msk.f32.mxu0 %vm7190_vm2, %v7191_v34 }
 0xf61   :  { %6510 = vmatprep.subr.bf16.mxu0 %v7189_v14 }
 0xf64   :  { %6512 = vmatpush3.bf16.msra.mxu0 %v7357_v26 }
 0xf65   :  { %6513 = vmatprep.subr.bf16.mxu0 %v7189_v14 }
 0xf68   :  { %6515 = vmatpush3.bf16.msra.mxu0 %v7362_v28 }
 0xf69   :  { %6516 = vmatprep.subr.bf16.mxu0 %v7189_v14 }
 0xf6c   :  { %6518 = vmatpush3.bf16.msra.mxu0 %v7376_v31 }
 0xf6d   :  { %6519 = vmatprep.subr.bf16.mxu0 %v7189_v14 }
 0xf70   :  { %6521 = vmatpush3.bf16.msra.mxu0 %v7337_v20 }
 0xf71   :  { %6522 = vmatprep.subr.bf16.mxu0 %v7189_v14 }
 0xf74   :  { %6524 = vmatpush3.bf16.msra.mxu0 %v7353_v25 }
 0xf75   :  { %6531 = vmatprep.subr.bf16.mxu0 %v7189_v14 }
0x1032   :  { %v1117_v6 = vpop.f32.mrb[14].mxu0 }
0x1033   :  { %v1121_v7 = vadd.f32 %v1117_v6, %v522_v5  ;;  %v5900_v9 = vpop.f32.mrb[15].mxu0 }
0x1034   :  { %v68_v9 = vld [vmem:[%s8738_s12 + $0x8] sm:$0xff] }
0x1035   :  { %v5397_v10 = vmul.f32 -1.442695, %v1121_v7 }
0x1037   :  { %7016 = vpow2.f32 %v5397_v10  ;;  %v69_v10 = vld [vmem:[%s8738_s12 + $0x10] sm:$0xff] }
0x1038   :  { %7018 = vtanh.f32 %v1121_v7  ;;  %v67_v7 = vld [vmem:[%s8738_s12] sm:$0xff] }
0x1041   :  { %v7017_v11 = vpop.eup %7016 }
0x1042   :  { %v1125_v12 = vadd.f32 1.0, %v7017_v11  ;;  %v7019_v16 = vpop.eup %7018  ;;  %v7666_v11 = vpack.c.bf16 %v68_v9, %v67_v7  ;;  %v7195_v9 = vmov 2  }
0x1044   :  { %7020 = vrcp.f32 %v1125_v12  ;;  %v70_v12 = vld [vmem:[%s8738_s12 + $0x18] sm:$0xff] }
0x104e   :  { %v7021_v27 = vpop.eup %7020 }
0x104f   :  { %v1129_v17 = vsel %vm612_vm4, %v7021_v27, %v7019_v16  ;;  %v7672_v16 = vpack.c.bf16 %v70_v12, %v69_v10 }
0x1050   :  { %1132 = vrot.lane.b32.xlu0 %v1129_v17, %s7192_s1  ;;  %v1130_v13 = vmul.f32 %v1129_v17, %v1039_v61 }
0x10c2   :  { %v1133_v21 = vpop.permute.xlu0 %1132 }
0x10c3   :  { %v1135_v22 = vmul.f32 %v1133_v21, %v1129_v17 }
0x10c5   :  { %1137 = vrot.lane.b32.xlu1 %v1135_v22, %s7192_s1 }
0x1137   :  { %v1138_v23 = vpop.permute.xlu1 %1137 }
0x1138   :  { %v1140_v24 = vadd.f32 %v1138_v23, %v1130_v13  ;;  %v7700_v13 = vld [vmem:[%s8739_s13] ss:$0 sm:$0xff] }
0x113a   :  { %7022 = vtanh.f32 %v1140_v24 }
0x1144   :  { %v7023_v46 = vpop.eup %7022 }
0x1145   :  { %1143 = vrot.lane.b32.xlu0 %v7023_v46, %s7192_s1 }
0x11b7   :  { %v1144_v49 = vpop.permute.xlu0 %1143 }
0x11b8   :  { %v1146_v15 = vmul.f32 %v1144_v49, %v1129_v17 }
0x11ba   :  { %1148 = vrot.lane.b32.xlu1 %v1146_v15, %s7193_s26 }
0x122c   :  { %v1149_v29 = vpop.permute.xlu1 %1148 }
0x122d   :  { %5910 = vmatmul.mubr.msk.f32.vlgmr.msra.gmra.mrb[12].mxu1 %vm390_vm1, %v1149_v29 }
0x122e   :  { %5947 = vmatprep.mubr.msk.f32.mxu1 %vm7190_vm2, %v7191_v34  ;;  %6527 = vmatpush3.bf16.msra.mxu1 %v7666_v11 }
0x122f   :  { %6528 = vmatprep.subr.bf16.mxu1 %v7189_v14 }
0x1232   :  { %6530 = vmatpush3.bf16.msra.mxu1 %v7672_v16 }
0x1233   :  { %6534 = vmatprep.subr.bf16.mxu1 %v7189_v14 }
0x1300   :  { %v1218_v33 = vpop.f32.mrb[12].mxu1 }
0x1301   :  { %v1222_v35 = vadd.f32 %v1218_v33, %v527_v30  ;;  %v5911_v37 = vpop.f32.mrb[13].mxu1  ;;  %v1248_v30 = vld [vmem:[%s8740_s5] sm:$0xff] }
0x1303   :  { %v5399_v38 = vmul.f32 -1.442695, %v1222_v35 }
0x1305   :  { %7024 = vpow2.f32 %v5399_v38  ;;  %v1438_v38 = vld [vmem:[%s8743_s2] sm:$0xff] }
0x1306   :  { %7026 = vtanh.f32 %v1222_v35 }
0x130f   :  { %v7025_v45 = vpop.eup %7024 }
0x1310   :  { %v1226_v39 = vadd.f32 1.0, %v7025_v45  ;;  %v7027_v40 = vpop.eup %7026 }
0x1312   :  { %7028 = vrcp.f32 %v1226_v39 }
0x131c   :  { %v7029_v41 = vpop.eup %7028 }
0x131d   :  { %v1230_v48 = vsel %vm612_vm4, %v7029_v41, %v7027_v40 }
0x131e   :  { %1233 = vrot.lane.b32.xlu0 %v1230_v48, %s7192_s1  ;;  %v1231_v52 = vmul.f32 %v1230_v48, %v1140_v24 }
0x1390   :  { %v1234_v42 = vpop.permute.xlu0 %1233 }
0x1391   :  { %v1236_v43 = vmul.f32 %v1234_v42, %v1230_v48 }
0x1393   :  { %1238 = vrot.lane.b32.xlu1 %v1236_v43, %s7192_s1 }
0x1405   :  { %v1239_v0 = vpop.permute.xlu1 %1238 }
0x1406   :  { %v1241_v47 = vadd.f32 %v1239_v0, %v1231_v52 }
0x1408   :  { %7030 = vtanh.f32 %v1241_v47 }
0x1412   :  { %v7031_v36 = vpop.eup %7030 }
0x1413   :  { %1244 = vrot.lane.b32.xlu0 %v7031_v36, %s7192_s1 }
0x1485   :  { %v1245_v51 = vpop.permute.xlu0 %1244 }
0x1486   :  { %v1247_v53 = vmul.f32 %v1245_v51, %v1230_v48 }
0x1488   :  { %v1249_v54 = vsel %vm405_vm3, %v7553_v44, %v1247_v53 }
0x1489   :  { %5937 = vmatmul.mubr.msk.f32.vlgmr.msra.gmra.mrb[16].mxu0 %vm1250_vm5, %v1249_v54 }
0x148a   :  { %6533 = vmatpush3.bf16.msra.mxu0 %v7287_v4  ;;  %5954 = vmatprep.mubr.msk.f32.mxu0 %vm7190_vm2, %v7191_v34 }
0x148b   :  { %6552 = vmatprep.subr.bf16.mxu0 %v7189_v14 }
0x155c   :  { %v1320_v57 = vpop.f32.mrb[16].mxu0 }
0x155d   :  { %v1321_v58 = vadd.f32 %v7457_v19, %v1320_v57  ;;  %v5938_v59 = vpop.f32.mrb[17].mxu0 }
0x155f   :  { %v5401_v50 = vmul.f32 -1.442695, %v1321_v58 }
0x1561   :  { %7032 = vpow2.f32 %v5401_v50 }
0x1562   :  { %7034 = vtanh.f32 %v1321_v58 }
0x156b   :  { %v7033_v60 = vpop.eup %7032 }
0x156c   :  { %v1327_v61 = vadd.f32 1.0, %v7033_v60  ;;  %v7035_v44 = vpop.eup %7034 }
0x156e   :  { %7036 = vrcp.f32 %v1327_v61 }
0x1578   :  { %v7037_v62 = vpop.eup %7036 }
0x1579   :  { %v1331_v63 = vsel %vm612_vm4, %v7037_v62, %v7035_v44 }
0x157a   :  { %1334 = vrot.lane.b32.xlu1 %v1331_v63, %s7192_s1  ;;  %v1332_v5 = vmul.f32 %v1331_v63, %v1241_v47 }
0x15ec   :  { %v1335_v1 = vpop.permute.xlu1 %1334 }
0x15ed   :  { %v1337_v2 = vmul.f32 %v1335_v1, %v1331_v63 }
0x15ef   :  { %1339 = vrot.lane.b32.xlu0 %v1337_v2, %s7192_s1 }
0x1661   :  { %v1340_v19 = vpop.permute.xlu0 %1339 }
0x1662   :  { %v7654_v6 = vadd.f32 %v1340_v19, %v1332_v5 }
0x1664   :  { %7038 = vtanh.f32 %v7654_v6 }
0x166e   :  { %v7039_v27 = vpop.eup %7038 }
0x166f   :  { %1345 = vrot.lane.b32.xlu1 %v7039_v27, %s7192_s1 }
0x16e1   :  { %v1346_v17 = vpop.permute.xlu1 %1345 }
0x16e2   :  { %v7678_v21 = vmul.f32 %v1346_v17, %v1331_v63 }
0x16e4   :  { %1356 = vrot.lane.b32.xlu0 %v7678_v21, %s7193_s26 }
0x1756   :  { %v1357_v22 = vpop.permute.xlu0 %1356 }
0x1757   :  { %5948 = vmatmul.mubr.msk.f32.vlgmr.msra.gmra.mrb[14].mxu1 %vm390_vm1, %v1357_v22 }
0x1758   :  { %6536 = vmatpush3.bf16.msra.mxu1 %v7331_v18  ;;  %5981 = vmatprep.mubr.msk.f32.mxu1 %vm7190_vm2, %v7191_v34 }
0x1759   :  { %6537 = vmatprep.subr.bf16.mxu1 %v7189_v14 }
0x175c   :  { %6539 = vmatpush3.bf16.msra.mxu1 %v7357_v26 }
0x175d   :  { %6540 = vmatprep.subr.bf16.mxu1 %v7189_v14 }
0x1760   :  { %6542 = vmatpush3.bf16.msra.mxu1 %v7362_v28 }
0x1761   :  { %6543 = vmatprep.subr.bf16.mxu1 %v7189_v14 }
0x1764   :  { %6545 = vmatpush3.bf16.msra.mxu1 %v7376_v31 }
0x1765   :  { %6546 = vmatprep.subr.bf16.mxu1 %v7189_v14 }
0x1768   :  { %6548 = vmatpush3.bf16.msra.mxu1 %v7337_v20 }
0x1769   :  { %6549 = vmatprep.subr.bf16.mxu1 %v7189_v14 }
0x176c   :  { %6551 = vmatpush3.bf16.msra.mxu1 %v7353_v25 }
0x176d   :  { %6579 = vmatprep.subr.bf16.mxu1 %v7189_v14 }
0x182a   :  { %v1426_v23 = vpop.f32.mrb[14].mxu1 }
0x182b   :  { %v1427_v24 = vadd.f32 %v7700_v13, %v1426_v23  ;;  %v5949_v46 = vpop.f32.mrb[15].mxu1 }
0x182d   :  { %v1432_v49 = vmul.f32 1.442695, %v1427_v24  ;;  %7040 = vtanh.f32 %v1427_v24 }
0x182f   :  { %7042 = vpow2.f32 %v1432_v49 }
0x1837   :  { %v7041_v15 = vpop.eup %7040 }
0x1839   :  { %v7043_v29 = vpop.eup %7042 }
0x183a   :  { %v1435_v33 = vsel %vm1431_vm6, %v7043_v29, %v7041_v15 }
0x183b   :  { %v1436_v35 = vsel %vm8746_vm7, %v1427_v24, %v1435_v33 }
0x183c   :  { %5334 = vst.msk [vmem:[%s8741_s14] sm:$0xff] %vm8745_vm8, %v1436_v35  ;;  %v7716_v37 = vadd.f32 %v1436_v35, %v1248_v30 }
0x183e   :  { %1441 = vperm.xlu0 %6887, %v7716_v37   ;;  %5347 = vst.msk [vmem:[%s8742_s15] sm:$0xff] %vm8744_vm9, %v7716_v37  ;;  %1446 = vperm.xlu1 %6886, %v7716_v37  }
0x1842   :  { %6888 = vset.pattern.permute.xlu1 %v7187_v3 }
0x18bd   :  { %v1447_v45 = vpop.permute.xlu1 %1446  ;;  %v1442_v53 = vpop.permute.xlu0 %1441 }
0x18be   :  { %v1449_v39 = vsub.f32 %v1438_v38, %v1447_v45  ;;  %v1444_v54 = vsub.f32 %v1438_v38, %v1442_v53 }
0x18c0   :  { %v1469_v40 = vadd.f32 2.0, %v1449_v39  ;;  %v1452_v41 = vand.u32 2147483647, %v1449_v39  ;;  %v1459_v57 = vadd.f32 2.0, %v1444_v54  ;;  %v1450_v44 = vand.u32 2147483647, %v1444_v54 }
0x18c2   :  { %v1470_v48 = vmul.f32 0.25, %v1469_v40  ;;  %vm1453_vm10 = vcmp.lt.f32.partialorder %v1452_v41, 2.0  ;;  %v1461_v58 = vmul.f32 0.25, %v1459_v57  ;;  %vm1451_vm15 = vcmp.lt.f32.partialorder %v1450_v44, 2.0  ;;  %v7781_v57 = vld [vmem:[%s8737_s11] ss:$0 sm:$0xff] }
0x18c3   :  { %v1454_v42 = vsel %vm1453_vm10, 1, %v7187_v3 }
0x18c4   :  { %v1471_v43 = vmul.f32 4.0, %v1470_v48  ;;  %1455 = vrot.lane.b32.xlu1 %v1454_v42, %s7194_s18  ;;  %v1462_v59 = vmul.f32 4.0, %v1461_v58 }
0x18c6   :  { %v1472_v52 = vfloor.f32 %v1471_v43  ;;  %v1463_v50 = vfloor.f32 %v1462_v59 }
0x18c8   :  { %v6830_v0 = vtrunc.f32 %v1472_v52  ;;  %v6828_v60 = vtrunc.f32 %v1463_v50  ;;  %v7765_v52 = vld [vmem:[%s8736_s7] ss:$0 sm:$0xff] }
0x18ca   :  { %v6831_v47 = vcvt.f32.s32 %v6830_v0  ;;  %v6829_v61 = vcvt.f32.s32 %v6828_v60 }
0x18cc   :  { %vm1474_vm11 = vcmp.gt.s32.totalorder %v6831_v47, 0  ;;  %vm1465_vm13 = vcmp.gt.s32.totalorder %v6829_v61, 0 }
0x18cd   :  { %v1475_v36 = vsel %vm1474_vm11, %v6831_v47, 0  ;;  %v1466_v63 = vsel %vm1465_vm13, %v6829_v61, 0 }
0x18ce   :  { %vm1476_vm12 = vcmp.lt.s32.totalorder %v1475_v36, 3  ;;  %vm1467_vm11 = vcmp.lt.s32.totalorder %v1466_v63, 3 }
0x18cf   :  { %v1477_v51 = vsel %vm1476_vm12, %v1475_v36, 3  ;;  %v1468_v2 = vsel %vm1467_vm11, %v1466_v63, 3 }
0x18d0   :  { %1479 = vrot.lane.b32.xlu1 %v1477_v51, %s7194_s18  ;;  %v1478_v5 = vmul.u32 4, %v1468_v2 }
0x1936   :  { %v1456_v62 = vpop.permute.xlu1 %1455 }
0x1937   :  { %vm1457_vm14 = vcmp.ne.s32.totalorder %v1456_v62, 0 }
0x1938   :  { %vm1458_vm10 = vmand %vm1451_vm15, %vm1457_vm14 }
0x1939   :  { %v1486_v1 = vsel %vm1458_vm10, 1, %v7187_v3 }
0x193a   :  { %1488 = vperm.xlu1 %6888, %v1486_v1  }
0x193e   :  { %6889 = vset.pattern.permute.xlu1 %v7188_v8 }
0x193f   :  { %1500 = vperm.xlu1 %6889, %v1486_v1  }
0x1942   :  { %v1480_v19 = vpop.permute.xlu1 %1479 }
0x1943   :  { %v1481_v7 = vadd.s32 %v1480_v19, %v1478_v5  ;;  %6891 = vset.pattern.permute.xlu1 %v7195_v9 }
0x1945   :  { %1508 = vperm.xlu1 %6891, %v1481_v7   ;;  %1483 = vperm.xlu0 %6887, %v1481_v7  }
0x1949   :  { %6893 = vset.pattern.permute.xlu1 %v7187_v3  ;;  %6890 = vset.pattern.permute.xlu0 %v7188_v8 }
0x194a   :  { %1522 = vperm.xlu1 %6893, %v1436_v35   ;;  %1496 = vperm.xlu0 %6890, %v1481_v7  }
0x194e   :  { %6894 = vset.pattern.permute.xlu1 %v7188_v8  ;;  %6892 = vset.pattern.permute.xlu0 %v7195_v9 }
0x194f   :  { %1527 = vperm.xlu1 %6894, %v1436_v35   ;;  %1512 = vperm.xlu0 %6892, %v1486_v1   ;;  %v7756_v35 = vld [vmem:[%s8732_s9] ss:$0 sm:$0xff] }
0x1953   :  { %6895 = vset.pattern.permute.xlu0 %v7187_v3 }
0x19b9   :  { %v1489_v10 = vpop.permute.xlu1 %1488 }
0x19ba   :  { %vm1490_vm15 = vcmp.eq.s32.totalorder %v1489_v10, 1 }
0x19be   :  { %v1501_v27 = vpop.permute.xlu1 %1500 }
0x19bf   :  { %vm1502_vm13 = vcmp.eq.s32.totalorder %v1501_v27, 1 }
0x19c4   :  { %v1484_v12 = vpop.permute.xlu0 %1483  ;;  %v1509_v22 = vpop.permute.xlu1 %1508 }
0x19c5   :  { %vm1485_vm12 = vcmp.eq.s32.totalorder %v7460_v32, %v1484_v12  ;;  %vm1510_vm9 = vcmp.eq.s32.totalorder %v7460_v32, %v1509_v22 }
0x19c6   :  { %vm1491_vm11 = vmand %vm1485_vm12, %vm1490_vm15 }
0x19c7   :  { %v5404_v46 = vsel %vm1491_vm11, 1.0, %v7191_v34 }
0x19c9   :  { %v1497_v17 = vpop.permute.xlu0 %1496  ;;  %v1523_v40 = vpop.permute.xlu1 %1522 }
0x19ca   :  { %vm1498_vm14 = vcmp.eq.s32.totalorder %v7460_v32, %v1497_v17  ;;  %v1525_v42 = vmul.f32 %v1523_v40, %v7427_v55 }
0x19cb   :  { %vm1503_vm10 = vmand %vm1498_vm14, %vm1502_vm13 }
0x19cc   :  { %v5405_v23 = vsel %vm1503_vm10, 1.0, %v7191_v34 }
0x19cd   :  { %v1506_v49 = vadd.f32 %v5405_v23, %v5404_v46 }
0x19ce   :  { %v1513_v24 = vpop.permute.xlu0 %1512  ;;  %v1528_v41 = vpop.permute.xlu1 %1527 }
0x19cf   :  { %vm1514_vm8 = vcmp.eq.s32.totalorder %v1513_v24, 1  ;;  %v1530_v48 = vmul.f32 %v1528_v41, %v7429_v56 }
0x19d0   :  { %vm1515_vm7 = vmand %vm1510_vm9, %vm1514_vm8  ;;  %vm8748_vm8 = vcmask 64512   ;;  %vm8749_vm9 = vcmask 15360  }
0x19d1   :  { %v5406_v15 = vsel %vm1515_vm7, 1.0, %v7191_v34  ;;  %v1531_v43 = vadd.f32 %v1530_v48, %v1525_v42  ;;  %vm8747_vm7 = vcmp.lt.s32.totalorder %v7460_v32, 2 }
0x19d2   :  { %v1518_v29 = vadd.f32 %v5406_v15, %v1506_v49 }
0x19d3   :  { %v1532_v0 = vadd.f32 %v7765_v52, %v1531_v43 }
0x19d4   :  { %v1519_v30 = vmin.f32 %v1518_v29, 1.0 }
0x19d5   :  { %v1533_v47 = vmax.f32 %v1532_v0, 0.0 }
0x19d6   :  { %5955 = vmatmul.mubr.msk.f32.vlgmr.msra.gmra.mrb[18].mxu0 %vm220_vm0, %v1519_v30  ;;  %v1793_v30 = vld [vmem:[%s8743_s2 + $0x8] sm:$0xff] }
0x19d7   :  { %6554 = vmatpush3.bf16.msra.mxu0 %v7666_v11  ;;  %5992 = vmatprep.mubr.msk.f32.mxu0 %vm7190_vm2, %v7191_v34 }
0x19d8   :  { %6555 = vmatprep.subr.bf16.mxu0 %v7189_v14 }
0x19db   :  { %6557 = vmatpush3.bf16.msra.mxu0 %v7672_v16 }
0x19dc   :  { %6558 = vmatprep.subr.bf16.mxu0 %v7189_v14 }
0x1aa9   :  { %v1603_v33 = vpop.f32.mrb[18].mxu0 }
0x1aaa   :  { %v1604_v38 = vadd.f32 %v7756_v35, %v1603_v33  ;;  %v5956_v45 = vpop.f32.mrb[19].mxu0 }
0x1aac   :  { %v1607_v39 = vmax.f32 %v1604_v38, 0.0 }
0x1aae   :  { %1609 = vrot.lane.b32.xlu0 %v1607_v39, %s7192_s1 }
0x1b20   :  { %v1610_v36 = vpop.permute.xlu0 %1609 }
0x1b21   :  { %v1612_v51 = vsel %vm390_vm1, %v1533_v47, %v1610_v36 }
0x1b22   :  { %v1613_v53 = vsel %vm405_vm3, %v1612_v51, %v7678_v21 }
0x1b23   :  { %5982 = vmatmul.mubr.msk.f32.vlgmr.msra.gmra.mrb[16].mxu1 %vm1250_vm5, %v1613_v53 }
0x1b24   :  { %6581 = vmatpush3.bf16.msra.mxu1 %v7666_v11  ;;  %6037 = vmatprep.mubr.msk.f32.mxu1 %vm7190_vm2, %v7191_v34 }
0x1b25   :  { %6582 = vmatprep.subr.bf16.mxu1 %v7189_v14 }
0x1b28   :  { %6584 = vmatpush3.bf16.msra.mxu1 %v7672_v16 }
0x1b29   :  { %6585 = vmatprep.subr.bf16.mxu1 %v7189_v14 }
0x1bf6   :  { %v1683_v54 = vpop.f32.mrb[16].mxu1 }
0x1bf7   :  { %v1684_v21 = vadd.f32 %v7781_v57, %v1683_v54  ;;  %v5983_v58 = vpop.f32.mrb[17].mxu1 }
0x1bf9   :  { %v5409_v59 = vmul.f32 -1.442695, %v1684_v21 }
0x1bfb   :  { %7044 = vpow2.f32 %v5409_v59 }
0x1bfc   :  { %7046 = vtanh.f32 %v1684_v21 }
0x1c05   :  { %v7045_v50 = vpop.eup %7044 }
0x1c06   :  { %v1690_v60 = vadd.f32 1.0, %v7045_v50  ;;  %v7047_v61 = vpop.eup %7046 }
0x1c08   :  { %7048 = vrcp.f32 %v1690_v60 }
0x1c12   :  { %v7049_v44 = vpop.eup %7048 }
0x1c13   :  { %v1694_v62 = vsel %vm612_vm4, %v7049_v44, %v7047_v61 }
0x1c14   :  { %1697 = vrot.lane.b32.xlu1 %v1694_v62, %s7192_s1  ;;  %v1695_v2 = vmul.f32 %v1694_v62, %v7654_v6 }
0x1c86   :  { %v1698_v63 = vpop.permute.xlu1 %1697 }
0x1c87   :  { %v1700_v1 = vmul.f32 %v1698_v63, %v1694_v62 }
0x1c89   :  { %1702 = vrot.lane.b32.xlu0 %v1700_v1, %s7192_s1 }
0x1cfb   :  { %v1703_v5 = vpop.permute.xlu0 %1702 }
0x1cfc   :  { %v7789_v19 = vadd.f32 %v1703_v5, %v1695_v2 }
0x1cfe   :  { %7050 = vtanh.f32 %v7789_v19 }
0x1d08   :  { %v7051_v7 = vpop.eup %7050 }
0x1d09   :  { %1708 = vrot.lane.b32.xlu1 %v7051_v7, %s7192_s1 }
0x1d7b   :  { %v1709_v10 = vpop.permute.xlu1 %1708 }
0x1d7c   :  { %v7793_v12 = vmul.f32 %v1709_v10, %v1694_v62 }
0x1d7e   :  { %1713 = vrot.lane.b32.xlu0 %v7793_v12, %s7193_s26 }
0x1df0   :  { %v1714_v27 = vpop.permute.xlu0 %1713 }
0x1df1   :  { %5993 = vmatmul.mubr.msk.f32.vlgmr.msra.gmra.mrb[20].mxu0 %vm390_vm1, %v1714_v27 }
0x1df2   :  { %6560 = vmatpush3.bf16.msra.mxu0 %v7287_v4  ;;  %5999 = vmatprep.mubr.msk.f32.mxu0 %vm7190_vm2, %v7191_v34 }
0x1df3   :  { %6561 = vmatprep.subr.bf16.mxu0 %v7189_v14 }
0x1ec4   :  { %v1783_v6 = vpop.f32.mrb[20].mxu0 }
0x1ec5   :  { %v1784_v17 = vadd.f32 %v7700_v13, %v1783_v6  ;;  %v5994_v22 = vpop.f32.mrb[21].mxu0 }
0x1ec7   :  { %v1787_v23 = vmul.f32 1.442695, %v1784_v17  ;;  %7052 = vtanh.f32 %v1784_v17 }
0x1ec9   :  { %7054 = vpow2.f32 %v1787_v23 }
0x1ed1   :  { %v7053_v24 = vpop.eup %7052 }
0x1ed3   :  { %v7055_v46 = vpop.eup %7054 }
0x1ed4   :  { %v1790_v49 = vsel %vm1431_vm6, %v7055_v46, %v7053_v24 }
0x1ed5   :  { %v1791_v15 = vsel %vm8747_vm7, %v1784_v17, %v1790_v49 }
0x1ed6   :  { %5335 = vst.msk [vmem:[%s8741_s14 + $0x8] sm:$0xff] %vm8748_vm8, %v1791_v15  ;;  %v7812_v29 = vadd.f32 %v1791_v15, %v7716_v37 }
0x1ed8   :  { %1796 = vperm.xlu0 %6895, %v7812_v29   ;;  %5348 = vst.msk [vmem:[%s8742_s15 + $0x8] sm:$0xff] %vm8749_vm9, %v7812_v29  ;;  %1801 = vperm.xlu1 %6894, %v7812_v29  }
0x1edc   :  { %6896 = vset.pattern.permute.xlu1 %v7187_v3 }
0x1f57   :  { %v1802_v33 = vpop.permute.xlu1 %1801  ;;  %v1797_v36 = vpop.permute.xlu0 %1796 }
0x1f58   :  { %v1804_v38 = vsub.f32 %v1793_v30, %v1802_v33  ;;  %v1799_v51 = vsub.f32 %v1793_v30, %v1797_v36 }
0x1f5a   :  { %v1823_v37 = vadd.f32 2.0, %v1804_v38  ;;  %v1807_v45 = vand.u32 2147483647, %v1804_v38  ;;  %v1814_v53 = vadd.f32 2.0, %v1799_v51  ;;  %v1805_v60 = vand.u32 2147483647, %v1799_v51 }
0x1f5c   :  { %v1824_v39 = vmul.f32 0.25, %v1823_v37  ;;  %vm1808_vm12 = vcmp.lt.f32.partialorder %v1807_v45, 2.0  ;;  %v1815_v54 = vmul.f32 0.25, %v1814_v53  ;;  %vm1806_vm11 = vcmp.lt.f32.partialorder %v1805_v60, 2.0 }
0x1f5d   :  { %v1809_v40 = vsel %vm1808_vm12, 1, %v7187_v3 }
0x1f5e   :  { %v1825_v41 = vmul.f32 4.0, %v1824_v39  ;;  %1810 = vrot.lane.b32.xlu1 %v1809_v40, %s7194_s18  ;;  %v1816_v21 = vmul.f32 4.0, %v1815_v54 }
0x1f60   :  { %v1826_v48 = vfloor.f32 %v1825_v41  ;;  %v1817_v58 = vfloor.f32 %v1816_v21 }
0x1f62   :  { %v6834_v42 = vtrunc.f32 %v1826_v48  ;;  %v6832_v59 = vtrunc.f32 %v1817_v58 }
0x1f64   :  { %v6835_v43 = vcvt.f32.s32 %v6834_v42  ;;  %v6833_v50 = vcvt.f32.s32 %v6832_v59 }
0x1f66   :  { %vm1828_vm13 = vcmp.gt.s32.totalorder %v6835_v43, 0  ;;  %vm1819_vm15 = vcmp.gt.s32.totalorder %v6833_v50, 0 }
0x1f67   :  { %v1829_v0 = vsel %vm1828_vm13, %v6835_v43, 0  ;;  %v1820_v44 = vsel %vm1819_vm15, %v6833_v50, 0 }
0x1f68   :  { %vm1830_vm14 = vcmp.lt.s32.totalorder %v1829_v0, 3  ;;  %vm1821_vm8 = vcmp.lt.s32.totalorder %v1820_v44, 3 }
0x1f69   :  { %v1831_v47 = vsel %vm1830_vm14, %v1829_v0, 3  ;;  %v1822_v63 = vsel %vm1821_vm8, %v1820_v44, 3 }
0x1f6a   :  { %1833 = vrot.lane.b32.xlu1 %v1831_v47, %s7194_s18  ;;  %v1832_v1 = vmul.u32 4, %v1822_v63 }
0x1fd0   :  { %v1811_v61 = vpop.permute.xlu1 %1810 }
0x1fd1   :  { %vm1812_vm10 = vcmp.ne.s32.totalorder %v1811_v61, 0 }
0x1fd2   :  { %vm1813_vm7 = vmand %vm1806_vm11, %vm1812_vm10 }
0x1fd3   :  { %v1840_v62 = vsel %vm1813_vm7, 1, %v7187_v3 }
0x1fd4   :  { %1842 = vperm.xlu1 %6896, %v1840_v62  }
0x1fd8   :  { %6897 = vset.pattern.permute.xlu1 %v7188_v8 }
0x1fd9   :  { %1854 = vperm.xlu1 %6897, %v1840_v62  }
0x1fdc   :  { %v1834_v2 = vpop.permute.xlu1 %1833 }
0x1fdd   :  { %v1835_v5 = vadd.s32 %v1834_v2, %v1832_v1  ;;  %6899 = vset.pattern.permute.xlu1 %v7195_v9 }
0x1fdf   :  { %1862 = vperm.xlu1 %6899, %v1835_v5   ;;  %1837 = vperm.xlu0 %6895, %v1835_v5  }
0x1fe3   :  { %6901 = vset.pattern.permute.xlu1 %v7187_v3  ;;  %6898 = vset.pattern.permute.xlu0 %v7188_v8 }
0x1fe4   :  { %1876 = vperm.xlu1 %6901, %v1791_v15   ;;  %1850 = vperm.xlu0 %6898, %v1835_v5  }
0x1fe8   :  { %6902 = vset.pattern.permute.xlu1 %v7188_v8  ;;  %6900 = vset.pattern.permute.xlu0 %v7195_v9 }
0x1fe9   :  { %1881 = vperm.xlu1 %6902, %v1791_v15   ;;  %1866 = vperm.xlu0 %6900, %v1840_v62  }
0x1fed   :  { %6903 = vset.pattern.permute.xlu0 %v7187_v3 }
0x2053   :  { %v1843_v7 = vpop.permute.xlu1 %1842 }
0x2054   :  { %vm1844_vm14 = vcmp.eq.s32.totalorder %v1843_v7, 1 }
0x2058   :  { %v1855_v27 = vpop.permute.xlu1 %1854 }
0x2059   :  { %vm1856_vm12 = vcmp.eq.s32.totalorder %v1855_v27, 1 }
0x205e   :  { %v1838_v10 = vpop.permute.xlu0 %1837  ;;  %v1863_v17 = vpop.permute.xlu1 %1862 }
0x205f   :  { %vm1839_vm9 = vcmp.eq.s32.totalorder %v7460_v32, %v1838_v10  ;;  %vm1864_vm11 = vcmp.eq.s32.totalorder %v7460_v32, %v1863_v17 }
0x2060   :  { %vm1845_vm10 = vmand %vm1839_vm9, %vm1844_vm14  ;;  %vm8750_vm9 = vcmp.lt.s32.totalorder %v7460_v32, 2 }
0x2061   :  { %v5411_v24 = vsel %vm1845_vm10, 1.0, %v7191_v34 }
0x2063   :  { %v1851_v6 = vpop.permute.xlu0 %1850  ;;  %v1877_v39 = vpop.permute.xlu1 %1876 }
0x2064   :  { %vm1852_vm13 = vcmp.eq.s32.totalorder %v7460_v32, %v1851_v6  ;;  %v1879_v48 = vmul.f32 %v1877_v39, %v7427_v55 }
0x2065   :  { %vm1857_vm15 = vmand %vm1852_vm13, %vm1856_vm12  ;;  %vm8751_vm12 = vcmask 64512   ;;  %vm8752_vm13 = vcmask 15360  }
0x2066   :  { %v5412_v22 = vsel %vm1857_vm15, 1.0, %v7191_v34 }
0x2067   :  { %v1860_v46 = vadd.f32 %v5412_v22, %v5411_v24 }
0x2068   :  { %v1867_v23 = vpop.permute.xlu0 %1866  ;;  %v1882_v40 = vpop.permute.xlu1 %1881 }
0x2069   :  { %vm1868_vm7 = vcmp.eq.s32.totalorder %v1867_v23, 1  ;;  %v1884_v41 = vmul.f32 %v1882_v40, %v7429_v56 }
0x206a   :  { %vm1869_vm8 = vmand %vm1864_vm11, %vm1868_vm7 }
0x206b   :  { %v5413_v49 = vsel %vm1869_vm8, 1.0, %v7191_v34  ;;  %v1885_v42 = vadd.f32 %v1884_v41, %v1879_v48 }
0x206c   :  { %v1872_v15 = vadd.f32 %v5413_v49, %v1860_v46 }
0x206d   :  { %v1886_v43 = vadd.f32 %v7765_v52, %v1885_v42 }
0x206e   :  { %v1873_v30 = vmin.f32 %v1872_v15, 1.0 }
0x206f   :  { %v1887_v0 = vmax.f32 %v1886_v43, 0.0 }
0x2070   :  { %6000 = vmatmul.mubr.msk.f32.vlgmr.msra.gmra.mrb[22].mxu0 %vm220_vm0, %v1873_v30  ;;  %v2147_v30 = vld [vmem:[%s8743_s2 + $0x10] sm:$0xff] }
0x2071   :  { %6563 = vmatpush3.bf16.msra.mxu0 %v7331_v18  ;;  %6026 = vmatprep.mubr.msk.f32.mxu0 %vm7190_vm2, %v7191_v34 }
0x2072   :  { %6564 = vmatprep.subr.bf16.mxu0 %v7189_v14 }
0x2075   :  { %6566 = vmatpush3.bf16.msra.mxu0 %v7357_v26 }
0x2076   :  { %6567 = vmatprep.subr.bf16.mxu0 %v7189_v14 }
0x2079   :  { %6569 = vmatpush3.bf16.msra.mxu0 %v7362_v28 }
0x207a   :  { %6570 = vmatprep.subr.bf16.mxu0 %v7189_v14 }
0x207d   :  { %6572 = vmatpush3.bf16.msra.mxu0 %v7376_v31 }
0x207e   :  { %6573 = vmatprep.subr.bf16.mxu0 %v7189_v14 }
0x2081   :  { %6575 = vmatpush3.bf16.msra.mxu0 %v7337_v20 }
0x2082   :  { %6576 = vmatprep.subr.bf16.mxu0 %v7189_v14 }
0x2085   :  { %6578 = vmatpush3.bf16.msra.mxu0 %v7353_v25 }
0x2086   :  { %6606 = vmatprep.subr.bf16.mxu0 %v7189_v14 }
0x2143   :  { %v1957_v33 = vpop.f32.mrb[22].mxu0 }
0x2144   :  { %v1958_v38 = vadd.f32 %v7756_v35, %v1957_v33  ;;  %v6001_v37 = vpop.f32.mrb[23].mxu0 }
0x2146   :  { %v1961_v45 = vmax.f32 %v1958_v38, 0.0 }
0x2148   :  { %1963 = vrot.lane.b32.xlu0 %v1961_v45, %s7192_s1 }
0x21ba   :  { %v1964_v47 = vpop.permute.xlu0 %1963 }
0x21bb   :  { %v1966_v36 = vsel %vm390_vm1, %v1887_v0, %v1964_v47 }
0x21bc   :  { %v1967_v51 = vsel %vm405_vm3, %v1966_v36, %v7793_v12 }
0x21bd   :  { %6027 = vmatmul.mubr.msk.f32.vlgmr.msra.gmra.mrb[24].mxu0 %vm1250_vm5, %v1967_v51 }
0x21be   :  { %6608 = vmatpush3.bf16.msra.mxu0 %v7666_v11  ;;  %6082 = vmatprep.mubr.msk.f32.mxu0 %vm7190_vm2, %v7191_v34 }
0x21bf   :  { %6609 = vmatprep.subr.bf16.mxu0 %v7189_v14 }
0x21c2   :  { %6611 = vmatpush3.bf16.msra.mxu0 %v7672_v16 }
0x21c3   :  { %6612 = vmatprep.subr.bf16.mxu0 %v7189_v14 }
0x2290   :  { %v2037_v53 = vpop.f32.mrb[24].mxu0 }
0x2291   :  { %v2038_v54 = vadd.f32 %v7781_v57, %v2037_v53  ;;  %v6028_v21 = vpop.f32.mrb[25].mxu0 }
0x2293   :  { %v5416_v58 = vmul.f32 -1.442695, %v2038_v54 }
0x2295   :  { %7056 = vpow2.f32 %v5416_v58 }
0x2296   :  { %7058 = vtanh.f32 %v2038_v54 }
0x229f   :  { %v7057_v12 = vpop.eup %7056 }
0x22a0   :  { %v2044_v59 = vadd.f32 1.0, %v7057_v12  ;;  %v7059_v50 = vpop.eup %7058 }
0x22a2   :  { %7060 = vrcp.f32 %v2044_v59 }
0x22ac   :  { %v7061_v60 = vpop.eup %7060 }
0x22ad   :  { %v2048_v61 = vsel %vm612_vm4, %v7061_v60, %v7059_v50 }
0x22ae   :  { %2051 = vrot.lane.b32.xlu1 %v2048_v61, %s7192_s1  ;;  %v2049_v63 = vmul.f32 %v2048_v61, %v7789_v19 }
0x2320   :  { %v2052_v44 = vpop.permute.xlu1 %2051 }
0x2321   :  { %v2054_v62 = vmul.f32 %v2052_v44, %v2048_v61 }
0x2323   :  { %2056 = vrot.lane.b32.xlu0 %v2054_v62, %s7192_s1 }
0x2395   :  { %v2057_v1 = vpop.permute.xlu0 %2056 }
0x2396   :  { %v7878_v2 = vadd.f32 %v2057_v1, %v2049_v63 }
0x2398   :  { %7062 = vtanh.f32 %v7878_v2 }
0x23a2   :  { %v7063_v5 = vpop.eup %7062 }
0x23a3   :  { %2062 = vrot.lane.b32.xlu1 %v7063_v5, %s7192_s1 }
0x2415   :  { %v2063_v7 = vpop.permute.xlu1 %2062 }
0x2416   :  { %v7882_v10 = vmul.f32 %v2063_v7, %v2048_v61 }
0x2418   :  { %2067 = vrot.lane.b32.xlu0 %v7882_v10, %s7193_s26 }
0x248a   :  { %v2068_v27 = vpop.permute.xlu0 %2067 }
0x248b   :  { %6038 = vmatmul.mubr.msk.f32.vlgmr.msra.gmra.mrb[18].mxu1 %vm390_vm1, %v2068_v27 }
0x248c   :  { %6587 = vmatpush3.bf16.msra.mxu1 %v7287_v4  ;;  %6044 = vmatprep.mubr.msk.f32.mxu1 %vm7190_vm2, %v7191_v34 }
0x248d   :  { %6588 = vmatprep.subr.bf16.mxu1 %v7189_v14 }
0x255e   :  { %v2137_v19 = vpop.f32.mrb[18].mxu1 }
0x255f   :  { %v2138_v6 = vadd.f32 %v7700_v13, %v2137_v19  ;;  %v6039_v17 = vpop.f32.mrb[19].mxu1 }
0x2561   :  { %v2141_v22 = vmul.f32 1.442695, %v2138_v6  ;;  %7064 = vtanh.f32 %v2138_v6 }
0x2563   :  { %7066 = vpow2.f32 %v2141_v22 }
0x256b   :  { %v7065_v23 = vpop.eup %7064 }
0x256d   :  { %v7067_v24 = vpop.eup %7066 }
0x256e   :  { %v2144_v46 = vsel %vm1431_vm6, %v7067_v24, %v7065_v23 }
0x256f   :  { %v2145_v49 = vsel %vm8750_vm9, %v2138_v6, %v2144_v46 }
0x2570   :  { %5336 = vst.msk [vmem:[%s8741_s14 + $0x10] sm:$0xff] %vm8751_vm12, %v2145_v49  ;;  %v7901_v15 = vadd.f32 %v2145_v49, %v7812_v29 }
0x2572   :  { %2150 = vperm.xlu0 %6903, %v7901_v15   ;;  %5349 = vst.msk [vmem:[%s8742_s15 + $0x10] sm:$0xff] %vm8752_vm13, %v7901_v15  ;;  %2155 = vperm.xlu1 %6902, %v7901_v15  }
0x2576   :  { %6904 = vset.pattern.permute.xlu1 %v7187_v3 }
0x25f1   :  { %v2156_v33 = vpop.permute.xlu1 %2155  ;;  %v2151_v47 = vpop.permute.xlu0 %2150 }
0x25f2   :  { %v2158_v38 = vsub.f32 %v2147_v30, %v2156_v33  ;;  %v2153_v36 = vsub.f32 %v2147_v30, %v2151_v47 }
0x25f4   :  { %v2161_v29 = vand.u32 2147483647, %v2158_v38  ;;  %v2177_v37 = vadd.f32 2.0, %v2158_v38  ;;  %v2168_v51 = vadd.f32 2.0, %v2153_v36  ;;  %v2159_v59 = vand.u32 2147483647, %v2153_v36 }
0x25f6   :  { %vm2162_vm14 = vcmp.lt.f32.partialorder %v2161_v29, 2.0  ;;  %v2178_v45 = vmul.f32 0.25, %v2177_v37  ;;  %v2169_v53 = vmul.f32 0.25, %v2168_v51  ;;  %vm2160_vm7 = vcmp.lt.f32.partialorder %v2159_v59, 2.0 }
0x25f7   :  { %v2163_v39 = vsel %vm2162_vm14, 1, %v7187_v3 }
0x25f8   :  { %v2179_v40 = vmul.f32 4.0, %v2178_v45  ;;  %2164 = vrot.lane.b32.xlu1 %v2163_v39, %s7194_s18  ;;  %v2170_v54 = vmul.f32 4.0, %v2169_v53 }
0x25fa   :  { %v2180_v41 = vfloor.f32 %v2179_v40  ;;  %v2171_v21 = vfloor.f32 %v2170_v54 }
0x25fc   :  { %v6838_v48 = vtrunc.f32 %v2180_v41  ;;  %v6836_v58 = vtrunc.f32 %v2171_v21 }
0x25fe   :  { %v6839_v42 = vcvt.f32.s32 %v6838_v48  ;;  %v6837_v12 = vcvt.f32.s32 %v6836_v58 }
0x2600   :  { %vm2182_vm15 = vcmp.gt.s32.totalorder %v6839_v42, 0  ;;  %vm2173_vm11 = vcmp.gt.s32.totalorder %v6837_v12, 0 }
0x2601   :  { %v2183_v43 = vsel %vm2182_vm15, %v6839_v42, 0  ;;  %v2174_v60 = vsel %vm2173_vm11, %v6837_v12, 0 }
0x2602   :  { %vm2184_vm10 = vcmp.lt.s32.totalorder %v2183_v43, 3  ;;  %vm2175_vm12 = vcmp.lt.s32.totalorder %v2174_v60, 3 }
0x2603   :  { %v2185_v0 = vsel %vm2184_vm10, %v2183_v43, 3  ;;  %v2176_v44 = vsel %vm2175_vm12, %v2174_v60, 3 }
0x2604   :  { %2187 = vrot.lane.b32.xlu1 %v2185_v0, %s7194_s18  ;;  %v2186_v62 = vmul.u32 4, %v2176_v44 }
0x266a   :  { %v2165_v50 = vpop.permute.xlu1 %2164 }
0x266b   :  { %vm2166_vm8 = vcmp.ne.s32.totalorder %v2165_v50, 0 }
0x266c   :  { %vm2167_vm9 = vmand %vm2160_vm7, %vm2166_vm8 }
0x266d   :  { %v2194_v61 = vsel %vm2167_vm9, 1, %v7187_v3 }
0x266e   :  { %2196 = vperm.xlu1 %6904, %v2194_v61  }
0x2672   :  { %6905 = vset.pattern.permute.xlu1 %v7188_v8 }
0x2673   :  { %2208 = vperm.xlu1 %6905, %v2194_v61  }
0x2676   :  { %v2188_v63 = vpop.permute.xlu1 %2187 }
0x2677   :  { %v2189_v1 = vadd.s32 %v2188_v63, %v2186_v62  ;;  %6907 = vset.pattern.permute.xlu1 %v7195_v9 }
0x2679   :  { %2216 = vperm.xlu1 %6907, %v2189_v1   ;;  %2191 = vperm.xlu0 %6903, %v2189_v1  }
0x267d   :  { %6909 = vset.pattern.permute.xlu1 %v7187_v3  ;;  %6906 = vset.pattern.permute.xlu0 %v7188_v8 }
0x267e   :  { %2230 = vperm.xlu1 %6909, %v2145_v49   ;;  %2204 = vperm.xlu0 %6906, %v2189_v1  }
0x2682   :  { %6910 = vset.pattern.permute.xlu1 %v7188_v8  ;;  %6908 = vset.pattern.permute.xlu0 %v7195_v9 }
0x2683   :  { %2235 = vperm.xlu1 %6910, %v2145_v49   ;;  %2220 = vperm.xlu0 %6908, %v2194_v61  }
0x2687   :  { %6911 = vset.pattern.permute.xlu0 %v7187_v3 }
0x26ed   :  { %v2197_v5 = vpop.permute.xlu1 %2196 }
0x26ee   :  { %vm2198_vm10 = vcmp.eq.s32.totalorder %v2197_v5, 1 }
0x26f2   :  { %v2209_v27 = vpop.permute.xlu1 %2208 }
0x26f3   :  { %vm2210_vm14 = vcmp.eq.s32.totalorder %v2209_v27, 1 }
0x26f8   :  { %v2192_v7 = vpop.permute.xlu0 %2191  ;;  %v2217_v6 = vpop.permute.xlu1 %2216 }
0x26f9   :  { %vm2193_vm13 = vcmp.eq.s32.totalorder %v7460_v32, %v2192_v7  ;;  %vm2218_vm8 = vcmp.eq.s32.totalorder %v7460_v32, %v2217_v6 }
0x26fa   :  { %vm2199_vm7 = vmand %vm2193_vm13, %vm2198_vm10  ;;  %vm8753_vm13 = vcmp.lt.s32.totalorder %v7460_v32, 2 }
0x26fb   :  { %v5418_v23 = vsel %vm2199_vm7, 1.0, %v7191_v34 }
0x26fd   :  { %v2205_v19 = vpop.permute.xlu0 %2204  ;;  %v2231_v45 = vpop.permute.xlu1 %2230 }
0x26fe   :  { %vm2206_vm15 = vcmp.eq.s32.totalorder %v7460_v32, %v2205_v19  ;;  %v2233_v41 = vmul.f32 %v2231_v45, %v7427_v55 }
0x26ff   :  { %vm2211_vm11 = vmand %vm2206_vm15, %vm2210_vm14  ;;  %vm8754_vm14 = vcmask 64512   ;;  %vm8755_vm15 = vcmask 15360  }
0x2700   :  { %v5419_v17 = vsel %vm2211_vm11, 1.0, %v7191_v34 }
0x2701   :  { %v2214_v24 = vadd.f32 %v5419_v17, %v5418_v23 }
0x2702   :  { %v2221_v22 = vpop.permute.xlu0 %2220  ;;  %v2236_v39 = vpop.permute.xlu1 %2235 }
0x2703   :  { %vm2222_vm9 = vcmp.eq.s32.totalorder %v2221_v22, 1  ;;  %v2238_v40 = vmul.f32 %v2236_v39, %v7429_v56 }
0x2704   :  { %vm2223_vm12 = vmand %vm2218_vm8, %vm2222_vm9 }
0x2705   :  { %v5420_v46 = vsel %vm2223_vm12, 1.0, %v7191_v34  ;;  %v2239_v48 = vadd.f32 %v2238_v40, %v2233_v41 }
0x2706   :  { %v2226_v49 = vadd.f32 %v5420_v46, %v2214_v24 }
0x2707   :  { %v2240_v42 = vadd.f32 %v7765_v52, %v2239_v48 }
0x2708   :  { %v2227_v30 = vmin.f32 %v2226_v49, 1.0 }
0x2709   :  { %v2241_v43 = vmax.f32 %v2240_v42, 0.0 }
0x270a   :  { %6045 = vmatmul.mubr.msk.f32.vlgmr.msra.gmra.mrb[20].mxu1 %vm220_vm0, %v2227_v30 }
0x270b   :  { %6590 = vmatpush3.bf16.msra.mxu1 %v7331_v18  ;;  %6071 = vmatprep.mubr.msk.f32.mxu1 %vm7190_vm2, %v7191_v34 }
0x270c   :  { %6591 = vmatprep.subr.bf16.mxu1 %v7189_v14 }
0x270f   :  { %6593 = vmatpush3.bf16.msra.mxu1 %v7357_v26 }
0x2710   :  { %6594 = vmatprep.subr.bf16.mxu1 %v7189_v14 }
0x2713   :  { %6596 = vmatpush3.bf16.msra.mxu1 %v7362_v28 }
0x2714   :  { %6597 = vmatprep.subr.bf16.mxu1 %v7189_v14 }
0x2717   :  { %6599 = vmatpush3.bf16.msra.mxu1 %v7376_v31 }
0x2718   :  { %6600 = vmatprep.subr.bf16.mxu1 %v7189_v14 }
0x271b   :  { %6602 = vmatpush3.bf16.msra.mxu1 %v7337_v20 }
0x271c   :  { %6603 = vmatprep.subr.bf16.mxu1 %v7189_v14 }
0x271f   :  { %6605 = vmatpush3.bf16.msra.mxu1 %v7353_v25 }
0x2720   :  { %6633 = vmatprep.subr.bf16.mxu1 %v7189_v14 }
0x27dd   :  { %v2311_v33 = vpop.f32.mrb[20].mxu1 }
0x27de   :  { %v2312_v38 = vadd.f32 %v7756_v35, %v2311_v33  ;;  %v6046_v29 = vpop.f32.mrb[21].mxu1 }
0x27e0   :  { %v2315_v37 = vmax.f32 %v2312_v38, 0.0 }
0x27e2   :  { %2317 = vrot.lane.b32.xlu0 %v2315_v37, %s7192_s1 }
0x2854   :  { %v2318_v0 = vpop.permute.xlu0 %2317 }
0x2855   :  { %v2320_v47 = vsel %vm390_vm1, %v2241_v43, %v2318_v0 }
0x2856   :  { %v2321_v36 = vsel %vm405_vm3, %v2320_v47, %v7882_v10 }
0x2857   :  { %6072 = vmatmul.mubr.msk.f32.vlgmr.msra.gmra.mrb[22].mxu1 %vm1250_vm5, %v2321_v36 }
0x2858   :  { %6635 = vmatpush3.bf16.msra.mxu1 %v7666_v11  ;;  %6127 = vmatprep.mubr.msk.f32.mxu1 %vm7190_vm2, %v7191_v34 }
0x2859   :  { %6636 = vmatprep.subr.bf16.mxu1 %v7189_v14 }
0x285c   :  { %6638 = vmatpush3.bf16.msra.mxu1 %v7672_v16 }
0x285d   :  { %6639 = vmatprep.subr.bf16.mxu1 %v7189_v14 }
0x292a   :  { %v2391_v51 = vpop.f32.mrb[22].mxu1 }
0x292b   :  { %v2392_v53 = vadd.f32 %v7781_v57, %v2391_v51  ;;  %v6073_v54 = vpop.f32.mrb[23].mxu1 }
0x292d   :  { %v5423_v21 = vmul.f32 -1.442695, %v2392_v53 }
0x292f   :  { %7068 = vpow2.f32 %v5423_v21 }
0x2930   :  { %7070 = vtanh.f32 %v2392_v53 }
0x2939   :  { %v7069_v10 = vpop.eup %7068 }
0x293a   :  { %v2398_v58 = vadd.f32 1.0, %v7069_v10  ;;  %v7071_v12 = vpop.eup %7070 }
0x293c   :  { %7072 = vrcp.f32 %v2398_v58 }
0x2946   :  { %v7073_v59 = vpop.eup %7072 }
0x2947   :  { %v2402_v50 = vsel %vm612_vm4, %v7073_v59, %v7071_v12 }
0x2948   :  { %2405 = vrot.lane.b32.xlu1 %v2402_v50, %s7192_s1  ;;  %v2403_v44 = vmul.f32 %v2402_v50, %v7878_v2 }
0x29ba   :  { %v2406_v60 = vpop.permute.xlu1 %2405 }
0x29bb   :  { %v2408_v61 = vmul.f32 %v2406_v60, %v2402_v50 }
0x29bd   :  { %2410 = vrot.lane.b32.xlu0 %v2408_v61, %s7192_s1 }
0x2a2f   :  { %v2411_v62 = vpop.permute.xlu0 %2410 }
0x2a30   :  { %v7967_v63 = vadd.f32 %v2411_v62, %v2403_v44 }
0x2a32   :  { %7074 = vtanh.f32 %v7967_v63 }
0x2a3c   :  { %v7075_v1 = vpop.eup %7074 }
0x2a3d   :  { %2416 = vrot.lane.b32.xlu1 %v7075_v1, %s7192_s1 }
0x2aaf   :  { %v2417_v5 = vpop.permute.xlu1 %2416 }
0x2ab0   :  { %v7971_v7 = vmul.f32 %v2417_v5, %v2402_v50 }
0x2ab2   :  { %2421 = vrot.lane.b32.xlu0 %v7971_v7, %s7193_s26 }
0x2b24   :  { %v2422_v27 = vpop.permute.xlu0 %2421 }
0x2b25   :  { %6083 = vmatmul.mubr.msk.f32.vlgmr.msra.gmra.mrb[26].mxu0 %vm390_vm1, %v2422_v27 }
0x2b26   :  { %6614 = vmatpush3.bf16.msra.mxu0 %v7287_v4  ;;  %6089 = vmatprep.mubr.msk.f32.mxu0 %vm7190_vm2, %v7191_v34 }
0x2b27   :  { %6615 = vmatprep.subr.bf16.mxu0 %v7189_v14 }
0x2bf8   :  { %v2491_v2 = vpop.f32.mrb[26].mxu0 }
0x2bf9   :  { %v2492_v19 = vadd.f32 %v7700_v13, %v2491_v2  ;;  %v6084_v6 = vpop.f32.mrb[27].mxu0  ;;  %v2501_v13 = vld [vmem:[%s8743_s2 + $0x18] sm:$0xff] }
0x2bfb   :  { %v2495_v17 = vmul.f32 1.442695, %v2492_v19  ;;  %7076 = vtanh.f32 %v2492_v19 }
0x2bfd   :  { %7078 = vpow2.f32 %v2495_v17 }
0x2c05   :  { %v7077_v22 = vpop.eup %7076 }
0x2c07   :  { %v7079_v23 = vpop.eup %7078 }
0x2c08   :  { %v2498_v24 = vsel %vm1431_vm6, %v7079_v23, %v7077_v22 }
0x2c09   :  { %v2499_v46 = vsel %vm8753_vm13, %v2492_v19, %v2498_v24 }
0x2c0a   :  { %5337 = vst.msk [vmem:[%s8741_s14 + $0x18] sm:$0xff] %vm8754_vm14, %v2499_v46  ;;  %v7990_v49 = vadd.f32 %v2499_v46, %v7901_v15 }
0x2c0c   :  { %2504 = vperm.xlu0 %6911, %v7990_v49   ;;  %5350 = vst.msk [vmem:[%s8742_s15 + $0x18] sm:$0xff] %vm8755_vm15, %v7990_v49  ;;  %2509 = vperm.xlu1 %6910, %v7990_v49  }
0x2c10   :  { %6912 = vset.pattern.permute.xlu1 %v7187_v3 }
0x2c8b   :  { %v2510_v30 = vpop.permute.xlu1 %2509  ;;  %v2505_v43 = vpop.permute.xlu0 %2504 }
0x2c8c   :  { %v2512_v33 = vsub.f32 %v2501_v13, %v2510_v30  ;;  %v2507_v0 = vsub.f32 %v2501_v13, %v2505_v43 }
0x2c8e   :  { %v2515_v15 = vand.u32 2147483647, %v2512_v33  ;;  %v2531_v38 = vadd.f32 2.0, %v2512_v33  ;;  %v2522_v47 = vadd.f32 2.0, %v2507_v0  ;;  %v2513_v10 = vand.u32 2147483647, %v2507_v0 }
0x2c90   :  { %vm2516_vm10 = vcmp.lt.f32.partialorder %v2515_v15, 2.0  ;;  %v2532_v29 = vmul.f32 0.25, %v2531_v38  ;;  %v2523_v36 = vmul.f32 0.25, %v2522_v47  ;;  %vm2514_vm9 = vcmp.lt.f32.partialorder %v2513_v10, 2.0 }
0x2c91   :  { %v2517_v37 = vsel %vm2516_vm10, 1, %v7187_v3 }
0x2c92   :  { %v2533_v45 = vmul.f32 4.0, %v2532_v29  ;;  %2518 = vrot.lane.b32.xlu1 %v2517_v37, %s7194_s18  ;;  %v2524_v51 = vmul.f32 4.0, %v2523_v36 }
0x2c94   :  { %v2534_v39 = vfloor.f32 %v2533_v45  ;;  %v2525_v53 = vfloor.f32 %v2524_v51 }
0x2c96   :  { %v6842_v40 = vtrunc.f32 %v2534_v39  ;;  %v6840_v54 = vtrunc.f32 %v2525_v53 }
0x2c98   :  { %v6843_v41 = vcvt.f32.s32 %v6842_v40  ;;  %v6841_v21 = vcvt.f32.s32 %v6840_v54 }
0x2c9a   :  { %vm2536_vm11 = vcmp.gt.s32.totalorder %v6843_v41, 0  ;;  %vm2527_vm8 = vcmp.gt.s32.totalorder %v6841_v21, 0 }
0x2c9b   :  { %v2537_v48 = vsel %vm2536_vm11, %v6843_v41, 0  ;;  %v2528_v12 = vsel %vm2527_vm8, %v6841_v21, 0 }
0x2c9c   :  { %vm2538_vm7 = vcmp.lt.s32.totalorder %v2537_v48, 3  ;;  %vm2529_vm14 = vcmp.lt.s32.totalorder %v2528_v12, 3 }
0x2c9d   :  { %v2539_v42 = vsel %vm2538_vm7, %v2537_v48, 3  ;;  %v2530_v50 = vsel %vm2529_vm14, %v2528_v12, 3 }
0x2c9e   :  { %2541 = vrot.lane.b32.xlu1 %v2539_v42, %s7194_s18  ;;  %v2540_v60 = vmul.u32 4, %v2530_v50 }
0x2d04   :  { %v2519_v58 = vpop.permute.xlu1 %2518 }
0x2d05   :  { %vm2520_vm12 = vcmp.ne.s32.totalorder %v2519_v58, 0 }
0x2d06   :  { %vm2521_vm13 = vmand %vm2514_vm9, %vm2520_vm12 }
0x2d07   :  { %v2548_v59 = vsel %vm2521_vm13, 1, %v7187_v3 }
0x2d08   :  { %2550 = vperm.xlu1 %6912, %v2548_v59  }
0x2d0c   :  { %6913 = vset.pattern.permute.xlu1 %v7188_v8 }
0x2d0d   :  { %2562 = vperm.xlu1 %6913, %v2548_v59  }
0x2d10   :  { %v2542_v61 = vpop.permute.xlu1 %2541 }
0x2d11   :  { %v2543_v44 = vadd.s32 %v2542_v61, %v2540_v60  ;;  %6915 = vset.pattern.permute.xlu1 %v7195_v9 }
0x2d13   :  { %2570 = vperm.xlu1 %6915, %v2543_v44   ;;  %2545 = vperm.xlu0 %6911, %v2543_v44  }
0x2d17   :  { %6917 = vset.pattern.permute.xlu1 %v7187_v3  ;;  %6914 = vset.pattern.permute.xlu0 %v7188_v8 }
0x2d18   :  { %2584 = vperm.xlu1 %6917, %v2499_v46   ;;  %2558 = vperm.xlu0 %6914, %v2543_v44   ;;  %v8072_v44 = vld [vmem:[%s8739_s13] ss:$0 sm:$0xff] }
0x2d1c   :  { %6918 = vset.pattern.permute.xlu1 %v7188_v8  ;;  %6916 = vset.pattern.permute.xlu0 %v7195_v9 }
0x2d1d   :  { %2589 = vperm.xlu1 %6918, %v2499_v46   ;;  %2574 = vperm.xlu0 %6916, %v2548_v59  }
0x2d21   :  { %6919 = vset.pattern.permute.xlu0 %v7187_v3 }
0x2d87   :  { %v2551_v62 = vpop.permute.xlu1 %2550 }
0x2d88   :  { %vm2552_vm7 = vcmp.eq.s32.totalorder %v2551_v62, 1 }
0x2d8c   :  { %v2563_v5 = vpop.permute.xlu1 %2562 }
0x2d8d   :  { %vm2564_vm10 = vcmp.eq.s32.totalorder %v2563_v5, 1 }
0x2d92   :  { %v2546_v1 = vpop.permute.xlu0 %2545  ;;  %v2571_v2 = vpop.permute.xlu1 %2570 }
0x2d93   :  { %vm2547_vm15 = vcmp.eq.s32.totalorder %v7460_v32, %v2546_v1  ;;  %vm2572_vm12 = vcmp.eq.s32.totalorder %v7460_v32, %v2571_v2 }
0x2d94   :  { %vm2553_vm9 = vmand %vm2547_vm15, %vm2552_vm7  ;;  %vm8756_vm15 = vcmp.lt.s32.totalorder %v7460_v32, 2 }
0x2d95   :  { %v5425_v17 = vsel %vm2553_vm9, 1.0, %v7191_v34 }
0x2d97   :  { %v2559_v27 = vpop.permute.xlu0 %2558  ;;  %v2585_v38 = vpop.permute.xlu1 %2584 }
0x2d98   :  { %vm2560_vm11 = vcmp.eq.s32.totalorder %v7460_v32, %v2559_v27  ;;  %v2587_v45 = vmul.f32 %v2585_v38, %v7427_v55 }
0x2d99   :  { %vm2565_vm8 = vmand %vm2560_vm11, %vm2564_vm10  ;;  %vm8757_vm10 = vcmask 64512   ;;  %vm8758_vm11 = vcmask 15360  }
0x2d9a   :  { %v5426_v19 = vsel %vm2565_vm8, 1.0, %v7191_v34 }
0x2d9b   :  { %v2568_v22 = vadd.f32 %v5426_v19, %v5425_v17 }
0x2d9c   :  { %v2575_v6 = vpop.permute.xlu0 %2574  ;;  %v2590_v29 = vpop.permute.xlu1 %2589 }
0x2d9d   :  { %vm2576_vm13 = vcmp.eq.s32.totalorder %v2575_v6, 1  ;;  %v2592_v37 = vmul.f32 %v2590_v29, %v7429_v56 }
0x2d9e   :  { %vm2577_vm14 = vmand %vm2572_vm12, %vm2576_vm13 }
0x2d9f   :  { %v5427_v23 = vsel %vm2577_vm14, 1.0, %v7191_v34  ;;  %v2593_v39 = vadd.f32 %v2592_v37, %v2587_v45 }
0x2da0   :  { %v2580_v24 = vadd.f32 %v5427_v23, %v2568_v22  ;;  %v2855_v22 = vld [vmem:[%s8743_s2 + $0x20] sm:$0xff] }
0x2da1   :  { %v2594_v40 = vadd.f32 %v7765_v52, %v2593_v39 }
0x2da2   :  { %v2581_v46 = vmin.f32 %v2580_v24, 1.0 }
0x2da3   :  { %v2595_v41 = vmax.f32 %v2594_v40, 0.0 }
0x2da4   :  { %6090 = vmatmul.mubr.msk.f32.vlgmr.msra.gmra.mrb[28].mxu0 %vm220_vm0, %v2581_v46 }
0x2da5   :  { %6617 = vmatpush3.bf16.msra.mxu0 %v7331_v18  ;;  %6116 = vmatprep.mubr.msk.f32.mxu0 %vm7190_vm2, %v7191_v34 }
0x2da6   :  { %6618 = vmatprep.subr.bf16.mxu0 %v7189_v14 }
0x2da9   :  { %6620 = vmatpush3.bf16.msra.mxu0 %v7357_v26 }
0x2daa   :  { %6621 = vmatprep.subr.bf16.mxu0 %v7189_v14 }
0x2dad   :  { %6623 = vmatpush3.bf16.msra.mxu0 %v7362_v28 }
0x2dae   :  { %6624 = vmatprep.subr.bf16.mxu0 %v7189_v14 }
0x2db1   :  { %6626 = vmatpush3.bf16.msra.mxu0 %v7376_v31 }
0x2db2   :  { %6627 = vmatprep.subr.bf16.mxu0 %v7189_v14 }
0x2db5   :  { %6629 = vmatpush3.bf16.msra.mxu0 %v7337_v20 }
0x2db6   :  { %6630 = vmatprep.subr.bf16.mxu0 %v7189_v14 }
0x2db9   :  { %6632 = vmatpush3.bf16.msra.mxu0 %v7353_v25 }
0x2dba   :  { %6660 = vmatprep.subr.bf16.mxu0 %v7189_v14 }
0x2e77   :  { %v2665_v13 = vpop.f32.mrb[28].mxu0 }
0x2e78   :  { %v2666_v30 = vadd.f32 %v7756_v35, %v2665_v13  ;;  %v6091_v33 = vpop.f32.mrb[29].mxu0 }
0x2e7a   :  { %v2669_v15 = vmax.f32 %v2666_v30, 0.0 }
0x2e7c   :  { %2671 = vrot.lane.b32.xlu0 %v2669_v15, %s7192_s1 }
0x2eee   :  { %v2672_v48 = vpop.permute.xlu0 %2671 }
0x2eef   :  { %v2674_v42 = vsel %vm390_vm1, %v2595_v41, %v2672_v48 }
0x2ef0   :  { %v2675_v35 = vsel %vm405_vm3, %v2674_v42, %v7971_v7 }
0x2ef1   :  { %6117 = vmatmul.mubr.msk.f32.vlgmr.msra.gmra.mrb[30].mxu0 %vm1250_vm5, %v2675_v35 }
0x2ef2   :  { %6662 = vmatpush3.bf16.msra.mxu0 %v7666_v11  ;;  %6172 = vmatprep.mubr.msk.f32.mxu0 %vm7190_vm2, %v7191_v34 }
0x2ef3   :  { %6663 = vmatprep.subr.bf16.mxu0 %v7189_v14 }
0x2ef6   :  { %6665 = vmatpush3.bf16.msra.mxu0 %v7672_v16 }
0x2ef7   :  { %6666 = vmatprep.subr.bf16.mxu0 %v7189_v14 }
0x2fc4   :  { %v2745_v52 = vpop.f32.mrb[30].mxu0 }
0x2fc5   :  { %v2746_v43 = vadd.f32 %v7781_v57, %v2745_v52  ;;  %v6118_v0 = vpop.f32.mrb[31].mxu0 }
0x2fc7   :  { %v5430_v47 = vmul.f32 -1.442695, %v2746_v43 }
0x2fc9   :  { %7080 = vpow2.f32 %v5430_v47 }
0x2fca   :  { %7082 = vtanh.f32 %v2746_v43 }
0x2fd3   :  { %v7081_v7 = vpop.eup %7080 }
0x2fd4   :  { %v2752_v36 = vadd.f32 1.0, %v7081_v7  ;;  %v7083_v51 = vpop.eup %7082 }
0x2fd6   :  { %7084 = vrcp.f32 %v2752_v36 }
0x2fe0   :  { %v7085_v53 = vpop.eup %7084 }
0x2fe1   :  { %v2756_v54 = vsel %vm612_vm4, %v7085_v53, %v7083_v51 }
0x2fe2   :  { %2759 = vrot.lane.b32.xlu1 %v2756_v54, %s7192_s1  ;;  %v2757_v57 = vmul.f32 %v2756_v54, %v7967_v63 }
0x3054   :  { %v2760_v21 = vpop.permute.xlu1 %2759 }
0x3055   :  { %v2762_v10 = vmul.f32 %v2760_v21, %v2756_v54 }
0x3057   :  { %2764 = vrot.lane.b32.xlu0 %v2762_v10, %s7192_s1 }
0x30c9   :  { %v2765_v58 = vpop.permute.xlu0 %2764 }
0x30ca   :  { %v8056_v12 = vadd.f32 %v2765_v58, %v2757_v57 }
0x30cc   :  { %7086 = vtanh.f32 %v8056_v12 }
0x30d6   :  { %v7087_v59 = vpop.eup %7086 }
0x30d7   :  { %2770 = vrot.lane.b32.xlu1 %v7087_v59, %s7192_s1 }
0x3149   :  { %v2771_v50 = vpop.permute.xlu1 %2770 }
0x314a   :  { %v8060_v60 = vmul.f32 %v2771_v50, %v2756_v54 }
0x314c   :  { %2775 = vrot.lane.b32.xlu0 %v8060_v60, %s7193_s26 }
0x31be   :  { %v2776_v61 = vpop.permute.xlu0 %2775 }
0x31bf   :  { %6128 = vmatmul.mubr.msk.f32.vlgmr.msra.gmra.mrb[24].mxu1 %vm390_vm1, %v2776_v61 }
0x31c0   :  { %6641 = vmatpush3.bf16.msra.mxu1 %v7287_v4  ;;  %6134 = vmatprep.mubr.msk.f32.mxu1 %vm7190_vm2, %v7191_v34 }
0x31c1   :  { %6642 = vmatprep.subr.bf16.mxu1 %v7189_v14 }
0x3292   :  { %v2845_v63 = vpop.f32.mrb[24].mxu1 }
0x3293   :  { %v2846_v62 = vadd.f32 %v8072_v44, %v2845_v63  ;;  %v6129_v1 = vpop.f32.mrb[25].mxu1 }
0x3295   :  { %v2849_v5 = vmul.f32 1.442695, %v2846_v62  ;;  %7088 = vtanh.f32 %v2846_v62 }
0x3297   :  { %7090 = vpow2.f32 %v2849_v5 }
0x329f   :  { %v7089_v27 = vpop.eup %7088 }
0x32a1   :  { %v7091_v2 = vpop.eup %7090 }
0x32a2   :  { %v2852_v19 = vsel %vm1431_vm6, %v7091_v2, %v7089_v27 }
0x32a3   :  { %v2853_v6 = vsel %vm8756_vm15, %v2846_v62, %v2852_v19 }
0x32a4   :  { %5338 = vst.msk [vmem:[%s8741_s14 + $0x20] sm:$0xff] %vm8757_vm10, %v2853_v6  ;;  %v8084_v17 = vadd.f32 %v2853_v6, %v7990_v49 }
0x32a6   :  { %2858 = vperm.xlu0 %6919, %v8084_v17   ;;  %5351 = vst.msk [vmem:[%s8742_s15 + $0x20] sm:$0xff] %vm8758_vm11, %v8084_v17  ;;  %2863 = vperm.xlu1 %6918, %v8084_v17  }
0x32aa   :  { %6920 = vset.pattern.permute.xlu1 %v7187_v3 }
0x3325   :  { %v2864_v23 = vpop.permute.xlu1 %2863  ;;  %v2859_v39 = vpop.permute.xlu0 %2858 }
0x3326   :  { %v2866_v24 = vsub.f32 %v2855_v22, %v2864_v23  ;;  %v2861_v40 = vsub.f32 %v2855_v22, %v2859_v39 }
0x3328   :  { %v2869_v49 = vand.u32 2147483647, %v2866_v24  ;;  %v2885_v46 = vadd.f32 2.0, %v2866_v24  ;;  %v2876_v41 = vadd.f32 2.0, %v2861_v40  ;;  %v2867_v0 = vand.u32 2147483647, %v2861_v40 }
0x332a   :  { %vm2870_vm7 = vcmp.lt.f32.partialorder %v2869_v49, 2.0  ;;  %v2886_v13 = vmul.f32 0.25, %v2885_v46  ;;  %v2877_v48 = vmul.f32 0.25, %v2876_v41  ;;  %vm2868_vm13 = vcmp.lt.f32.partialorder %v2867_v0, 2.0  ;;  %v8157_v41 = vld [vmem:[%s8737_s11] ss:$0 sm:$0xff] }
0x332b   :  { %v2871_v30 = vsel %vm2870_vm7, 1, %v7187_v3 }
0x332c   :  { %v2887_v33 = vmul.f32 4.0, %v2886_v13  ;;  %2872 = vrot.lane.b32.xlu1 %v2871_v30, %s7194_s18  ;;  %v2878_v42 = vmul.f32 4.0, %v2877_v48 }
0x332e   :  { %v2888_v15 = vfloor.f32 %v2887_v33  ;;  %v2879_v35 = vfloor.f32 %v2878_v42 }
0x3330   :  { %v6846_v38 = vtrunc.f32 %v2888_v15  ;;  %v6844_v52 = vtrunc.f32 %v2879_v35  ;;  %v8141_v15 = vld [vmem:[%s8736_s7] ss:$0 sm:$0xff] }
0x3332   :  { %v6847_v29 = vcvt.f32.s32 %v6846_v38  ;;  %v6845_v43 = vcvt.f32.s32 %v6844_v52 }
0x3334   :  { %vm2890_vm8 = vcmp.gt.s32.totalorder %v6847_v29, 0  ;;  %vm2881_vm12 = vcmp.gt.s32.totalorder %v6845_v43, 0 }
0x3335   :  { %v2891_v37 = vsel %vm2890_vm8, %v6847_v29, 0  ;;  %v2882_v7 = vsel %vm2881_vm12, %v6845_v43, 0 }
0x3336   :  { %vm2892_vm9 = vcmp.lt.s32.totalorder %v2891_v37, 3  ;;  %vm2883_vm10 = vcmp.lt.s32.totalorder %v2882_v7, 3 }
0x3337   :  { %v2893_v45 = vsel %vm2892_vm9, %v2891_v37, 3  ;;  %v2884_v51 = vsel %vm2883_vm10, %v2882_v7, 3 }
0x3338   :  { %2895 = vrot.lane.b32.xlu1 %v2893_v45, %s7194_s18  ;;  %v2894_v53 = vmul.u32 4, %v2884_v51 }
0x339e   :  { %v2873_v47 = vpop.permute.xlu1 %2872 }
0x339f   :  { %vm2874_vm14 = vcmp.ne.s32.totalorder %v2873_v47, 0 }
0x33a0   :  { %vm2875_vm15 = vmand %vm2868_vm13, %vm2874_vm14 }
0x33a1   :  { %v2902_v36 = vsel %vm2875_vm15, 1, %v7187_v3 }
0x33a2   :  { %2904 = vperm.xlu1 %6920, %v2902_v36  }
0x33a6   :  { %6921 = vset.pattern.permute.xlu1 %v7188_v8 }
0x33a7   :  { %2916 = vperm.xlu1 %6921, %v2902_v36  }
0x33aa   :  { %v2896_v54 = vpop.permute.xlu1 %2895 }
0x33ab   :  { %v2897_v21 = vadd.s32 %v2896_v54, %v2894_v53  ;;  %6923 = vset.pattern.permute.xlu1 %v7195_v9 }
0x33ad   :  { %2924 = vperm.xlu1 %6923, %v2897_v21   ;;  %2899 = vperm.xlu0 %6919, %v2897_v21  }
0x33b1   :  { %6925 = vset.pattern.permute.xlu1 %v7187_v3  ;;  %6922 = vset.pattern.permute.xlu0 %v7188_v8 }
0x33b2   :  { %2938 = vperm.xlu1 %6925, %v2853_v6   ;;  %2912 = vperm.xlu0 %6922, %v2897_v21  }
0x33b6   :  { %6926 = vset.pattern.permute.xlu1 %v7188_v8  ;;  %6924 = vset.pattern.permute.xlu0 %v7195_v9 }
0x33b7   :  { %2943 = vperm.xlu1 %6926, %v2853_v6   ;;  %2928 = vperm.xlu0 %6924, %v2902_v36   ;;  %v8132_v6 = vld [vmem:[%s8732_s9] ss:$0 sm:$0xff] }
0x33bb   :  { %6927 = vset.pattern.permute.xlu0 %v7187_v3 }
0x3421   :  { %v2905_v10 = vpop.permute.xlu1 %2904 }
0x3422   :  { %vm2906_vm9 = vcmp.eq.s32.totalorder %v2905_v10, 1 }
0x3426   :  { %v2917_v58 = vpop.permute.xlu1 %2916 }
0x3427   :  { %vm2918_vm7 = vcmp.eq.s32.totalorder %v2917_v58, 1 }
0x342c   :  { %v2900_v57 = vpop.permute.xlu0 %2899  ;;  %v2925_v50 = vpop.permute.xlu1 %2924 }
0x342d   :  { %vm2901_vm11 = vcmp.eq.s32.totalorder %v7460_v32, %v2900_v57  ;;  %vm2926_vm14 = vcmp.eq.s32.totalorder %v7460_v32, %v2925_v50 }
0x342e   :  { %vm2907_vm13 = vmand %vm2901_vm11, %vm2906_vm9  ;;  %vm8759_vm11 = vcmp.lt.s32.totalorder %v7460_v32, 2 }
0x342f   :  { %v5432_v62 = vsel %vm2907_vm13, 1.0, %v7191_v34 }
0x3431   :  { %v2913_v59 = vpop.permute.xlu0 %2912  ;;  %v2939_v49 = vpop.permute.xlu1 %2938 }
0x3432   :  { %vm2914_vm8 = vcmp.eq.s32.totalorder %v7460_v32, %v2913_v59  ;;  %v2941_v30 = vmul.f32 %v2939_v49, %v7427_v55 }
0x3433   :  { %vm2919_vm12 = vmand %vm2914_vm8, %vm2918_vm7  ;;  %vm8760_vm7 = vcmask 64512   ;;  %vm8761_vm8 = vcmask 15360  }
0x3434   :  { %v5433_v61 = vsel %vm2919_vm12, 1.0, %v7191_v34 }
0x3435   :  { %v2922_v1 = vadd.f32 %v5433_v61, %v5432_v62 }
0x3436   :  { %v2929_v63 = vpop.permute.xlu0 %2928  ;;  %v2944_v46 = vpop.permute.xlu1 %2943 }
0x3437   :  { %vm2930_vm15 = vcmp.eq.s32.totalorder %v2929_v63, 1  ;;  %v2946_v13 = vmul.f32 %v2944_v46, %v7429_v56 }
0x3438   :  { %vm2931_vm10 = vmand %vm2926_vm14, %vm2930_vm15 }
0x3439   :  { %v5434_v5 = vsel %vm2931_vm10, 1.0, %v7191_v34  ;;  %v2947_v33 = vadd.f32 %v2946_v13, %v2941_v30 }
0x343a   :  { %v2934_v27 = vadd.f32 %v5434_v5, %v2922_v1 }
0x343b   :  { %v2948_v38 = vadd.f32 %v8141_v15, %v2947_v33 }
0x343c   :  { %v2935_v2 = vmin.f32 %v2934_v27, 1.0 }
0x343d   :  { %v2949_v29 = vmax.f32 %v2948_v38, 0.0 }
0x343e   :  { %6135 = vmatmul.mubr.msk.f32.vlgmr.msra.gmra.mrb[26].mxu1 %vm220_vm0, %v2935_v2  ;;  %v3209_v2 = vld [vmem:[%s8743_s2 + $0x28] sm:$0xff] }
0x343f   :  { %6644 = vmatpush3.bf16.msra.mxu1 %v7331_v18  ;;  %6161 = vmatprep.mubr.msk.f32.mxu1 %vm7190_vm2, %v7191_v34 }
0x3440   :  { %6645 = vmatprep.subr.bf16.mxu1 %v7189_v14 }
0x3443   :  { %6647 = vmatpush3.bf16.msra.mxu1 %v7357_v26 }
0x3444   :  { %6648 = vmatprep.subr.bf16.mxu1 %v7189_v14 }
0x3447   :  { %6650 = vmatpush3.bf16.msra.mxu1 %v7362_v28 }
0x3448   :  { %6651 = vmatprep.subr.bf16.mxu1 %v7189_v14 }
0x344b   :  { %6653 = vmatpush3.bf16.msra.mxu1 %v7376_v31 }
0x344c   :  { %6654 = vmatprep.subr.bf16.mxu1 %v7189_v14 }
0x344f   :  { %6656 = vmatpush3.bf16.msra.mxu1 %v7337_v20 }
0x3450   :  { %6657 = vmatprep.subr.bf16.mxu1 %v7189_v14 }
0x3453   :  { %6659 = vmatpush3.bf16.msra.mxu1 %v7353_v25 }
0x3454   :  { %6687 = vmatprep.subr.bf16.mxu1 %v7189_v14 }
0x3511   :  { %v3019_v19 = vpop.f32.mrb[26].mxu1 }
0x3512   :  { %v3020_v22 = vadd.f32 %v8132_v6, %v3019_v19  ;;  %v6136_v23 = vpop.f32.mrb[27].mxu1 }
0x3514   :  { %v3023_v24 = vmax.f32 %v3020_v22, 0.0 }
0x3516   :  { %3025 = vrot.lane.b32.xlu0 %v3023_v24, %s7192_s1 }
0x3588   :  { %v3026_v37 = vpop.permute.xlu0 %3025 }
0x3589   :  { %v3028_v45 = vsel %vm390_vm1, %v2949_v29, %v3026_v37 }
0x358a   :  { %v3029_v39 = vsel %vm405_vm3, %v3028_v45, %v8060_v60 }
0x358b   :  { %6162 = vmatmul.mubr.msk.f32.vlgmr.msra.gmra.mrb[28].mxu1 %vm1250_vm5, %v3029_v39 }
0x358c   :  { %6689 = vmatpush3.bf16.msra.mxu1 %v7666_v11  ;;  %6217 = vmatprep.mubr.msk.f32.mxu1 %vm7190_vm2, %v7191_v34 }
0x358d   :  { %6690 = vmatprep.subr.bf16.mxu1 %v7189_v14 }
0x3590   :  { %6692 = vmatpush3.bf16.msra.mxu1 %v7672_v16 }
0x3591   :  { %6693 = vmatprep.subr.bf16.mxu1 %v7189_v14 }
0x365e   :  { %v3099_v40 = vpop.f32.mrb[28].mxu1 }
0x365f   :  { %v3100_v60 = vadd.f32 %v8157_v41, %v3099_v40  ;;  %v6163_v48 = vpop.f32.mrb[29].mxu1 }
0x3661   :  { %v5437_v42 = vmul.f32 -1.442695, %v3100_v60 }
0x3663   :  { %7092 = vpow2.f32 %v5437_v42 }
0x3664   :  { %7094 = vtanh.f32 %v3100_v60 }
0x366d   :  { %v7093_v35 = vpop.eup %7092 }
0x366e   :  { %v3106_v52 = vadd.f32 1.0, %v7093_v35  ;;  %v7095_v43 = vpop.eup %7094 }
0x3670   :  { %7096 = vrcp.f32 %v3106_v52 }
0x367a   :  { %v7097_v0 = vpop.eup %7096 }
0x367b   :  { %v3110_v47 = vsel %vm612_vm4, %v7097_v0, %v7095_v43 }
0x367c   :  { %3113 = vrot.lane.b32.xlu1 %v3110_v47, %s7192_s1  ;;  %v3111_v51 = vmul.f32 %v3110_v47, %v8056_v12 }
0x36ee   :  { %v3114_v7 = vpop.permute.xlu1 %3113 }
0x36ef   :  { %v3116_v36 = vmul.f32 %v3114_v7, %v3110_v47 }
0x36f1   :  { %3118 = vrot.lane.b32.xlu0 %v3116_v36, %s7192_s1 }
0x3763   :  { %v3119_v53 = vpop.permute.xlu0 %3118 }
0x3764   :  { %v8165_v54 = vadd.f32 %v3119_v53, %v3111_v51 }
0x3766   :  { %7098 = vtanh.f32 %v8165_v54 }
0x3770   :  { %v7099_v21 = vpop.eup %7098 }
0x3771   :  { %3124 = vrot.lane.b32.xlu1 %v7099_v21, %s7192_s1 }
0x37e3   :  { %v3125_v10 = vpop.permute.xlu1 %3124 }
0x37e4   :  { %v8169_v57 = vmul.f32 %v3125_v10, %v3110_v47 }
0x37e6   :  { %3129 = vrot.lane.b32.xlu0 %v8169_v57, %s7193_s26 }
0x3858   :  { %v3130_v58 = vpop.permute.xlu0 %3129 }
0x3859   :  { %6173 = vmatmul.mubr.msk.f32.vlgmr.msra.gmra.mrb[32].mxu0 %vm390_vm1, %v3130_v58 }
0x385a   :  { %6668 = vmatpush3.bf16.msra.mxu0 %v7287_v4  ;;  %6179 = vmatprep.mubr.msk.f32.mxu0 %vm7190_vm2, %v7191_v34 }
0x385b   :  { %6669 = vmatprep.subr.bf16.mxu0 %v7189_v14 }
0x392c   :  { %v3199_v12 = vpop.f32.mrb[32].mxu0 }
0x392d   :  { %v3200_v59 = vadd.f32 %v8072_v44, %v3199_v12  ;;  %v6174_v50 = vpop.f32.mrb[33].mxu0 }
0x392f   :  { %v3203_v61 = vmul.f32 1.442695, %v3200_v59  ;;  %7100 = vtanh.f32 %v3200_v59 }
0x3931   :  { %7102 = vpow2.f32 %v3203_v61 }
0x3939   :  { %v7101_v63 = vpop.eup %7100 }
0x393b   :  { %v7103_v62 = vpop.eup %7102 }
0x393c   :  { %v3206_v1 = vsel %vm1431_vm6, %v7103_v62, %v7101_v63 }
0x393d   :  { %v3207_v5 = vsel %vm8759_vm11, %v3200_v59, %v3206_v1 }
0x393e   :  { %5339 = vst.msk [vmem:[%s8741_s14 + $0x28] sm:$0xff] %vm8760_vm7, %v3207_v5  ;;  %v8188_v27 = vadd.f32 %v3207_v5, %v8084_v17 }
0x3940   :  { %3212 = vperm.xlu0 %6927, %v8188_v27   ;;  %5352 = vst.msk [vmem:[%s8742_s15 + $0x28] sm:$0xff] %vm8761_vm8, %v8188_v27  ;;  %3217 = vperm.xlu1 %6926, %v8188_v27  }
0x3944   :  { %6928 = vset.pattern.permute.xlu1 %v7187_v3 }
0x39bf   :  { %v3218_v19 = vpop.permute.xlu1 %3217  ;;  %v3213_v37 = vpop.permute.xlu0 %3212 }
0x39c0   :  { %v3220_v22 = vsub.f32 %v3209_v2, %v3218_v19  ;;  %v3215_v45 = vsub.f32 %v3209_v2, %v3213_v37 }
0x39c2   :  { %v3223_v17 = vand.u32 2147483647, %v3220_v22  ;;  %v3239_v23 = vadd.f32 2.0, %v3220_v22  ;;  %v3230_v39 = vadd.f32 2.0, %v3215_v45  ;;  %v3221_v52 = vand.u32 2147483647, %v3215_v45 }
0x39c4   :  { %vm3224_vm9 = vcmp.lt.f32.partialorder %v3223_v17, 2.0  ;;  %v3240_v24 = vmul.f32 0.25, %v3239_v23  ;;  %v3231_v40 = vmul.f32 0.25, %v3230_v39  ;;  %vm3222_vm15 = vcmp.lt.f32.partialorder %v3221_v52, 2.0 }
0x39c5   :  { %v3225_v49 = vsel %vm3224_vm9, 1, %v7187_v3 }
0x39c6   :  { %v3241_v46 = vmul.f32 4.0, %v3240_v24  ;;  %3226 = vrot.lane.b32.xlu1 %v3225_v49, %s7194_s18  ;;  %v3232_v60 = vmul.f32 4.0, %v3231_v40 }
0x39c8   :  { %v3242_v13 = vfloor.f32 %v3241_v46  ;;  %v3233_v48 = vfloor.f32 %v3232_v60 }
0x39ca   :  { %v6850_v30 = vtrunc.f32 %v3242_v13  ;;  %v6848_v42 = vtrunc.f32 %v3233_v48 }
0x39cc   :  { %v6851_v33 = vcvt.f32.s32 %v6850_v30  ;;  %v6849_v35 = vcvt.f32.s32 %v6848_v42 }
0x39ce   :  { %vm3244_vm12 = vcmp.gt.s32.totalorder %v6851_v33, 0  ;;  %vm3235_vm14 = vcmp.gt.s32.totalorder %v6849_v35, 0 }
0x39cf   :  { %v3245_v38 = vsel %vm3244_vm12, %v6851_v33, 0  ;;  %v3236_v0 = vsel %vm3235_vm14, %v6849_v35, 0 }
0x39d0   :  { %vm3246_vm13 = vcmp.lt.s32.totalorder %v3245_v38, 3  ;;  %vm3237_vm7 = vcmp.lt.s32.totalorder %v3236_v0, 3 }
0x39d1   :  { %v3247_v29 = vsel %vm3246_vm13, %v3245_v38, 3  ;;  %v3238_v7 = vsel %vm3237_vm7, %v3236_v0, 3 }
0x39d2   :  { %3249 = vrot.lane.b32.xlu1 %v3247_v29, %s7194_s18  ;;  %v3248_v36 = vmul.u32 4, %v3238_v7 }
0x3a38   :  { %v3227_v43 = vpop.permute.xlu1 %3226 }
0x3a39   :  { %vm3228_vm10 = vcmp.ne.s32.totalorder %v3227_v43, 0 }
0x3a3a   :  { %vm3229_vm11 = vmand %vm3222_vm15, %vm3228_vm10 }
0x3a3b   :  { %v3256_v47 = vsel %vm3229_vm11, 1, %v7187_v3 }
0x3a3c   :  { %3258 = vperm.xlu1 %6928, %v3256_v47  }
0x3a40   :  { %6929 = vset.pattern.permute.xlu1 %v7188_v8 }
0x3a41   :  { %3270 = vperm.xlu1 %6929, %v3256_v47  }
0x3a44   :  { %v3250_v51 = vpop.permute.xlu1 %3249 }
0x3a45   :  { %v3251_v53 = vadd.s32 %v3250_v51, %v3248_v36  ;;  %6931 = vset.pattern.permute.xlu1 %v7195_v9 }
0x3a47   :  { %3278 = vperm.xlu1 %6931, %v3251_v53   ;;  %3253 = vperm.xlu0 %6927, %v3251_v53  }
0x3a4b   :  { %6933 = vset.pattern.permute.xlu1 %v7187_v3  ;;  %6930 = vset.pattern.permute.xlu0 %v7188_v8 }
0x3a4c   :  { %3292 = vperm.xlu1 %6933, %v3207_v5   ;;  %3266 = vperm.xlu0 %6930, %v3251_v53  }
0x3a50   :  { %6934 = vset.pattern.permute.xlu1 %v7188_v8  ;;  %6932 = vset.pattern.permute.xlu0 %v7195_v9 }
0x3a51   :  { %3297 = vperm.xlu1 %6934, %v3207_v5   ;;  %3282 = vperm.xlu0 %6932, %v3256_v47  }
0x3a55   :  { %6935 = vset.pattern.permute.xlu0 %v7187_v3 }
0x3abb   :  { %v3259_v21 = vpop.permute.xlu1 %3258 }
0x3abc   :  { %vm3260_vm13 = vcmp.eq.s32.totalorder %v3259_v21, 1 }
0x3ac0   :  { %v3271_v58 = vpop.permute.xlu1 %3270 }
0x3ac1   :  { %vm3272_vm9 = vcmp.eq.s32.totalorder %v3271_v58, 1 }
0x3ac6   :  { %v3254_v10 = vpop.permute.xlu0 %3253  ;;  %v3279_v59 = vpop.permute.xlu1 %3278 }
0x3ac7   :  { %vm3255_vm8 = vcmp.eq.s32.totalorder %v7460_v32, %v3254_v10  ;;  %vm3280_vm10 = vcmp.eq.s32.totalorder %v7460_v32, %v3279_v59 }
0x3ac8   :  { %vm3261_vm15 = vmand %vm3255_vm8, %vm3260_vm13  ;;  %vm8762_vm8 = vcmp.lt.s32.totalorder %v7460_v32, 2 }
0x3ac9   :  { %v5439_v63 = vsel %vm3261_vm15, 1.0, %v7191_v34 }
0x3acb   :  { %v3267_v12 = vpop.permute.xlu0 %3266  ;;  %v3293_v24 = vpop.permute.xlu1 %3292 }
0x3acc   :  { %vm3268_vm12 = vcmp.eq.s32.totalorder %v7460_v32, %v3267_v12  ;;  %v3295_v13 = vmul.f32 %v3293_v24, %v7427_v55 }
0x3acd   :  { %vm3273_vm14 = vmand %vm3268_vm12, %vm3272_vm9  ;;  %vm8763_vm9 = vcmask 64512   ;;  %vm8764_vm12 = vcmask 15360  }
0x3ace   :  { %v5440_v50 = vsel %vm3273_vm14, 1.0, %v7191_v34 }
0x3acf   :  { %v3276_v62 = vadd.f32 %v5440_v50, %v5439_v63 }
0x3ad0   :  { %v3283_v61 = vpop.permute.xlu0 %3282  ;;  %v3298_v49 = vpop.permute.xlu1 %3297 }
0x3ad1   :  { %vm3284_vm11 = vcmp.eq.s32.totalorder %v3283_v61, 1  ;;  %v3300_v46 = vmul.f32 %v3298_v49, %v7429_v56 }
0x3ad2   :  { %vm3285_vm7 = vmand %vm3280_vm10, %vm3284_vm11 }
0x3ad3   :  { %v5441_v1 = vsel %vm3285_vm7, 1.0, %v7191_v34  ;;  %v3301_v30 = vadd.f32 %v3300_v46, %v3295_v13 }
0x3ad4   :  { %v3288_v5 = vadd.f32 %v5441_v1, %v3276_v62 }
0x3ad5   :  { %v3302_v33 = vadd.f32 %v8141_v15, %v3301_v30 }
0x3ad6   :  { %v3289_v2 = vmin.f32 %v3288_v5, 1.0 }
0x3ad7   :  { %v3303_v38 = vmax.f32 %v3302_v33, 0.0 }
0x3ad8   :  { %6180 = vmatmul.mubr.msk.f32.vlgmr.msra.gmra.mrb[34].mxu0 %vm220_vm0, %v3289_v2  ;;  %v3563_v2 = vld [vmem:[%s8743_s2 + $0x30] sm:$0xff] }
0x3ad9   :  { %6671 = vmatpush3.bf16.msra.mxu0 %v7331_v18  ;;  %6206 = vmatprep.mubr.msk.f32.mxu0 %vm7190_vm2, %v7191_v34 }
0x3ada   :  { %6672 = vmatprep.subr.bf16.mxu0 %v7189_v14 }
0x3add   :  { %6674 = vmatpush3.bf16.msra.mxu0 %v7357_v26 }
0x3ade   :  { %6675 = vmatprep.subr.bf16.mxu0 %v7189_v14 }
0x3ae1   :  { %6677 = vmatpush3.bf16.msra.mxu0 %v7362_v28 }
0x3ae2   :  { %6678 = vmatprep.subr.bf16.mxu0 %v7189_v14 }
0x3ae5   :  { %6680 = vmatpush3.bf16.msra.mxu0 %v7376_v31 }
0x3ae6   :  { %6681 = vmatprep.subr.bf16.mxu0 %v7189_v14 }
0x3ae9   :  { %6683 = vmatpush3.bf16.msra.mxu0 %v7337_v20 }
0x3aea   :  { %6684 = vmatprep.subr.bf16.mxu0 %v7189_v14 }
0x3aed   :  { %6686 = vmatpush3.bf16.msra.mxu0 %v7353_v25 }
0x3aee   :  { %6714 = vmatprep.subr.bf16.mxu0 %v7189_v14 }
0x3bab   :  { %v3373_v19 = vpop.f32.mrb[34].mxu0 }
0x3bac   :  { %v3374_v22 = vadd.f32 %v8132_v6, %v3373_v19  ;;  %v6181_v17 = vpop.f32.mrb[35].mxu0 }
0x3bae   :  { %v3377_v23 = vmax.f32 %v3374_v22, 0.0 }
0x3bb0   :  { %3379 = vrot.lane.b32.xlu0 %v3377_v23, %s7192_s1 }
0x3c22   :  { %v3380_v29 = vpop.permute.xlu0 %3379 }
0x3c23   :  { %v3382_v37 = vsel %vm390_vm1, %v3303_v38, %v3380_v29 }
0x3c24   :  { %v3383_v45 = vsel %vm405_vm3, %v3382_v37, %v8169_v57 }
0x3c25   :  { %6207 = vmatmul.mubr.msk.f32.vlgmr.msra.gmra.mrb[36].mxu0 %vm1250_vm5, %v3383_v45 }
0x3c26   :  { %6716 = vmatpush3.bf16.msra.mxu0 %v7666_v11  ;;  %6262 = vmatprep.mubr.msk.f32.mxu0 %vm7190_vm2, %v7191_v34 }
0x3c27   :  { %6717 = vmatprep.subr.bf16.mxu0 %v7189_v14 }
0x3c2a   :  { %6719 = vmatpush3.bf16.msra.mxu0 %v7672_v16 }
0x3c2b   :  { %6720 = vmatprep.subr.bf16.mxu0 %v7189_v14 }
0x3cf8   :  { %v3453_v39 = vpop.f32.mrb[36].mxu0 }
0x3cf9   :  { %v3454_v40 = vadd.f32 %v8157_v41, %v3453_v39  ;;  %v6208_v60 = vpop.f32.mrb[37].mxu0 }
0x3cfb   :  { %v5444_v48 = vmul.f32 -1.442695, %v3454_v40 }
0x3cfd   :  { %7104 = vpow2.f32 %v5444_v48 }
0x3cfe   :  { %7106 = vtanh.f32 %v3454_v40 }
0x3d07   :  { %v7105_v57 = vpop.eup %7104 }
0x3d08   :  { %v3460_v42 = vadd.f32 1.0, %v7105_v57  ;;  %v7107_v35 = vpop.eup %7106 }
0x3d0a   :  { %7108 = vrcp.f32 %v3460_v42 }
0x3d14   :  { %v7109_v52 = vpop.eup %7108 }
0x3d15   :  { %v3464_v43 = vsel %vm612_vm4, %v7109_v52, %v7107_v35 }
0x3d16   :  { %3467 = vrot.lane.b32.xlu1 %v3464_v43, %s7192_s1  ;;  %v3465_v7 = vmul.f32 %v3464_v43, %v8165_v54 }
0x3d88   :  { %v3468_v0 = vpop.permute.xlu1 %3467 }
0x3d89   :  { %v3470_v47 = vmul.f32 %v3468_v0, %v3464_v43 }
0x3d8b   :  { %3472 = vrot.lane.b32.xlu0 %v3470_v47, %s7192_s1 }
0x3dfd   :  { %v3473_v36 = vpop.permute.xlu0 %3472 }
0x3dfe   :  { %v8254_v51 = vadd.f32 %v3473_v36, %v3465_v7 }
0x3e00   :  { %7110 = vtanh.f32 %v8254_v51 }
0x3e0a   :  { %v7111_v53 = vpop.eup %7110 }
0x3e0b   :  { %3478 = vrot.lane.b32.xlu1 %v7111_v53, %s7192_s1 }
0x3e7d   :  { %v3479_v21 = vpop.permute.xlu1 %3478 }
0x3e7e   :  { %v8258_v10 = vmul.f32 %v3479_v21, %v3464_v43 }
0x3e80   :  { %3483 = vrot.lane.b32.xlu0 %v8258_v10, %s7193_s26 }
0x3ef2   :  { %v3484_v58 = vpop.permute.xlu0 %3483 }
0x3ef3   :  { %6218 = vmatmul.mubr.msk.f32.vlgmr.msra.gmra.mrb[30].mxu1 %vm390_vm1, %v3484_v58 }
0x3ef4   :  { %6695 = vmatpush3.bf16.msra.mxu1 %v7287_v4  ;;  %6224 = vmatprep.mubr.msk.f32.mxu1 %vm7190_vm2, %v7191_v34 }
0x3ef5   :  { %6696 = vmatprep.subr.bf16.mxu1 %v7189_v14 }
0x3fc6   :  { %v3553_v54 = vpop.f32.mrb[30].mxu1 }
0x3fc7   :  { %v3554_v12 = vadd.f32 %v8072_v44, %v3553_v54  ;;  %v6219_v59 = vpop.f32.mrb[31].mxu1 }
0x3fc9   :  { %v3557_v50 = vmul.f32 1.442695, %v3554_v12  ;;  %7112 = vtanh.f32 %v3554_v12 }
0x3fcb   :  { %7114 = vpow2.f32 %v3557_v50 }
0x3fd3   :  { %v7113_v61 = vpop.eup %7112 }
0x3fd5   :  { %v7115_v63 = vpop.eup %7114 }
0x3fd6   :  { %v3560_v62 = vsel %vm1431_vm6, %v7115_v63, %v7113_v61 }
0x3fd7   :  { %v3561_v1 = vsel %vm8762_vm8, %v3554_v12, %v3560_v62 }
0x3fd8   :  { %5340 = vst.msk [vmem:[%s8741_s14 + $0x30] sm:$0xff] %vm8763_vm9, %v3561_v1  ;;  %v8277_v5 = vadd.f32 %v3561_v1, %v8188_v27 }
0x3fda   :  { %3566 = vperm.xlu0 %6935, %v8277_v5   ;;  %5353 = vst.msk [vmem:[%s8742_s15 + $0x30] sm:$0xff] %vm8764_vm12, %v8277_v5  ;;  %3571 = vperm.xlu1 %6934, %v8277_v5  }
0x3fde   :  { %6936 = vset.pattern.permute.xlu1 %v7187_v3 }
0x4059   :  { %v3572_v19 = vpop.permute.xlu1 %3571  ;;  %v3567_v29 = vpop.permute.xlu0 %3566 }
0x405a   :  { %v3574_v22 = vsub.f32 %v3563_v2, %v3572_v19  ;;  %v3569_v37 = vsub.f32 %v3563_v2, %v3567_v29 }
0x405c   :  { %v3577_v27 = vand.u32 2147483647, %v3574_v22  ;;  %v3593_v17 = vadd.f32 2.0, %v3574_v22  ;;  %v3584_v45 = vadd.f32 2.0, %v3569_v37  ;;  %v3575_v42 = vand.u32 2147483647, %v3569_v37 }
0x405e   :  { %vm3578_vm13 = vcmp.lt.f32.partialorder %v3577_v27, 2.0  ;;  %v3594_v23 = vmul.f32 0.25, %v3593_v17  ;;  %v3585_v39 = vmul.f32 0.25, %v3584_v45  ;;  %vm3576_vm11 = vcmp.lt.f32.partialorder %v3575_v42, 2.0 }
0x405f   :  { %v3579_v24 = vsel %vm3578_vm13, 1, %v7187_v3 }
0x4060   :  { %v3595_v49 = vmul.f32 4.0, %v3594_v23  ;;  %3580 = vrot.lane.b32.xlu1 %v3579_v24, %s7194_s18  ;;  %v3586_v40 = vmul.f32 4.0, %v3585_v39 }
0x4062   :  { %v3596_v46 = vfloor.f32 %v3595_v49  ;;  %v3587_v60 = vfloor.f32 %v3586_v40 }
0x4064   :  { %v6854_v13 = vtrunc.f32 %v3596_v46  ;;  %v6852_v48 = vtrunc.f32 %v3587_v60 }
0x4066   :  { %v6855_v30 = vcvt.f32.s32 %v6854_v13  ;;  %v6853_v57 = vcvt.f32.s32 %v6852_v48 }
0x4068   :  { %vm3598_vm14 = vcmp.gt.s32.totalorder %v6855_v30, 0  ;;  %vm3589_vm10 = vcmp.gt.s32.totalorder %v6853_v57, 0 }
0x4069   :  { %v3599_v33 = vsel %vm3598_vm14, %v6855_v30, 0  ;;  %v3590_v52 = vsel %vm3589_vm10, %v6853_v57, 0 }
0x406a   :  { %vm3600_vm15 = vcmp.lt.s32.totalorder %v3599_v33, 3  ;;  %vm3591_vm9 = vcmp.lt.s32.totalorder %v3590_v52, 3 }
0x406b   :  { %v3601_v38 = vsel %vm3600_vm15, %v3599_v33, 3  ;;  %v3592_v0 = vsel %vm3591_vm9, %v3590_v52, 3 }
0x406c   :  { %3603 = vrot.lane.b32.xlu1 %v3601_v38, %s7194_s18  ;;  %v3602_v47 = vmul.u32 4, %v3592_v0 }
0x40d2   :  { %v3581_v35 = vpop.permute.xlu1 %3580 }
0x40d3   :  { %vm3582_vm7 = vcmp.ne.s32.totalorder %v3581_v35, 0 }
0x40d4   :  { %vm3583_vm8 = vmand %vm3576_vm11, %vm3582_vm7 }
0x40d5   :  { %v3610_v43 = vsel %vm3583_vm8, 1, %v7187_v3 }
0x40d6   :  { %3612 = vperm.xlu1 %6936, %v3610_v43  }
0x40da   :  { %6937 = vset.pattern.permute.xlu1 %v7188_v8 }
0x40db   :  { %3624 = vperm.xlu1 %6937, %v3610_v43  }
0x40de   :  { %v3604_v7 = vpop.permute.xlu1 %3603 }
0x40df   :  { %v3605_v36 = vadd.s32 %v3604_v7, %v3602_v47  ;;  %6939 = vset.pattern.permute.xlu1 %v7195_v9 }
0x40e1   :  { %3632 = vperm.xlu1 %6939, %v3605_v36   ;;  %3607 = vperm.xlu0 %6935, %v3605_v36  }
0x40e5   :  { %6941 = vset.pattern.permute.xlu1 %v7187_v3  ;;  %6938 = vset.pattern.permute.xlu0 %v7188_v8 }
0x40e6   :  { %3646 = vperm.xlu1 %6941, %v3561_v1   ;;  %3620 = vperm.xlu0 %6938, %v3605_v36  }
0x40ea   :  { %6942 = vset.pattern.permute.xlu1 %v7188_v8  ;;  %6940 = vset.pattern.permute.xlu0 %v7195_v9 }
0x40eb   :  { %3651 = vperm.xlu1 %6942, %v3561_v1   ;;  %3636 = vperm.xlu0 %6940, %v3610_v43  }
0x40ef   :  { %6943 = vset.pattern.permute.xlu0 %v7187_v3 }
0x4155   :  { %v3613_v53 = vpop.permute.xlu1 %3612 }
0x4156   :  { %vm3614_vm15 = vcmp.eq.s32.totalorder %v3613_v53, 1 }
0x415a   :  { %v3625_v58 = vpop.permute.xlu1 %3624 }
0x415b   :  { %vm3626_vm13 = vcmp.eq.s32.totalorder %v3625_v58, 1 }
0x4160   :  { %v3608_v21 = vpop.permute.xlu0 %3607  ;;  %v3633_v12 = vpop.permute.xlu1 %3632 }
0x4161   :  { %vm3609_vm12 = vcmp.eq.s32.totalorder %v7460_v32, %v3608_v21  ;;  %vm3634_vm7 = vcmp.eq.s32.totalorder %v7460_v32, %v3633_v12 }
0x4162   :  { %vm3615_vm11 = vmand %vm3609_vm12, %vm3614_vm15  ;;  %vm8765_vm12 = vcmp.lt.s32.totalorder %v7460_v32, 2 }
0x4163   :  { %v5446_v61 = vsel %vm3615_vm11, 1.0, %v7191_v34 }
0x4165   :  { %v3621_v54 = vpop.permute.xlu0 %3620  ;;  %v3647_v23 = vpop.permute.xlu1 %3646 }
0x4166   :  { %vm3622_vm14 = vcmp.eq.s32.totalorder %v7460_v32, %v3621_v54  ;;  %v3649_v46 = vmul.f32 %v3647_v23, %v7427_v55 }
0x4167   :  { %vm3627_vm10 = vmand %vm3622_vm14, %vm3626_vm13  ;;  %vm8766_vm13 = vcmask 64512   ;;  %vm8767_vm14 = vcmask 15360  }
0x4168   :  { %v5447_v59 = vsel %vm3627_vm10, 1.0, %v7191_v34 }
0x4169   :  { %v3630_v63 = vadd.f32 %v5447_v59, %v5446_v61 }
0x416a   :  { %v3637_v50 = vpop.permute.xlu0 %3636  ;;  %v3652_v24 = vpop.permute.xlu1 %3651 }
0x416b   :  { %vm3638_vm8 = vcmp.eq.s32.totalorder %v3637_v50, 1  ;;  %v3654_v49 = vmul.f32 %v3652_v24, %v7429_v56 }
0x416c   :  { %vm3639_vm9 = vmand %vm3634_vm7, %vm3638_vm8 }
0x416d   :  { %v5448_v62 = vsel %vm3639_vm9, 1.0, %v7191_v34  ;;  %v3655_v13 = vadd.f32 %v3654_v49, %v3649_v46 }
0x416e   :  { %v3642_v1 = vadd.f32 %v5448_v62, %v3630_v63 }
0x416f   :  { %v3656_v30 = vadd.f32 %v8141_v15, %v3655_v13 }
0x4170   :  { %v3643_v2 = vmin.f32 %v3642_v1, 1.0 }
0x4171   :  { %v3657_v33 = vmax.f32 %v3656_v30, 0.0 }
0x4172   :  { %6225 = vmatmul.mubr.msk.f32.vlgmr.msra.gmra.mrb[32].mxu1 %vm220_vm0, %v3643_v2 }
0x4173   :  { %6698 = vmatpush3.bf16.msra.mxu1 %v7331_v18  ;;  %6251 = vmatprep.mubr.msk.f32.mxu1 %vm7190_vm2, %v7191_v34 }
0x4174   :  { %6699 = vmatprep.subr.bf16.mxu1 %v7189_v14 }
0x4177   :  { %6701 = vmatpush3.bf16.msra.mxu1 %v7357_v26 }
0x4178   :  { %6702 = vmatprep.subr.bf16.mxu1 %v7189_v14 }
0x417b   :  { %6704 = vmatpush3.bf16.msra.mxu1 %v7362_v28 }
0x417c   :  { %6705 = vmatprep.subr.bf16.mxu1 %v7189_v14 }
0x417f   :  { %6707 = vmatpush3.bf16.msra.mxu1 %v7376_v31 }
0x4180   :  { %6708 = vmatprep.subr.bf16.mxu1 %v7189_v14 }
0x4183   :  { %6710 = vmatpush3.bf16.msra.mxu1 %v7337_v20 }
0x4184   :  { %6711 = vmatprep.subr.bf16.mxu1 %v7189_v14 }
0x4187   :  { %6713 = vmatpush3.bf16.msra.mxu1 %v7353_v25 }
0x4188   :  { %6741 = vmatprep.subr.bf16.mxu1 %v7189_v14 }
0x4245   :  { %v3727_v19 = vpop.f32.mrb[32].mxu1 }
0x4246   :  { %v3728_v22 = vadd.f32 %v8132_v6, %v3727_v19  ;;  %v6226_v27 = vpop.f32.mrb[33].mxu1 }
0x4248   :  { %v3731_v17 = vmax.f32 %v3728_v22, 0.0 }
0x424a   :  { %3733 = vrot.lane.b32.xlu0 %v3731_v17, %s7192_s1 }
0x42bc   :  { %v3734_v38 = vpop.permute.xlu0 %3733 }
0x42bd   :  { %v3736_v29 = vsel %vm390_vm1, %v3657_v33, %v3734_v38 }
0x42be   :  { %v3737_v37 = vsel %vm405_vm3, %v3736_v29, %v8258_v10 }
0x42bf   :  { %6252 = vmatmul.mubr.msk.f32.vlgmr.msra.gmra.mrb[34].mxu1 %vm1250_vm5, %v3737_v37 }
0x42c0   :  { %6743 = vmatpush3.bf16.msra.mxu1 %v7666_v11  ;;  %6307 = vmatprep.mubr.msk.f32.mxu1 %vm7190_vm2, %v7191_v34 }
0x42c1   :  { %6744 = vmatprep.subr.bf16.mxu1 %v7189_v14 }
0x42c4   :  { %6746 = vmatpush3.bf16.msra.mxu1 %v7672_v16 }
0x42c5   :  { %6747 = vmatprep.subr.bf16.mxu1 %v7189_v14 }
0x4392   :  { %v3807_v45 = vpop.f32.mrb[34].mxu1 }
0x4393   :  { %v3808_v39 = vadd.f32 %v8157_v41, %v3807_v45  ;;  %v6253_v40 = vpop.f32.mrb[35].mxu1 }
0x4395   :  { %v5451_v60 = vmul.f32 -1.442695, %v3808_v39 }
0x4397   :  { %7116 = vpow2.f32 %v5451_v60 }
0x4398   :  { %7118 = vtanh.f32 %v3808_v39 }
0x43a1   :  { %v7117_v10 = vpop.eup %7116 }
0x43a2   :  { %v3814_v48 = vadd.f32 1.0, %v7117_v10  ;;  %v7119_v57 = vpop.eup %7118 }
0x43a4   :  { %7120 = vrcp.f32 %v3814_v48 }
0x43ae   :  { %v7121_v42 = vpop.eup %7120 }
0x43af   :  { %v3818_v35 = vsel %vm612_vm4, %v7121_v42, %v7119_v57 }
0x43b0   :  { %3821 = vrot.lane.b32.xlu1 %v3818_v35, %s7192_s1  ;;  %v3819_v0 = vmul.f32 %v3818_v35, %v8254_v51 }
0x4422   :  { %v3822_v52 = vpop.permute.xlu1 %3821 }
0x4423   :  { %v3824_v43 = vmul.f32 %v3822_v52, %v3818_v35 }
0x4425   :  { %3826 = vrot.lane.b32.xlu0 %v3824_v43, %s7192_s1 }
0x4497   :  { %v3827_v47 = vpop.permute.xlu0 %3826 }
0x4498   :  { %v8343_v7 = vadd.f32 %v3827_v47, %v3819_v0 }
0x449a   :  { %7122 = vtanh.f32 %v8343_v7 }
0x44a4   :  { %v7123_v36 = vpop.eup %7122 }
0x44a5   :  { %3832 = vrot.lane.b32.xlu1 %v7123_v36, %s7192_s1 }
0x4517   :  { %v3833_v53 = vpop.permute.xlu1 %3832 }
0x4518   :  { %v8347_v21 = vmul.f32 %v3833_v53, %v3818_v35 }
0x451a   :  { %3837 = vrot.lane.b32.xlu0 %v8347_v21, %s7193_s26 }
0x458c   :  { %v3838_v58 = vpop.permute.xlu0 %3837 }
0x458d   :  { %6263 = vmatmul.mubr.msk.f32.vlgmr.msra.gmra.mrb[38].mxu0 %vm390_vm1, %v3838_v58 }
0x458e   :  { %6722 = vmatpush3.bf16.msra.mxu0 %v7287_v4  ;;  %6269 = vmatprep.mubr.msk.f32.mxu0 %vm7190_vm2, %v7191_v34 }
0x458f   :  { %6723 = vmatprep.subr.bf16.mxu0 %v7189_v14 }
0x4660   :  { %v3907_v51 = vpop.f32.mrb[38].mxu0 }
0x4661   :  { %v3908_v54 = vadd.f32 %v8072_v44, %v3907_v51  ;;  %v6264_v12 = vpop.f32.mrb[39].mxu0  ;;  %v3917_v44 = vld [vmem:[%s8743_s2 + $0x38] sm:$0xff] }
0x4663   :  { %v3911_v59 = vmul.f32 1.442695, %v3908_v54  ;;  %7124 = vtanh.f32 %v3908_v54 }
0x4665   :  { %7126 = vpow2.f32 %v3911_v59 }
0x466d   :  { %v7125_v50 = vpop.eup %7124 }
0x466f   :  { %v7127_v61 = vpop.eup %7126 }
0x4670   :  { %v3914_v63 = vsel %vm1431_vm6, %v7127_v61, %v7125_v50 }
0x4671   :  { %v3915_v62 = vsel %vm8765_vm12, %v3908_v54, %v3914_v63 }
0x4672   :  { %5341 = vst.msk [vmem:[%s8741_s14 + $0x38] sm:$0xff] %vm8766_vm13, %v3915_v62  ;;  %v8366_v1 = vadd.f32 %v3915_v62, %v8277_v5 }
0x4674   :  { %3920 = vperm.xlu0 %6943, %v8366_v1   ;;  %5354 = vst.msk [vmem:[%s8742_s15 + $0x38] sm:$0xff] %vm8767_vm14, %v8366_v1  ;;  %3925 = vperm.xlu1 %6942, %v8366_v1  }
0x4678   :  { %6944 = vset.pattern.permute.xlu1 %v7187_v3 }
0x46f3   :  { %v3926_v2 = vpop.permute.xlu1 %3925  ;;  %v3921_v33 = vpop.permute.xlu0 %3920 }
0x46f4   :  { %v3928_v19 = vsub.f32 %v3917_v44, %v3926_v2  ;;  %v3923_v38 = vsub.f32 %v3917_v44, %v3921_v33 }
0x46f6   :  { %v3931_v5 = vand.u32 2147483647, %v3928_v19  ;;  %v3947_v22 = vadd.f32 2.0, %v3928_v19  ;;  %v3938_v29 = vadd.f32 2.0, %v3923_v38  ;;  %v3929_v10 = vand.u32 2147483647, %v3923_v38 }
0x46f8   :  { %vm3932_vm15 = vcmp.lt.f32.partialorder %v3931_v5, 2.0  ;;  %v3948_v27 = vmul.f32 0.25, %v3947_v22  ;;  %v3939_v37 = vmul.f32 0.25, %v3938_v29  ;;  %vm3930_vm8 = vcmp.lt.f32.partialorder %v3929_v10, 2.0 }
0x46f9   :  { %v3933_v17 = vsel %vm3932_vm15, 1, %v7187_v3 }
0x46fa   :  { %v3949_v23 = vmul.f32 4.0, %v3948_v27  ;;  %3934 = vrot.lane.b32.xlu1 %v3933_v17, %s7194_s18  ;;  %v3940_v45 = vmul.f32 4.0, %v3939_v37 }
0x46fc   :  { %v3950_v24 = vfloor.f32 %v3949_v23  ;;  %v3941_v39 = vfloor.f32 %v3940_v45 }
0x46fe   :  { %v6858_v49 = vtrunc.f32 %v3950_v24  ;;  %v6856_v40 = vtrunc.f32 %v3941_v39 }
0x4700   :  { %v6859_v46 = vcvt.f32.s32 %v6858_v49  ;;  %v6857_v60 = vcvt.f32.s32 %v6856_v40 }
0x4702   :  { %vm3952_vm10 = vcmp.gt.s32.totalorder %v6859_v46, 0  ;;  %vm3943_vm7 = vcmp.gt.s32.totalorder %v6857_v60, 0 }
0x4703   :  { %v3953_v13 = vsel %vm3952_vm10, %v6859_v46, 0  ;;  %v3944_v57 = vsel %vm3943_vm7, %v6857_v60, 0 }
0x4704   :  { %vm3954_vm11 = vcmp.lt.s32.totalorder %v3953_v13, 3  ;;  %vm3945_vm13 = vcmp.lt.s32.totalorder %v3944_v57, 3 }
0x4705   :  { %v3955_v30 = vsel %vm3954_vm11, %v3953_v13, 3  ;;  %v3946_v35 = vsel %vm3945_vm13, %v3944_v57, 3 }
0x4706   :  { %3957 = vrot.lane.b32.xlu1 %v3955_v30, %s7194_s18  ;;  %v3956_v52 = vmul.u32 4, %v3946_v35 }
0x476c   :  { %v3935_v48 = vpop.permute.xlu1 %3934 }
0x476d   :  { %vm3936_vm9 = vcmp.ne.s32.totalorder %v3935_v48, 0 }
0x476e   :  { %vm3937_vm12 = vmand %vm3930_vm8, %vm3936_vm9 }
0x476f   :  { %v3964_v42 = vsel %vm3937_vm12, 1, %v7187_v3 }
0x4770   :  { %3966 = vperm.xlu1 %6944, %v3964_v42  }
0x4774   :  { %6945 = vset.pattern.permute.xlu1 %v7188_v8 }
0x4775   :  { %3978 = vperm.xlu1 %6945, %v3964_v42  }
0x4778   :  { %v3958_v43 = vpop.permute.xlu1 %3957 }
0x4779   :  { %v3959_v0 = vadd.s32 %v3958_v43, %v3956_v52  ;;  %6947 = vset.pattern.permute.xlu1 %v7195_v9 }
0x477b   :  { %3986 = vperm.xlu1 %6947, %v3959_v0   ;;  %3961 = vperm.xlu0 %6943, %v3959_v0  }
0x477f   :  { %6949 = vset.pattern.permute.xlu1 %v7187_v3  ;;  %6946 = vset.pattern.permute.xlu0 %v7188_v8 }
0x4780   :  { %4000 = vperm.xlu1 %6949, %v3915_v62   ;;  %3974 = vperm.xlu0 %6946, %v3959_v0   ;;  %v8448_v0 = vld [vmem:[%s8739_s13] ss:$0 sm:$0xff] }
0x4784   :  { %6950 = vset.pattern.permute.xlu1 %v7188_v8  ;;  %6948 = vset.pattern.permute.xlu0 %v7195_v9 }
0x4785   :  { %4005 = vperm.xlu1 %6950, %v3915_v62   ;;  %3990 = vperm.xlu0 %6948, %v3964_v42  }
0x4789   :  { %6951 = vset.pattern.permute.xlu0 %v7187_v3 }
0x47ef   :  { %v3967_v47 = vpop.permute.xlu1 %3966 }
0x47f0   :  { %vm3968_vm11 = vcmp.eq.s32.totalorder %v3967_v47, 1 }
0x47f4   :  { %v3979_v53 = vpop.permute.xlu1 %3978 }
0x47f5   :  { %vm3980_vm15 = vcmp.eq.s32.totalorder %v3979_v53, 1 }
0x47fa   :  { %v3962_v36 = vpop.permute.xlu0 %3961  ;;  %v3987_v51 = vpop.permute.xlu1 %3986 }
0x47fb   :  { %vm3963_vm14 = vcmp.eq.s32.totalorder %v7460_v32, %v3962_v36  ;;  %vm3988_vm9 = vcmp.eq.s32.totalorder %v7460_v32, %v3987_v51 }
0x47fc   :  { %vm3969_vm8 = vmand %vm3963_vm14, %vm3968_vm11  ;;  %vm8768_vm14 = vcmp.lt.s32.totalorder %v7460_v32, 2 }
0x47fd   :  { %v5453_v59 = vsel %vm3969_vm8, 1.0, %v7191_v34 }
0x47ff   :  { %v3975_v58 = vpop.permute.xlu0 %3974  ;;  %v4001_v22 = vpop.permute.xlu1 %4000 }
0x4800   :  { %vm3976_vm10 = vcmp.eq.s32.totalorder %v7460_v32, %v3975_v58  ;;  %v4003_v23 = vmul.f32 %v4001_v22, %v7427_v55 }
0x4801   :  { %vm3981_vm7 = vmand %vm3976_vm10, %vm3980_vm15  ;;  %vm8769_vm15 = vcmask 64512   ;;  %vm8770_vm10 = vcmask 15360  }
0x4802   :  { %v5454_v54 = vsel %vm3981_vm7, 1.0, %v7191_v34 }
0x4803   :  { %v3984_v50 = vadd.f32 %v5454_v54, %v5453_v59 }
0x4804   :  { %v3991_v12 = vpop.permute.xlu0 %3990  ;;  %v4006_v27 = vpop.permute.xlu1 %4005 }
0x4805   :  { %vm3992_vm12 = vcmp.eq.s32.totalorder %v3991_v12, 1  ;;  %v4008_v17 = vmul.f32 %v4006_v27, %v7429_v56 }
0x4806   :  { %vm3993_vm13 = vmand %vm3988_vm9, %vm3992_vm12 }
0x4807   :  { %v5455_v61 = vsel %vm3993_vm13, 1.0, %v7191_v34  ;;  %v4009_v24 = vadd.f32 %v4008_v17, %v4003_v23 }
0x4808   :  { %v3996_v63 = vadd.f32 %v5455_v61, %v3984_v50  ;;  %v4271_v50 = vld [vmem:[%s8743_s2 + $0x40] sm:$0xff] }
0x4809   :  { %v4010_v49 = vadd.f32 %v8141_v15, %v4009_v24 }
0x480a   :  { %v3997_v62 = vmin.f32 %v3996_v63, 1.0 }
0x480b   :  { %v4011_v46 = vmax.f32 %v4010_v49, 0.0 }
0x480c   :  { %6270 = vmatmul.mubr.msk.f32.vlgmr.msra.gmra.mrb[40].mxu0 %vm220_vm0, %v3997_v62 }
0x480d   :  { %6725 = vmatpush3.bf16.msra.mxu0 %v7331_v18  ;;  %6296 = vmatprep.mubr.msk.f32.mxu0 %vm7190_vm2, %v7191_v34 }
0x480e   :  { %6726 = vmatprep.subr.bf16.mxu0 %v7189_v14 }
0x4811   :  { %6728 = vmatpush3.bf16.msra.mxu0 %v7357_v26 }
0x4812   :  { %6729 = vmatprep.subr.bf16.mxu0 %v7189_v14 }
0x4815   :  { %6731 = vmatpush3.bf16.msra.mxu0 %v7362_v28 }
0x4816   :  { %6732 = vmatprep.subr.bf16.mxu0 %v7189_v14 }
0x4819   :  { %6734 = vmatpush3.bf16.msra.mxu0 %v7376_v31 }
0x481a   :  { %6735 = vmatprep.subr.bf16.mxu0 %v7189_v14 }
0x481d   :  { %6737 = vmatpush3.bf16.msra.mxu0 %v7337_v20 }
0x481e   :  { %6738 = vmatprep.subr.bf16.mxu0 %v7189_v14 }
0x4821   :  { %6740 = vmatpush3.bf16.msra.mxu0 %v7353_v25 }
0x4822   :  { %6768 = vmatprep.subr.bf16.mxu0 %v7189_v14 }
0x48df   :  { %v4081_v44 = vpop.f32.mrb[40].mxu0 }
0x48e0   :  { %v4082_v2 = vadd.f32 %v8132_v6, %v4081_v44  ;;  %v6271_v19 = vpop.f32.mrb[41].mxu0 }
0x48e2   :  { %v4085_v5 = vmax.f32 %v4082_v2, 0.0 }
0x48e4   :  { %4087 = vrot.lane.b32.xlu0 %v4085_v5, %s7192_s1 }
0x4956   :  { %v4088_v13 = vpop.permute.xlu0 %4087 }
0x4957   :  { %v4090_v30 = vsel %vm390_vm1, %v4011_v46, %v4088_v13 }
0x4958   :  { %v4091_v6 = vsel %vm405_vm3, %v4090_v30, %v8347_v21 }
0x4959   :  { %6297 = vmatmul.mubr.msk.f32.vlgmr.msra.gmra.mrb[42].mxu0 %vm1250_vm5, %v4091_v6 }
0x495a   :  { %6770 = vmatpush3.bf16.msra.mxu0 %v7666_v11  ;;  %6352 = vmatprep.mubr.msk.f32.mxu0 %vm7190_vm2, %v7191_v34 }
0x495b   :  { %6771 = vmatprep.subr.bf16.mxu0 %v7189_v14 }
0x495e   :  { %6773 = vmatpush3.bf16.msra.mxu0 %v7672_v16 }
0x495f   :  { %6774 = vmatprep.subr.bf16.mxu0 %v7189_v14 }
0x4a2c   :  { %v4161_v15 = vpop.f32.mrb[42].mxu0 }
0x4a2d   :  { %v4162_v33 = vadd.f32 %v8157_v41, %v4161_v15  ;;  %v6298_v38 = vpop.f32.mrb[43].mxu0 }
0x4a2f   :  { %v5458_v29 = vmul.f32 -1.442695, %v4162_v33 }
0x4a31   :  { %7128 = vpow2.f32 %v5458_v29 }
0x4a32   :  { %7130 = vtanh.f32 %v4162_v33 }
0x4a3b   :  { %v7129_v21 = vpop.eup %7128 }
0x4a3c   :  { %v4168_v37 = vadd.f32 1.0, %v7129_v21  ;;  %v7131_v45 = vpop.eup %7130 }
0x4a3e   :  { %7132 = vrcp.f32 %v4168_v37 }
0x4a48   :  { %v7133_v39 = vpop.eup %7132 }
0x4a49   :  { %v4172_v40 = vsel %vm612_vm4, %v7133_v39, %v7131_v45 }
0x4a4a   :  { %4175 = vrot.lane.b32.xlu1 %v4172_v40, %s7192_s1  ;;  %v4173_v41 = vmul.f32 %v4172_v40, %v8343_v7 }
0x4abc   :  { %v4176_v60 = vpop.permute.xlu1 %4175 }
0x4abd   :  { %v4178_v10 = vmul.f32 %v4176_v60, %v4172_v40 }
0x4abf   :  { %4180 = vrot.lane.b32.xlu0 %v4178_v10, %s7192_s1 }
0x4b31   :  { %v4181_v48 = vpop.permute.xlu0 %4180 }
0x4b32   :  { %v8432_v57 = vadd.f32 %v4181_v48, %v4173_v41 }
0x4b34   :  { %7134 = vtanh.f32 %v8432_v57 }
0x4b3e   :  { %v7135_v42 = vpop.eup %7134 }
0x4b3f   :  { %4186 = vrot.lane.b32.xlu1 %v7135_v42, %s7192_s1 }
0x4bb1   :  { %v4187_v35 = vpop.permute.xlu1 %4186 }
0x4bb2   :  { %v8436_v52 = vmul.f32 %v4187_v35, %v4172_v40 }
0x4bb4   :  { %4191 = vrot.lane.b32.xlu0 %v8436_v52, %s7193_s26 }
0x4c26   :  { %v4192_v43 = vpop.permute.xlu0 %4191 }
0x4c27   :  { %6308 = vmatmul.mubr.msk.f32.vlgmr.msra.gmra.mrb[36].mxu1 %vm390_vm1, %v4192_v43 }
0x4c28   :  { %6749 = vmatpush3.bf16.msra.mxu1 %v7287_v4  ;;  %6314 = vmatprep.mubr.msk.f32.mxu1 %vm7190_vm2, %v7191_v34 }
0x4c29   :  { %6750 = vmatprep.subr.bf16.mxu1 %v7189_v14 }
0x4cfa   :  { %v4261_v7 = vpop.f32.mrb[36].mxu1 }
0x4cfb   :  { %v4262_v47 = vadd.f32 %v8448_v0, %v4261_v7  ;;  %v6309_v36 = vpop.f32.mrb[37].mxu1 }
0x4cfd   :  { %v4265_v53 = vmul.f32 1.442695, %v4262_v47  ;;  %7136 = vtanh.f32 %v4262_v47 }
0x4cff   :  { %7138 = vpow2.f32 %v4265_v53 }
0x4d07   :  { %v7137_v58 = vpop.eup %7136 }
0x4d09   :  { %v7139_v51 = vpop.eup %7138 }
0x4d0a   :  { %v4268_v54 = vsel %vm1431_vm6, %v7139_v51, %v7137_v58 }
0x4d0b   :  { %v4269_v12 = vsel %vm8768_vm14, %v4262_v47, %v4268_v54 }
0x4d0c   :  { %5342 = vst.msk [vmem:[%s8741_s14 + $0x40] sm:$0xff] %vm8769_vm15, %v4269_v12  ;;  %v8460_v59 = vadd.f32 %v4269_v12, %v8366_v1 }
0x4d0e   :  { %4274 = vperm.xlu0 %6951, %v8460_v59   ;;  %5355 = vst.msk [vmem:[%s8742_s15 + $0x40] sm:$0xff] %vm8770_vm10, %v8460_v59  ;;  %4279 = vperm.xlu1 %6950, %v8460_v59  }
0x4d12   :  { %6952 = vset.pattern.permute.xlu1 %v7187_v3 }
0x4d8d   :  { %v4280_v61 = vpop.permute.xlu1 %4279  ;;  %v4275_v24 = vpop.permute.xlu0 %4274 }
0x4d8e   :  { %v4282_v63 = vsub.f32 %v4271_v50, %v4280_v61  ;;  %v4277_v49 = vsub.f32 %v4271_v50, %v4275_v24 }
0x4d90   :  { %v4285_v1 = vand.u32 2147483647, %v4282_v63  ;;  %v4301_v62 = vadd.f32 2.0, %v4282_v63  ;;  %v4292_v46 = vadd.f32 2.0, %v4277_v49  ;;  %v4283_v38 = vand.u32 2147483647, %v4277_v49 }
0x4d92   :  { %vm4286_vm11 = vcmp.lt.f32.partialorder %v4285_v1, 2.0  ;;  %v4302_v44 = vmul.f32 0.25, %v4301_v62  ;;  %v4293_v13 = vmul.f32 0.25, %v4292_v46  ;;  %vm4284_vm12 = vcmp.lt.f32.partialorder %v4283_v38, 2.0  ;;  %v8533_v46 = vld [vmem:[%s8737_s11] ss:$0 sm:$0xff] }
0x4d93   :  { %v4287_v2 = vsel %vm4286_vm11, 1, %v7187_v3 }
0x4d94   :  { %v4303_v19 = vmul.f32 4.0, %v4302_v44  ;;  %4288 = vrot.lane.b32.xlu1 %v4287_v2, %s7194_s18  ;;  %v4294_v30 = vmul.f32 4.0, %v4293_v13 }
0x4d96   :  { %v4304_v5 = vfloor.f32 %v4303_v19  ;;  %v4295_v6 = vfloor.f32 %v4294_v30 }
0x4d98   :  { %v6862_v22 = vtrunc.f32 %v4304_v5  ;;  %v6860_v15 = vtrunc.f32 %v4295_v6  ;;  %v8517_v5 = vld [vmem:[%s8736_s7] ss:$0 sm:$0xff] }
0x4d9a   :  { %v6863_v27 = vcvt.f32.s32 %v6862_v22  ;;  %v6861_v33 = vcvt.f32.s32 %v6860_v15 }
0x4d9c   :  { %vm4306_vm7 = vcmp.gt.s32.totalorder %v6863_v27, 0  ;;  %vm4297_vm9 = vcmp.gt.s32.totalorder %v6861_v33, 0 }
0x4d9d   :  { %v4307_v17 = vsel %vm4306_vm7, %v6863_v27, 0  ;;  %v4298_v21 = vsel %vm4297_vm9, %v6861_v33, 0 }
0x4d9e   :  { %vm4308_vm8 = vcmp.lt.s32.totalorder %v4307_v17, 3  ;;  %vm4299_vm15 = vcmp.lt.s32.totalorder %v4298_v21, 3 }
0x4d9f   :  { %v4309_v23 = vsel %vm4308_vm8, %v4307_v17, 3  ;;  %v4300_v45 = vsel %vm4299_vm15, %v4298_v21, 3 }
0x4da0   :  { %4311 = vrot.lane.b32.xlu1 %v4309_v23, %s7194_s18  ;;  %v4310_v39 = vmul.u32 4, %v4300_v45 }
0x4e06   :  { %v4289_v29 = vpop.permute.xlu1 %4288 }
0x4e07   :  { %vm4290_vm13 = vcmp.ne.s32.totalorder %v4289_v29, 0 }
0x4e08   :  { %vm4291_vm14 = vmand %vm4284_vm12, %vm4290_vm13 }
0x4e09   :  { %v4318_v37 = vsel %vm4291_vm14, 1, %v7187_v3 }
0x4e0a   :  { %4320 = vperm.xlu1 %6952, %v4318_v37  }
0x4e0e   :  { %6953 = vset.pattern.permute.xlu1 %v7188_v8 }
0x4e0f   :  { %4332 = vperm.xlu1 %6953, %v4318_v37  }
0x4e12   :  { %v4312_v40 = vpop.permute.xlu1 %4311 }
0x4e13   :  { %v4313_v60 = vadd.s32 %v4312_v40, %v4310_v39  ;;  %6955 = vset.pattern.permute.xlu1 %v7195_v9 }
0x4e15   :  { %4340 = vperm.xlu1 %6955, %v4313_v60   ;;  %4315 = vperm.xlu0 %6951, %v4313_v60  }
0x4e19   :  { %6957 = vset.pattern.permute.xlu1 %v7187_v3  ;;  %6954 = vset.pattern.permute.xlu0 %v7188_v8 }
0x4e1a   :  { %4354 = vperm.xlu1 %6957, %v4269_v12   ;;  %4328 = vperm.xlu0 %6954, %v4313_v60  }
0x4e1e   :  { %6958 = vset.pattern.permute.xlu1 %v7188_v8  ;;  %6956 = vset.pattern.permute.xlu0 %v7195_v9 }
0x4e1f   :  { %4359 = vperm.xlu1 %6958, %v4269_v12   ;;  %4344 = vperm.xlu0 %6956, %v4318_v37   ;;  %v8508_v12 = vld [vmem:[%s8732_s9] ss:$0 sm:$0xff] }
0x4e23   :  { %6959 = vset.pattern.permute.xlu0 %v7187_v3 }
0x4e89   :  { %v4321_v10 = vpop.permute.xlu1 %4320 }
0x4e8a   :  { %vm4322_vm8 = vcmp.eq.s32.totalorder %v4321_v10, 1 }
0x4e8e   :  { %v4333_v48 = vpop.permute.xlu1 %4332 }
0x4e8f   :  { %vm4334_vm11 = vcmp.eq.s32.totalorder %v4333_v48, 1 }
0x4e94   :  { %v4316_v41 = vpop.permute.xlu0 %4315  ;;  %v4341_v35 = vpop.permute.xlu1 %4340 }
0x4e95   :  { %vm4317_vm10 = vcmp.eq.s32.totalorder %v7460_v32, %v4316_v41  ;;  %vm4342_vm13 = vcmp.eq.s32.totalorder %v7460_v32, %v4341_v35 }
0x4e96   :  { %vm4323_vm12 = vmand %vm4317_vm10, %vm4322_vm8  ;;  %vm8771_vm10 = vcmp.lt.s32.totalorder %v7460_v32, 2 }
0x4e97   :  { %v5460_v47 = vsel %vm4323_vm12, 1.0, %v7191_v34 }
0x4e99   :  { %v4329_v42 = vpop.permute.xlu0 %4328  ;;  %v4355_v1 = vpop.permute.xlu1 %4354 }
0x4e9a   :  { %vm4330_vm7 = vcmp.eq.s32.totalorder %v7460_v32, %v4329_v42  ;;  %v4357_v2 = vmul.f32 %v4355_v1, %v7427_v55 }
0x4e9b   :  { %vm4335_vm9 = vmand %vm4330_vm7, %vm4334_vm11  ;;  %vm8772_vm11 = vcmask 64512   ;;  %vm8773_vm7 = vcmask 15360  }
0x4e9c   :  { %v5461_v43 = vsel %vm4335_vm9, 1.0, %v7191_v34 }
0x4e9d   :  { %v4338_v36 = vadd.f32 %v5461_v43, %v5460_v47 }
0x4e9e   :  { %v4345_v7 = vpop.permute.xlu0 %4344  ;;  %v4360_v62 = vpop.permute.xlu1 %4359 }
0x4e9f   :  { %vm4346_vm14 = vcmp.eq.s32.totalorder %v4345_v7, 1  ;;  %v4362_v44 = vmul.f32 %v4360_v62, %v7429_v56 }
0x4ea0   :  { %vm4347_vm15 = vmand %vm4342_vm13, %vm4346_vm14 }
0x4ea1   :  { %v5462_v53 = vsel %vm4347_vm15, 1.0, %v7191_v34  ;;  %v4363_v19 = vadd.f32 %v4362_v44, %v4357_v2 }
0x4ea2   :  { %v4350_v58 = vadd.f32 %v5462_v53, %v4338_v36 }
0x4ea3   :  { %v4364_v22 = vadd.f32 %v8517_v5, %v4363_v19 }
0x4ea4   :  { %v4351_v51 = vmin.f32 %v4350_v58, 1.0 }
0x4ea5   :  { %v4365_v27 = vmax.f32 %v4364_v22, 0.0 }
0x4ea6   :  { %6315 = vmatmul.mubr.msk.f32.vlgmr.msra.gmra.mrb[38].mxu1 %vm220_vm0, %v4351_v51  ;;  %v4625_v51 = vld [vmem:[%s8743_s2 + $0x48] sm:$0xff] }
0x4ea7   :  { %6752 = vmatpush3.bf16.msra.mxu1 %v7331_v18  ;;  %6341 = vmatprep.mubr.msk.f32.mxu1 %vm7190_vm2, %v7191_v34 }
0x4ea8   :  { %6753 = vmatprep.subr.bf16.mxu1 %v7189_v14 }
0x4eab   :  { %6755 = vmatpush3.bf16.msra.mxu1 %v7357_v26 }
0x4eac   :  { %6756 = vmatprep.subr.bf16.mxu1 %v7189_v14 }
0x4eaf   :  { %6758 = vmatpush3.bf16.msra.mxu1 %v7362_v28 }
0x4eb0   :  { %6759 = vmatprep.subr.bf16.mxu1 %v7189_v14 }
0x4eb3   :  { %6761 = vmatpush3.bf16.msra.mxu1 %v7376_v31 }
0x4eb4   :  { %6762 = vmatprep.subr.bf16.mxu1 %v7189_v14 }
0x4eb7   :  { %6764 = vmatpush3.bf16.msra.mxu1 %v7337_v20 }
0x4eb8   :  { %6765 = vmatprep.subr.bf16.mxu1 %v7189_v14 }
0x4ebb   :  { %6767 = vmatpush3.bf16.msra.mxu1 %v7353_v25 }
0x4ebc   :  { %6795 = vmatprep.subr.bf16.mxu1 %v7189_v14 }
0x4f79   :  { %v4435_v54 = vpop.f32.mrb[38].mxu1 }
0x4f7a   :  { %v4436_v50 = vadd.f32 %v8508_v12, %v4435_v54  ;;  %v6316_v61 = vpop.f32.mrb[39].mxu1 }
0x4f7c   :  { %v4439_v63 = vmax.f32 %v4436_v50, 0.0 }
0x4f7e   :  { %4441 = vrot.lane.b32.xlu0 %v4439_v63, %s7192_s1 }
0x4ff0   :  { %v4442_v17 = vpop.permute.xlu0 %4441 }
0x4ff1   :  { %v4444_v23 = vsel %vm390_vm1, %v4365_v27, %v4442_v17 }
0x4ff2   :  { %v4445_v24 = vsel %vm405_vm3, %v4444_v23, %v8436_v52 }
0x4ff3   :  { %6342 = vmatmul.mubr.msk.f32.vlgmr.msra.gmra.mrb[40].mxu1 %vm1250_vm5, %v4445_v24 }
0x4ff4   :  { %6797 = vmatpush3.bf16.msra.mxu1 %v7666_v11  ;;  %6397 = vmatprep.mubr.msk.f32.mxu1 %vm7190_vm2, %v7191_v34 }
0x4ff5   :  { %6798 = vmatprep.subr.bf16.mxu1 %v7189_v14 }
0x4ff8   :  { %6800 = vmatpush3.bf16.msra.mxu1 %v7672_v16 }
0x4ff9   :  { %6801 = vmatprep.subr.bf16.mxu1 %v7189_v14 }
0x50c6   :  { %v4515_v49 = vpop.f32.mrb[40].mxu1 }
0x50c7   :  { %v4516_v52 = vadd.f32 %v8533_v46, %v4515_v49  ;;  %v6343_v13 = vpop.f32.mrb[41].mxu1 }
0x50c9   :  { %v5465_v30 = vmul.f32 -1.442695, %v4516_v52 }
0x50cb   :  { %7140 = vpow2.f32 %v5465_v30 }
0x50cc   :  { %7142 = vtanh.f32 %v4516_v52 }
0x50d5   :  { %v7141_v6 = vpop.eup %7140 }
0x50d6   :  { %v4522_v15 = vadd.f32 1.0, %v7141_v6  ;;  %v7143_v33 = vpop.eup %7142 }
0x50d8   :  { %7144 = vrcp.f32 %v4522_v15 }
0x50e2   :  { %v7145_v38 = vpop.eup %7144 }
0x50e3   :  { %v4526_v29 = vsel %vm612_vm4, %v7145_v38, %v7143_v33 }
0x50e4   :  { %4529 = vrot.lane.b32.xlu1 %v4526_v29, %s7192_s1  ;;  %v4527_v45 = vmul.f32 %v4526_v29, %v8432_v57 }
0x5156   :  { %v4530_v21 = vpop.permute.xlu1 %4529 }
0x5157   :  { %v4532_v37 = vmul.f32 %v4530_v21, %v4526_v29 }
0x5159   :  { %4534 = vrot.lane.b32.xlu0 %v4532_v37, %s7192_s1 }
0x51cb   :  { %v4535_v39 = vpop.permute.xlu0 %4534 }
0x51cc   :  { %v8541_v40 = vadd.f32 %v4535_v39, %v4527_v45 }
0x51ce   :  { %7146 = vtanh.f32 %v8541_v40 }
0x51d8   :  { %v7147_v60 = vpop.eup %7146 }
0x51d9   :  { %4540 = vrot.lane.b32.xlu1 %v7147_v60, %s7192_s1 }
0x524b   :  { %v4541_v10 = vpop.permute.xlu1 %4540 }
0x524c   :  { %v8545_v41 = vmul.f32 %v4541_v10, %v4526_v29 }
0x524e   :  { %4545 = vrot.lane.b32.xlu0 %v8545_v41, %s7193_s26 }
0x52c0   :  { %v4546_v48 = vpop.permute.xlu0 %4545 }
0x52c1   :  { %6353 = vmatmul.mubr.msk.f32.vlgmr.msra.gmra.mrb[44].mxu0 %vm390_vm1, %v4546_v48 }
0x52c2   :  { %6776 = vmatpush3.bf16.msra.mxu0 %v7287_v4  ;;  %6359 = vmatprep.mubr.msk.f32.mxu0 %vm7190_vm2, %v7191_v34 }
0x52c3   :  { %6777 = vmatprep.subr.bf16.mxu0 %v7189_v14 }
0x5394   :  { %v4615_v57 = vpop.f32.mrb[44].mxu0 }
0x5395   :  { %v4616_v42 = vadd.f32 %v8448_v0, %v4615_v57  ;;  %v6354_v35 = vpop.f32.mrb[45].mxu0 }
0x5397   :  { %v4619_v43 = vmul.f32 1.442695, %v4616_v42  ;;  %7148 = vtanh.f32 %v4616_v42 }
0x5399   :  { %7150 = vpow2.f32 %v4619_v43 }
0x53a1   :  { %v7149_v7 = vpop.eup %7148 }
0x53a3   :  { %v7151_v47 = vpop.eup %7150 }
0x53a4   :  { %v4622_v36 = vsel %vm1431_vm6, %v7151_v47, %v7149_v7 }
0x53a5   :  { %v4623_v53 = vsel %vm8771_vm10, %v4616_v42, %v4622_v36 }
0x53a6   :  { %5343 = vst.msk [vmem:[%s8741_s14 + $0x48] sm:$0xff] %vm8772_vm11, %v4623_v53  ;;  %v8564_v58 = vadd.f32 %v4623_v53, %v8460_v59 }
0x53a8   :  { %4628 = vperm.xlu0 %6959, %v8564_v58   ;;  %5356 = vst.msk [vmem:[%s8742_s15 + $0x48] sm:$0xff] %vm8773_vm7, %v8564_v58  ;;  %4633 = vperm.xlu1 %6958, %v8564_v58  }
0x53ac   :  { %6960 = vset.pattern.permute.xlu1 %v7187_v3 }
0x5427   :  { %v4634_v54 = vpop.permute.xlu1 %4633  ;;  %v4629_v17 = vpop.permute.xlu0 %4628 }
0x5428   :  { %v4636_v50 = vsub.f32 %v4625_v51, %v4634_v54  ;;  %v4631_v23 = vsub.f32 %v4625_v51, %v4629_v17 }
0x542a   :  { %v4639_v59 = vand.u32 2147483647, %v4636_v50  ;;  %v4655_v61 = vadd.f32 2.0, %v4636_v50  ;;  %v4646_v24 = vadd.f32 2.0, %v4631_v23  ;;  %v4637_v15 = vand.u32 2147483647, %v4631_v23 }
0x542c   :  { %vm4640_vm8 = vcmp.lt.f32.partialorder %v4639_v59, 2.0  ;;  %v4656_v63 = vmul.f32 0.25, %v4655_v61  ;;  %v4647_v49 = vmul.f32 0.25, %v4646_v24  ;;  %vm4638_vm14 = vcmp.lt.f32.partialorder %v4637_v15, 2.0 }
0x542d   :  { %v4641_v1 = vsel %vm4640_vm8, 1, %v7187_v3 }
0x542e   :  { %v4657_v62 = vmul.f32 4.0, %v4656_v63  ;;  %4642 = vrot.lane.b32.xlu1 %v4641_v1, %s7194_s18  ;;  %v4648_v52 = vmul.f32 4.0, %v4647_v49 }
0x5430   :  { %v4658_v44 = vfloor.f32 %v4657_v62  ;;  %v4649_v13 = vfloor.f32 %v4648_v52 }
0x5432   :  { %v6866_v2 = vtrunc.f32 %v4658_v44  ;;  %v6864_v30 = vtrunc.f32 %v4649_v13 }
0x5434   :  { %v6867_v19 = vcvt.f32.s32 %v6866_v2  ;;  %v6865_v6 = vcvt.f32.s32 %v6864_v30 }
0x5436   :  { %vm4660_vm9 = vcmp.gt.s32.totalorder %v6867_v19, 0  ;;  %vm4651_vm13 = vcmp.gt.s32.totalorder %v6865_v6, 0 }
0x5437   :  { %v4661_v22 = vsel %vm4660_vm9, %v6867_v19, 0  ;;  %v4652_v38 = vsel %vm4651_vm13, %v6865_v6, 0 }
0x5438   :  { %vm4662_vm12 = vcmp.lt.s32.totalorder %v4661_v22, 3  ;;  %vm4653_vm11 = vcmp.lt.s32.totalorder %v4652_v38, 3 }
0x5439   :  { %v4663_v27 = vsel %vm4662_vm12, %v4661_v22, 3  ;;  %v4654_v21 = vsel %vm4653_vm11, %v4652_v38, 3 }
0x543a   :  { %4665 = vrot.lane.b32.xlu1 %v4663_v27, %s7194_s18  ;;  %v4664_v37 = vmul.u32 4, %v4654_v21 }
0x54a0   :  { %v4643_v33 = vpop.permute.xlu1 %4642 }
0x54a1   :  { %vm4644_vm15 = vcmp.ne.s32.totalorder %v4643_v33, 0 }
0x54a2   :  { %vm4645_vm10 = vmand %vm4638_vm14, %vm4644_vm15 }
0x54a3   :  { %v4672_v29 = vsel %vm4645_vm10, 1, %v7187_v3 }
0x54a4   :  { %4674 = vperm.xlu1 %6960, %v4672_v29  }
0x54a8   :  { %6961 = vset.pattern.permute.xlu1 %v7188_v8 }
0x54a9   :  { %4686 = vperm.xlu1 %6961, %v4672_v29  }
0x54ac   :  { %v4666_v45 = vpop.permute.xlu1 %4665 }
0x54ad   :  { %v4667_v39 = vadd.s32 %v4666_v45, %v4664_v37  ;;  %6963 = vset.pattern.permute.xlu1 %v7195_v9 }
0x54af   :  { %4694 = vperm.xlu1 %6963, %v4667_v39   ;;  %4669 = vperm.xlu0 %6959, %v4667_v39  }
0x54b3   :  { %6965 = vset.pattern.permute.xlu1 %v7187_v3  ;;  %6962 = vset.pattern.permute.xlu0 %v7188_v8 }
0x54b4   :  { %4708 = vperm.xlu1 %6965, %v4623_v53   ;;  %4682 = vperm.xlu0 %6962, %v4667_v39  }
0x54b8   :  { %6966 = vset.pattern.permute.xlu1 %v7188_v8  ;;  %6964 = vset.pattern.permute.xlu0 %v7195_v9 }
0x54b9   :  { %4713 = vperm.xlu1 %6966, %v4623_v53   ;;  %4698 = vperm.xlu0 %6964, %v4672_v29  }
0x54bd   :  { %6967 = vset.pattern.permute.xlu0 %v7187_v3 }
0x5523   :  { %v4675_v60 = vpop.permute.xlu1 %4674 }
0x5524   :  { %vm4676_vm12 = vcmp.eq.s32.totalorder %v4675_v60, 1 }
0x5528   :  { %v4687_v48 = vpop.permute.xlu1 %4686 }
0x5529   :  { %vm4688_vm8 = vcmp.eq.s32.totalorder %v4687_v48, 1 }
0x552e   :  { %v4670_v10 = vpop.permute.xlu0 %4669  ;;  %v4695_v42 = vpop.permute.xlu1 %4694 }
0x552f   :  { %vm4671_vm7 = vcmp.eq.s32.totalorder %v7460_v32, %v4670_v10  ;;  %vm4696_vm15 = vcmp.eq.s32.totalorder %v7460_v32, %v4695_v42 }
0x5530   :  { %vm4677_vm14 = vmand %vm4671_vm7, %vm4676_vm12  ;;  %vm8774_vm7 = vcmp.lt.s32.totalorder %v7460_v32, 2 }
0x5531   :  { %v5467_v7 = vsel %vm4677_vm14, 1.0, %v7191_v34 }
0x5533   :  { %v4683_v57 = vpop.permute.xlu0 %4682  ;;  %v4709_v63 = vpop.permute.xlu1 %4708 }
0x5534   :  { %vm4684_vm9 = vcmp.eq.s32.totalorder %v7460_v32, %v4683_v57  ;;  %v4711_v44 = vmul.f32 %v4709_v63, %v7427_v55 }
0x5535   :  { %vm4689_vm13 = vmand %vm4684_vm9, %vm4688_vm8  ;;  %vm8775_vm8 = vcmask 64512   ;;  %vm8776_vm9 = vcmask 15360  }
0x5536   :  { %v5468_v35 = vsel %vm4689_vm13, 1.0, %v7191_v34 }
0x5537   :  { %v4692_v47 = vadd.f32 %v5468_v35, %v5467_v7 }
0x5538   :  { %v4699_v43 = vpop.permute.xlu0 %4698  ;;  %v4714_v1 = vpop.permute.xlu1 %4713 }
0x5539   :  { %vm4700_vm10 = vcmp.eq.s32.totalorder %v4699_v43, 1  ;;  %v4716_v62 = vmul.f32 %v4714_v1, %v7429_v56 }
0x553a   :  { %vm4701_vm11 = vmand %vm4696_vm15, %vm4700_vm10 }
0x553b   :  { %v5469_v36 = vsel %vm4701_vm11, 1.0, %v7191_v34  ;;  %v4717_v2 = vadd.f32 %v4716_v62, %v4711_v44 }
0x553c   :  { %v4704_v53 = vadd.f32 %v5469_v36, %v4692_v47  ;;  %v4979_v47 = vld [vmem:[%s8743_s2 + $0x50] sm:$0xff] }
0x553d   :  { %v4718_v19 = vadd.f32 %v8517_v5, %v4717_v2 }
0x553e   :  { %v4705_v51 = vmin.f32 %v4704_v53, 1.0 }
0x553f   :  { %v4719_v22 = vmax.f32 %v4718_v19, 0.0 }
0x5540   :  { %6360 = vmatmul.mubr.msk.f32.vlgmr.msra.gmra.mrb[46].mxu0 %vm220_vm0, %v4705_v51 }
0x5541   :  { %6779 = vmatpush3.bf16.msra.mxu0 %v7331_v18  ;;  %6386 = vmatprep.mubr.msk.f32.mxu0 %vm7190_vm2, %v7191_v34 }
0x5542   :  { %6780 = vmatprep.subr.bf16.mxu0 %v7189_v14 }
0x5545   :  { %6782 = vmatpush3.bf16.msra.mxu0 %v7357_v26 }
0x5546   :  { %6783 = vmatprep.subr.bf16.mxu0 %v7189_v14 }
0x5549   :  { %6785 = vmatpush3.bf16.msra.mxu0 %v7362_v28 }
0x554a   :  { %6786 = vmatprep.subr.bf16.mxu0 %v7189_v14 }
0x554d   :  { %6788 = vmatpush3.bf16.msra.mxu0 %v7376_v31 }
0x554e   :  { %6789 = vmatprep.subr.bf16.mxu0 %v7189_v14 }
0x5551   :  { %6791 = vmatpush3.bf16.msra.mxu0 %v7337_v20 }
0x5552   :  { %6792 = vmatprep.subr.bf16.mxu0 %v7189_v14 }
0x5555   :  { %6794 = vmatpush3.bf16.msra.mxu0 %v7353_v25 }
0x5556   :  { %6822 = vmatprep.subr.bf16.mxu0 %v7189_v14 }
0x5613   :  { %v4789_v54 = vpop.f32.mrb[46].mxu0 }
0x5614   :  { %v4790_v50 = vadd.f32 %v8508_v12, %v4789_v54  ;;  %v6361_v59 = vpop.f32.mrb[47].mxu0 }
0x5616   :  { %v4793_v61 = vmax.f32 %v4790_v50, 0.0 }
0x5618   :  { %4795 = vrot.lane.b32.xlu0 %v4793_v61, %s7192_s1 }
0x568a   :  { %v4796_v27 = vpop.permute.xlu0 %4795 }
0x568b   :  { %v4798_v17 = vsel %vm390_vm1, %v4719_v22, %v4796_v27 }
0x568c   :  { %v4799_v23 = vsel %vm405_vm3, %v4798_v17, %v8545_v41 }
0x568d   :  { %6387 = vmatmul.mubr.msk.f32.vlgmr.msra.gmra.mrb[48].mxu0 %vm1250_vm5, %v4799_v23 }
0x568e   :  { %6824 = vmatpush3.bf16.msra.mxu0 %v7666_v11  ;;  %6442 = vmatprep.mubr.msk.f32.mxu0 %vm7190_vm2, %v7191_v34 }
0x568f   :  { %6825 = vmatprep.subr.bf16.mxu0 %v7189_v14 }
0x5692   :  { %6827 = vmatpush3.bf16.msra.mxu0 %v7672_v16 }
0x5760   :  { %v4869_v24 = vpop.f32.mrb[48].mxu0 }
0x5761   :  { %v4870_v49 = vadd.f32 %v8533_v46, %v4869_v24  ;;  %v6388_v52 = vpop.f32.mrb[49].mxu0 }
0x5763   :  { %v5472_v13 = vmul.f32 -1.442695, %v4870_v49 }
0x5765   :  { %7152 = vpow2.f32 %v5472_v13 }
0x5766   :  { %7154 = vtanh.f32 %v4870_v49 }
0x576f   :  { %v7153_v30 = vpop.eup %7152 }
0x5770   :  { %v4876_v6 = vadd.f32 1.0, %v7153_v30  ;;  %v7155_v41 = vpop.eup %7154 }
0x5772   :  { %7156 = vrcp.f32 %v4876_v6 }
0x577c   :  { %v7157_v15 = vpop.eup %7156 }
0x577d   :  { %v4880_v11 = vsel %vm612_vm4, %v7157_v15, %v7155_v41 }
0x577e   :  { %4883 = vrot.lane.b32.xlu1 %v4880_v11, %s7192_s1  ;;  %v4881_v16 = vmul.f32 %v4880_v11, %v8541_v40 }
0x57f0   :  { %v4884_v33 = vpop.permute.xlu1 %4883 }
0x57f1   :  { %v4886_v38 = vmul.f32 %v4884_v33, %v4880_v11 }
0x57f3   :  { %4888 = vrot.lane.b32.xlu0 %v4886_v38, %s7192_s1 }
0x5865   :  { %v4889_v29 = vpop.permute.xlu0 %4888 }
0x5866   :  { %v8629_v21 = vadd.f32 %v4889_v29, %v4881_v16 }
0x5868   :  { %7158 = vtanh.f32 %v8629_v21 }
0x5872   :  { %v7159_v37 = vpop.eup %7158 }
0x5873   :  { %4894 = vrot.lane.b32.xlu1 %v7159_v37, %s7192_s1 }
0x58e5   :  { %v4895_v45 = vpop.permute.xlu1 %4894 }
0x58e6   :  { %v8633_v39 = vmul.f32 %v4895_v45, %v4880_v11 }
0x58e8   :  { %4899 = vrot.lane.b32.xlu0 %v8633_v39, %s7193_s26 }
0x595a   :  { %v4900_v60 = vpop.permute.xlu0 %4899 }
0x595b   :  { %6398 = vmatmul.mubr.msk.f32.vlgmr.msra.gmra.mrb[42].mxu1 %vm390_vm1, %v4900_v60 }
0x595c   :  { %6803 = vmatpush3.bf16.msra.mxu1 %v7287_v4  ;;  %6404 = vmatprep.mubr.msk.f32.mxu1 %vm7190_vm2, %v7191_v34 }
0x595d   :  { %6804 = vmatprep.subr.bf16.mxu1 %v7189_v14 }
0x5a2e   :  { %v4969_v40 = vpop.f32.mrb[42].mxu1 }
0x5a2f   :  { %v4970_v10 = vadd.f32 %v8448_v0, %v4969_v40  ;;  %v6399_v48 = vpop.f32.mrb[43].mxu1 }
0x5a31   :  { %v4973_v57 = vmul.f32 1.442695, %v4970_v10  ;;  %7160 = vtanh.f32 %v4970_v10 }
0x5a33   :  { %7162 = vpow2.f32 %v4973_v57 }
0x5a3b   :  { %v7161_v42 = vpop.eup %7160 }
0x5a3d   :  { %v7163_v35 = vpop.eup %7162 }
0x5a3e   :  { %v4976_v43 = vsel %vm1431_vm6, %v7163_v35, %v7161_v42 }
0x5a3f   :  { %v4977_v4 = vsel %vm8774_vm7, %v4970_v10, %v4976_v43 }
0x5a40   :  { %5344 = vst.msk [vmem:[%s8741_s14 + $0x50] sm:$0xff] %vm8775_vm8, %v4977_v4  ;;  %v8652_v7 = vadd.f32 %v4977_v4, %v8564_v58 }
0x5a42   :  { %4982 = vperm.xlu0 %6967, %v8652_v7   ;;  %5357 = vst.msk [vmem:[%s8742_s15 + $0x50] sm:$0xff] %vm8776_vm9, %v8652_v7  ;;  %4987 = vperm.xlu1 %6966, %v8652_v7  }
0x5a46   :  { %6968 = vset.pattern.permute.xlu1 %v7187_v3 }
0x5ac1   :  { %v4988_v36 = vpop.permute.xlu1 %4987  ;;  %v4983_v2 = vpop.permute.xlu0 %4982 }
0x5ac2   :  { %v4990_v53 = vsub.f32 %v4979_v47, %v4988_v36  ;;  %v4985_v19 = vsub.f32 %v4979_v47, %v4983_v2 }
0x5ac4   :  { %v4993_v58 = vand.u32 2147483647, %v4990_v53  ;;  %v5009_v51 = vadd.f32 2.0, %v4990_v53  ;;  %v5000_v22 = vadd.f32 2.0, %v4985_v19  ;;  %v4991_v52 = vand.u32 2147483647, %v4985_v19 }
0x5ac6   :  { %vm4994_vm12 = vcmp.lt.f32.partialorder %v4993_v58, 2.0  ;;  %v5010_v54 = vmul.f32 0.25, %v5009_v51  ;;  %v5001_v27 = vmul.f32 0.25, %v5000_v22  ;;  %vm4992_vm10 = vcmp.lt.f32.partialorder %v4991_v52, 2.0 }
0x5ac7   :  { %v4995_v50 = vsel %vm4994_vm12, 1, %v7187_v3 }
0x5ac8   :  { %v5011_v59 = vmul.f32 4.0, %v5010_v54  ;;  %4996 = vrot.lane.b32.xlu1 %v4995_v50, %s7194_s18  ;;  %v5002_v17 = vmul.f32 4.0, %v5001_v27 }
0x5aca   :  { %v5012_v61 = vfloor.f32 %v5011_v59  ;;  %v5003_v23 = vfloor.f32 %v5002_v17 }
0x5acc   :  { %v6870_v63 = vtrunc.f32 %v5012_v61  ;;  %v6868_v24 = vtrunc.f32 %v5003_v23 }
0x5ace   :  { %v6871_v1 = vcvt.f32.s32 %v6870_v63  ;;  %v6869_v49 = vcvt.f32.s32 %v6868_v24 }
0x5ad0   :  { %vm5014_vm13 = vcmp.gt.s32.totalorder %v6871_v1, 0  ;;  %vm5005_vm15 = vcmp.gt.s32.totalorder %v6869_v49, 0 }
0x5ad1   :  { %v5015_v62 = vsel %vm5014_vm13, %v6871_v1, 0  ;;  %v5006_v30 = vsel %vm5005_vm15, %v6869_v49, 0 }
0x5ad2   :  { %vm5016_vm14 = vcmp.lt.s32.totalorder %v5015_v62, 3  ;;  %vm5007_vm8 = vcmp.lt.s32.totalorder %v5006_v30, 3 }
0x5ad3   :  { %v5017_v44 = vsel %vm5016_vm14, %v5015_v62, 3  ;;  %v5008_v41 = vsel %vm5007_vm8, %v5006_v30, 3 }
0x5ad4   :  { %5019 = vrot.lane.b32.xlu1 %v5017_v44, %s7194_s18  ;;  %v5018_v15 = vmul.u32 4, %v5008_v41 }
0x5b3a   :  { %v4997_v13 = vpop.permute.xlu1 %4996 }
0x5b3b   :  { %vm4998_vm11 = vcmp.ne.s32.totalorder %v4997_v13, 0 }
0x5b3c   :  { %vm4999_vm7 = vmand %vm4992_vm10, %vm4998_vm11 }
0x5b3d   :  { %v5026_v6 = vsel %vm4999_vm7, 1, %v7187_v3 }
0x5b3e   :  { %5028 = vperm.xlu1 %6968, %v5026_v6  }
0x5b42   :  { %6969 = vset.pattern.permute.xlu1 %v7188_v8 }
0x5b43   :  { %5040 = vperm.xlu1 %6969, %v5026_v6  }
0x5b46   :  { %v5020_v11 = vpop.permute.xlu1 %5019 }
0x5b47   :  { %v5021_v33 = vadd.s32 %v5020_v11, %v5018_v15  ;;  %6971 = vset.pattern.permute.xlu1 %v7195_v9 }
0x5b49   :  { %5048 = vperm.xlu1 %6971, %v5021_v33   ;;  %5023 = vperm.xlu0 %6967, %v5021_v33  }
0x5b4d   :  { %6973 = vset.pattern.permute.xlu1 %v7187_v3  ;;  %6970 = vset.pattern.permute.xlu0 %v7188_v8 }
0x5b4e   :  { %5062 = vperm.xlu1 %6973, %v4977_v4   ;;  %5036 = vperm.xlu0 %6970, %v5021_v33  }
0x5b52   :  { %6974 = vset.pattern.permute.xlu1 %v7188_v8  ;;  %6972 = vset.pattern.permute.xlu0 %v7195_v9 }
0x5b53   :  { %5067 = vperm.xlu1 %6974, %v4977_v4   ;;  %5052 = vperm.xlu0 %6972, %v5026_v6  }
0x5b57   :  { %6975 = vset.pattern.permute.xlu0 %v7188_v8 }
0x5bbd   :  { %v5029_v38 = vpop.permute.xlu1 %5028 }
0x5bbe   :  { %vm5030_vm14 = vcmp.eq.s32.totalorder %v5029_v38, 1 }
0x5bc2   :  { %v5041_v29 = vpop.permute.xlu1 %5040 }
0x5bc3   :  { %vm5042_vm12 = vcmp.eq.s32.totalorder %v5041_v29, 1 }
0x5bc8   :  { %v5024_v16 = vpop.permute.xlu0 %5023  ;;  %v5049_v3 = vpop.permute.xlu1 %5048 }
0x5bc9   :  { %vm5025_vm9 = vcmp.eq.s32.totalorder %v7460_v32, %v5024_v16  ;;  %vm5050_vm11 = vcmp.eq.s32.totalorder %v7460_v32, %v5049_v3 }
0x5bca   :  { %vm5031_vm10 = vmand %vm5025_vm9, %vm5030_vm14 }
0x5bcb   :  { %v5474_v60 = vsel %vm5031_vm10, 1.0, %v7191_v34 }
0x5bcd   :  { %v5037_v37 = vpop.permute.xlu0 %5036 }
0x5bce   :  { %vm5038_vm13 = vcmp.eq.s32.totalorder %v7460_v32, %v5037_v37 }
0x5bcf   :  { %vm5043_vm15 = vmand %vm5038_vm13, %vm5042_vm12 }
0x5bd0   :  { %v5475_v45 = vsel %vm5043_vm15, 1.0, %v7191_v34 }
0x5bd1   :  { %v5046_v8 = vadd.f32 %v5475_v45, %v5474_v60 }
0x5bd2   :  { %v5053_v9 = vpop.permute.xlu0 %5052 }
0x5bd3   :  { %vm5054_vm7 = vcmp.eq.s32.totalorder %v5053_v9, 1 }
0x5bd4   :  { %vm5055_vm8 = vmand %vm5050_vm11, %vm5054_vm7 }
0x5bd5   :  { %v5476_v40 = vsel %vm5055_vm8, 1.0, %v7191_v34 }
0x5bd6   :  { %v5058_v10 = vadd.f32 %v5476_v40, %v5046_v8 }
0x5bd8   :  { %v5059_v48 = vmin.f32 %v5058_v10, 1.0 }
0x5bda   :  { %6405 = vmatmul.mubr.msk.f32.vlgmr.msra.gmra.mrb[44].mxu1 %vm220_vm0, %v5059_v48  ;;  %vm8777_vm0 = vcmp.lt.s32.totalorder %v7460_v32, 2 }
0x5bdb   :  { %6806 = vmatpush3.bf16.msra.mxu1 %v7331_v18  ;;  %6431 = vmatprep.mubr.msk.f32.mxu1 %vm7190_vm2, %v7191_v34  ;;  %vm8778_vm2 = vcmask 64512  }
0x5bdc   :  { %6807 = vmatprep.subr.bf16.mxu1 %v7189_v14 }
0x5bdf   :  { %6809 = vmatpush3.bf16.msra.mxu1 %v7357_v26 }
0x5be0   :  { %6810 = vmatprep.subr.bf16.mxu1 %v7189_v14 }
0x5be3   :  { %6812 = vmatpush3.bf16.msra.mxu1 %v7362_v28  ;;  %v5063_v28 = vpop.permute.xlu1 %5062 }
0x5be4   :  { %6813 = vmatprep.subr.bf16.mxu1 %v7189_v14 }
0x5be7   :  { %6815 = vmatpush3.bf16.msra.mxu1 %v7376_v31  ;;  %v5068_v42 = vpop.permute.xlu1 %5067  ;;  %v5065_v31 = vmul.f32 %v5063_v28, %v7427_v55 }
0x5be8   :  { %6816 = vmatprep.subr.bf16.mxu1 %v7189_v14  ;;  %v5070_v35 = vmul.f32 %v5068_v42, %v7429_v56 }
0x5bea   :  { %v5071_v43 = vadd.f32 %v5070_v35, %v5065_v31 }
0x5beb   :  { %6818 = vmatpush3.bf16.msra.mxu1 %v7337_v20 }
0x5bec   :  { %6819 = vmatprep.subr.bf16.mxu1 %v7189_v14  ;;  %v5072_v20 = vadd.f32 %v8517_v5, %v5071_v43 }
0x5bee   :  { %v5073_v4 = vmax.f32 %v5072_v20, 0.0 }
0x5bef   :  { %6821 = vmatpush3.bf16.msra.mxu1 %v7353_v25 }
0x5cad   :  { %v5143_v18 = vpop.f32.mrb[44].mxu1 }
0x5cae   :  { %v5144_v34 = vadd.f32 %v8508_v12, %v5143_v18  ;;  %v6406_v26 = vpop.f32.mrb[45].mxu1 }
0x5cb0   :  { %v5147_v57 = vmax.f32 %v5144_v34, 0.0 }
0x5cb2   :  { %5149 = vrot.lane.b32.xlu0 %v5147_v57, %s7192_s1 }
0x5d24   :  { %v5150_v14 = vpop.permute.xlu0 %5149 }
0x5d25   :  { %v5152_v25 = vsel %vm390_vm1, %v5073_v4, %v5150_v14 }
0x5d26   :  { %v5153_v12 = vsel %vm405_vm3, %v5152_v25, %v8633_v39 }
0x5d27   :  { %6432 = vmatmul.mubr.msk.f32.vlgmr.msra.gmra.mrb[46].mxu1 %vm1250_vm5, %v5153_v12 }
0x5dfa   :  { %v5223_v47 = vpop.f32.mrb[46].mxu1 }
0x5dfb   :  { %v5224_v36 = vadd.f32 %v8533_v46, %v5223_v47  ;;  %v6433_v53 = vpop.f32.mrb[47].mxu1 }
0x5dfd   :  { %v5479_v58 = vmul.f32 -1.442695, %v5224_v36 }
0x5dff   :  { %7164 = vpow2.f32 %v5479_v58 }
0x5e00   :  { %7166 = vtanh.f32 %v5224_v36 }
0x5e09   :  { %v7165_v56 = vpop.eup %7164 }
0x5e0a   :  { %v5230_v55 = vadd.f32 1.0, %v7165_v56  ;;  %v7167_v5 = vpop.eup %7166 }
0x5e0c   :  { %7168 = vrcp.f32 %v5230_v55 }
0x5e16   :  { %v7169_v51 = vpop.eup %7168 }
0x5e17   :  { %v5234_v54 = vsel %vm612_vm4, %v7169_v51, %v7167_v5 }
0x5e18   :  { %5237 = vrot.lane.b32.xlu1 %v5234_v54, %s7192_s1  ;;  %v5235_v46 = vmul.f32 %v5234_v54, %v8629_v21 }
0x5e8a   :  { %v5238_v39 = vpop.permute.xlu1 %5237 }
0x5e8b   :  { %v5240_v50 = vmul.f32 %v5238_v39, %v5234_v54 }
0x5e8d   :  { %5242 = vrot.lane.b32.xlu0 %v5240_v50, %s7192_s1 }
0x5eff   :  { %v5243_v59 = vpop.permute.xlu0 %5242 }
0x5f00   :  { %v5245_v61 = vadd.f32 %v5243_v59, %v5235_v46 }
0x5f02   :  { %7170 = vtanh.f32 %v5245_v61 }
0x5f0c   :  { %v7171_v63 = vpop.eup %7170 }
0x5f0d   :  { %5248 = vrot.lane.b32.xlu1 %v7171_v63, %s7192_s1 }
0x5f7f   :  { %v5249_v1 = vpop.permute.xlu1 %5248 }
0x5f80   :  { %v5251_v62 = vmul.f32 %v5249_v1, %v5234_v54 }
0x5f82   :  { %5253 = vrot.lane.b32.xlu0 %v5251_v62, %s7193_s26 }
0x5ff4   :  { %v5254_v44 = vpop.permute.xlu0 %5253 }
0x5ff5   :  { %6443 = vmatmul.mubr.msk.f32.vlgmr.msra.gmra.mrb[50].mxu0 %vm390_vm1, %v5254_v44  ;;  %vm8779_vm1 = vcmask 15360  }
0x60c8   :  { %v5323_v2 = vpop.f32.mrb[50].mxu0 }
0x60c9   :  { %v5324_v19 = vadd.f32 %v8448_v0, %v5323_v2  ;;  %v6444_v22 = vpop.f32.mrb[51].mxu0 }
0x60cb   :  { %v5327_v27 = vmul.f32 1.442695, %v5324_v19  ;;  %7172 = vtanh.f32 %v5324_v19 }
0x60cd   :  { %7174 = vpow2.f32 %v5327_v27 }
0x60d5   :  { %v7173_v21 = vpop.eup %7172 }
0x60d7   :  { %v7175_v17 = vpop.eup %7174 }
0x60d8   :  { %v5330_v23 = vsel %vm1431_vm6, %v7175_v17, %v7173_v21 }
0x60d9   :  { %v5331_v24 = vsel %vm8777_vm0, %v5324_v19, %v5330_v23 }
0x60da   :  { %v5332_v49 = vadd.f32 %v5331_v24, %v8652_v7  ;;  %5345 = vst.msk [vmem:[%s8741_s14 + $0x58] sm:$0xff] %vm8778_vm2, %v5331_v24 }
0x60dc   :  { %5358 = vst.msk [vmem:[%s8742_s15 + $0x58] sm:$0xff] %vm8779_vm1, %v5332_v49 }

</bundles_post_ra>
